<compile_context>
chip_gen: v5e
topology: v5e:2x2
jax: 0.10.0
libtpu: 0.0.40
codegen_flags: <defaults>
</compile_context>

<pallas_src>
import numpy as np
import jax
import jax.numpy as jnp
from jax.experimental import pallas as pl
from jax.experimental.pallas import tpu as pltpu

BN_EPS = 1e-5
LANE = 128


def _ceil_to(x, m):
    return (x + m - 1) // m * m


# --------------------------- static (numpy) helpers --------------------------

def _tap_offsets(W, k, pad):
    """Lane offset (di*W + dj) read by each tap of a kxk 'same' conv."""
    return [(kh - pad) * W + (kw - pad) for kh in range(k) for kw in range(k)]


def _tap_masks(B, H, W, k, pad, s_pad):
    """mask[t, dst]=1 iff tap t reads an in-bounds source pixel for destination dst."""
    T = k * k
    m = np.zeros((T, s_pad), np.float32)
    for kh in range(k):
        for kw in range(k):
            t = kh * k + kw
            di, dj = kh - pad, kw - pad
            for b in range(B):
                for i in range(H):
                    if not (0 <= i + di < H):
                        continue
                    for j in range(W):
                        if not (0 <= j + dj < W):
                            continue
                        m[t, b * H * W + i * W + j] = 1.0
    return m


def _interp_mat_np(n_in, n_out):
    """1-D bilinear interpolation matrix with align_corners=True: (n_out, n_in)."""
    if n_out == 1:
        m = np.zeros((1, n_in), np.float32)
        m[0, 0] = 1.0
        return m
    coords = np.arange(n_out) * (n_in - 1) / (n_out - 1)
    lo = np.clip(np.floor(coords).astype(np.int64), 0, max(n_in - 2, 0))
    frac = (coords - lo).astype(np.float32)
    m = np.zeros((n_out, n_in), np.float32)
    m[np.arange(n_out), lo] += 1.0 - frac
    m[np.arange(n_out), np.minimum(lo + 1, n_in - 1)] += frac
    return m


def _interp_matrix(B, Hf, Wf, H, W, sf_pad, s_pad):
    """att (M, sf_pad) @ P -> bilinear(align_corners) upsample to (M, s_pad)."""
    Mh = _interp_mat_np(Hf, H)                       # (H, Hf)
    Mw = _interp_mat_np(Wf, W)                       # (W, Wf)
    blk = np.kron(Mh, Mw).astype(np.float32)         # (H*W, Hf*Wf)
    P = np.zeros((sf_pad, s_pad), np.float32)
    for b in range(B):
        P[b * Hf * Wf:(b + 1) * Hf * Wf, b * H * W:(b + 1) * H * W] = blk.T
    return P


def _pool_mat(B, H, W, AH, AW, s_pad, sf_pad):
    """x (C, s_pad) @ P == adaptive_avg_pool2d(x, (AH, AW)) flattened (low-rank half)."""
    P = np.zeros((s_pad, sf_pad), np.float32)
    sh, sw = H // AH, W // AW
    inv = 1.0 / (sh * sw)
    for b in range(B):
        for i in range(H):
            for j in range(W):
                P[b * H * W + i * W + j, b * AH * AW + (i // sh) * AW + (j // sw)] = inv
    return P


def _up_mat(B, H, W, AH, AW, sf_pad, s_pad):
    """pooled (C, sf_pad) @ U == nearest-upsample back to (C, s_pad) (low-rank half)."""
    U = np.zeros((sf_pad, s_pad), np.float32)
    for b in range(B):
        for i in range(H):
            pi = (i * AH) // H
            for j in range(W):
                pj = (j * AW) // W
                U[b * AH * AW + pi * AW + pj, b * H * W + i * W + j] = 1.0
    return U


def _attention_mask(B, oh, ow, sf_pad):
    """AttentionMap 24x24 border mask nearest-resized to (oh, ow), flattened & padded."""
    m = np.zeros((24, 24), np.float32)
    m[2:-2, 2:-2] = 1.0
    ih = (np.arange(oh) * 24) // oh
    iw = (np.arange(ow) * 24) // ow
    mm = m[ih][:, iw].reshape(-1)
    out = np.zeros((1, sf_pad), np.float32)
    out[0, :B * oh * ow] = np.tile(mm, B)
    return out


def _batch_selector(B, n, s_pad):
    s = np.zeros((s_pad, B), np.float32)
    for b in range(B):
        s[b * n:(b + 1) * n, b] = 1.0
    return s


def _stage_perm(num_stages, M, Nf):
    """kernel stage-major channel index -> PyTorch group-major channel index."""
    perm = np.zeros(num_stages * M * Nf, np.int64)
    for st in range(num_stages):
        for m in range(M):
            for n in range(Nf):
                perm[st * M * Nf + m * Nf + n] = m * num_stages * Nf + st * Nf + n
    return perm


# ----------------------------- weight preparation ----------------------------

def _fused_plain_weight(w):
    """(Cout, Cin, k, k) conv weight -> (Cout, k*k*Cin), tap-major columns."""
    co, ci, k, _ = w.shape
    return np.transpose(w, (0, 2, 3, 1)).reshape(co, k * k * ci)


def _fused_grouped_weight(w, M, num_stages, Nf):
    """Grouped conv weight -> (Cout, T * num_stages*M*Nf) dense block-diagonal weight
    whose input-channel axis uses the kernel's stage-major concat layout."""
    w = np.asarray(w, np.float32)
    cout, cin_g, k, _ = w.shape
    T = k * k
    cin_full = num_stages * M * Nf
    out = np.zeros((cout, T, cin_full), np.float32)
    for co in range(cout):
        m = co // Nf
        for st in range(num_stages):
            for n in range(Nf):
                out[co, :, st * M * Nf + m * Nf + n] = w[co, st * Nf + n].reshape(T)
    return out.reshape(cout, T * cin_full)


def _bn_affine(bn, perm=None):
    gamma, beta, mean, var = [np.asarray(v, np.float32) for v in bn]
    scale = gamma / np.sqrt(var + BN_EPS)
    shift = beta - mean * scale
    if perm is not None:
        scale, shift = scale[perm], shift[perm]
    return scale, shift


def fold_bn_into_conv(w, b, bn):
    gamma, beta, mean, var = bn
    scale = gamma / jnp.sqrt(var + BN_EPS)
    return w * scale[:, None, None, None], (b - mean) * scale + beta


def _pack_row_blocks(blocks, dtype):
    """Pack 2-D arrays as 8-aligned row blocks of a single slab.  Returns (slab, offsets)."""
    width = max(int(b.shape[1]) for b in blocks)
    offs, r = [], 0
    for b in blocks:
        offs.append(r)
        r += _ceil_to(int(b.shape[0]), 8)
    slab = np.zeros((max(r, 8), width), np.float32)
    for off, b in zip(offs, blocks):
        slab[off:off + b.shape[0], :b.shape[1]] = b
    return jnp.asarray(slab, dtype=dtype), offs


# -------------------------------- preparation ---------------------------------

def prepare_mat(params, M, feat_shape, final_shape):
    """One-time (outside jit) packing of all weights and static operators."""
    B, Nf, H, W = feat_shape
    _, Cf, Hf, Wf = final_shape
    MN = M * Nf
    S = _ceil_to(B * H * W, LANE)
    Sf = _ceil_to(B * Hf * Wf, LANE)
    mid = int(params['pl_w1'].shape[0])
    nc = int(params['ens_w2'].shape[0])

    g = lambda k: np.asarray(params[k], np.float32)

    # static spatial pieces (elementwise masks, f32)
    mask_blocks = [_tap_masks(B, H, W, 3, 1, S),
                   _tap_masks(B, H, W, 5, 2, S),
                   _tap_masks(B, Hf, Wf, 3, 1, Sf),
                   _attention_mask(B, Hf, Wf, Sf)]
    masks, moffs = _pack_row_blocks(mask_blocks, jnp.float32)
    mask_rows = dict(zip(['m3', 'm5', 'm3a', 'border'], moffs))

    # static matmul operators (bf16)
    do_sub = H > Hf
    ops_blocks = [_interp_matrix(B, Hf, Wf, H, W, Sf, S)]
    ops_names = ['interp']
    if do_sub:
        ops_blocks += [_pool_mat(B, H, W, Hf, Wf, S, Sf),
                       _up_mat(B, H, W, Hf, Wf, Sf, S)]
        ops_names += ['pool', 'up']
    ops_blocks += [_batch_selector(B, Hf * Wf, Sf), _batch_selector(B, H * W, S)]
    ops_names += ['bself', 'bsels']
    ops, ooffs = _pack_row_blocks(ops_blocks, jnp.bfloat16)
    op_rows = dict(zip(ops_names, ooffs))

    # BN affines (eval mode), permuted to the kernel's stage-major concat layout
    bn1s, bn1t = _bn_affine(params['tex_bn1'])
    bn2s, bn2t = _bn_affine(params['tex_bn2'], _stage_perm(2, M, Nf))
    bn3s, bn3t = _bn_affine(params['tex_bn3'], _stage_perm(3, M, Nf))
    bn4s, bn4t = _bn_affine(params['tex_bn4'], _stage_perm(4, M, Nf))

    # per-channel vectors -> one f32 slab, one column per vector
    vec_list = [
        ('ba1', g('attn_b1')), ('ba2', g('attn_b2')), ('bce', g('tex_ce_b')),
        ('b0', g('tex_c0_b')), ('b1', g('tex_c1_b')), ('b2', g('tex_c2_b')),
        ('b3', g('tex_c3_b')), ('bl', g('tex_cl_b')),
        ('bn1s', bn1s), ('bn1t', bn1t), ('bn2s', bn2s), ('bn2t', bn2t),
        ('bn3s', bn3s), ('bn3t', bn3t), ('bn4s', bn4s), ('bn4t', bn4t),
        ('bp1', g('pl_b1')), ('bp2', g('pl_b2')), ('bpf', g('pf_b')),
        ('be1', g('ens_b1')), ('be2', g('ens_b2')),
    ]
    nrows = _ceil_to(max(int(v.shape[0]) for _, v in vec_list), 8)
    vecs = np.zeros((nrows, len(vec_list)), np.float32)
    vec_cols = {}
    for c, (name, v) in enumerate(vec_list):
        vecs[:v.shape[0], c] = v
        vec_cols[name] = (c, int(v.shape[0]))

    # fused-tap bf16 weights (biases live in the vector slab)
    wa1 = _fused_plain_weight(g('attn_w1'))
    wce = _fused_plain_weight(g('tex_ce_w'))
    wa2 = g('attn_w2').reshape(M, Cf)
    w0 = _fused_grouped_weight(g('tex_c0_w'), M, 1, Nf)
    w1 = _fused_grouped_weight(g('tex_c1_w'), M, 1, Nf)
    w2 = _fused_grouped_weight(g('tex_c2_w'), M, 2, Nf)
    w3 = _fused_grouped_weight(g('tex_c3_w'), M, 3, Nf)
    wl = _fused_grouped_weight(g('tex_cl_w'), M, 4, Nf)
    big_list = [('w0', w0), ('w2', w2), ('w3', w3)]
    sml_list = [('wa1', wa1), ('wce', wce), ('w1', w1), ('wl', wl), ('wa2', wa2),
                ('wp1', g('pl_w1')), ('wp2', g('pl_w2')), ('wpf', g('pf_w')),
                ('we1', g('ens_w1')), ('we2', g('ens_w2'))]
    wbig, boffs = _pack_row_blocks([w for _, w in big_list], jnp.bfloat16)
    wsml, soffs = _pack_row_blocks([w for _, w in sml_list], jnp.bfloat16)
    w_rows = {}
    for (name, w), off in zip(big_list, boffs):
        w_rows[name] = ('big', off, int(w.shape[0]), int(w.shape[1]))
    for (name, w), off in zip(sml_list, soffs):
        w_rows[name] = ('sml', off, int(w.shape[0]), int(w.shape[1]))

    meta = dict(B=B, S=S, Sf=Sf, Cf=Cf, Nf=Nf, M=M, mid=mid, nc=nc,
                mask_rows=mask_rows, op_rows=op_rows, vec_cols=vec_cols,
                w_rows=w_rows,
                off3=_tap_offsets(W, 3, 1), off5=_tap_offsets(W, 5, 2),
                off3a=_tap_offsets(Wf, 3, 1), do_pool_sub=do_sub)
    arrays = dict(masks=masks, ops=ops, vecs=jnp.asarray(vecs),
                  wbig=wbig, wsml=wsml)
    return dict(meta=meta, arrays=arrays)


# --------------------------------- the kernel --------------------------------

def build_forward(meta):
    B = meta['B']; S = meta['S']; Sf = meta['Sf']
    Cf = meta['Cf']; Nf = meta['Nf']; M = meta['M']; MN = M * Nf
    nc = meta['nc']
    mask_rows = meta['mask_rows']; op_rows = meta['op_rows']
    vec_cols = meta['vec_cols']; w_rows = meta['w_rows']
    off3 = meta['off3']; off5 = meta['off5']; off3a = meta['off3a']
    do_sub = meta['do_pool_sub']

    def hswish(x):
        return x * jnp.clip(x + 3.0, 0.0, 6.0) * (1.0 / 6.0)

    def kernel(final_ref, feat_ref, masks_ref, ops_ref, vecs_ref,
               wbig_ref, wsml_ref, out_ref, cat_ref):

        def vc(name):
            c, L = vec_cols[name]
            return vecs_ref[0:L, c:c + 1]

        def wb(name):
            slab, r, co, kd = w_rows[name]
            ref = wbig_ref if slab == 'big' else wsml_ref
            return ref[r:r + co, 0:kd]

        def op(name, rows, cols):
            r = op_rows[name]
            return ops_ref[r:r + rows, 0:cols]

        def conv(x, mrow0, offsets, wname, bname, width):
            """kxk 'same' conv as one MXU matmul over a roll+mask tap stack."""
            pieces = []
            for t, off in enumerate(offsets):
                sh = (-off) % width
                r = pltpu.roll(x, sh, 1) if sh else x
                mk = masks_ref[mrow0 + t:mrow0 + t + 1, 0:width]
                pieces.append((r * mk).astype(jnp.bfloat16))
            stack = jnp.concatenate(pieces, axis=0)            # (T*Cin, width) bf16
            y = jnp.dot(wb(wname), stack, preferred_element_type=jnp.float32)
            return y + vc(bname)

        # ---- AttentionMap on the 'final' backbone activation -----------------
        xf = final_ref[...]                                    # (Cf, Sf) f32, lanes>=B*Hf*Wf are 0
        a = conv(xf, mask_rows['m3a'], off3a, 'wa1', 'ba1', Sf)
        a = jnp.maximum(a, 0.0)                                # conv_extract + bn1 (folded) + relu
        a = jnp.dot(wb('wa2'), a.astype(jnp.bfloat16),
                    preferred_element_type=jnp.float32) + vc('ba2')   # conv2 + bn2 (folded)
        a = jnp.where(a > 0.0, a + 1.0, jnp.exp(jnp.minimum(a, 0.0)))  # elu(x) + 1
        att = a * masks_ref[mask_rows['border']:mask_rows['border'] + 1, 0:Sf]   # (M, Sf)

        # ---- norm=1 attention pooling of 'final' ------------------------------
        att_sum = jnp.sum(att, axis=0, keepdims=True) + 1e-8   # (1, Sf)
        bself = op('bself', Sf, B)
        numden = jnp.dot(jnp.concatenate([xf * att_sum, att_sum], axis=0
                                         ).astype(jnp.bfloat16),
                         bself, preferred_element_type=jnp.float32)    # (Cf+1, B)
        pooled = numden[0:Cf, :] * pl.reciprocal(numden[Cf:Cf + 1, :], approx=True)

        # ---- bilinear(align_corners) upsample of attentions to feature grid --
        att_big = jnp.dot(att.astype(jnp.bfloat16), op('interp', Sf, S),
                          preferred_element_type=jnp.float32)  # (M, S)
        att_tanh = jnp.tanh(att_big)
        att_rep = jnp.concatenate(
            [jnp.broadcast_to(att_big[m:m + 1, :], (Nf, S)) for m in range(M)], axis=0)
        att_tanh_rep = jnp.concatenate(
            [jnp.broadcast_to(att_tanh[m:m + 1, :], (Nf, S)) for m in range(M)], axis=0)

        # ---- Texture_Enhance_v2 ------------------------------------------------
        fm = conv(feat_ref[...], mask_rows['m3'], off3, 'wce', 'bce', S)   # conv_extract
        if do_sub:                                             # fm - nearest_up(adaptive_pool(fm))
            fm_small = jnp.dot(fm.astype(jnp.bfloat16), op('pool', S, Sf),
                               preferred_element_type=jnp.float32)
            fm = fm - jnp.dot(fm_small.astype(jnp.bfloat16), op('up', Sf, S),
                              preferred_element_type=jnp.float32)
        fm_big = jnp.concatenate([fm] * M, axis=0) * att_tanh_rep          # (MN, S)

        fm0 = conv(fm_big, mask_rows['m5'], off5, 'w0', 'b0', S)           # conv0 (5x5, grouped)
        cat_ref[0:MN, :] = fm0
        a1 = jnp.maximum(fm0 * vc('bn1s') + vc('bn1t'), 0.0)
        fm1 = conv(a1, mask_rows['m3'], off3, 'w1', 'b1', S)               # conv1
        cat_ref[MN:2 * MN, :] = fm1
        a2 = jnp.maximum(cat_ref[0:2 * MN, :] * vc('bn2s') + vc('bn2t'), 0.0)
        fm2 = conv(a2, mask_rows['m3'], off3, 'w2', 'b2', S)               # conv2
        cat_ref[2 * MN:3 * MN, :] = fm2
        a3 = jnp.maximum(cat_ref[0:3 * MN, :] * vc('bn3s') + vc('bn3t'), 0.0)
        fm3 = conv(a3, mask_rows['m3'], off3, 'w3', 'b3', S)               # conv3
        cat_ref[3 * MN:4 * MN, :] = fm3
        a4 = jnp.maximum(cat_ref[...] * vc('bn4s') + vc('bn4t'), 0.0)
        fm_out = jnp.maximum(                                              # conv_last+bn_last+relu
            jnp.dot(wb('wl'), a4.astype(jnp.bfloat16),
                    preferred_element_type=jnp.float32) + vc('bl'), 0.0)   # (MN, S)

        # ---- norm=2 attention pooling ('imjk,imnjk->imn' + L2 normalize) ------
        bsels = op('bsels', S, B)
        fmat_raw = jnp.dot((fm_out * att_rep).astype(jnp.bfloat16), bsels,
                           preferred_element_type=jnp.float32)             # (MN, B)
        parts = []
        for m in range(M):
            blk = fmat_raw[m * Nf:(m + 1) * Nf, :]
            ss = jnp.sum(blk * blk, axis=0, keepdims=True)
            parts.append(blk * jax.lax.rsqrt(jnp.maximum(ss, 1e-24)))
        fmat = jnp.concatenate(parts, axis=0)                              # (MN, B)

        # ---- projection / ensemble heads (feature-major, batch on lanes) ------
        h = hswish(jnp.dot(wb('wp1'), fmat.astype(jnp.bfloat16),
                           preferred_element_type=jnp.float32) + vc('bp1'))
        h = hswish(jnp.dot(wb('wp2'), h.astype(jnp.bfloat16),
                           preferred_element_type=jnp.float32) + vc('bp2'))
        pf = hswish(jnp.dot(wb('wpf'), pooled.astype(jnp.bfloat16),
                            preferred_element_type=jnp.float32) + vc('bpf'))
        cat = jnp.concatenate([h, pf], axis=0)                             # (2*mid, B)
        e = hswish(jnp.dot(wb('we1'), cat.astype(jnp.bfloat16),
                           preferred_element_type=jnp.float32) + vc('be1'))
        out_ref[...] = jnp.dot(wb('we2'), e.astype(jnp.bfloat16),
                               preferred_element_type=jnp.float32) + vc('be2')

    def forward(arrays, feature_maps, final_layer):
        Bq, Nfq, H, W = feature_maps.shape
        _, Cfq, Hf, Wf = final_layer.shape
        # channel-major activations, flattened (B,H,W) on the lane axis, zero-padded
        xfeat = feature_maps.transpose(1, 0, 2, 3).reshape(Nfq, Bq * H * W)
        xfeat = jnp.pad(xfeat.astype(jnp.float32), ((0, 0), (0, S - Bq * H * W)))
        xfin = final_layer.transpose(1, 0, 2, 3).reshape(Cfq, Bq * Hf * Wf)
        xfin = jnp.pad(xfin.astype(jnp.float32), ((0, 0), (0, Sf - Bq * Hf * Wf)))
        logits_t = pl.pallas_call(
            kernel,
            out_shape=jax.ShapeDtypeStruct((nc, B), jnp.float32),
            scratch_shapes=[pltpu.VMEM((4 * MN, S), jnp.float32)],
        )(xfin, xfeat, arrays['masks'], arrays['ops'], arrays['vecs'],
          arrays['wbig'], arrays['wsml'])
        return logits_t.T                                                  # (B, num_classes)

    return jax.jit(forward)


# ------------------------------- parameter init --------------------------------

class _Keys:
    def __init__(self, key):
        self._k = key

    def __call__(self):
        self._k, sub = jax.random.split(self._k)
        return sub


def _conv_init(kg, cout, cin_g, k, scale=0.1):
    return (scale * jax.random.normal(kg(), (cout, cin_g, k, k), jnp.float32),
            scale * jax.random.normal(kg(), (cout,), jnp.float32))


def _linear_init(kg, cout, cin, scale=0.1):
    return (scale * jax.random.normal(kg(), (cout, cin), jnp.float32),
            scale * jax.random.normal(kg(), (cout,), jnp.float32))


def _bn_init(kg, c):
    return (1.0 + 0.1 * jax.random.normal(kg(), (c,), jnp.float32),    # gamma
            0.1 * jax.random.normal(kg(), (c,), jnp.float32),          # beta
            0.1 * jax.random.normal(kg(), (c,), jnp.float32),          # running_mean
            0.9 + 0.2 * jax.random.uniform(kg(), (c,), jnp.float32))   # running_var


def make_params(key, Cf, Nf, M, mid, num_classes):
    kg = _Keys(key)
    p = {}
    # AttentionMap(Cf -> M): conv_extract+bn1 folded, conv2(no bias)+bn2 folded
    w1, b1 = _conv_init(kg, Cf, Cf, 3)
    p['attn_w1'], p['attn_b1'] = fold_bn_into_conv(w1, b1, _bn_init(kg, Cf))
    w2 = 0.1 * jax.random.normal(kg(), (M, Cf, 1, 1), jnp.float32)
    p['attn_w2'], p['attn_b2'] = fold_bn_into_conv(w2, jnp.zeros((M,), jnp.float32),
                                                   _bn_init(kg, M))
    # Texture_Enhance_v2(Nf, M)
    p['tex_ce_w'], p['tex_ce_b'] = _conv_init(kg, Nf, Nf, 3)
    p['tex_c0_w'], p['tex_c0_b'] = _conv_init(kg, Nf * M, Nf, 5)
    p['tex_c1_w'], p['tex_c1_b'] = _conv_init(kg, Nf * M, Nf, 3)
    p['tex_bn1'] = _bn_init(kg, Nf * M)
    p['tex_c2_w'], p['tex_c2_b'] = _conv_init(kg, Nf * M, 2 * Nf, 3)
    p['tex_bn2'] = _bn_init(kg, 2 * Nf * M)
    p['tex_c3_w'], p['tex_c3_b'] = _conv_init(kg, Nf * M, 3 * Nf, 3)
    p['tex_bn3'] = _bn_init(kg, 3 * Nf * M)
    wl, bl = _conv_init(kg, Nf * M, 4 * Nf, 1)
    p['tex_bn4'] = _bn_init(kg, 4 * Nf * M)
    p['tex_cl_w'], p['tex_cl_b'] = fold_bn_into_conv(wl, bl, _bn_init(kg, Nf * M))
    # heads
    p['pl_w1'], p['pl_b1'] = _linear_init(kg, mid, M * Nf)
    p['pl_w2'], p['pl_b2'] = _linear_init(kg, mid, mid)
    p['pf_w'], p['pf_b'] = _linear_init(kg, mid, Cf)
    p['ens_w1'], p['ens_b1'] = _linear_init(kg, mid, 2 * mid)
    p['ens_w2'], p['ens_b2'] = _linear_init(kg, num_classes, mid)
    return p


# ------------------------------------ main ------------------------------------

if __name__ == "__main__":
    B = 2
    Nf, H, W = 8, 8, 8           # backbone 'b3' (feature_layer) activation
    Cf, Hf, Wf = 16, 4, 4        # backbone 'final' (attention_layer) activation
    M, mid, num_classes = 4, 32, 2

    key = jax.random.PRNGKey(0)
    k_feat, k_final, k_params = jax.random.split(key, 3)
    feature_maps = jax.random.normal(k_feat, (B, Nf, H, W), jnp.float32)
    final_layer = jax.random.normal(k_final, (B, Cf, Hf, Wf), jnp.float32)
    params = make_params(k_params, Cf, Nf, M, mid, num_classes)

    prep = prepare_mat(params, M, (B, Nf, H, W), (B, Cf, Hf, Wf))
    fwd = build_forward(prep['meta'])
    logits = fwd(prep['arrays'], feature_maps, final_layer)
    jax.block_until_ready(logits)

    assert logits.shape == (B, num_classes)
    assert bool(jnp.all(jnp.isfinite(logits)))
    print("KERNEL_OK")
</pallas_src>

<mosaic_0001>
module attributes {stable_mosaic.version = 11 : i64} {
  func.func @kernel(%arg0: memref<16x128xf32, #tpu.memory_space<vmem>>, %arg1: memref<8x128xf32, #tpu.memory_space<vmem>>, %arg2: memref<72x128xf32, #tpu.memory_space<vmem>>, %arg3: memref<640x128xbf16, #tpu.memory_space<vmem>>, %arg4: memref<128x21xf32, #tpu.memory_space<vmem>>, %arg5: memref<96x864xbf16, #tpu.memory_space<vmem>>, %arg6: memref<232x288xbf16, #tpu.memory_space<vmem>>, %arg7: memref<2x2xf32, #tpu.memory_space<vmem>>, %arg8: memref<128x128xf32, #tpu.memory_space<vmem>>) attributes {dimension_semantics = [], scalar_prefetch = 0 : i64, scratch_operands = 1 : i64, tpu.core_type = #tpu.core_type<tc>} {
    %c0 = arith.constant 0 : index
    %c0_0 = arith.constant 0 : index
    %0 = vector.load %arg0[%c0, %c0_0] : memref<16x128xf32, #tpu.memory_space<vmem>>, vector<16x128xf32>
    %c5_i32 = arith.constant 5 : i32
    %1 = tpu.dynamic_rotate %0 by %c5_i32 dim 1 : vector<16x128xf32>, i32 -> vector<16x128xf32>
    %c48 = arith.constant 48 : index
    %c0_1 = arith.constant 0 : index
    %2 = vector.load %arg2[%c48, %c0_1] : memref<72x128xf32, #tpu.memory_space<vmem>>, vector<1x128xf32>
    %3 = vector.broadcast %2 : vector<1x128xf32> to vector<16x128xf32>
    %4 = arith.mulf %1, %3 : vector<16x128xf32>
    %5 = arith.truncf %4 : vector<16x128xf32> to vector<16x128xbf16>
    %c4_i32 = arith.constant 4 : i32
    %6 = tpu.dynamic_rotate %0 by %c4_i32 dim 1 : vector<16x128xf32>, i32 -> vector<16x128xf32>
    %c49 = arith.constant 49 : index
    %c0_2 = arith.constant 0 : index
    %7 = vector.load %arg2[%c49, %c0_2] : memref<72x128xf32, #tpu.memory_space<vmem>>, vector<1x128xf32>
    %8 = vector.broadcast %7 : vector<1x128xf32> to vector<16x128xf32>
    %9 = arith.mulf %6, %8 : vector<16x128xf32>
    %10 = arith.truncf %9 : vector<16x128xf32> to vector<16x128xbf16>
    %c3_i32 = arith.constant 3 : i32
    %11 = tpu.dynamic_rotate %0 by %c3_i32 dim 1 : vector<16x128xf32>, i32 -> vector<16x128xf32>
    %c50 = arith.constant 50 : index
    %c0_3 = arith.constant 0 : index
    %12 = vector.load %arg2[%c50, %c0_3] : memref<72x128xf32, #tpu.memory_space<vmem>>, vector<1x128xf32>
    %13 = vector.broadcast %12 : vector<1x128xf32> to vector<16x128xf32>
    %14 = arith.mulf %11, %13 : vector<16x128xf32>
    %15 = arith.truncf %14 : vector<16x128xf32> to vector<16x128xbf16>
    %c1_i32 = arith.constant 1 : i32
    %16 = tpu.dynamic_rotate %0 by %c1_i32 dim 1 : vector<16x128xf32>, i32 -> vector<16x128xf32>
    %c51 = arith.constant 51 : index
    %c0_4 = arith.constant 0 : index
    %17 = vector.load %arg2[%c51, %c0_4] : memref<72x128xf32, #tpu.memory_space<vmem>>, vector<1x128xf32>
    %18 = vector.broadcast %17 : vector<1x128xf32> to vector<16x128xf32>
    %19 = arith.mulf %16, %18 : vector<16x128xf32>
    %20 = arith.truncf %19 : vector<16x128xf32> to vector<16x128xbf16>
    %c52 = arith.constant 52 : index
    %c0_5 = arith.constant 0 : index
    %21 = vector.load %arg2[%c52, %c0_5] : memref<72x128xf32, #tpu.memory_space<vmem>>, vector<1x128xf32>
    %22 = vector.broadcast %21 : vector<1x128xf32> to vector<16x128xf32>
    %23 = arith.mulf %0, %22 : vector<16x128xf32>
    %24 = arith.truncf %23 : vector<16x128xf32> to vector<16x128xbf16>
    %c127_i32 = arith.constant 127 : i32
    %25 = tpu.dynamic_rotate %0 by %c127_i32 dim 1 : vector<16x128xf32>, i32 -> vector<16x128xf32>
    %c53 = arith.constant 53 : index
    %c0_6 = arith.constant 0 : index
    %26 = vector.load %arg2[%c53, %c0_6] : memref<72x128xf32, #tpu.memory_space<vmem>>, vector<1x128xf32>
    %27 = vector.broadcast %26 : vector<1x128xf32> to vector<16x128xf32>
    %28 = arith.mulf %25, %27 : vector<16x128xf32>
    %29 = arith.truncf %28 : vector<16x128xf32> to vector<16x128xbf16>
    %c125_i32 = arith.constant 125 : i32
    %30 = tpu.dynamic_rotate %0 by %c125_i32 dim 1 : vector<16x128xf32>, i32 -> vector<16x128xf32>
    %c54 = arith.constant 54 : index
    %c0_7 = arith.constant 0 : index
    %31 = vector.load %arg2[%c54, %c0_7] : memref<72x128xf32, #tpu.memory_space<vmem>>, vector<1x128xf32>
    %32 = vector.broadcast %31 : vector<1x128xf32> to vector<16x128xf32>
    %33 = arith.mulf %30, %32 : vector<16x128xf32>
    %34 = arith.truncf %33 : vector<16x128xf32> to vector<16x128xbf16>
    %c124_i32 = arith.constant 124 : i32
    %35 = tpu.dynamic_rotate %0 by %c124_i32 dim 1 : vector<16x128xf32>, i32 -> vector<16x128xf32>
    %c55 = arith.constant 55 : index
    %c0_8 = arith.constant 0 : index
    %36 = vector.load %arg2[%c55, %c0_8] : memref<72x128xf32, #tpu.memory_space<vmem>>, vector<1x128xf32>
    %37 = vector.broadcast %36 : vector<1x128xf32> to vector<16x128xf32>
    %38 = arith.mulf %35, %37 : vector<16x128xf32>
    %39 = arith.truncf %38 : vector<16x128xf32> to vector<16x128xbf16>
    %c123_i32 = arith.constant 123 : i32
    %40 = tpu.dynamic_rotate %0 by %c123_i32 dim 1 : vector<16x128xf32>, i32 -> vector<16x128xf32>
    %c56 = arith.constant 56 : index
    %c0_9 = arith.constant 0 : index
    %41 = vector.load %arg2[%c56, %c0_9] : memref<72x128xf32, #tpu.memory_space<vmem>>, vector<1x128xf32>
    %42 = vector.broadcast %41 : vector<1x128xf32> to vector<16x128xf32>
    %43 = arith.mulf %40, %42 : vector<16x128xf32>
    %44 = arith.truncf %43 : vector<16x128xf32> to vector<16x128xbf16>
    %45 = tpu.concatenate %5, %10, %15, %20, %24, %29, %34, %39, %44 in 0 : vector<16x128xbf16>, vector<16x128xbf16>, vector<16x128xbf16>, vector<16x128xbf16>, vector<16x128xbf16>, vector<16x128xbf16>, vector<16x128xbf16>, vector<16x128xbf16>, vector<16x128xbf16> -> vector<144x128xbf16>
    %c0_10 = arith.constant 0 : index
    %c0_11 = arith.constant 0 : index
    %46 = vector.load %arg6[%c0_10, %c0_11] : memref<232x288xbf16, #tpu.memory_space<vmem>>, vector<16x144xbf16>
    %cst = arith.constant dense<0.000000e+00> : vector<16x128xf32>
    %47 = tpu.matmul %46, %45, %cst {dimension_numbers = #tpu.dot_dimension_numbers<[1], [0], [0], [1], [0, 0, 1, 1], [], []>} : vector<16x144xbf16>, vector<144x128xbf16>, vector<16x128xf32> -> vector<16x128xf32>
    %c0_12 = arith.constant 0 : index
    %c0_13 = arith.constant 0 : index
    %48 = vector.load %arg4[%c0_12, %c0_13] : memref<128x21xf32, #tpu.memory_space<vmem>>, vector<16x1xf32>
    %49 = vector.broadcast %48 : vector<16x1xf32> to vector<16x128xf32>
    %50 = arith.addf %47, %49 : vector<16x128xf32>
    %cst_14 = arith.constant 0.000000e+00 : f32
    %51 = vector.broadcast %cst_14 : f32 to vector<16x128xf32>
    %52 = arith.maximumf %50, %51 : vector<16x128xf32>
    %c88 = arith.constant 88 : index
    %c0_15 = arith.constant 0 : index
    %53 = vector.load %arg6[%c88, %c0_15] : memref<232x288xbf16, #tpu.memory_space<vmem>>, vector<4x16xbf16>
    %54 = arith.truncf %52 : vector<16x128xf32> to vector<16x128xbf16>
    %cst_16 = arith.constant dense<0.000000e+00> : vector<4x128xf32>
    %55 = tpu.matmul %53, %54, %cst_16 {dimension_numbers = #tpu.dot_dimension_numbers<[1], [0], [0], [1], [0, 0, 1, 1], [], []>} : vector<4x16xbf16>, vector<16x128xbf16>, vector<4x128xf32> -> vector<4x128xf32>
    %c0_17 = arith.constant 0 : index
    %c1 = arith.constant 1 : index
    %56 = vector.load %arg4[%c0_17, %c1] : memref<128x21xf32, #tpu.memory_space<vmem>>, vector<4x1xf32>
    %57 = vector.broadcast %56 : vector<4x1xf32> to vector<4x128xf32>
    %58 = arith.addf %55, %57 : vector<4x128xf32>
    %cst_18 = arith.constant 0.000000e+00 : f32
    %59 = vector.broadcast %cst_18 : f32 to vector<4x128xf32>
    %60 = arith.cmpf ogt, %58, %59 : vector<4x128xf32>
    %cst_19 = arith.constant 1.000000e+00 : f32
    %61 = vector.broadcast %cst_19 : f32 to vector<4x128xf32>
    %62 = arith.addf %58, %61 : vector<4x128xf32>
    %cst_20 = arith.constant 0.000000e+00 : f32
    %63 = vector.broadcast %cst_20 : f32 to vector<4x128xf32>
    %64 = arith.minimumf %58, %63 : vector<4x128xf32>
    %65 = math.exp %64 : vector<4x128xf32>
    %66 = arith.select %60, %62, %65 : vector<4x128xi1>, vector<4x128xf32>
    %c64 = arith.constant 64 : index
    %c0_21 = arith.constant 0 : index
    %67 = vector.load %arg2[%c64, %c0_21] : memref<72x128xf32, #tpu.memory_space<vmem>>, vector<1x128xf32>
    %68 = vector.broadcast %67 : vector<1x128xf32> to vector<4x128xf32>
    %69 = arith.mulf %66, %68 : vector<4x128xf32>
    %cst_22 = arith.constant dense<0.000000e+00> : vector<128xf32>
    %70 = vector.multi_reduction <add>, %69, %cst_22 [0] : vector<4x128xf32> to vector<128xf32>
    %71 = vector.shape_cast %70 : vector<128xf32> to vector<1x128xf32>
    %cst_23 = arith.constant 9.99999993E-9 : f32
    %72 = vector.broadcast %cst_23 : f32 to vector<1x128xf32>
    %73 = arith.addf %71, %72 : vector<1x128xf32>
    %c384 = arith.constant 384 : index
    %c0_24 = arith.constant 0 : index
    %74 = vector.load %arg3[%c384, %c0_24] : memref<640x128xbf16, #tpu.memory_space<vmem>>, vector<128x2xbf16>
    %75 = vector.broadcast %73 : vector<1x128xf32> to vector<16x128xf32>
    %76 = arith.mulf %0, %75 : vector<16x128xf32>
    %77 = tpu.concatenate %76, %73 in 0 : vector<16x128xf32>, vector<1x128xf32> -> vector<17x128xf32>
    %78 = arith.truncf %77 : vector<17x128xf32> to vector<17x128xbf16>
    %cst_25 = arith.constant dense<0.000000e+00> : vector<17x2xf32>
    %79 = tpu.matmul %78, %74, %cst_25 {dimension_numbers = #tpu.dot_dimension_numbers<[1], [0], [0], [1], [0, 0, 1, 1], [], []>} : vector<17x128xbf16>, vector<128x2xbf16>, vector<17x2xf32> -> vector<17x2xf32>
    %80 = vector.extract_strided_slice %79 {offsets = [0, 0], sizes = [16, 2], strides = [1, 1]} : vector<17x2xf32> to vector<16x2xf32>
    %81 = vector.extract_strided_slice %79 {offsets = [16, 0], sizes = [1, 2], strides = [1, 1]} : vector<17x2xf32> to vector<1x2xf32>
    %82 = tpu.reciprocal %81 {approx = true} : vector<1x2xf32> -> vector<1x2xf32>
    %83 = vector.broadcast %82 : vector<1x2xf32> to vector<16x2xf32>
    %84 = arith.mulf %80, %83 : vector<16x2xf32>
    %85 = arith.truncf %69 : vector<4x128xf32> to vector<4x128xbf16>
    %c0_26 = arith.constant 0 : index
    %c0_27 = arith.constant 0 : index
    %86 = vector.load %arg3[%c0_26, %c0_27] : memref<640x128xbf16, #tpu.memory_space<vmem>>, vector<128x128xbf16>
    %cst_28 = arith.constant dense<0.000000e+00> : vector<4x128xf32>
    %87 = tpu.matmul %85, %86, %cst_28 {dimension_numbers = #tpu.dot_dimension_numbers<[1], [0], [0], [1], [0, 0, 1, 1], [], []>} : vector<4x128xbf16>, vector<128x128xbf16>, vector<4x128xf32> -> vector<4x128xf32>
    %88 = math.tanh %87 : vector<4x128xf32>
    %89 = vector.extract_strided_slice %87 {offsets = [0, 0], sizes = [1, 128], strides = [1, 1]} : vector<4x128xf32> to vector<1x128xf32>
    %90 = vector.shape_cast %89 : vector<1x128xf32> to vector<1x128xf32>
    %91 = vector.broadcast %90 : vector<1x128xf32> to vector<8x128xf32>
    %92 = vector.extract_strided_slice %87 {offsets = [1, 0], sizes = [1, 128], strides = [1, 1]} : vector<4x128xf32> to vector<1x128xf32>
    %93 = vector.shape_cast %92 : vector<1x128xf32> to vector<1x128xf32>
    %94 = vector.broadcast %93 : vector<1x128xf32> to vector<8x128xf32>
    %95 = vector.extract_strided_slice %87 {offsets = [2, 0], sizes = [1, 128], strides = [1, 1]} : vector<4x128xf32> to vector<1x128xf32>
    %96 = vector.shape_cast %95 : vector<1x128xf32> to vector<1x128xf32>
    %97 = vector.broadcast %96 : vector<1x128xf32> to vector<8x128xf32>
    %98 = vector.extract_strided_slice %87 {offsets = [3, 0], sizes = [1, 128], strides = [1, 1]} : vector<4x128xf32> to vector<1x128xf32>
    %99 = vector.shape_cast %98 : vector<1x128xf32> to vector<1x128xf32>
    %100 = vector.broadcast %99 : vector<1x128xf32> to vector<8x128xf32>
    %101 = tpu.concatenate %91, %94, %97, %100 in 0 : vector<8x128xf32>, vector<8x128xf32>, vector<8x128xf32>, vector<8x128xf32> -> vector<32x128xf32>
    %102 = vector.extract_strided_slice %88 {offsets = [0, 0], sizes = [1, 128], strides = [1, 1]} : vector<4x128xf32> to vector<1x128xf32>
    %103 = vector.shape_cast %102 : vector<1x128xf32> to vector<1x128xf32>
    %104 = vector.broadcast %103 : vector<1x128xf32> to vector<8x128xf32>
    %105 = vector.extract_strided_slice %88 {offsets = [1, 0], sizes = [1, 128], strides = [1, 1]} : vector<4x128xf32> to vector<1x128xf32>
    %106 = vector.shape_cast %105 : vector<1x128xf32> to vector<1x128xf32>
    %107 = vector.broadcast %106 : vector<1x128xf32> to vector<8x128xf32>
    %108 = vector.extract_strided_slice %88 {offsets = [2, 0], sizes = [1, 128], strides = [1, 1]} : vector<4x128xf32> to vector<1x128xf32>
    %109 = vector.shape_cast %108 : vector<1x128xf32> to vector<1x128xf32>
    %110 = vector.broadcast %109 : vector<1x128xf32> to vector<8x128xf32>
    %111 = vector.extract_strided_slice %88 {offsets = [3, 0], sizes = [1, 128], strides = [1, 1]} : vector<4x128xf32> to vector<1x128xf32>
    %112 = vector.shape_cast %111 : vector<1x128xf32> to vector<1x128xf32>
    %113 = vector.broadcast %112 : vector<1x128xf32> to vector<8x128xf32>
    %114 = tpu.concatenate %104, %107, %110, %113 in 0 : vector<8x128xf32>, vector<8x128xf32>, vector<8x128xf32>, vector<8x128xf32> -> vector<32x128xf32>
    %c0_29 = arith.constant 0 : index
    %c0_30 = arith.constant 0 : index
    %115 = vector.load %arg1[%c0_29, %c0_30] : memref<8x128xf32, #tpu.memory_space<vmem>>, vector<8x128xf32>
    %c9_i32 = arith.constant 9 : i32
    %116 = tpu.dynamic_rotate %115 by %c9_i32 dim 1 : vector<8x128xf32>, i32 -> vector<8x128xf32>
    %c0_31 = arith.constant 0 : index
    %c0_32 = arith.constant 0 : index
    %117 = vector.load %arg2[%c0_31, %c0_32] : memref<72x128xf32, #tpu.memory_space<vmem>>, vector<1x128xf32>
    %118 = vector.broadcast %117 : vector<1x128xf32> to vector<8x128xf32>
    %119 = arith.mulf %116, %118 : vector<8x128xf32>
    %120 = arith.truncf %119 : vector<8x128xf32> to vector<8x128xbf16>
    %c8_i32 = arith.constant 8 : i32
    %121 = tpu.dynamic_rotate %115 by %c8_i32 dim 1 : vector<8x128xf32>, i32 -> vector<8x128xf32>
    %c1_33 = arith.constant 1 : index
    %c0_34 = arith.constant 0 : index
    %122 = vector.load %arg2[%c1_33, %c0_34] : memref<72x128xf32, #tpu.memory_space<vmem>>, vector<1x128xf32>
    %123 = vector.broadcast %122 : vector<1x128xf32> to vector<8x128xf32>
    %124 = arith.mulf %121, %123 : vector<8x128xf32>
    %125 = arith.truncf %124 : vector<8x128xf32> to vector<8x128xbf16>
    %c7_i32 = arith.constant 7 : i32
    %126 = tpu.dynamic_rotate %115 by %c7_i32 dim 1 : vector<8x128xf32>, i32 -> vector<8x128xf32>
    %c2 = arith.constant 2 : index
    %c0_35 = arith.constant 0 : index
    %127 = vector.load %arg2[%c2, %c0_35] : memref<72x128xf32, #tpu.memory_space<vmem>>, vector<1x128xf32>
    %128 = vector.broadcast %127 : vector<1x128xf32> to vector<8x128xf32>
    %129 = arith.mulf %126, %128 : vector<8x128xf32>
    %130 = arith.truncf %129 : vector<8x128xf32> to vector<8x128xbf16>
    %c1_i32_36 = arith.constant 1 : i32
    %131 = tpu.dynamic_rotate %115 by %c1_i32_36 dim 1 : vector<8x128xf32>, i32 -> vector<8x128xf32>
    %c3 = arith.constant 3 : index
    %c0_37 = arith.constant 0 : index
    %132 = vector.load %arg2[%c3, %c0_37] : memref<72x128xf32, #tpu.memory_space<vmem>>, vector<1x128xf32>
    %133 = vector.broadcast %132 : vector<1x128xf32> to vector<8x128xf32>
    %134 = arith.mulf %131, %133 : vector<8x128xf32>
    %135 = arith.truncf %134 : vector<8x128xf32> to vector<8x128xbf16>
    %c4 = arith.constant 4 : index
    %c0_38 = arith.constant 0 : index
    %136 = vector.load %arg2[%c4, %c0_38] : memref<72x128xf32, #tpu.memory_space<vmem>>, vector<1x128xf32>
    %137 = vector.broadcast %136 : vector<1x128xf32> to vector<8x128xf32>
    %138 = arith.mulf %115, %137 : vector<8x128xf32>
    %139 = arith.truncf %138 : vector<8x128xf32> to vector<8x128xbf16>
    %c127_i32_39 = arith.constant 127 : i32
    %140 = tpu.dynamic_rotate %115 by %c127_i32_39 dim 1 : vector<8x128xf32>, i32 -> vector<8x128xf32>
    %c5 = arith.constant 5 : index
    %c0_40 = arith.constant 0 : index
    %141 = vector.load %arg2[%c5, %c0_40] : memref<72x128xf32, #tpu.memory_space<vmem>>, vector<1x128xf32>
    %142 = vector.broadcast %141 : vector<1x128xf32> to vector<8x128xf32>
    %143 = arith.mulf %140, %142 : vector<8x128xf32>
    %144 = arith.truncf %143 : vector<8x128xf32> to vector<8x128xbf16>
    %c121_i32 = arith.constant 121 : i32
    %145 = tpu.dynamic_rotate %115 by %c121_i32 dim 1 : vector<8x128xf32>, i32 -> vector<8x128xf32>
    %c6 = arith.constant 6 : index
    %c0_41 = arith.constant 0 : index
    %146 = vector.load %arg2[%c6, %c0_41] : memref<72x128xf32, #tpu.memory_space<vmem>>, vector<1x128xf32>
    %147 = vector.broadcast %146 : vector<1x128xf32> to vector<8x128xf32>
    %148 = arith.mulf %145, %147 : vector<8x128xf32>
    %149 = arith.truncf %148 : vector<8x128xf32> to vector<8x128xbf16>
    %c120_i32 = arith.constant 120 : i32
    %150 = tpu.dynamic_rotate %115 by %c120_i32 dim 1 : vector<8x128xf32>, i32 -> vector<8x128xf32>
    %c7 = arith.constant 7 : index
    %c0_42 = arith.constant 0 : index
    %151 = vector.load %arg2[%c7, %c0_42] : memref<72x128xf32, #tpu.memory_space<vmem>>, vector<1x128xf32>
    %152 = vector.broadcast %151 : vector<1x128xf32> to vector<8x128xf32>
    %153 = arith.mulf %150, %152 : vector<8x128xf32>
    %154 = arith.truncf %153 : vector<8x128xf32> to vector<8x128xbf16>
    %c119_i32 = arith.constant 119 : i32
    %155 = tpu.dynamic_rotate %115 by %c119_i32 dim 1 : vector<8x128xf32>, i32 -> vector<8x128xf32>
    %c8 = arith.constant 8 : index
    %c0_43 = arith.constant 0 : index
    %156 = vector.load %arg2[%c8, %c0_43] : memref<72x128xf32, #tpu.memory_space<vmem>>, vector<1x128xf32>
    %157 = vector.broadcast %156 : vector<1x128xf32> to vector<8x128xf32>
    %158 = arith.mulf %155, %157 : vector<8x128xf32>
    %159 = arith.truncf %158 : vector<8x128xf32> to vector<8x128xbf16>
    %160 = tpu.concatenate %120, %125, %130, %135, %139, %144, %149, %154, %159 in 0 : vector<8x128xbf16>, vector<8x128xbf16>, vector<8x128xbf16>, vector<8x128xbf16>, vector<8x128xbf16>, vector<8x128xbf16>, vector<8x128xbf16>, vector<8x128xbf16>, vector<8x128xbf16> -> vector<72x128xbf16>
    %c16 = arith.constant 16 : index
    %c0_44 = arith.constant 0 : index
    %161 = vector.load %arg6[%c16, %c0_44] : memref<232x288xbf16, #tpu.memory_space<vmem>>, vector<8x72xbf16>
    %cst_45 = arith.constant dense<0.000000e+00> : vector<8x128xf32>
    %162 = tpu.matmul %161, %160, %cst_45 {dimension_numbers = #tpu.dot_dimension_numbers<[1], [0], [0], [1], [0, 0, 1, 1], [], []>} : vector<8x72xbf16>, vector<72x128xbf16>, vector<8x128xf32> -> vector<8x128xf32>
    %c0_46 = arith.constant 0 : index
    %c2_47 = arith.constant 2 : index
    %163 = vector.load %arg4[%c0_46, %c2_47] : memref<128x21xf32, #tpu.memory_space<vmem>>, vector<8x1xf32>
    %164 = vector.broadcast %163 : vector<8x1xf32> to vector<8x128xf32>
    %165 = arith.addf %162, %164 : vector<8x128xf32>
    %166 = arith.truncf %165 : vector<8x128xf32> to vector<8x128xbf16>
    %c128 = arith.constant 128 : index
    %c0_48 = arith.constant 0 : index
    %167 = vector.load %arg3[%c128, %c0_48] : memref<640x128xbf16, #tpu.memory_space<vmem>>, vector<128x128xbf16>
    %cst_49 = arith.constant dense<0.000000e+00> : vector<8x128xf32>
    %168 = tpu.matmul %166, %167, %cst_49 {dimension_numbers = #tpu.dot_dimension_numbers<[1], [0], [0], [1], [0, 0, 1, 1], [], []>} : vector<8x128xbf16>, vector<128x128xbf16>, vector<8x128xf32> -> vector<8x128xf32>
    %169 = arith.truncf %168 : vector<8x128xf32> to vector<8x128xbf16>
    %c256 = arith.constant 256 : index
    %c0_50 = arith.constant 0 : index
    %170 = vector.load %arg3[%c256, %c0_50] : memref<640x128xbf16, #tpu.memory_space<vmem>>, vector<128x128xbf16>
    %cst_51 = arith.constant dense<0.000000e+00> : vector<8x128xf32>
    %171 = tpu.matmul %169, %170, %cst_51 {dimension_numbers = #tpu.dot_dimension_numbers<[1], [0], [0], [1], [0, 0, 1, 1], [], []>} : vector<8x128xbf16>, vector<128x128xbf16>, vector<8x128xf32> -> vector<8x128xf32>
    %172 = arith.subf %165, %171 : vector<8x128xf32>
    %173 = tpu.concatenate %172, %172, %172, %172 in 0 : vector<8x128xf32>, vector<8x128xf32>, vector<8x128xf32>, vector<8x128xf32> -> vector<32x128xf32>
    %174 = arith.mulf %173, %114 : vector<32x128xf32>
    %c18_i32 = arith.constant 18 : i32
    %175 = tpu.dynamic_rotate %174 by %c18_i32 dim 1 : vector<32x128xf32>, i32 -> vector<32x128xf32>
    %c16_52 = arith.constant 16 : index
    %c0_53 = arith.constant 0 : index
    %176 = vector.load %arg2[%c16_52, %c0_53] : memref<72x128xf32, #tpu.memory_space<vmem>>, vector<1x128xf32>
    %177 = vector.broadcast %176 : vector<1x128xf32> to vector<32x128xf32>
    %178 = arith.mulf %175, %177 : vector<32x128xf32>
    %179 = arith.truncf %178 : vector<32x128xf32> to vector<32x128xbf16>
    %c17_i32 = arith.constant 17 : i32
    %180 = tpu.dynamic_rotate %174 by %c17_i32 dim 1 : vector<32x128xf32>, i32 -> vector<32x128xf32>
    %c17 = arith.constant 17 : index
    %c0_54 = arith.constant 0 : index
    %181 = vector.load %arg2[%c17, %c0_54] : memref<72x128xf32, #tpu.memory_space<vmem>>, vector<1x128xf32>
    %182 = vector.broadcast %181 : vector<1x128xf32> to vector<32x128xf32>
    %183 = arith.mulf %180, %182 : vector<32x128xf32>
    %184 = arith.truncf %183 : vector<32x128xf32> to vector<32x128xbf16>
    %c16_i32 = arith.constant 16 : i32
    %185 = tpu.dynamic_rotate %174 by %c16_i32 dim 1 : vector<32x128xf32>, i32 -> vector<32x128xf32>
    %c18 = arith.constant 18 : index
    %c0_55 = arith.constant 0 : index
    %186 = vector.load %arg2[%c18, %c0_55] : memref<72x128xf32, #tpu.memory_space<vmem>>, vector<1x128xf32>
    %187 = vector.broadcast %186 : vector<1x128xf32> to vector<32x128xf32>
    %188 = arith.mulf %185, %187 : vector<32x128xf32>
    %189 = arith.truncf %188 : vector<32x128xf32> to vector<32x128xbf16>
    %c15_i32 = arith.constant 15 : i32
    %190 = tpu.dynamic_rotate %174 by %c15_i32 dim 1 : vector<32x128xf32>, i32 -> vector<32x128xf32>
    %c19 = arith.constant 19 : index
    %c0_56 = arith.constant 0 : index
    %191 = vector.load %arg2[%c19, %c0_56] : memref<72x128xf32, #tpu.memory_space<vmem>>, vector<1x128xf32>
    %192 = vector.broadcast %191 : vector<1x128xf32> to vector<32x128xf32>
    %193 = arith.mulf %190, %192 : vector<32x128xf32>
    %194 = arith.truncf %193 : vector<32x128xf32> to vector<32x128xbf16>
    %c14_i32 = arith.constant 14 : i32
    %195 = tpu.dynamic_rotate %174 by %c14_i32 dim 1 : vector<32x128xf32>, i32 -> vector<32x128xf32>
    %c20 = arith.constant 20 : index
    %c0_57 = arith.constant 0 : index
    %196 = vector.load %arg2[%c20, %c0_57] : memref<72x128xf32, #tpu.memory_space<vmem>>, vector<1x128xf32>
    %197 = vector.broadcast %196 : vector<1x128xf32> to vector<32x128xf32>
    %198 = arith.mulf %195, %197 : vector<32x128xf32>
    %199 = arith.truncf %198 : vector<32x128xf32> to vector<32x128xbf16>
    %c10_i32 = arith.constant 10 : i32
    %200 = tpu.dynamic_rotate %174 by %c10_i32 dim 1 : vector<32x128xf32>, i32 -> vector<32x128xf32>
    %c21 = arith.constant 21 : index
    %c0_58 = arith.constant 0 : index
    %201 = vector.load %arg2[%c21, %c0_58] : memref<72x128xf32, #tpu.memory_space<vmem>>, vector<1x128xf32>
    %202 = vector.broadcast %201 : vector<1x128xf32> to vector<32x128xf32>
    %203 = arith.mulf %200, %202 : vector<32x128xf32>
    %204 = arith.truncf %203 : vector<32x128xf32> to vector<32x128xbf16>
    %c9_i32_59 = arith.constant 9 : i32
    %205 = tpu.dynamic_rotate %174 by %c9_i32_59 dim 1 : vector<32x128xf32>, i32 -> vector<32x128xf32>
    %c22 = arith.constant 22 : index
    %c0_60 = arith.constant 0 : index
    %206 = vector.load %arg2[%c22, %c0_60] : memref<72x128xf32, #tpu.memory_space<vmem>>, vector<1x128xf32>
    %207 = vector.broadcast %206 : vector<1x128xf32> to vector<32x128xf32>
    %208 = arith.mulf %205, %207 : vector<32x128xf32>
    %209 = arith.truncf %208 : vector<32x128xf32> to vector<32x128xbf16>
    %c8_i32_61 = arith.constant 8 : i32
    %210 = tpu.dynamic_rotate %174 by %c8_i32_61 dim 1 : vector<32x128xf32>, i32 -> vector<32x128xf32>
    %c23 = arith.constant 23 : index
    %c0_62 = arith.constant 0 : index
    %211 = vector.load %arg2[%c23, %c0_62] : memref<72x128xf32, #tpu.memory_space<vmem>>, vector<1x128xf32>
    %212 = vector.broadcast %211 : vector<1x128xf32> to vector<32x128xf32>
    %213 = arith.mulf %210, %212 : vector<32x128xf32>
    %214 = arith.truncf %213 : vector<32x128xf32> to vector<32x128xbf16>
    %c7_i32_63 = arith.constant 7 : i32
    %215 = tpu.dynamic_rotate %174 by %c7_i32_63 dim 1 : vector<32x128xf32>, i32 -> vector<32x128xf32>
    %c24 = arith.constant 24 : index
    %c0_64 = arith.constant 0 : index
    %216 = vector.load %arg2[%c24, %c0_64] : memref<72x128xf32, #tpu.memory_space<vmem>>, vector<1x128xf32>
    %217 = vector.broadcast %216 : vector<1x128xf32> to vector<32x128xf32>
    %218 = arith.mulf %215, %217 : vector<32x128xf32>
    %219 = arith.truncf %218 : vector<32x128xf32> to vector<32x128xbf16>
    %c6_i32 = arith.constant 6 : i32
    %220 = tpu.dynamic_rotate %174 by %c6_i32 dim 1 : vector<32x128xf32>, i32 -> vector<32x128xf32>
    %c25 = arith.constant 25 : index
    %c0_65 = arith.constant 0 : index
    %221 = vector.load %arg2[%c25, %c0_65] : memref<72x128xf32, #tpu.memory_space<vmem>>, vector<1x128xf32>
    %222 = vector.broadcast %221 : vector<1x128xf32> to vector<32x128xf32>
    %223 = arith.mulf %220, %222 : vector<32x128xf32>
    %224 = arith.truncf %223 : vector<32x128xf32> to vector<32x128xbf16>
    %c2_i32 = arith.constant 2 : i32
    %225 = tpu.dynamic_rotate %174 by %c2_i32 dim 1 : vector<32x128xf32>, i32 -> vector<32x128xf32>
    %c26 = arith.constant 26 : index
    %c0_66 = arith.constant 0 : index
    %226 = vector.load %arg2[%c26, %c0_66] : memref<72x128xf32, #tpu.memory_space<vmem>>, vector<1x128xf32>
    %227 = vector.broadcast %226 : vector<1x128xf32> to vector<32x128xf32>
    %228 = arith.mulf %225, %227 : vector<32x128xf32>
    %229 = arith.truncf %228 : vector<32x128xf32> to vector<32x128xbf16>
    %c1_i32_67 = arith.constant 1 : i32
    %230 = tpu.dynamic_rotate %174 by %c1_i32_67 dim 1 : vector<32x128xf32>, i32 -> vector<32x128xf32>
    %c27 = arith.constant 27 : index
    %c0_68 = arith.constant 0 : index
    %231 = vector.load %arg2[%c27, %c0_68] : memref<72x128xf32, #tpu.memory_space<vmem>>, vector<1x128xf32>
    %232 = vector.broadcast %231 : vector<1x128xf32> to vector<32x128xf32>
    %233 = arith.mulf %230, %232 : vector<32x128xf32>
    %234 = arith.truncf %233 : vector<32x128xf32> to vector<32x128xbf16>
    %c28 = arith.constant 28 : index
    %c0_69 = arith.constant 0 : index
    %235 = vector.load %arg2[%c28, %c0_69] : memref<72x128xf32, #tpu.memory_space<vmem>>, vector<1x128xf32>
    %236 = vector.broadcast %235 : vector<1x128xf32> to vector<32x128xf32>
    %237 = arith.mulf %174, %236 : vector<32x128xf32>
    %238 = arith.truncf %237 : vector<32x128xf32> to vector<32x128xbf16>
    %c127_i32_70 = arith.constant 127 : i32
    %239 = tpu.dynamic_rotate %174 by %c127_i32_70 dim 1 : vector<32x128xf32>, i32 -> vector<32x128xf32>
    %c29 = arith.constant 29 : index
    %c0_71 = arith.constant 0 : index
    %240 = vector.load %arg2[%c29, %c0_71] : memref<72x128xf32, #tpu.memory_space<vmem>>, vector<1x128xf32>
    %241 = vector.broadcast %240 : vector<1x128xf32> to vector<32x128xf32>
    %242 = arith.mulf %239, %241 : vector<32x128xf32>
    %243 = arith.truncf %242 : vector<32x128xf32> to vector<32x128xbf16>
    %c126_i32 = arith.constant 126 : i32
    %244 = tpu.dynamic_rotate %174 by %c126_i32 dim 1 : vector<32x128xf32>, i32 -> vector<32x128xf32>
    %c30 = arith.constant 30 : index
    %c0_72 = arith.constant 0 : index
    %245 = vector.load %arg2[%c30, %c0_72] : memref<72x128xf32, #tpu.memory_space<vmem>>, vector<1x128xf32>
    %246 = vector.broadcast %245 : vector<1x128xf32> to vector<32x128xf32>
    %247 = arith.mulf %244, %246 : vector<32x128xf32>
    %248 = arith.truncf %247 : vector<32x128xf32> to vector<32x128xbf16>
    %c122_i32 = arith.constant 122 : i32
    %249 = tpu.dynamic_rotate %174 by %c122_i32 dim 1 : vector<32x128xf32>, i32 -> vector<32x128xf32>
    %c31 = arith.constant 31 : index
    %c0_73 = arith.constant 0 : index
    %250 = vector.load %arg2[%c31, %c0_73] : memref<72x128xf32, #tpu.memory_space<vmem>>, vector<1x128xf32>
    %251 = vector.broadcast %250 : vector<1x128xf32> to vector<32x128xf32>
    %252 = arith.mulf %249, %251 : vector<32x128xf32>
    %253 = arith.truncf %252 : vector<32x128xf32> to vector<32x128xbf16>
    %c121_i32_74 = arith.constant 121 : i32
    %254 = tpu.dynamic_rotate %174 by %c121_i32_74 dim 1 : vector<32x128xf32>, i32 -> vector<32x128xf32>
    %c32 = arith.constant 32 : index
    %c0_75 = arith.constant 0 : index
    %255 = vector.load %arg2[%c32, %c0_75] : memref<72x128xf32, #tpu.memory_space<vmem>>, vector<1x128xf32>
    %256 = vector.broadcast %255 : vector<1x128xf32> to vector<32x128xf32>
    %257 = arith.mulf %254, %256 : vector<32x128xf32>
    %258 = arith.truncf %257 : vector<32x128xf32> to vector<32x128xbf16>
    %c120_i32_76 = arith.constant 120 : i32
    %259 = tpu.dynamic_rotate %174 by %c120_i32_76 dim 1 : vector<32x128xf32>, i32 -> vector<32x128xf32>
    %c33 = arith.constant 33 : index
    %c0_77 = arith.constant 0 : index
    %260 = vector.load %arg2[%c33, %c0_77] : memref<72x128xf32, #tpu.memory_space<vmem>>, vector<1x128xf32>
    %261 = vector.broadcast %260 : vector<1x128xf32> to vector<32x128xf32>
    %262 = arith.mulf %259, %261 : vector<32x128xf32>
    %263 = arith.truncf %262 : vector<32x128xf32> to vector<32x128xbf16>
    %c119_i32_78 = arith.constant 119 : i32
    %264 = tpu.dynamic_rotate %174 by %c119_i32_78 dim 1 : vector<32x128xf32>, i32 -> vector<32x128xf32>
    %c34 = arith.constant 34 : index
    %c0_79 = arith.constant 0 : index
    %265 = vector.load %arg2[%c34, %c0_79] : memref<72x128xf32, #tpu.memory_space<vmem>>, vector<1x128xf32>
    %266 = vector.broadcast %265 : vector<1x128xf32> to vector<32x128xf32>
    %267 = arith.mulf %264, %266 : vector<32x128xf32>
    %268 = arith.truncf %267 : vector<32x128xf32> to vector<32x128xbf16>
    %c118_i32 = arith.constant 118 : i32
    %269 = tpu.dynamic_rotate %174 by %c118_i32 dim 1 : vector<32x128xf32>, i32 -> vector<32x128xf32>
    %c35 = arith.constant 35 : index
    %c0_80 = arith.constant 0 : index
    %270 = vector.load %arg2[%c35, %c0_80] : memref<72x128xf32, #tpu.memory_space<vmem>>, vector<1x128xf32>
    %271 = vector.broadcast %270 : vector<1x128xf32> to vector<32x128xf32>
    %272 = arith.mulf %269, %271 : vector<32x128xf32>
    %273 = arith.truncf %272 : vector<32x128xf32> to vector<32x128xbf16>
    %c114_i32 = arith.constant 114 : i32
    %274 = tpu.dynamic_rotate %174 by %c114_i32 dim 1 : vector<32x128xf32>, i32 -> vector<32x128xf32>
    %c36 = arith.constant 36 : index
    %c0_81 = arith.constant 0 : index
    %275 = vector.load %arg2[%c36, %c0_81] : memref<72x128xf32, #tpu.memory_space<vmem>>, vector<1x128xf32>
    %276 = vector.broadcast %275 : vector<1x128xf32> to vector<32x128xf32>
    %277 = arith.mulf %274, %276 : vector<32x128xf32>
    %278 = arith.truncf %277 : vector<32x128xf32> to vector<32x128xbf16>
    %c113_i32 = arith.constant 113 : i32
    %279 = tpu.dynamic_rotate %174 by %c113_i32 dim 1 : vector<32x128xf32>, i32 -> vector<32x128xf32>
    %c37 = arith.constant 37 : index
    %c0_82 = arith.constant 0 : index
    %280 = vector.load %arg2[%c37, %c0_82] : memref<72x128xf32, #tpu.memory_space<vmem>>, vector<1x128xf32>
    %281 = vector.broadcast %280 : vector<1x128xf32> to vector<32x128xf32>
    %282 = arith.mulf %279, %281 : vector<32x128xf32>
    %283 = arith.truncf %282 : vector<32x128xf32> to vector<32x128xbf16>
    %c112_i32 = arith.constant 112 : i32
    %284 = tpu.dynamic_rotate %174 by %c112_i32 dim 1 : vector<32x128xf32>, i32 -> vector<32x128xf32>
    %c38 = arith.constant 38 : index
    %c0_83 = arith.constant 0 : index
    %285 = vector.load %arg2[%c38, %c0_83] : memref<72x128xf32, #tpu.memory_space<vmem>>, vector<1x128xf32>
    %286 = vector.broadcast %285 : vector<1x128xf32> to vector<32x128xf32>
    %287 = arith.mulf %284, %286 : vector<32x128xf32>
    %288 = arith.truncf %287 : vector<32x128xf32> to vector<32x128xbf16>
    %c111_i32 = arith.constant 111 : i32
    %289 = tpu.dynamic_rotate %174 by %c111_i32 dim 1 : vector<32x128xf32>, i32 -> vector<32x128xf32>
    %c39 = arith.constant 39 : index
    %c0_84 = arith.constant 0 : index
    %290 = vector.load %arg2[%c39, %c0_84] : memref<72x128xf32, #tpu.memory_space<vmem>>, vector<1x128xf32>
    %291 = vector.broadcast %290 : vector<1x128xf32> to vector<32x128xf32>
    %292 = arith.mulf %289, %291 : vector<32x128xf32>
    %293 = arith.truncf %292 : vector<32x128xf32> to vector<32x128xbf16>
    %c110_i32 = arith.constant 110 : i32
    %294 = tpu.dynamic_rotate %174 by %c110_i32 dim 1 : vector<32x128xf32>, i32 -> vector<32x128xf32>
    %c40 = arith.constant 40 : index
    %c0_85 = arith.constant 0 : index
    %295 = vector.load %arg2[%c40, %c0_85] : memref<72x128xf32, #tpu.memory_space<vmem>>, vector<1x128xf32>
    %296 = vector.broadcast %295 : vector<1x128xf32> to vector<32x128xf32>
    %297 = arith.mulf %294, %296 : vector<32x128xf32>
    %298 = arith.truncf %297 : vector<32x128xf32> to vector<32x128xbf16>
    %299 = tpu.concatenate %179, %184, %189, %194, %199, %204, %209, %214, %219, %224, %229, %234, %238, %243, %248, %253 in 0 : vector<32x128xbf16>, vector<32x128xbf16>, vector<32x128xbf16>, vector<32x128xbf16>, vector<32x128xbf16>, vector<32x128xbf16>, vector<32x128xbf16>, vector<32x128xbf16>, vector<32x128xbf16>, vector<32x128xbf16>, vector<32x128xbf16>, vector<32x128xbf16>, vector<32x128xbf16>, vector<32x128xbf16>, vector<32x128xbf16>, vector<32x128xbf16> -> vector<512x128xbf16>
    %300 = tpu.concatenate %258, %263, %268, %273, %278, %283, %288, %293, %298 in 0 : vector<32x128xbf16>, vector<32x128xbf16>, vector<32x128xbf16>, vector<32x128xbf16>, vector<32x128xbf16>, vector<32x128xbf16>, vector<32x128xbf16>, vector<32x128xbf16>, vector<32x128xbf16> -> vector<288x128xbf16>
    %301 = tpu.concatenate %299, %300 in 0 : vector<512x128xbf16>, vector<288x128xbf16> -> vector<800x128xbf16>
    %c0_86 = arith.constant 0 : index
    %c0_87 = arith.constant 0 : index
    %302 = vector.load %arg5[%c0_86, %c0_87] : memref<96x864xbf16, #tpu.memory_space<vmem>>, vector<32x800xbf16>
    %cst_88 = arith.constant dense<0.000000e+00> : vector<32x128xf32>
    %303 = tpu.matmul %302, %301, %cst_88 {dimension_numbers = #tpu.dot_dimension_numbers<[1], [0], [0], [1], [0, 0, 1, 1], [], []>} : vector<32x800xbf16>, vector<800x128xbf16>, vector<32x128xf32> -> vector<32x128xf32>
    %c0_89 = arith.constant 0 : index
    %c3_90 = arith.constant 3 : index
    %304 = vector.load %arg4[%c0_89, %c3_90] : memref<128x21xf32, #tpu.memory_space<vmem>>, vector<32x1xf32>
    %305 = vector.broadcast %304 : vector<32x1xf32> to vector<32x128xf32>
    %306 = arith.addf %303, %305 : vector<32x128xf32>
    %c0_91 = arith.constant 0 : index
    %c0_92 = arith.constant 0 : index
    %307 = vector.load %arg8[%c0_91, %c0_92] : memref<128x128xf32, #tpu.memory_space<vmem>>, vector<32x128xf32>
    tpu.vector_store %arg8[%c0_91, %c0_92], %306 {strides = array<i32>} : memref<128x128xf32, #tpu.memory_space<vmem>>, vector<32x128xf32>,
    %c0_93 = arith.constant 0 : index
    %c8_94 = arith.constant 8 : index
    %308 = vector.load %arg4[%c0_93, %c8_94] : memref<128x21xf32, #tpu.memory_space<vmem>>, vector<32x1xf32>
    %309 = vector.broadcast %308 : vector<32x1xf32> to vector<32x128xf32>
    %310 = arith.mulf %306, %309 : vector<32x128xf32>
    %c0_95 = arith.constant 0 : index
    %c9 = arith.constant 9 : index
    %311 = vector.load %arg4[%c0_95, %c9] : memref<128x21xf32, #tpu.memory_space<vmem>>, vector<32x1xf32>
    %312 = vector.broadcast %311 : vector<32x1xf32> to vector<32x128xf32>
    %313 = arith.addf %310, %312 : vector<32x128xf32>
    %cst_96 = arith.constant 0.000000e+00 : f32
    %314 = vector.broadcast %cst_96 : f32 to vector<32x128xf32>
    %315 = arith.maximumf %313, %314 : vector<32x128xf32>
    %c9_i32_97 = arith.constant 9 : i32
    %316 = tpu.dynamic_rotate %315 by %c9_i32_97 dim 1 : vector<32x128xf32>, i32 -> vector<32x128xf32>
    %c0_98 = arith.constant 0 : index
    %c0_99 = arith.constant 0 : index
    %317 = vector.load %arg2[%c0_98, %c0_99] : memref<72x128xf32, #tpu.memory_space<vmem>>, vector<1x128xf32>
    %318 = vector.broadcast %317 : vector<1x128xf32> to vector<32x128xf32>
    %319 = arith.mulf %316, %318 : vector<32x128xf32>
    %320 = arith.truncf %319 : vector<32x128xf32> to vector<32x128xbf16>
    %c8_i32_100 = arith.constant 8 : i32
    %321 = tpu.dynamic_rotate %315 by %c8_i32_100 dim 1 : vector<32x128xf32>, i32 -> vector<32x128xf32>
    %c1_101 = arith.constant 1 : index
    %c0_102 = arith.constant 0 : index
    %322 = vector.load %arg2[%c1_101, %c0_102] : memref<72x128xf32, #tpu.memory_space<vmem>>, vector<1x128xf32>
    %323 = vector.broadcast %322 : vector<1x128xf32> to vector<32x128xf32>
    %324 = arith.mulf %321, %323 : vector<32x128xf32>
    %325 = arith.truncf %324 : vector<32x128xf32> to vector<32x128xbf16>
    %c7_i32_103 = arith.constant 7 : i32
    %326 = tpu.dynamic_rotate %315 by %c7_i32_103 dim 1 : vector<32x128xf32>, i32 -> vector<32x128xf32>
    %c2_104 = arith.constant 2 : index
    %c0_105 = arith.constant 0 : index
    %327 = vector.load %arg2[%c2_104, %c0_105] : memref<72x128xf32, #tpu.memory_space<vmem>>, vector<1x128xf32>
    %328 = vector.broadcast %327 : vector<1x128xf32> to vector<32x128xf32>
    %329 = arith.mulf %326, %328 : vector<32x128xf32>
    %330 = arith.truncf %329 : vector<32x128xf32> to vector<32x128xbf16>
    %c1_i32_106 = arith.constant 1 : i32
    %331 = tpu.dynamic_rotate %315 by %c1_i32_106 dim 1 : vector<32x128xf32>, i32 -> vector<32x128xf32>
    %c3_107 = arith.constant 3 : index
    %c0_108 = arith.constant 0 : index
    %332 = vector.load %arg2[%c3_107, %c0_108] : memref<72x128xf32, #tpu.memory_space<vmem>>, vector<1x128xf32>
    %333 = vector.broadcast %332 : vector<1x128xf32> to vector<32x128xf32>
    %334 = arith.mulf %331, %333 : vector<32x128xf32>
    %335 = arith.truncf %334 : vector<32x128xf32> to vector<32x128xbf16>
    %c4_109 = arith.constant 4 : index
    %c0_110 = arith.constant 0 : index
    %336 = vector.load %arg2[%c4_109, %c0_110] : memref<72x128xf32, #tpu.memory_space<vmem>>, vector<1x128xf32>
    %337 = vector.broadcast %336 : vector<1x128xf32> to vector<32x128xf32>
    %338 = arith.mulf %315, %337 : vector<32x128xf32>
    %339 = arith.truncf %338 : vector<32x128xf32> to vector<32x128xbf16>
    %c127_i32_111 = arith.constant 127 : i32
    %340 = tpu.dynamic_rotate %315 by %c127_i32_111 dim 1 : vector<32x128xf32>, i32 -> vector<32x128xf32>
    %c5_112 = arith.constant 5 : index
    %c0_113 = arith.constant 0 : index
    %341 = vector.load %arg2[%c5_112, %c0_113] : memref<72x128xf32, #tpu.memory_space<vmem>>, vector<1x128xf32>
    %342 = vector.broadcast %341 : vector<1x128xf32> to vector<32x128xf32>
    %343 = arith.mulf %340, %342 : vector<32x128xf32>
    %344 = arith.truncf %343 : vector<32x128xf32> to vector<32x128xbf16>
    %c121_i32_114 = arith.constant 121 : i32
    %345 = tpu.dynamic_rotate %315 by %c121_i32_114 dim 1 : vector<32x128xf32>, i32 -> vector<32x128xf32>
    %c6_115 = arith.constant 6 : index
    %c0_116 = arith.constant 0 : index
    %346 = vector.load %arg2[%c6_115, %c0_116] : memref<72x128xf32, #tpu.memory_space<vmem>>, vector<1x128xf32>
    %347 = vector.broadcast %346 : vector<1x128xf32> to vector<32x128xf32>
    %348 = arith.mulf %345, %347 : vector<32x128xf32>
    %349 = arith.truncf %348 : vector<32x128xf32> to vector<32x128xbf16>
    %c120_i32_117 = arith.constant 120 : i32
    %350 = tpu.dynamic_rotate %315 by %c120_i32_117 dim 1 : vector<32x128xf32>, i32 -> vector<32x128xf32>
    %c7_118 = arith.constant 7 : index
    %c0_119 = arith.constant 0 : index
    %351 = vector.load %arg2[%c7_118, %c0_119] : memref<72x128xf32, #tpu.memory_space<vmem>>, vector<1x128xf32>
    %352 = vector.broadcast %351 : vector<1x128xf32> to vector<32x128xf32>
    %353 = arith.mulf %350, %352 : vector<32x128xf32>
    %354 = arith.truncf %353 : vector<32x128xf32> to vector<32x128xbf16>
    %c119_i32_120 = arith.constant 119 : i32
    %355 = tpu.dynamic_rotate %315 by %c119_i32_120 dim 1 : vector<32x128xf32>, i32 -> vector<32x128xf32>
    %c8_121 = arith.constant 8 : index
    %c0_122 = arith.constant 0 : index
    %356 = vector.load %arg2[%c8_121, %c0_122] : memref<72x128xf32, #tpu.memory_space<vmem>>, vector<1x128xf32>
    %357 = vector.broadcast %356 : vector<1x128xf32> to vector<32x128xf32>
    %358 = arith.mulf %355, %357 : vector<32x128xf32>
    %359 = arith.truncf %358 : vector<32x128xf32> to vector<32x128xbf16>
    %360 = tpu.concatenate %320, %325, %330, %335, %339, %344, %349, %354, %359 in 0 : vector<32x128xbf16>, vector<32x128xbf16>, vector<32x128xbf16>, vector<32x128xbf16>, vector<32x128xbf16>, vector<32x128xbf16>, vector<32x128xbf16>, vector<32x128xbf16>, vector<32x128xbf16> -> vector<288x128xbf16>
    %c24_123 = arith.constant 24 : index
    %c0_124 = arith.constant 0 : index
    %361 = vector.load %arg6[%c24_123, %c0_124] : memref<232x288xbf16, #tpu.memory_space<vmem>>, vector<32x288xbf16>
    %cst_125 = arith.constant dense<0.000000e+00> : vector<32x128xf32>
    %362 = tpu.matmul %361, %360, %cst_125 {dimension_numbers = #tpu.dot_dimension_numbers<[1], [0], [0], [1], [0, 0, 1, 1], [], []>} : vector<32x288xbf16>, vector<288x128xbf16>, vector<32x128xf32> -> vector<32x128xf32>
    %c0_126 = arith.constant 0 : index
    %c4_127 = arith.constant 4 : index
    %363 = vector.load %arg4[%c0_126, %c4_127] : memref<128x21xf32, #tpu.memory_space<vmem>>, vector<32x1xf32>
    %364 = vector.broadcast %363 : vector<32x1xf32> to vector<32x128xf32>
    %365 = arith.addf %362, %364 : vector<32x128xf32>
    %c32_128 = arith.constant 32 : index
    %c0_129 = arith.constant 0 : index
    %366 = vector.load %arg8[%c32_128, %c0_129] : memref<128x128xf32, #tpu.memory_space<vmem>>, vector<32x128xf32>
    tpu.vector_store %arg8[%c32_128, %c0_129], %365 {strides = array<i32>} : memref<128x128xf32, #tpu.memory_space<vmem>>, vector<32x128xf32>,
    %c0_130 = arith.constant 0 : index
    %c0_131 = arith.constant 0 : index
    %367 = vector.load %arg8[%c0_130, %c0_131] : memref<128x128xf32, #tpu.memory_space<vmem>>, vector<64x128xf32>
    %c0_132 = arith.constant 0 : index
    %c10 = arith.constant 10 : index
    %368 = vector.load %arg4[%c0_132, %c10] : memref<128x21xf32, #tpu.memory_space<vmem>>, vector<64x1xf32>
    %369 = vector.broadcast %368 : vector<64x1xf32> to vector<64x128xf32>
    %370 = arith.mulf %367, %369 : vector<64x128xf32>
    %c0_133 = arith.constant 0 : index
    %c11 = arith.constant 11 : index
    %371 = vector.load %arg4[%c0_133, %c11] : memref<128x21xf32, #tpu.memory_space<vmem>>, vector<64x1xf32>
    %372 = vector.broadcast %371 : vector<64x1xf32> to vector<64x128xf32>
    %373 = arith.addf %370, %372 : vector<64x128xf32>
    %cst_134 = arith.constant 0.000000e+00 : f32
    %374 = vector.broadcast %cst_134 : f32 to vector<64x128xf32>
    %375 = arith.maximumf %373, %374 : vector<64x128xf32>
    %c9_i32_135 = arith.constant 9 : i32
    %376 = tpu.dynamic_rotate %375 by %c9_i32_135 dim 1 : vector<64x128xf32>, i32 -> vector<64x128xf32>
    %c0_136 = arith.constant 0 : index
    %c0_137 = arith.constant 0 : index
    %377 = vector.load %arg2[%c0_136, %c0_137] : memref<72x128xf32, #tpu.memory_space<vmem>>, vector<1x128xf32>
    %378 = vector.broadcast %377 : vector<1x128xf32> to vector<64x128xf32>
    %379 = arith.mulf %376, %378 : vector<64x128xf32>
    %380 = arith.truncf %379 : vector<64x128xf32> to vector<64x128xbf16>
    %c8_i32_138 = arith.constant 8 : i32
    %381 = tpu.dynamic_rotate %375 by %c8_i32_138 dim 1 : vector<64x128xf32>, i32 -> vector<64x128xf32>
    %c1_139 = arith.constant 1 : index
    %c0_140 = arith.constant 0 : index
    %382 = vector.load %arg2[%c1_139, %c0_140] : memref<72x128xf32, #tpu.memory_space<vmem>>, vector<1x128xf32>
    %383 = vector.broadcast %382 : vector<1x128xf32> to vector<64x128xf32>
    %384 = arith.mulf %381, %383 : vector<64x128xf32>
    %385 = arith.truncf %384 : vector<64x128xf32> to vector<64x128xbf16>
    %c7_i32_141 = arith.constant 7 : i32
    %386 = tpu.dynamic_rotate %375 by %c7_i32_141 dim 1 : vector<64x128xf32>, i32 -> vector<64x128xf32>
    %c2_142 = arith.constant 2 : index
    %c0_143 = arith.constant 0 : index
    %387 = vector.load %arg2[%c2_142, %c0_143] : memref<72x128xf32, #tpu.memory_space<vmem>>, vector<1x128xf32>
    %388 = vector.broadcast %387 : vector<1x128xf32> to vector<64x128xf32>
    %389 = arith.mulf %386, %388 : vector<64x128xf32>
    %390 = arith.truncf %389 : vector<64x128xf32> to vector<64x128xbf16>
    %c1_i32_144 = arith.constant 1 : i32
    %391 = tpu.dynamic_rotate %375 by %c1_i32_144 dim 1 : vector<64x128xf32>, i32 -> vector<64x128xf32>
    %c3_145 = arith.constant 3 : index
    %c0_146 = arith.constant 0 : index
    %392 = vector.load %arg2[%c3_145, %c0_146] : memref<72x128xf32, #tpu.memory_space<vmem>>, vector<1x128xf32>
    %393 = vector.broadcast %392 : vector<1x128xf32> to vector<64x128xf32>
    %394 = arith.mulf %391, %393 : vector<64x128xf32>
    %395 = arith.truncf %394 : vector<64x128xf32> to vector<64x128xbf16>
    %c4_147 = arith.constant 4 : index
    %c0_148 = arith.constant 0 : index
    %396 = vector.load %arg2[%c4_147, %c0_148] : memref<72x128xf32, #tpu.memory_space<vmem>>, vector<1x128xf32>
    %397 = vector.broadcast %396 : vector<1x128xf32> to vector<64x128xf32>
    %398 = arith.mulf %375, %397 : vector<64x128xf32>
    %399 = arith.truncf %398 : vector<64x128xf32> to vector<64x128xbf16>
    %c127_i32_149 = arith.constant 127 : i32
    %400 = tpu.dynamic_rotate %375 by %c127_i32_149 dim 1 : vector<64x128xf32>, i32 -> vector<64x128xf32>
    %c5_150 = arith.constant 5 : index
    %c0_151 = arith.constant 0 : index
    %401 = vector.load %arg2[%c5_150, %c0_151] : memref<72x128xf32, #tpu.memory_space<vmem>>, vector<1x128xf32>
    %402 = vector.broadcast %401 : vector<1x128xf32> to vector<64x128xf32>
    %403 = arith.mulf %400, %402 : vector<64x128xf32>
    %404 = arith.truncf %403 : vector<64x128xf32> to vector<64x128xbf16>
    %c121_i32_152 = arith.constant 121 : i32
    %405 = tpu.dynamic_rotate %375 by %c121_i32_152 dim 1 : vector<64x128xf32>, i32 -> vector<64x128xf32>
    %c6_153 = arith.constant 6 : index
    %c0_154 = arith.constant 0 : index
    %406 = vector.load %arg2[%c6_153, %c0_154] : memref<72x128xf32, #tpu.memory_space<vmem>>, vector<1x128xf32>
    %407 = vector.broadcast %406 : vector<1x128xf32> to vector<64x128xf32>
    %408 = arith.mulf %405, %407 : vector<64x128xf32>
    %409 = arith.truncf %408 : vector<64x128xf32> to vector<64x128xbf16>
    %c120_i32_155 = arith.constant 120 : i32
    %410 = tpu.dynamic_rotate %375 by %c120_i32_155 dim 1 : vector<64x128xf32>, i32 -> vector<64x128xf32>
    %c7_156 = arith.constant 7 : index
    %c0_157 = arith.constant 0 : index
    %411 = vector.load %arg2[%c7_156, %c0_157] : memref<72x128xf32, #tpu.memory_space<vmem>>, vector<1x128xf32>
    %412 = vector.broadcast %411 : vector<1x128xf32> to vector<64x128xf32>
    %413 = arith.mulf %410, %412 : vector<64x128xf32>
    %414 = arith.truncf %413 : vector<64x128xf32> to vector<64x128xbf16>
    %c119_i32_158 = arith.constant 119 : i32
    %415 = tpu.dynamic_rotate %375 by %c119_i32_158 dim 1 : vector<64x128xf32>, i32 -> vector<64x128xf32>
    %c8_159 = arith.constant 8 : index
    %c0_160 = arith.constant 0 : index
    %416 = vector.load %arg2[%c8_159, %c0_160] : memref<72x128xf32, #tpu.memory_space<vmem>>, vector<1x128xf32>
    %417 = vector.broadcast %416 : vector<1x128xf32> to vector<64x128xf32>
    %418 = arith.mulf %415, %417 : vector<64x128xf32>
    %419 = arith.truncf %418 : vector<64x128xf32> to vector<64x128xbf16>
    %420 = tpu.concatenate %380, %385, %390, %395, %399, %404, %409, %414, %419 in 0 : vector<64x128xbf16>, vector<64x128xbf16>, vector<64x128xbf16>, vector<64x128xbf16>, vector<64x128xbf16>, vector<64x128xbf16>, vector<64x128xbf16>, vector<64x128xbf16>, vector<64x128xbf16> -> vector<576x128xbf16>
    %c32_161 = arith.constant 32 : index
    %c0_162 = arith.constant 0 : index
    %421 = vector.load %arg5[%c32_161, %c0_162] : memref<96x864xbf16, #tpu.memory_space<vmem>>, vector<32x576xbf16>
    %cst_163 = arith.constant dense<0.000000e+00> : vector<32x128xf32>
    %422 = tpu.matmul %421, %420, %cst_163 {dimension_numbers = #tpu.dot_dimension_numbers<[1], [0], [0], [1], [0, 0, 1, 1], [], []>} : vector<32x576xbf16>, vector<576x128xbf16>, vector<32x128xf32> -> vector<32x128xf32>
    %c0_164 = arith.constant 0 : index
    %c5_165 = arith.constant 5 : index
    %423 = vector.load %arg4[%c0_164, %c5_165] : memref<128x21xf32, #tpu.memory_space<vmem>>, vector<32x1xf32>
    %424 = vector.broadcast %423 : vector<32x1xf32> to vector<32x128xf32>
    %425 = arith.addf %422, %424 : vector<32x128xf32>
    %c64_166 = arith.constant 64 : index
    %c0_167 = arith.constant 0 : index
    %426 = vector.load %arg8[%c64_166, %c0_167] : memref<128x128xf32, #tpu.memory_space<vmem>>, vector<32x128xf32>
    tpu.vector_store %arg8[%c64_166, %c0_167], %425 {strides = array<i32>} : memref<128x128xf32, #tpu.memory_space<vmem>>, vector<32x128xf32>,
    %c0_168 = arith.constant 0 : index
    %c0_169 = arith.constant 0 : index
    %427 = vector.load %arg8[%c0_168, %c0_169] : memref<128x128xf32, #tpu.memory_space<vmem>>, vector<96x128xf32>
    %c0_170 = arith.constant 0 : index
    %c12 = arith.constant 12 : index
    %428 = vector.load %arg4[%c0_170, %c12] : memref<128x21xf32, #tpu.memory_space<vmem>>, vector<96x1xf32>
    %429 = vector.broadcast %428 : vector<96x1xf32> to vector<96x128xf32>
    %430 = arith.mulf %427, %429 : vector<96x128xf32>
    %c0_171 = arith.constant 0 : index
    %c13 = arith.constant 13 : index
    %431 = vector.load %arg4[%c0_171, %c13] : memref<128x21xf32, #tpu.memory_space<vmem>>, vector<96x1xf32>
    %432 = vector.broadcast %431 : vector<96x1xf32> to vector<96x128xf32>
    %433 = arith.addf %430, %432 : vector<96x128xf32>
    %cst_172 = arith.constant 0.000000e+00 : f32
    %434 = vector.broadcast %cst_172 : f32 to vector<96x128xf32>
    %435 = arith.maximumf %433, %434 : vector<96x128xf32>
    %c9_i32_173 = arith.constant 9 : i32
    %436 = tpu.dynamic_rotate %435 by %c9_i32_173 dim 1 : vector<96x128xf32>, i32 -> vector<96x128xf32>
    %c0_174 = arith.constant 0 : index
    %c0_175 = arith.constant 0 : index
    %437 = vector.load %arg2[%c0_174, %c0_175] : memref<72x128xf32, #tpu.memory_space<vmem>>, vector<1x128xf32>
    %438 = vector.broadcast %437 : vector<1x128xf32> to vector<96x128xf32>
    %439 = arith.mulf %436, %438 : vector<96x128xf32>
    %440 = arith.truncf %439 : vector<96x128xf32> to vector<96x128xbf16>
    %c8_i32_176 = arith.constant 8 : i32
    %441 = tpu.dynamic_rotate %435 by %c8_i32_176 dim 1 : vector<96x128xf32>, i32 -> vector<96x128xf32>
    %c1_177 = arith.constant 1 : index
    %c0_178 = arith.constant 0 : index
    %442 = vector.load %arg2[%c1_177, %c0_178] : memref<72x128xf32, #tpu.memory_space<vmem>>, vector<1x128xf32>
    %443 = vector.broadcast %442 : vector<1x128xf32> to vector<96x128xf32>
    %444 = arith.mulf %441, %443 : vector<96x128xf32>
    %445 = arith.truncf %444 : vector<96x128xf32> to vector<96x128xbf16>
    %c7_i32_179 = arith.constant 7 : i32
    %446 = tpu.dynamic_rotate %435 by %c7_i32_179 dim 1 : vector<96x128xf32>, i32 -> vector<96x128xf32>
    %c2_180 = arith.constant 2 : index
    %c0_181 = arith.constant 0 : index
    %447 = vector.load %arg2[%c2_180, %c0_181] : memref<72x128xf32, #tpu.memory_space<vmem>>, vector<1x128xf32>
    %448 = vector.broadcast %447 : vector<1x128xf32> to vector<96x128xf32>
    %449 = arith.mulf %446, %448 : vector<96x128xf32>
    %450 = arith.truncf %449 : vector<96x128xf32> to vector<96x128xbf16>
    %c1_i32_182 = arith.constant 1 : i32
    %451 = tpu.dynamic_rotate %435 by %c1_i32_182 dim 1 : vector<96x128xf32>, i32 -> vector<96x128xf32>
    %c3_183 = arith.constant 3 : index
    %c0_184 = arith.constant 0 : index
    %452 = vector.load %arg2[%c3_183, %c0_184] : memref<72x128xf32, #tpu.memory_space<vmem>>, vector<1x128xf32>
    %453 = vector.broadcast %452 : vector<1x128xf32> to vector<96x128xf32>
    %454 = arith.mulf %451, %453 : vector<96x128xf32>
    %455 = arith.truncf %454 : vector<96x128xf32> to vector<96x128xbf16>
    %c4_185 = arith.constant 4 : index
    %c0_186 = arith.constant 0 : index
    %456 = vector.load %arg2[%c4_185, %c0_186] : memref<72x128xf32, #tpu.memory_space<vmem>>, vector<1x128xf32>
    %457 = vector.broadcast %456 : vector<1x128xf32> to vector<96x128xf32>
    %458 = arith.mulf %435, %457 : vector<96x128xf32>
    %459 = arith.truncf %458 : vector<96x128xf32> to vector<96x128xbf16>
    %c127_i32_187 = arith.constant 127 : i32
    %460 = tpu.dynamic_rotate %435 by %c127_i32_187 dim 1 : vector<96x128xf32>, i32 -> vector<96x128xf32>
    %c5_188 = arith.constant 5 : index
    %c0_189 = arith.constant 0 : index
    %461 = vector.load %arg2[%c5_188, %c0_189] : memref<72x128xf32, #tpu.memory_space<vmem>>, vector<1x128xf32>
    %462 = vector.broadcast %461 : vector<1x128xf32> to vector<96x128xf32>
    %463 = arith.mulf %460, %462 : vector<96x128xf32>
    %464 = arith.truncf %463 : vector<96x128xf32> to vector<96x128xbf16>
    %c121_i32_190 = arith.constant 121 : i32
    %465 = tpu.dynamic_rotate %435 by %c121_i32_190 dim 1 : vector<96x128xf32>, i32 -> vector<96x128xf32>
    %c6_191 = arith.constant 6 : index
    %c0_192 = arith.constant 0 : index
    %466 = vector.load %arg2[%c6_191, %c0_192] : memref<72x128xf32, #tpu.memory_space<vmem>>, vector<1x128xf32>
    %467 = vector.broadcast %466 : vector<1x128xf32> to vector<96x128xf32>
    %468 = arith.mulf %465, %467 : vector<96x128xf32>
    %469 = arith.truncf %468 : vector<96x128xf32> to vector<96x128xbf16>
    %c120_i32_193 = arith.constant 120 : i32
    %470 = tpu.dynamic_rotate %435 by %c120_i32_193 dim 1 : vector<96x128xf32>, i32 -> vector<96x128xf32>
    %c7_194 = arith.constant 7 : index
    %c0_195 = arith.constant 0 : index
    %471 = vector.load %arg2[%c7_194, %c0_195] : memref<72x128xf32, #tpu.memory_space<vmem>>, vector<1x128xf32>
    %472 = vector.broadcast %471 : vector<1x128xf32> to vector<96x128xf32>
    %473 = arith.mulf %470, %472 : vector<96x128xf32>
    %474 = arith.truncf %473 : vector<96x128xf32> to vector<96x128xbf16>
    %c119_i32_196 = arith.constant 119 : i32
    %475 = tpu.dynamic_rotate %435 by %c119_i32_196 dim 1 : vector<96x128xf32>, i32 -> vector<96x128xf32>
    %c8_197 = arith.constant 8 : index
    %c0_198 = arith.constant 0 : index
    %476 = vector.load %arg2[%c8_197, %c0_198] : memref<72x128xf32, #tpu.memory_space<vmem>>, vector<1x128xf32>
    %477 = vector.broadcast %476 : vector<1x128xf32> to vector<96x128xf32>
    %478 = arith.mulf %475, %477 : vector<96x128xf32>
    %479 = arith.truncf %478 : vector<96x128xf32> to vector<96x128xbf16>
    %480 = tpu.concatenate %440, %445, %450, %455, %459, %464, %469, %474, %479 in 0 : vector<96x128xbf16>, vector<96x128xbf16>, vector<96x128xbf16>, vector<96x128xbf16>, vector<96x128xbf16>, vector<96x128xbf16>, vector<96x128xbf16>, vector<96x128xbf16>, vector<96x128xbf16> -> vector<864x128xbf16>
    %c64_199 = arith.constant 64 : index
    %c0_200 = arith.constant 0 : index
    %481 = vector.load %arg5[%c64_199, %c0_200] : memref<96x864xbf16, #tpu.memory_space<vmem>>, vector<32x864xbf16>
    %cst_201 = arith.constant dense<0.000000e+00> : vector<32x128xf32>
    %482 = tpu.matmul %481, %480, %cst_201 {dimension_numbers = #tpu.dot_dimension_numbers<[1], [0], [0], [1], [0, 0, 1, 1], [], []>} : vector<32x864xbf16>, vector<864x128xbf16>, vector<32x128xf32> -> vector<32x128xf32>
    %c0_202 = arith.constant 0 : index
    %c6_203 = arith.constant 6 : index
    %483 = vector.load %arg4[%c0_202, %c6_203] : memref<128x21xf32, #tpu.memory_space<vmem>>, vector<32x1xf32>
    %484 = vector.broadcast %483 : vector<32x1xf32> to vector<32x128xf32>
    %485 = arith.addf %482, %484 : vector<32x128xf32>
    %c96 = arith.constant 96 : index
    %c0_204 = arith.constant 0 : index
    %486 = vector.load %arg8[%c96, %c0_204] : memref<128x128xf32, #tpu.memory_space<vmem>>, vector<32x128xf32>
    tpu.vector_store %arg8[%c96, %c0_204], %485 {strides = array<i32>} : memref<128x128xf32, #tpu.memory_space<vmem>>, vector<32x128xf32>,
    %c0_205 = arith.constant 0 : index
    %c0_206 = arith.constant 0 : index
    %487 = vector.load %arg8[%c0_205, %c0_206] : memref<128x128xf32, #tpu.memory_space<vmem>>, vector<128x128xf32>
    %c0_207 = arith.constant 0 : index
    %c14 = arith.constant 14 : index
    %488 = vector.load %arg4[%c0_207, %c14] : memref<128x21xf32, #tpu.memory_space<vmem>>, vector<128x1xf32>
    %489 = vector.broadcast %488 : vector<128x1xf32> to vector<128x128xf32>
    %490 = arith.mulf %487, %489 : vector<128x128xf32>
    %c0_208 = arith.constant 0 : index
    %c15 = arith.constant 15 : index
    %491 = vector.load %arg4[%c0_208, %c15] : memref<128x21xf32, #tpu.memory_space<vmem>>, vector<128x1xf32>
    %492 = vector.broadcast %491 : vector<128x1xf32> to vector<128x128xf32>
    %493 = arith.addf %490, %492 : vector<128x128xf32>
    %cst_209 = arith.constant 0.000000e+00 : f32
    %494 = vector.broadcast %cst_209 : f32 to vector<128x128xf32>
    %495 = arith.maximumf %493, %494 : vector<128x128xf32>
    %c56_210 = arith.constant 56 : index
    %c0_211 = arith.constant 0 : index
    %496 = vector.load %arg6[%c56_210, %c0_211] : memref<232x288xbf16, #tpu.memory_space<vmem>>, vector<32x128xbf16>
    %497 = arith.truncf %495 : vector<128x128xf32> to vector<128x128xbf16>
    %cst_212 = arith.constant dense<0.000000e+00> : vector<32x128xf32>
    %498 = tpu.matmul %496, %497, %cst_212 {dimension_numbers = #tpu.dot_dimension_numbers<[1], [0], [0], [1], [0, 0, 1, 1], [], []>} : vector<32x128xbf16>, vector<128x128xbf16>, vector<32x128xf32> -> vector<32x128xf32>
    %c0_213 = arith.constant 0 : index
    %c7_214 = arith.constant 7 : index
    %499 = vector.load %arg4[%c0_213, %c7_214] : memref<128x21xf32, #tpu.memory_space<vmem>>, vector<32x1xf32>
    %500 = vector.broadcast %499 : vector<32x1xf32> to vector<32x128xf32>
    %501 = arith.addf %498, %500 : vector<32x128xf32>
    %cst_215 = arith.constant 0.000000e+00 : f32
    %502 = vector.broadcast %cst_215 : f32 to vector<32x128xf32>
    %503 = arith.maximumf %501, %502 : vector<32x128xf32>
    %c512 = arith.constant 512 : index
    %c0_216 = arith.constant 0 : index
    %504 = vector.load %arg3[%c512, %c0_216] : memref<640x128xbf16, #tpu.memory_space<vmem>>, vector<128x2xbf16>
    %505 = arith.mulf %503, %101 : vector<32x128xf32>
    %506 = arith.truncf %505 : vector<32x128xf32> to vector<32x128xbf16>
    %cst_217 = arith.constant dense<0.000000e+00> : vector<32x2xf32>
    %507 = tpu.matmul %506, %504, %cst_217 {dimension_numbers = #tpu.dot_dimension_numbers<[1], [0], [0], [1], [0, 0, 1, 1], [], []>} : vector<32x128xbf16>, vector<128x2xbf16>, vector<32x2xf32> -> vector<32x2xf32>
    %508 = vector.extract_strided_slice %507 {offsets = [0, 0], sizes = [8, 2], strides = [1, 1]} : vector<32x2xf32> to vector<8x2xf32>
    %509 = arith.mulf %508, %508 : vector<8x2xf32>
    %cst_218 = arith.constant dense<0.000000e+00> : vector<2xf32>
    %510 = vector.multi_reduction <add>, %509, %cst_218 [0] : vector<8x2xf32> to vector<2xf32>
    %511 = vector.shape_cast %510 : vector<2xf32> to vector<1x2xf32>
    %cst_219 = arith.constant 1.000000e-24 : f32
    %512 = vector.broadcast %cst_219 : f32 to vector<1x2xf32>
    %513 = arith.maximumf %511, %512 : vector<1x2xf32>
    %514 = math.rsqrt %513 : vector<1x2xf32>
    %515 = vector.broadcast %514 : vector<1x2xf32> to vector<8x2xf32>
    %516 = arith.mulf %508, %515 : vector<8x2xf32>
    %517 = vector.extract_strided_slice %507 {offsets = [8, 0], sizes = [8, 2], strides = [1, 1]} : vector<32x2xf32> to vector<8x2xf32>
    %518 = arith.mulf %517, %517 : vector<8x2xf32>
    %cst_220 = arith.constant dense<0.000000e+00> : vector<2xf32>
    %519 = vector.multi_reduction <add>, %518, %cst_220 [0] : vector<8x2xf32> to vector<2xf32>
    %520 = vector.shape_cast %519 : vector<2xf32> to vector<1x2xf32>
    %cst_221 = arith.constant 1.000000e-24 : f32
    %521 = vector.broadcast %cst_221 : f32 to vector<1x2xf32>
    %522 = arith.maximumf %520, %521 : vector<1x2xf32>
    %523 = math.rsqrt %522 : vector<1x2xf32>
    %524 = vector.broadcast %523 : vector<1x2xf32> to vector<8x2xf32>
    %525 = arith.mulf %517, %524 : vector<8x2xf32>
    %526 = vector.extract_strided_slice %507 {offsets = [16, 0], sizes = [8, 2], strides = [1, 1]} : vector<32x2xf32> to vector<8x2xf32>
    %527 = arith.mulf %526, %526 : vector<8x2xf32>
    %cst_222 = arith.constant dense<0.000000e+00> : vector<2xf32>
    %528 = vector.multi_reduction <add>, %527, %cst_222 [0] : vector<8x2xf32> to vector<2xf32>
    %529 = vector.shape_cast %528 : vector<2xf32> to vector<1x2xf32>
    %cst_223 = arith.constant 1.000000e-24 : f32
    %530 = vector.broadcast %cst_223 : f32 to vector<1x2xf32>
    %531 = arith.maximumf %529, %530 : vector<1x2xf32>
    %532 = math.rsqrt %531 : vector<1x2xf32>
    %533 = vector.broadcast %532 : vector<1x2xf32> to vector<8x2xf32>
    %534 = arith.mulf %526, %533 : vector<8x2xf32>
    %535 = vector.extract_strided_slice %507 {offsets = [24, 0], sizes = [8, 2], strides = [1, 1]} : vector<32x2xf32> to vector<8x2xf32>
    %536 = arith.mulf %535, %535 : vector<8x2xf32>
    %cst_224 = arith.constant dense<0.000000e+00> : vector<2xf32>
    %537 = vector.multi_reduction <add>, %536, %cst_224 [0] : vector<8x2xf32> to vector<2xf32>
    %538 = vector.shape_cast %537 : vector<2xf32> to vector<1x2xf32>
    %cst_225 = arith.constant 1.000000e-24 : f32
    %539 = vector.broadcast %cst_225 : f32 to vector<1x2xf32>
    %540 = arith.maximumf %538, %539 : vector<1x2xf32>
    %541 = math.rsqrt %540 : vector<1x2xf32>
    %542 = vector.broadcast %541 : vector<1x2xf32> to vector<8x2xf32>
    %543 = arith.mulf %535, %542 : vector<8x2xf32>
    %544 = tpu.concatenate %516, %525, %534, %543 in 0 : vector<8x2xf32>, vector<8x2xf32>, vector<8x2xf32>, vector<8x2xf32> -> vector<32x2xf32>
    %c96_226 = arith.constant 96 : index
    %c0_227 = arith.constant 0 : index
    %545 = vector.load %arg6[%c96_226, %c0_227] : memref<232x288xbf16, #tpu.memory_space<vmem>>, vector<32x32xbf16>
    %546 = arith.truncf %544 : vector<32x2xf32> to vector<32x2xbf16>
    %cst_228 = arith.constant dense<0.000000e+00> : vector<32x2xf32>
    %547 = tpu.matmul %545, %546, %cst_228 {dimension_numbers = #tpu.dot_dimension_numbers<[1], [0], [0], [1], [0, 0, 1, 1], [], []>} : vector<32x32xbf16>, vector<32x2xbf16>, vector<32x2xf32> -> vector<32x2xf32>
    %c0_229 = arith.constant 0 : index
    %c16_230 = arith.constant 16 : index
    %548 = vector.load %arg4[%c0_229, %c16_230] : memref<128x21xf32, #tpu.memory_space<vmem>>, vector<32x1xf32>
    %549 = vector.broadcast %548 : vector<32x1xf32> to vector<32x2xf32>
    %550 = arith.addf %547, %549 : vector<32x2xf32>
    %cst_231 = arith.constant 3.000000e+00 : f32
    %551 = vector.broadcast %cst_231 : f32 to vector<32x2xf32>
    %552 = arith.addf %550, %551 : vector<32x2xf32>
    %cst_232 = arith.constant 0.000000e+00 : f32
    %cst_233 = arith.constant 6.000000e+00 : f32
    %553 = vector.broadcast %cst_232 : f32 to vector<32x2xf32>
    %554 = arith.maximumf %553, %552 : vector<32x2xf32>
    %555 = vector.broadcast %cst_233 : f32 to vector<32x2xf32>
    %556 = arith.minimumf %555, %554 : vector<32x2xf32>
    %557 = arith.mulf %550, %556 : vector<32x2xf32>
    %cst_234 = arith.constant 0.166666672 : f32
    %558 = vector.broadcast %cst_234 : f32 to vector<32x2xf32>
    %559 = arith.mulf %557, %558 : vector<32x2xf32>
    %c128_235 = arith.constant 128 : index
    %c0_236 = arith.constant 0 : index
    %560 = vector.load %arg6[%c128_235, %c0_236] : memref<232x288xbf16, #tpu.memory_space<vmem>>, vector<32x32xbf16>
    %561 = arith.truncf %559 : vector<32x2xf32> to vector<32x2xbf16>
    %cst_237 = arith.constant dense<0.000000e+00> : vector<32x2xf32>
    %562 = tpu.matmul %560, %561, %cst_237 {dimension_numbers = #tpu.dot_dimension_numbers<[1], [0], [0], [1], [0, 0, 1, 1], [], []>} : vector<32x32xbf16>, vector<32x2xbf16>, vector<32x2xf32> -> vector<32x2xf32>
    %c0_238 = arith.constant 0 : index
    %c17_239 = arith.constant 17 : index
    %563 = vector.load %arg4[%c0_238, %c17_239] : memref<128x21xf32, #tpu.memory_space<vmem>>, vector<32x1xf32>
    %564 = vector.broadcast %563 : vector<32x1xf32> to vector<32x2xf32>
    %565 = arith.addf %562, %564 : vector<32x2xf32>
    %cst_240 = arith.constant 3.000000e+00 : f32
    %566 = vector.broadcast %cst_240 : f32 to vector<32x2xf32>
    %567 = arith.addf %565, %566 : vector<32x2xf32>
    %cst_241 = arith.constant 0.000000e+00 : f32
    %cst_242 = arith.constant 6.000000e+00 : f32
    %568 = vector.broadcast %cst_241 : f32 to vector<32x2xf32>
    %569 = arith.maximumf %568, %567 : vector<32x2xf32>
    %570 = vector.broadcast %cst_242 : f32 to vector<32x2xf32>
    %571 = arith.minimumf %570, %569 : vector<32x2xf32>
    %572 = arith.mulf %565, %571 : vector<32x2xf32>
    %cst_243 = arith.constant 0.166666672 : f32
    %573 = vector.broadcast %cst_243 : f32 to vector<32x2xf32>
    %574 = arith.mulf %572, %573 : vector<32x2xf32>
    %c160 = arith.constant 160 : index
    %c0_244 = arith.constant 0 : index
    %575 = vector.load %arg6[%c160, %c0_244] : memref<232x288xbf16, #tpu.memory_space<vmem>>, vector<32x16xbf16>
    %576 = arith.truncf %84 : vector<16x2xf32> to vector<16x2xbf16>
    %cst_245 = arith.constant dense<0.000000e+00> : vector<32x2xf32>
    %577 = tpu.matmul %575, %576, %cst_245 {dimension_numbers = #tpu.dot_dimension_numbers<[1], [0], [0], [1], [0, 0, 1, 1], [], []>} : vector<32x16xbf16>, vector<16x2xbf16>, vector<32x2xf32> -> vector<32x2xf32>
    %c0_246 = arith.constant 0 : index
    %c18_247 = arith.constant 18 : index
    %578 = vector.load %arg4[%c0_246, %c18_247] : memref<128x21xf32, #tpu.memory_space<vmem>>, vector<32x1xf32>
    %579 = vector.broadcast %578 : vector<32x1xf32> to vector<32x2xf32>
    %580 = arith.addf %577, %579 : vector<32x2xf32>
    %cst_248 = arith.constant 3.000000e+00 : f32
    %581 = vector.broadcast %cst_248 : f32 to vector<32x2xf32>
    %582 = arith.addf %580, %581 : vector<32x2xf32>
    %cst_249 = arith.constant 0.000000e+00 : f32
    %cst_250 = arith.constant 6.000000e+00 : f32
    %583 = vector.broadcast %cst_249 : f32 to vector<32x2xf32>
    %584 = arith.maximumf %583, %582 : vector<32x2xf32>
    %585 = vector.broadcast %cst_250 : f32 to vector<32x2xf32>
    %586 = arith.minimumf %585, %584 : vector<32x2xf32>
    %587 = arith.mulf %580, %586 : vector<32x2xf32>
    %cst_251 = arith.constant 0.166666672 : f32
    %588 = vector.broadcast %cst_251 : f32 to vector<32x2xf32>
    %589 = arith.mulf %587, %588 : vector<32x2xf32>
    %590 = tpu.concatenate %574, %589 in 0 : vector<32x2xf32>, vector<32x2xf32> -> vector<64x2xf32>
    %c192 = arith.constant 192 : index
    %c0_252 = arith.constant 0 : index
    %591 = vector.load %arg6[%c192, %c0_252] : memref<232x288xbf16, #tpu.memory_space<vmem>>, vector<32x64xbf16>
    %592 = arith.truncf %590 : vector<64x2xf32> to vector<64x2xbf16>
    %cst_253 = arith.constant dense<0.000000e+00> : vector<32x2xf32>
    %593 = tpu.matmul %591, %592, %cst_253 {dimension_numbers = #tpu.dot_dimension_numbers<[1], [0], [0], [1], [0, 0, 1, 1], [], []>} : vector<32x64xbf16>, vector<64x2xbf16>, vector<32x2xf32> -> vector<32x2xf32>
    %c0_254 = arith.constant 0 : index
    %c19_255 = arith.constant 19 : index
    %594 = vector.load %arg4[%c0_254, %c19_255] : memref<128x21xf32, #tpu.memory_space<vmem>>, vector<32x1xf32>
    %595 = vector.broadcast %594 : vector<32x1xf32> to vector<32x2xf32>
    %596 = arith.addf %593, %595 : vector<32x2xf32>
    %cst_256 = arith.constant 3.000000e+00 : f32
    %597 = vector.broadcast %cst_256 : f32 to vector<32x2xf32>
    %598 = arith.addf %596, %597 : vector<32x2xf32>
    %cst_257 = arith.constant 0.000000e+00 : f32
    %cst_258 = arith.constant 6.000000e+00 : f32
    %599 = vector.broadcast %cst_257 : f32 to vector<32x2xf32>
    %600 = arith.maximumf %599, %598 : vector<32x2xf32>
    %601 = vector.broadcast %cst_258 : f32 to vector<32x2xf32>
    %602 = arith.minimumf %601, %600 : vector<32x2xf32>
    %603 = arith.mulf %596, %602 : vector<32x2xf32>
    %cst_259 = arith.constant 0.166666672 : f32
    %604 = vector.broadcast %cst_259 : f32 to vector<32x2xf32>
    %605 = arith.mulf %603, %604 : vector<32x2xf32>
    %c224 = arith.constant 224 : index
    %c0_260 = arith.constant 0 : index
    %606 = vector.load %arg6[%c224, %c0_260] : memref<232x288xbf16, #tpu.memory_space<vmem>>, vector<2x32xbf16>
    %607 = arith.truncf %605 : vector<32x2xf32> to vector<32x2xbf16>
    %cst_261 = arith.constant dense<0.000000e+00> : vector<2x2xf32>
    %608 = tpu.matmul %606, %607, %cst_261 {dimension_numbers = #tpu.dot_dimension_numbers<[1], [0], [0], [1], [0, 0, 1, 1], [], []>} : vector<2x32xbf16>, vector<32x2xbf16>, vector<2x2xf32> -> vector<2x2xf32>
    %c0_262 = arith.constant 0 : index
    %c20_263 = arith.constant 20 : index
    %609 = vector.load %arg4[%c0_262, %c20_263] : memref<128x21xf32, #tpu.memory_space<vmem>>, vector<2x1xf32>
    %610 = vector.broadcast %609 : vector<2x1xf32> to vector<2x2xf32>
    %611 = arith.addf %608, %610 : vector<2x2xf32>
    %c0_264 = arith.constant 0 : index
    %c0_265 = arith.constant 0 : index
    %612 = vector.load %arg7[%c0_264, %c0_265] : memref<2x2xf32, #tpu.memory_space<vmem>>, vector<2x2xf32>
    tpu.vector_store %arg7[%c0_264, %c0_265], %611 {strides = array<i32>} : memref<2x2xf32, #tpu.memory_space<vmem>>, vector<2x2xf32>,
    return
  }
}

</mosaic_0001>

<bundles_post_ra>
// kernel: forward.1
= control target key start
LH: loop header
LB: loop body
LE: loop exit
PB: predicated region body
PF: predicated region fallthrough
CT: control target
= control target key end

     0   :  { %s5669_s26 = smov 125   ;;  %s5670_s27 = smov 124   ;;  %v5677_v47 = vmov 0   ;;  %vm192_vm0 = vcmask 130048   ;;  %vm259_vm1 = vcmask 1043456   ;;  %vm533_vm2 = vcmask 588800   ;;  %s8324_s0 = inlined_call_operand.vmem [shape: f32[16,128], index: 0, kind: input, shape index: {}]   ;;  %s8325_s2 = inlined_call_operand.vmem [shape: f32[72,128], index: 2, kind: input, shape index: {}]   ;;  %s8326_s4 = inlined_call_operand.vmem [shape: f32[128,21], index: 4, kind: input, shape index: {}]   ;;  %s8327_s1 = inlined_call_operand.vmem [shape: f32[8,128], index: 1, kind: input, shape index: {}]   ;;  %s8328_s6 = inlined_call_operand.vmem [shape: bf16[232,288], index: 6, kind: input, shape index: {}]   ;;  %s8329_s3 = inlined_call_operand.vmem [shape: bf16[640,128], index: 3, kind: input, shape index: {}]   ;;  %s8330_s5 = inlined_call_operand.vmem [shape: bf16[96,864], index: 5, kind: input, shape index: {}]   ;;  %s8331_s7 = inlined_call_operand.vmem [shape: f32[2,2], index: 7, kind: output, shape index: {}]  }
   0x1   :  { %v5763_v0 = vld [vmem:[%s8324_s0] sm:$0xff]  ;;  %s5671_s28 = smov 127   ;;  %v5772_v1 = vld [vmem:[%s8324_s0 + $0x8] sm:$0xff]  ;;  %s5672_s8 = smov 1   ;;  %v5581_v5 = vld [vmem:[%s8325_s2 + $0x37] ss:$0 sm:$0xff]  ;;  %5491 = vset.pattern.permute.xlu1 %v5677_v47  ;;  %5492 = vset.pattern.permute.xlu2 %v5677_v47 }
   0x2   :  { %85 = vrot.lane.b32.xlu1 %v5763_v0, %s5669_s26  ;;  %95 = vrot.lane.b32.xlu0 %v5763_v0, %s5670_s27  ;;  %s5673_s9 = smov 3   ;;  %s5674_s10 = smov 4   ;;  %v5580_v6 = vld [vmem:[%s8325_s2 + $0x36] ss:$0 sm:$0xff]  ;;  %v5579_v9 = vld [vmem:[%s8325_s2 + $0x35] ss:$0 sm:$0xff] }
   0x3   :  { %75 = vrot.lane.b32.xlu2 %v5763_v0, %s5671_s28  ;;  %s5675_s0 = smov 5   ;;  %s5676_s11 = smov 123   ;;  %v5585_v12 = vld [vmem:[%s8325_s2 + $0x34] ss:$0 sm:$0xff]  ;;  %v5582_v30 = vld [vmem:[%s8325_s2 + $0x33] ss:$0 sm:$0xff] }
   0x4   :  { %v71_v21 = vmul.f32 %v5585_v12, %v5763_v0  ;;  %v72_v26 = vmul.f32 %v5585_v12, %v5772_v1  ;;  %v5583_v38 = vld [vmem:[%s8325_s2 + $0x32] ss:$0 sm:$0xff]  ;;  %v5813_v43 = vld [vmem:[%s8326_s4] sm:$0xff]  ;;  %v172_v48 = vld [vmem:[%s8326_s4 + $0x8] sm:$0xff]  ;;  %s5679_s14 = smov 119   ;;  %s5680_s15 = smov 121  }
   0x5   :  { %v5818_v44 = vld [vmem:[%s8327_s1] sm:$0xff]  ;;  %v5584_v50 = vld [vmem:[%s8325_s2 + $0x31] ss:$0 sm:$0xff]  ;;  %s5681_s16 = smov 7   ;;  %s5682_s17 = smov 8   ;;  %vm1566_vm4 = vcmask 261120  }
   0x6   :  { %v73_v35 = vpack.c.bf16 %v71_v21, %v71_v21  ;;  %v74_v36 = vpack.c.bf16 %v72_v26, %v72_v26  ;;  %v5591_v47 = vld [vmem:[%s8325_s2 + $0x5] ss:$0 sm:$0xff]  ;;  %s5686_s1 = smov 15   ;;  %s5688_s12 = smov 2   ;;  %vm2849_vm5 = vcmask 523264   ;;  %vm3983_vm6 = vcmask 785408  }
   0x7   :  { %s5689_s13 = smov 17   ;;  %s5690_s18 = smov 6   ;;  %vm4512_vm7 = vcmask 15360  }
   0x8   :  { %v141_v45 = vunpack.c.l.b16 %v73_v35  ;;  %v142_v46 = vunpack.c.l.b16 %v74_v36  ;;  %v4936_v35 = vld [vmem:[%s8328_s6 + $0xc] sm:$0xf0]  ;;  %s5691_s19 = smov 18   ;;  %s5692_s20 = smov 10  }
   0x9   :  { %s5693_s21 = smov 14   ;;  %s5694_s24 = smov 118  }
   0xa   :  { %87 = vrot.lane.b32.xlu1 %v5772_v1, %s5669_s26  ;;  %97 = vrot.lane.b32.xlu0 %v5772_v1, %s5670_s27  ;;  %v143_v58 = vpack.c.b16 %v142_v46, %v141_v45  ;;  %s5683_s26 = smov 9   ;;  %v5588_v45 = vld [vmem:[%s8325_s2 + $0x7] ss:$0 sm:$0xff]  ;;  %s5698_s23 = smov 112  }
   0xb   :  { %77 = vrot.lane.b32.xlu2 %v5772_v1, %s5671_s28 }
  0x12   :  { %61 = vrot.lane.b32.xlu1 %v5772_v1, %s5672_s8  ;;  %59 = vrot.lane.b32.xlu0 %v5763_v0, %s5672_s8 }
  0x13   :  { %49 = vrot.lane.b32.xlu2 %v5763_v0, %s5673_s9 }
  0x1a   :  { %39 = vrot.lane.b32.xlu1 %v5763_v0, %s5674_s10  ;;  %51 = vrot.lane.b32.xlu0 %v5772_v1, %s5673_s9 }
  0x1b   :  { %41 = vrot.lane.b32.xlu2 %v5772_v1, %s5674_s10  ;;  %s5699_s10 = smov 113  }
  0x22   :  { %31 = vrot.lane.b32.xlu1 %v5772_v1, %s5675_s0  ;;  %29 = vrot.lane.b32.xlu0 %v5763_v0, %s5675_s0  ;;  %s5678_s0 = smov 120  }
  0x23   :  { %105 = vrot.lane.b32.xlu2 %v5763_v0, %s5676_s11 }
  0x2a   :  { %107 = vrot.lane.b32.xlu0 %v5772_v1, %s5676_s11  ;;  %175 = vperm.xlu1 %5491, %v5813_v43   ;;  %s5687_s11 = smov 16  }
  0x2b   :  { %180 = vperm.xlu2 %5492, %v172_v48  }
  0x32   :  { %486 = vrot.lane.b32.xlu0 %v5818_v44, %s5678_s0  ;;  %492 = vrot.lane.b32.xlu1 %v5818_v44, %s5679_s14 }
  0x33   :  { %474 = vrot.lane.b32.xlu2 %v5818_v44, %s5671_s28 }
  0x3a   :  { %480 = vrot.lane.b32.xlu0 %v5818_v44, %s5680_s15  ;;  %464 = vrot.lane.b32.xlu1 %v5818_v44, %s5672_s8 }
  0x3b   :  { %452 = vrot.lane.b32.xlu2 %v5818_v44, %s5682_s17 }
  0x42   :  { %458 = vrot.lane.b32.xlu0 %v5818_v44, %s5681_s16  ;;  %446 = vrot.lane.b32.xlu1 %v5818_v44, %s5683_s26 }
  0x5d   :  { %v76_v2 = vpop.permute.xlu2 %75 }
  0x5e   :  { %v81_v17 = vmul.f32 %v5579_v9, %v76_v2 }
  0x60   :  { %v83_v27 = vpack.c.bf16 %v81_v17, %v81_v17 }
  0x62   :  { %v147_v37 = vunpack.c.l.b16 %v83_v27  ;;  %v4934_v27 = vld [vmem:[%s8328_s6] sm:$0xf] }
  0x65   :  { %v78_v8 = vpop.permute.xlu2 %77 }
  0x66   :  { %v82_v18 = vmul.f32 %v5579_v9, %v78_v8 }
  0x68   :  { %v84_v28 = vpack.c.bf16 %v82_v18, %v82_v18 }
  0x6a   :  { %v148_v39 = vunpack.c.l.b16 %v84_v28  ;;  %v5337_v28 = vld [vmem:[%s8328_s6 + $0x8] sm:$0xf0] }
  0x6c   :  { %v149_v53 = vpack.c.b16 %v148_v39, %v147_v37 }
  0x6d   :  { %v50_v25 = vpop.permute.xlu2 %49 }
  0x6e   :  { %v55_v49 = vmul.f32 %v5583_v38, %v50_v25 }
  0x70   :  { %v57_v59 = vpack.c.bf16 %v55_v49, %v55_v49  ;;  %v228_v49 = vld [vmem:[%s8326_s4] sm:$0xf] }
  0x74   :  { %v86_v3 = vpop.permute.xlu1 %85  ;;  %v96_v4 = vpop.permute.xlu0 %95 }
  0x75   :  { %v101_v7 = vmul.f32 %v5581_v5, %v96_v4  ;;  %v91_v13 = vmul.f32 %v5580_v6, %v86_v3  ;;  %v42_v54 = vpop.permute.xlu2 %41  ;;  %v5586_v3 = vld [vmem:[%s8325_s2 + $0x30] ss:$0 sm:$0xff] }
  0x76   :  { %v46_v60 = vmul.f32 %v5584_v50, %v42_v54  ;;  %v5353_v54 = vld [vmem:[%s8329_s3 + $0x38] sm:$0xff] }
  0x77   :  { %v103_v14 = vpack.c.bf16 %v101_v7, %v101_v7  ;;  %v93_v22 = vpack.c.bf16 %v91_v13, %v91_v13 }
  0x78   :  { %v48_v4 = vpack.c.bf16 %v46_v60, %v46_v60  ;;  %v5352_v60 = vld [vmem:[%s8329_s3 + $0x30] sm:$0xff] }
  0x79   :  { %v159_v23 = vunpack.c.l.b16 %v103_v14  ;;  %v153_v34 = vunpack.c.l.b16 %v93_v22 }
  0x7c   :  { %v88_v10 = vpop.permute.xlu1 %87  ;;  %v98_v11 = vpop.permute.xlu0 %97 }
  0x7d   :  { %v92_v15 = vmul.f32 %v5580_v6, %v88_v10  ;;  %v102_v16 = vmul.f32 %v5581_v5, %v98_v11  ;;  %v5587_v5 = vld [vmem:[%s8325_s2 + $0x38] ss:$0 sm:$0xff]  ;;  %v129_v6 = vunpack.c.l.b16 %v57_v59  ;;  %v106_v10 = vpop.permute.xlu2 %105  ;;  %v5592_v59 = vld [vmem:[%s8325_s2 + $0x3] ss:$0 sm:$0xff] }
  0x7f   :  { %v94_v19 = vpack.c.bf16 %v92_v15, %v92_v15  ;;  %v104_v20 = vpack.c.bf16 %v102_v16, %v102_v16  ;;  %v124_v15 = vunpack.c.l.b16 %v48_v4  ;;  %v111_v16 = vmul.f32 %v5587_v5, %v106_v10  ;;  %v5590_v4 = vld [vmem:[%s8325_s2 + $0x6] ss:$0 sm:$0xff]  ;;  %v5593_v10 = vld [vmem:[%s8325_s2 + $0x1] ss:$0 sm:$0xff] }
  0x81   :  { %v160_v24 = vunpack.c.l.b16 %v104_v20  ;;  %v154_v29 = vunpack.c.l.b16 %v94_v19 }
  0x83   :  { %v161_v31 = vpack.c.b16 %v160_v24, %v159_v23  ;;  %v155_v42 = vpack.c.b16 %v154_v29, %v153_v34  ;;  %v113_v23 = vpack.c.bf16 %v111_v16, %v111_v16  ;;  %v5336_v34 = vld [vmem:[%s8328_s6 + $0x4] sm:$0xf] }
  0x84   :  { %v62_v32 = vpop.permute.xlu1 %61  ;;  %v60_v33 = vpop.permute.xlu0 %59  ;;  %v4939_v37 = vor.u32 %v5336_v34, %v4936_v35 }
  0x85   :  { %196 = vmatpush.bf16.msra.mxu0 %v161_v31  ;;  %v66_v40 = vmul.f32 %v5582_v30, %v62_v32  ;;  %v65_v41 = vmul.f32 %v5582_v30, %v60_v33  ;;  %v165_v31 = vunpack.c.l.b16 %v113_v23  ;;  %v4935_v32 = vor.u32 %v5337_v28, %v4934_v27  ;;  %v181_v39 = vpop.permute.xlu2 %180  ;;  %v5594_v23 = vld [vmem:[%s8325_s2 + $0x2] ss:$0 sm:$0xff] }
  0x87   :  { %v68_v51 = vpack.c.bf16 %v66_v40, %v66_v40  ;;  %v67_v52 = vpack.c.bf16 %v65_v41, %v65_v41 }
  0x89   :  { %197 = vmatpush.bf16.msra.mxu0 %v155_v42  ;;  %v136_v61 = vunpack.c.l.b16 %v68_v51  ;;  %v135_v62 = vunpack.c.l.b16 %v67_v52  ;;  %v5684_v51 = vmov 1  }
  0x8a   :  { %5494 = vset.pattern.permute.xlu0 %v5684_v51  ;;  %v5358_v51 = vld [vmem:[%s8329_s3 + $0x60] sm:$0xff] }
  0x8b   :  { %v137_v9 = vpack.c.b16 %v136_v61, %v135_v62  ;;  %231 = vperm.xlu0 %5494, %v228_v49   ;;  %v5360_v49 = vld [vmem:[%s8329_s3 + $0x70] sm:$0xff] }
  0x8c   :  { %v40_v55 = vpop.permute.xlu1 %39  ;;  %v52_v56 = vpop.permute.xlu0 %51 }
  0x8d   :  { %v56_v57 = vmul.f32 %v5583_v38, %v52_v56  ;;  %198 = vmatpush.bf16.msra.mxu0 %v149_v53  ;;  %v45_v63 = vmul.f32 %v5584_v50, %v40_v55  ;;  %v475_v48 = vpop.permute.xlu2 %474  ;;  %v5589_v50 = vld [vmem:[%s8325_s2 + $0x8] ss:$0 sm:$0xff] }
  0x8e   :  { %v478_v56 = vmul.f32 %v5591_v47, %v475_v48  ;;  %v5361_v47 = vld [vmem:[%s8329_s3 + $0x78] sm:$0xff] }
  0x8f   :  { %v58_v2 = vpack.c.bf16 %v56_v57, %v56_v57  ;;  %v47_v7 = vpack.c.bf16 %v45_v63, %v45_v63  ;;  %v5685_v57 = vmov 2   ;;  %v526_v48 = vld [vmem:[%s8328_s6 + $0x18] sm:$0xf] }
  0x90   :  { %5493 = vset.pattern.permute.xlu2 %v5685_v57  ;;  %v5356_v57 = vld [vmem:[%s8329_s3 + $0x50] sm:$0xff] }
  0x91   :  { %199 = vmatpush.bf16.msra.mxu0 %v143_v58  ;;  %v130_v8 = vunpack.c.l.b16 %v58_v2  ;;  %v123_v17 = vunpack.c.l.b16 %v47_v7  ;;  %530 = vperm.xlu2 %5493, %v5813_v43   ;;  %v5595_v43 = vld [vmem:[%s8325_s2 + $0x4] ss:$0 sm:$0xff] }
  0x93   :  { %v131_v20 = vpack.c.b16 %v130_v8, %v129_v6  ;;  %v125_v24 = vpack.c.b16 %v124_v15, %v123_v17  ;;  %v479_v6 = vpack.c.bf16 %v478_v56, %v478_v56  ;;  %v5344_v56 = vld [vmem:[%s8329_s3 + $0xf0] sm:$0xff] }
  0x94   :  { %v32_v11 = vpop.permute.xlu1 %31  ;;  %v30_v12 = vpop.permute.xlu0 %29 }
  0x95   :  { %v36_v13 = vmul.f32 %v5586_v3, %v32_v11  ;;  %v35_v14 = vmul.f32 %v5586_v3, %v30_v12  ;;  %200 = vmatpush.bf16.msra.mxu0 %v137_v9  ;;  %v5351_v11 = vld [vmem:[%s8329_s3 + $0x28] sm:$0xff]  ;;  %v453_v12 = vpop.permute.xlu2 %452  ;;  %v505_v17 = vunpack.c.l.b16 %v479_v6 }
  0x97   :  { %v38_v18 = vpack.c.bf16 %v36_v13, %v36_v13  ;;  %v37_v19 = vpack.c.bf16 %v35_v14, %v35_v14  ;;  %v506_v28 = vpack.c.b16 %v505_v17, %v505_v17 }
  0x99   :  { %201 = vmatpush.bf16.msra.mxu0 %v131_v20  ;;  %v118_v21 = vunpack.c.l.b16 %v38_v18  ;;  %v117_v22 = vunpack.c.l.b16 %v37_v19  ;;  %v472_v18 = vmul.f32 %v5595_v43, %v5818_v44  ;;  %v226_v44 = vld [vmem:[%s8328_s6 + $0x84] sm:$0x3] }
  0x9b   :  { %v119_v30 = vpack.c.b16 %v118_v21, %v117_v22  ;;  %v456_v22 = vmul.f32 %v5593_v10, %v453_v12 }
  0x9c   :  { %v108_v25 = vpop.permute.xlu0 %107  ;;  %v176_v38 = vpop.permute.xlu1 %175 }
  0x9d   :  { %v112_v26 = vmul.f32 %v5587_v5, %v108_v25  ;;  %202 = vmatpush.bf16.msra.mxu0 %v125_v24  ;;  %v5350_v24 = vld [vmem:[%s8329_s3 + $0x20] sm:$0xff] }
  0x9f   :  { %v114_v29 = vpack.c.bf16 %v112_v26, %v112_v26 }
  0xa1   :  { %203 = vmatpush.bf16.msra.mxu0 %v119_v30  ;;  %v166_v33 = vunpack.c.l.b16 %v114_v29  ;;  %v473_v29 = vpack.c.bf16 %v472_v18, %v472_v18 }
  0xa3   :  { %v167_v36 = vpack.c.b16 %v166_v33, %v165_v31  ;;  %v457_v31 = vpack.c.bf16 %v456_v22, %v456_v22  ;;  %v5596_v33 = vld [vmem:[%s8325_s2] ss:$0 sm:$0xff] }
  0xa4   :  { %204 = vmatmul.bf16.vlgmr.msra.gmra.mxu0 %v4935_v32  ;;  %v487_v40 = vpop.permute.xlu0 %486  ;;  %v493_v42 = vpop.permute.xlu1 %492 }
  0xa5   :  { %217 = vmatpush.bf16.msra.mxu1 %v167_v36  ;;  %v490_v53 = vmul.f32 %v5588_v45, %v487_v40  ;;  %v496_v58 = vmul.f32 %v5589_v50, %v493_v42  ;;  %v520_v36 = vsel %vm259_vm1, %v473_v29, %v506_v28  ;;  %v5359_v50 = vld [vmem:[%s8329_s3 + $0x68] sm:$0xff] }
  0xa6   :  { %v5367_v29 = vld [vmem:[%s8329_s3 + $0xa8] sm:$0xff] }
  0xa7   :  { %v491_v2 = vpack.c.bf16 %v490_v53, %v490_v53  ;;  %v497_v8 = vpack.c.bf16 %v496_v58, %v496_v58  ;;  %v5345_v53 = vld [vmem:[%s8329_s3 + $0xf8] sm:$0xff]  ;;  %v5347_v58 = vld [vmem:[%s8329_s3 + $0x8] sm:$0xff] }
  0xa8   :  { %4940 = vmatmul.msk.bf16.vlgmr.msra.gmra.mxu1 %vm192_vm0, %v4939_v37  ;;  %336 = vmatpush.bf16.msra.mxu3 %v5345_v53 }
  0xa9   :  { %423 = vmatpush.bf16.msrb.mxu1 %v5353_v54  ;;  %v508_v14 = vunpack.c.l.b16 %v491_v2  ;;  %v538_v20 = vsel %vm259_vm1, %v497_v8, 0  ;;  %v5357_v54 = vld [vmem:[%s8329_s3 + $0x58] sm:$0xff] }
  0xaa   :  { %v5341_v2 = vld [vmem:[%s8329_s3 + $0xd8] sm:$0xff] }
  0xab   :  { %v509_v26 = vpack.c.b16 %v508_v14, %v508_v14 }
  0xac   :  { %v481_v61 = vpop.permute.xlu0 %480  ;;  %v465_v62 = vpop.permute.xlu1 %464  ;;  %337 = vmatpush.bf16.msra.mxu3 %v5344_v56 }
  0xad   :  { %v468_v9 = vmul.f32 %v5592_v59, %v465_v62  ;;  %424 = vmatpush.bf16.msrb.mxu1 %v5352_v60  ;;  %v484_v15 = vmul.f32 %v5590_v4, %v481_v61  ;;  %v5343_v59 = vld [vmem:[%s8329_s3 + $0xe8] sm:$0xff]  ;;  %v5346_v61 = vld [vmem:[%s8329_s3] sm:$0xff] }
  0xae   :  { %v5355_v60 = vld [vmem:[%s8329_s3 + $0x48] sm:$0xff]  ;;  %v5342_v62 = vld [vmem:[%s8329_s3 + $0xe0] sm:$0xff] }
  0xaf   :  { %v469_v21 = vpack.c.bf16 %v468_v9, %v468_v9  ;;  %v485_v27 = vpack.c.bf16 %v484_v15, %v484_v15  ;;  %v5339_v4 = vld [vmem:[%s8329_s3 + $0xc8] sm:$0xff] }
  0xb0   :  { %338 = vmatpush.bf16.msra.mxu3 %v5343_v59 }
  0xb1   :  { %425 = vmatpush.bf16.msrb.mxu1 %v5351_v11  ;;  %v502_v30 = vunpack.c.l.b16 %v469_v21  ;;  %v524_v35 = vsel %vm259_vm1, %v485_v27, %v509_v26  ;;  %v5597_v11 = vld [vmem:[%s8325_s2 + $0x40] ss:$0 sm:$0xff]  ;;  %v5368_v26 = vld [vmem:[%s8329_s3 + $0xb0] sm:$0xff] }
  0xb3   :  { %v503_v37 = vpack.c.b16 %v502_v30, %v502_v30 }
  0xb4   :  { %v459_v25 = vpop.permute.xlu0 %458  ;;  %v447_v34 = vpop.permute.xlu1 %446  ;;  %339 = vmatpush.bf16.msra.mxu3 %v5342_v62 }
  0xb5   :  { %v462_v32 = vmul.f32 %v5594_v23, %v459_v25  ;;  %426 = vmatpush.bf16.msrb.mxu1 %v5350_v24  ;;  %v450_v40 = vmul.f32 %v5596_v33, %v447_v34  ;;  %v5369_v24 = vld [vmem:[%s8329_s3 + $0xb8] sm:$0xff] }
  0xb6   :  { %696 = vmatpush.bf16.msrb.mxu0 %v5369_v24 }
  0xb7   :  { %v451_v42 = vpack.c.bf16 %v450_v40, %v450_v40 }
  0xb8   :  { %340 = vmatpush.bf16.msra.mxu3 %v5341_v2 }
  0xba   :  { %697 = vmatpush.bf16.msrb.mxu0 %v5368_v26  ;;  %v5600_v26 = vld [vmem:[%s8325_s2 + $0x1b] ss:$0 sm:$0xff] }
  0xbe   :  { %698 = vmatpush.bf16.msrb.mxu0 %v5367_v29 }
  0xeb   :  { %v531_v15 = vpop.permute.xlu2 %530 }
  0xfd   :  { %v232_v6 = vpop.permute.xlu0 %231 }
 0x121   :  { %v205_v41 = vpop.f32.mrf.mxu0 }
 0x122   :  { %v206_v52 = vadd.f32 %v205_v41, %v176_v38  ;;  %v499_v38 = vunpack.c.l.b16 %v457_v31 }
 0x124   :  { %v500_v41 = vpack.c.b16 %v499_v38, %v499_v38  ;;  %v5364_v38 = vld [vmem:[%s8329_s3 + $0x90] sm:$0xff] }
 0x125   :  { %v219_v46 = vpop.f32.mrf.mxu1 }
 0x126   :  { %v220_v63 = vadd.f32 %v219_v46, %v206_v52  ;;  %v512_v46 = vsel %vm259_vm1, %v451_v42, %v500_v41  ;;  %v5349_v52 = vld [vmem:[%s8329_s3 + $0x18] sm:$0xff] }
 0x127   :  { %427 = vmatpush.bf16.msrb.mxu1 %v5349_v52 }
 0x128   :  { %v224_v13 = vmax.f32 %v220_v63, 0.0  ;;  %v5354_v63 = vld [vmem:[%s8329_s3 + $0x40] sm:$0xff] }
 0x129   :  { %v207_v55 = vpop.f32.mrf.mxu0 }
 0x12a   :  { %v208_v3 = vadd.f32 %v207_v55, %v181_v39  ;;  %v463_v39 = vpack.c.bf16 %v462_v32, %v462_v32  ;;  %v5348_v55 = vld [vmem:[%s8329_s3 + $0x10] sm:$0xff]  ;;  %v5366_v32 = vld [vmem:[%s8329_s3 + $0xa0] sm:$0xff] }
 0x12b   :  { %428 = vmatpush.bf16.msrb.mxu1 %v5348_v55  ;;  %699 = vmatpush.bf16.msrb.mxu0 %v5366_v32 }
 0x12c   :  { %v516_v45 = vsel %vm259_vm1, %v463_v39, %v503_v37 }
 0x12d   :  { %v221_v5 = vpop.f32.mrf.mxu1 }
 0x12e   :  { %v222_v7 = vadd.f32 %v221_v5, %v208_v3  ;;  %v5340_v3 = vld [vmem:[%s8329_s3 + $0xd0] sm:$0xff]  ;;  %v5338_v5 = vld [vmem:[%s8329_s3 + $0xc0] sm:$0xff] }
 0x12f   :  { %429 = vmatpush.bf16.msrb.mxu1 %v5347_v58  ;;  %341 = vmatpush.bf16.msra.mxu3 %v5340_v3 }
 0x130   :  { %v225_v16 = vmax.f32 %v222_v7, 0.0 }
 0x132   :  { %v227_v19 = vpack.c.bf16 %v225_v16, %v224_v13 }
 0x133   :  { %430 = vmatpush.bf16.msrb.mxu1 %v5346_v61  ;;  %342 = vmatpush.bf16.msra.mxu3 %v5339_v4 }
 0x134   :  { %244 = vmatpush.bf16.msra.mxu2 %v227_v19 }
 0x137   :  { %4941 = vmatmul.msk.bf16.vlgmr.msra.gmra.mxu2 %vm192_vm0, %v226_v44  ;;  %343 = vmatpush.bf16.msra.mxu3 %v5338_v5 }
 0x138   :  { %543 = vmatpush.bf16.msrb.mxu2 %v538_v20 }
 0x13c   :  { %544 = vmatpush.bf16.msrb.mxu2 %v524_v35 }
 0x140   :  { %545 = vmatpush.bf16.msrb.mxu2 %v520_v36  ;;  %v5365_v36 = vld [vmem:[%s8329_s3 + $0x98] sm:$0xff] }
 0x141   :  { %700 = vmatpush.bf16.msrb.mxu0 %v5365_v36 }
 0x144   :  { %546 = vmatpush.bf16.msrb.mxu2 %v516_v45 }
 0x145   :  { %701 = vmatpush.bf16.msrb.mxu0 %v5364_v38 }
 0x148   :  { %547 = vmatpush.bf16.msrb.mxu2 %v512_v46 }
 0x14b   :  { %5006 = vmatmul.msk.bf16.vlgmr.msrb.gmra.mxu2 %vm533_vm2, %v526_v48 }
 0x14c   :  { %618 = vmatpush.bf16.msra.mxu2 %v5361_v47 }
 0x150   :  { %619 = vmatpush.bf16.msra.mxu2 %v5360_v49 }
 0x154   :  { %620 = vmatpush.bf16.msra.mxu2 %v5359_v50 }
 0x158   :  { %621 = vmatpush.bf16.msra.mxu2 %v5358_v51 }
 0x15c   :  { %622 = vmatpush.bf16.msra.mxu2 %v5357_v54 }
 0x160   :  { %623 = vmatpush.bf16.msra.mxu2 %v5356_v57 }
 0x164   :  { %624 = vmatpush.bf16.msra.mxu2 %v5355_v60 }
 0x168   :  { %625 = vmatpush.bf16.msra.mxu2 %v5354_v63 }
 0x1ba   :  { %v246_v43 = vpop.f32.mrf.mxu2 }
 0x1bb   :  { %v247_v7 = vadd.f32 %v246_v43, %v232_v6 }
 0x1bd   :  { %v252_v8 = vmin.f32 %v247_v7, 0.0  ;;  %v251_v12 = vadd.f32 1.0, %v247_v7  ;;  %vm250_vm3 = vcmp.gt.f32.partialorder %v247_v7, 0.0  ;;  %v5598_v7 = vld [vmem:[%s8325_s2 + $0x13] ss:$0 sm:$0xff] }
 0x1bf   :  { %v253_v9 = vmul.f32 1.442695, %v252_v8 }
 0x1c1   :  { %5650 = vpow2.f32 %v253_v9 }
 0x1c2   :  { %v248_v10 = vpop.f32.mrf.mxu2 }
 0x1c7   :  { %v5651_v13 = vpop.eup %5650 }
 0x1c8   :  { %v255_v14 = vsel %vm250_vm3, %v251_v12, %v5651_v13 }
 0x1c9   :  { %v258_v16 = vmul.f32 %v5597_v11, %v255_v14 }
 0x1cb   :  { %v260_v18 = vsel %vm259_vm1, %v258_v16, 0.0  ;;  %v358_v19 = vpack.c.bf16 %v258_v16, %v258_v16 }
 0x1cc   :  { %v261_v21 = vrot.slane %v260_v18, 4 }
 0x1cd   :  { %431 = vmatmul.bf16.vlgmr.msrb.gmra.mxu1 %v358_v19 }
 0x1ce   :  { %v549_v17 = vpop.f32.mrf.mxu2  ;;  %v262_v23 = vadd.f32 %v261_v21, %v260_v18 }
 0x1cf   :  { %v550_v20 = vadd.f32 %v549_v17, %v531_v15  ;;  %v5599_v17 = vld [vmem:[%s8325_s2 + $0x12] ss:$0 sm:$0xff] }
 0x1d0   :  { %v263_v25 = vrot.slane %v262_v23, 2 }
 0x1d1   :  { %v553_v22 = vpack.c.bf16 %v550_v20, %v550_v20 }
 0x1d2   :  { %v264_v27 = vadd.f32 %v263_v25, %v262_v23 }
 0x1d3   :  { %626 = vmatmul.bf16.vlgmr.msra.gmra.mxu2 %v553_v22 }
 0x1d4   :  { %v265_v28 = vrot.slane %v264_v27, 1 }
 0x1d6   :  { %v551_v44 = vpop.f32.mrf.mxu2  ;;  %v266_v30 = vadd.f32 %v265_v28, %v264_v27 }
 0x1d8   :  { %v267_v31 = vadd.f32 1e-08, %v266_v30 }
 0x1da   :  { %v284_v33 = vmul.f32 %v267_v31, %v5763_v0  ;;  %v285_v34 = vmul.f32 %v267_v31, %v5772_v1  ;;  %v287_v37 = vpack.c.bf16 %v267_v31, %v267_v31  ;;  %v5363_v0 = vld [vmem:[%s8329_s3 + $0x88] sm:$0xff]  ;;  %v5362_v1 = vld [vmem:[%s8329_s3 + $0x80] sm:$0xff] }
 0x1db   :  { %702 = vmatpush.bf16.msrb.mxu0 %v5363_v0 }
 0x1dc   :  { %v286_v35 = vpack.c.bf16 %v285_v34, %v284_v33 }
 0x1de   :  { %344 = vmatmul.bf16.vlgmr.msra.gmra.mxu3 %v286_v35 }
 0x1df   :  { %703 = vmatpush.bf16.msrb.mxu0 %v5362_v1  ;;  %v5601_v1 = vld [vmem:[%s8325_s2 + $0x17] ss:$0 sm:$0xff] }
 0x1ee   :  { %349 = vmatmul.bf16.gmra.mxu3 %v287_v37 }
 0x24a   :  { %v6008_v39 = vpop.f32.mrf.mxu1 }
 0x24b   :  { %8390 = vst [vmem:[#allocation3_spill] sm:$0xff] %v6008_v39 }
 0x252   :  { %v434_v40 = vpop.f32.mrf.mxu1 }
 0x256   :  { %v627_v41 = vpop.f32.mrf.mxu2 }
 0x257   :  { %v631_v42 = vpack.c.bf16 %v627_v41, %v627_v41 }
 0x259   :  { %704 = vmatmul.bf16.vlgmr.msrb.gmra.mxu0 %v631_v42 }
 0x25e   :  { %v629_v45 = vpop.f32.mrf.mxu2 }
 0x261   :  { %v345_v46 = vpop.f32.mrf.mxu3 }
 0x269   :  { %v347_v47 = vpop.f32.mrf.mxu3 }
 0x271   :  { %v350_v48 = vpop.f32.mrf.mxu3 }
 0x272   :  { %5652 = vrcp.f32 %v350_v48 }
 0x273   :  { %5654 = vtanh.f32 %v6008_v39 }
 0x278   :  { %v5653_v49 = vpop.eup %5652 }
 0x279   :  { %v355_v50 = vperm.slane %v5653_v49, 0  ;;  %v352_v51 = vpop.f32.mrf.mxu3  ;;  %v5655_v55 = vpop.eup %5654 }
 0x27a   :  { %v443_v57 = vperm.slane %v5655_v55, 2  ;;  %v444_v58 = vperm.slane %v5655_v55, 3  ;;  %v442_v63 = vperm.slane %v5655_v55, 1  ;;  %v441_v2 = vperm.slane %v5655_v55, 0 }
 0x27b   :  { %v6010_v52 = vmul.f32 %v355_v50, %v345_v46  ;;  %v6012_v53 = vmul.f32 %v355_v50, %v347_v47 }
 0x27d   :  { %8391 = vst [vmem:[#allocation4_spill] sm:$0xff] %v6010_v52 }
 0x27e   :  { %8392 = vst [vmem:[#allocation5_spill] sm:$0xff] %v6012_v53 }
 0x2d6   :  { %v705_v56 = vpop.f32.mrf.mxu0 }
 0x2d7   :  { %v709_v59 = vsub.f32 %v550_v20, %v705_v56 }
 0x2d9   :  { %v6017_v60 = vmul.f32 %v709_v59, %v443_v57  ;;  %v6019_v61 = vmul.f32 %v709_v59, %v444_v58  ;;  %v6025_v3 = vmul.f32 %v709_v59, %v442_v63  ;;  %v6027_v4 = vmul.f32 %v709_v59, %v441_v2 }
 0x2db   :  { %774 = vrot.lane.b32.xlu2 %v6019_v61, %s5686_s1  ;;  %916 = vrot.lane.b32.xlu0 %v6017_v60, %s5672_s8 }
 0x2dc   :  { %772 = vrot.lane.b32.xlu1 %v6017_v60, %s5686_s1 }
 0x2de   :  { %v707_v62 = vpop.f32.mrf.mxu0 }
 0x2e3   :  { %756 = vrot.lane.b32.xlu0 %v6019_v61, %s5687_s11  ;;  %770 = vrot.lane.b32.xlu2 %v6025_v3, %s5686_s1 }
 0x2e4   :  { %768 = vrot.lane.b32.xlu1 %v6027_v4, %s5686_s1  ;;  %s5695_s1 = smov 122  }
 0x2eb   :  { %754 = vrot.lane.b32.xlu2 %v6017_v60, %s5687_s11  ;;  %912 = vrot.lane.b32.xlu0 %v6027_v4, %s5672_s8 }
 0x2ec   :  { %918 = vrot.lane.b32.xlu1 %v6019_v61, %s5672_s8 }
 0x2f3   :  { %846 = vrot.lane.b32.xlu2 %v6019_v61, %s5682_s17  ;;  %752 = vrot.lane.b32.xlu0 %v6025_v3, %s5687_s11 }
 0x2f4   :  { %844 = vrot.lane.b32.xlu1 %v6017_v60, %s5682_s17 }
 0x2fb   :  { %750 = vrot.lane.b32.xlu2 %v6027_v4, %s5687_s11  ;;  %898 = vrot.lane.b32.xlu0 %v6017_v60, %s5688_s12  ;;  %s5696_s11 = smov 111  }
 0x2fc   :  { %914 = vrot.lane.b32.xlu1 %v6025_v3, %s5672_s8 }
 0x303   :  { %842 = vrot.lane.b32.xlu2 %v6025_v3, %s5682_s17  ;;  %738 = vrot.lane.b32.xlu0 %v6019_v61, %s5689_s13 }
 0x304   :  { %840 = vrot.lane.b32.xlu1 %v6027_v4, %s5682_s17 }
 0x30b   :  { %736 = vrot.lane.b32.xlu2 %v6017_v60, %s5689_s13  ;;  %894 = vrot.lane.b32.xlu0 %v6027_v4, %s5688_s12 }
 0x30c   :  { %900 = vrot.lane.b32.xlu1 %v6019_v61, %s5688_s12 }
 0x313   :  { %828 = vrot.lane.b32.xlu2 %v6019_v61, %s5683_s26  ;;  %734 = vrot.lane.b32.xlu0 %v6025_v3, %s5689_s13 }
 0x314   :  { %826 = vrot.lane.b32.xlu1 %v6017_v60, %s5683_s26 }
 0x31b   :  { %732 = vrot.lane.b32.xlu2 %v6027_v4, %s5689_s13  ;;  %880 = vrot.lane.b32.xlu0 %v6017_v60, %s5690_s18 }
 0x31c   :  { %896 = vrot.lane.b32.xlu1 %v6025_v3, %s5688_s12 }
 0x323   :  { %824 = vrot.lane.b32.xlu2 %v6025_v3, %s5683_s26  ;;  %720 = vrot.lane.b32.xlu0 %v6019_v61, %s5691_s19 }
 0x324   :  { %822 = vrot.lane.b32.xlu1 %v6027_v4, %s5683_s26 }
 0x32b   :  { %718 = vrot.lane.b32.xlu2 %v6017_v60, %s5691_s19  ;;  %876 = vrot.lane.b32.xlu0 %v6027_v4, %s5690_s18 }
 0x32c   :  { %882 = vrot.lane.b32.xlu1 %v6019_v61, %s5690_s18 }
 0x333   :  { %810 = vrot.lane.b32.xlu2 %v6019_v61, %s5692_s20  ;;  %716 = vrot.lane.b32.xlu0 %v6025_v3, %s5691_s19 }
 0x334   :  { %808 = vrot.lane.b32.xlu1 %v6017_v60, %s5692_s20 }
 0x335   :  { %v775_v5 = vpop.permute.xlu2 %774 }
 0x336   :  { %v781_v8 = vmul.f32 %v5598_v7, %v775_v5 }
 0x338   :  { %v785_v12 = vpack.c.bf16 %v781_v8, %v781_v8 }
 0x33a   :  { %v1199_v15 = vunpack.c.l.b16 %v785_v12  ;;  %v5602_v12 = vld [vmem:[%s8325_s2 + $0x11] ss:$0 sm:$0xff] }
 0x33b   :  { %714 = vrot.lane.b32.xlu2 %v6027_v4, %s5691_s19  ;;  %862 = vrot.lane.b32.xlu0 %v6017_v60, %s5681_s16  ;;  %s5701_s19 = smov 114  }
 0x33c   :  { %878 = vrot.lane.b32.xlu1 %v6025_v3, %s5690_s18  ;;  %s5697_s18 = smov 126  }
 0x33d   :  { %v771_v6 = vpop.permute.xlu2 %770 }
 0x33e   :  { %v779_v16 = vmul.f32 %v5598_v7, %v771_v6 }
 0x340   :  { %v783_v24 = vpack.c.bf16 %v779_v16, %v779_v16 }
 0x342   :  { %v1197_v29 = vunpack.c.l.b16 %v783_v24 }
 0x343   :  { %806 = vrot.lane.b32.xlu2 %v6025_v3, %s5692_s20  ;;  %792 = vrot.lane.b32.xlu0 %v6019_v61, %s5693_s21 }
 0x344   :  { %804 = vrot.lane.b32.xlu1 %v6027_v4, %s5692_s20 }
 0x345   :  { %v755_v43 = vpop.permute.xlu2 %754 }
 0x346   :  { %v762_v25 = vmul.f32 %v5599_v17, %v755_v43 }
 0x348   :  { %v766_v30 = vpack.c.bf16 %v762_v25, %v762_v25 }
 0x34a   :  { %v1186_v38 = vunpack.c.l.b16 %v766_v30 }
 0x34b   :  { %790 = vrot.lane.b32.xlu2 %v6017_v60, %s5693_s21  ;;  %1052 = vrot.lane.b32.xlu0 %v6017_v60, %s5694_s24 }
 0x34c   :  { %864 = vrot.lane.b32.xlu1 %v6019_v61, %s5681_s16 }
 0x34d   :  { %v917_v9 = vpop.permute.xlu0 %916  ;;  %v847_v10 = vpop.permute.xlu2 %846 }
 0x34e   :  { %v773_v11 = vpop.permute.xlu1 %772  ;;  %v924_v31 = vmul.f32 %v5600_v26, %v917_v9  ;;  %v853_v47 = vmul.f32 %v5601_v1, %v847_v10 }
 0x34f   :  { %v780_v13 = vmul.f32 %v5598_v7, %v773_v11 }
 0x350   :  { %v928_v0 = vpack.c.bf16 %v924_v31, %v924_v31  ;;  %v857_v58 = vpack.c.bf16 %v853_v47, %v853_v47 }
 0x351   :  { %v784_v14 = vpack.c.bf16 %v780_v13, %v780_v13 }
 0x352   :  { %v1294_v46 = vunpack.c.l.b16 %v928_v0  ;;  %v1247_v6 = vunpack.c.l.b16 %v857_v58 }
 0x353   :  { %v1198_v18 = vunpack.c.l.b16 %v784_v14  ;;  %860 = vrot.lane.b32.xlu2 %v6025_v3, %s5681_s16  ;;  %788 = vrot.lane.b32.xlu0 %v6025_v3, %s5693_s21 }
 0x354   :  { %858 = vrot.lane.b32.xlu1 %v6027_v4, %s5681_s16 }
 0x355   :  { %v757_v19 = vpop.permute.xlu0 %756  ;;  %v751_v20 = vpop.permute.xlu2 %750  ;;  %v1201_v21 = vpack.c.b16 %v1199_v15, %v1198_v18 }
 0x356   :  { %v763_v22 = vmul.f32 %v5599_v17, %v757_v19  ;;  %v769_v23 = vpop.permute.xlu1 %768  ;;  %v760_v45 = vmul.f32 %v5599_v17, %v751_v20 }
 0x357   :  { %v778_v27 = vmul.f32 %v5598_v7, %v769_v23  ;;  %1573 = vmatpush.bf16.msrb.mxu3 %v1201_v21 }
 0x358   :  { %v767_v44 = vpack.c.bf16 %v763_v22, %v763_v22  ;;  %v764_v55 = vpack.c.bf16 %v760_v45, %v760_v45 }
 0x359   :  { %v782_v28 = vpack.c.bf16 %v778_v27, %v778_v27 }
 0x35a   :  { %v1187_v33 = vunpack.c.l.b16 %v767_v44  ;;  %v1184_v2 = vunpack.c.l.b16 %v764_v55  ;;  %v5604_v44 = vld [vmem:[%s8325_s2 + $0x1a] ss:$0 sm:$0xff] }
 0x35b   :  { %v1196_v32 = vunpack.c.l.b16 %v782_v28  ;;  %786 = vrot.lane.b32.xlu2 %v6027_v4, %s5693_s21  ;;  %1048 = vrot.lane.b32.xlu0 %v6027_v4, %s5694_s24 }
 0x35c   :  { %1054 = vrot.lane.b32.xlu1 %v6019_v61, %s5694_s24  ;;  %v1189_v42 = vpack.c.b16 %v1187_v33, %v1186_v38 }
 0x35d   :  { %v843_v34 = vpop.permute.xlu2 %842  ;;  %v913_v35 = vpop.permute.xlu0 %912  ;;  %v1200_v36 = vpack.c.b16 %v1197_v29, %v1196_v32 }
 0x35e   :  { %v919_v37 = vpop.permute.xlu1 %918  ;;  %v922_v43 = vmul.f32 %v5600_v26, %v913_v35  ;;  %v851_v18 = vmul.f32 %v5601_v1, %v843_v34 }
 0x35f   :  { %v925_v40 = vmul.f32 %v5600_v26, %v919_v37  ;;  %1574 = vmatpush.bf16.msrb.mxu3 %v1200_v36 }
 0x360   :  { %v926_v14 = vpack.c.bf16 %v922_v43, %v922_v43  ;;  %v855_v27 = vpack.c.bf16 %v851_v18, %v851_v18 }
 0x361   :  { %v929_v41 = vpack.c.bf16 %v925_v40, %v925_v40  ;;  %v5603_v40 = vld [vmem:[%s8325_s2 + $0x16] ss:$0 sm:$0xff] }
 0x362   :  { %v1292_v19 = vunpack.c.l.b16 %v926_v14  ;;  %v1245_v33 = vunpack.c.l.b16 %v855_v27 }
 0x363   :  { %v1295_v48 = vunpack.c.l.b16 %v929_v41  ;;  %1575 = vmatpush.bf16.msrb.mxu3 %v1189_v42  ;;  %982 = vrot.lane.b32.xlu2 %v6019_v61, %s5695_s1 }
 0x364   :  { %978 = vrot.lane.b32.xlu0 %v6025_v3, %s5695_s1  ;;  %980 = vrot.lane.b32.xlu1 %v6017_v60, %s5695_s1 }
 0x365   :  { %v1297_v49 = vpack.c.b16 %v1295_v48, %v1294_v46  ;;  %v737_v50 = vpop.permute.xlu2 %736  ;;  %v753_v51 = vpop.permute.xlu0 %752 }
 0x366   :  { %v761_v56 = vmul.f32 %v5599_v17, %v753_v51  ;;  %v845_v57 = vpop.permute.xlu1 %844  ;;  %v744_v17 = vmul.f32 %v5602_v12, %v737_v50 }
 0x367   :  { %v852_v59 = vmul.f32 %v5601_v1, %v845_v57  ;;  %1611 = vmatpush.bf16.msrb.mxu2 %v1297_v49 }
 0x368   :  { %v765_v62 = vpack.c.bf16 %v761_v56, %v761_v56  ;;  %v748_v24 = vpack.c.bf16 %v744_v17, %v744_v17 }
 0x369   :  { %v856_v63 = vpack.c.bf16 %v852_v59, %v852_v59 }
 0x36a   :  { %v1185_v5 = vunpack.c.l.b16 %v765_v62  ;;  %v1174_v31 = vunpack.c.l.b16 %v748_v24 }
 0x36b   :  { %v1246_v7 = vunpack.c.l.b16 %v856_v63  ;;  %976 = vrot.lane.b32.xlu2 %v6027_v4, %s5695_s1 }
 0x36c   :  { %1124 = vrot.lane.b32.xlu0 %v6017_v60, %s5696_s11  ;;  %1050 = vrot.lane.b32.xlu1 %v6025_v3, %s5694_s24  ;;  %v1188_v8 = vpack.c.b16 %v1185_v5, %v1184_v2 }
 0x36d   :  { %v1249_v9 = vpack.c.b16 %v1247_v6, %v1246_v7  ;;  %v829_v10 = vpop.permute.xlu2 %828  ;;  %v899_v11 = vpop.permute.xlu0 %898 }
 0x36e   :  { %v915_v13 = vpop.permute.xlu1 %914  ;;  %1576 = vmatpush.bf16.msrb.mxu3 %v1188_v8  ;;  %v906_v34 = vmul.f32 %v5604_v44, %v899_v11  ;;  %v835_v47 = vmul.f32 %v5603_v40, %v829_v10 }
 0x36f   :  { %v923_v15 = vmul.f32 %v5600_v26, %v915_v13  ;;  %1592 = vmatpush.bf16.msra.mxu1 %v1249_v9  ;;  %v5605_v13 = vld [vmem:[%s8325_s2 + $0x10] ss:$0 sm:$0xff] }
 0x370   :  { %v910_v41 = vpack.c.bf16 %v906_v34, %v906_v34  ;;  %v839_v59 = vpack.c.bf16 %v835_v47, %v835_v47 }
 0x371   :  { %v927_v16 = vpack.c.bf16 %v923_v15, %v923_v15 }
 0x372   :  { %v1282_v48 = vunpack.c.l.b16 %v910_v41  ;;  %v1235_v43 = vunpack.c.l.b16 %v839_v59  ;;  %v5606_v41 = vld [vmem:[%s8325_s2 + $0x15] ss:$0 sm:$0xff] }
 0x373   :  { %v1293_v20 = vunpack.c.l.b16 %v927_v16  ;;  %1036 = vrot.lane.b32.xlu2 %v6019_v61, %s5679_s14 }
 0x374   :  { %964 = vrot.lane.b32.xlu0 %v6019_v61, %s5697_s18  ;;  %1034 = vrot.lane.b32.xlu1 %v6017_v60, %s5679_s14 }
 0x375   :  { %v733_v21 = vpop.permute.xlu2 %732  ;;  %v739_v22 = vpop.permute.xlu0 %738  ;;  %v1296_v23 = vpack.c.b16 %v1293_v20, %v1292_v19 }
 0x376   :  { %v745_v25 = vmul.f32 %v5602_v12, %v739_v22  ;;  %v841_v26 = vpop.permute.xlu1 %840  ;;  %v742_v46 = vmul.f32 %v5602_v12, %v733_v21 }
 0x377   :  { %v850_v28 = vmul.f32 %v5601_v1, %v841_v26  ;;  %1612 = vmatpush.bf16.msrb.mxu2 %v1296_v23 }
 0x378   :  { %v749_v29 = vpack.c.bf16 %v745_v25, %v745_v25  ;;  %v746_v56 = vpack.c.bf16 %v742_v46, %v742_v46 }
 0x379   :  { %v854_v30 = vpack.c.bf16 %v850_v28, %v850_v28  ;;  %v5607_v28 = vld [vmem:[%s8325_s2 + $0x19] ss:$0 sm:$0xff] }
 0x37a   :  { %v1175_v32 = vunpack.c.l.b16 %v749_v29  ;;  %v1172_v5 = vunpack.c.l.b16 %v746_v56 }
 0x37b   :  { %v1244_v35 = vunpack.c.l.b16 %v854_v30  ;;  %962 = vrot.lane.b32.xlu2 %v6017_v60, %s5697_s18 }
 0x37c   :  { %1120 = vrot.lane.b32.xlu0 %v6027_v4, %s5696_s11  ;;  %1126 = vrot.lane.b32.xlu1 %v6019_v61, %s5696_s11  ;;  %v1177_v36 = vpack.c.b16 %v1175_v32, %v1174_v31 }
 0x37d   :  { %v825_v37 = vpop.permute.xlu2 %824  ;;  %v895_v38 = vpop.permute.xlu0 %894  ;;  %v1248_v0 = vpack.c.b16 %v1245_v33, %v1244_v35 }
 0x37e   :  { %v901_v1 = vpop.permute.xlu1 %900  ;;  %1577 = vmatpush.bf16.msrb.mxu3 %v1177_v36  ;;  %v904_v7 = vmul.f32 %v5604_v44, %v895_v38  ;;  %v833_v19 = vmul.f32 %v5603_v40, %v825_v37 }
 0x37f   :  { %v907_v42 = vmul.f32 %v5604_v44, %v901_v1  ;;  %1593 = vmatpush.bf16.msra.mxu1 %v1248_v0 }
 0x380   :  { %v908_v15 = vpack.c.bf16 %v904_v7, %v904_v7 }
 0x381   :  { %v911_v45 = vpack.c.bf16 %v907_v42, %v907_v42 }
 0x382   :  { %v1280_v20 = vunpack.c.l.b16 %v908_v15 }
 0x383   :  { %v1283_v49 = vunpack.c.l.b16 %v911_v45  ;;  %1032 = vrot.lane.b32.xlu2 %v6025_v3, %s5679_s14 }
 0x384   :  { %960 = vrot.lane.b32.xlu0 %v6025_v3, %s5697_s18  ;;  %1030 = vrot.lane.b32.xlu1 %v6027_v4, %s5679_s14 }
 0x385   :  { %v719_v50 = vpop.permute.xlu2 %718  ;;  %v735_v51 = vpop.permute.xlu0 %734  ;;  %v1285_v55 = vpack.c.b16 %v1283_v49, %v1282_v48 }
 0x386   :  { %v743_v57 = vmul.f32 %v5602_v12, %v735_v51  ;;  %v827_v58 = vpop.permute.xlu1 %826  ;;  %v726_v18 = vmul.f32 %v5605_v13, %v719_v50 }
 0x387   :  { %v834_v62 = vmul.f32 %v5603_v40, %v827_v58  ;;  %1613 = vmatpush.bf16.msrb.mxu2 %v1285_v55 }
 0x388   :  { %v747_v63 = vpack.c.bf16 %v743_v57, %v743_v57  ;;  %v730_v25 = vpack.c.bf16 %v726_v18, %v726_v18 }
 0x389   :  { %v838_v2 = vpack.c.bf16 %v834_v62, %v834_v62 }
 0x38a   :  { %v1173_v6 = vunpack.c.l.b16 %v747_v63  ;;  %v1162_v32 = vunpack.c.l.b16 %v730_v25 }
 0x38b   :  { %v1234_v8 = vunpack.c.l.b16 %v838_v2  ;;  %958 = vrot.lane.b32.xlu2 %v6027_v4, %s5697_s18  ;;  %s5700_s18 = smov 110  }
 0x38c   :  { %1106 = vrot.lane.b32.xlu0 %v6017_v60, %s5698_s23  ;;  %1122 = vrot.lane.b32.xlu1 %v6025_v3, %s5696_s11  ;;  %v1176_v9 = vpack.c.b16 %v1173_v6, %v1172_v5 }
 0x38d   :  { %v811_v10 = vpop.permute.xlu2 %810  ;;  %v881_v11 = vpop.permute.xlu0 %880  ;;  %v1237_v12 = vpack.c.b16 %v1235_v43, %v1234_v8 }
 0x38e   :  { %v897_v14 = vpop.permute.xlu1 %896  ;;  %1578 = vmatpush.bf16.msrb.mxu3 %v1176_v9  ;;  %v888_v35 = vmul.f32 %v5607_v28, %v881_v11  ;;  %v817_v48 = vmul.f32 %v5606_v41, %v811_v10 }
 0x38f   :  { %v905_v16 = vmul.f32 %v5604_v44, %v897_v14  ;;  %1594 = vmatpush.bf16.msra.mxu1 %v1237_v12  ;;  %v837_v44 = vpack.c.bf16 %v833_v19, %v833_v19 }
 0x390   :  { %v892_v42 = vpack.c.bf16 %v888_v35, %v888_v35  ;;  %v821_v62 = vpack.c.bf16 %v817_v48, %v817_v48 }
 0x391   :  { %v909_v17 = vpack.c.bf16 %v905_v16, %v905_v16  ;;  %v1233_v34 = vunpack.c.l.b16 %v837_v44 }
 0x392   :  { %v1270_v49 = vunpack.c.l.b16 %v892_v42  ;;  %v1223_v7 = vunpack.c.l.b16 %v821_v62 }
 0x393   :  { %v1281_v21 = vunpack.c.l.b16 %v909_v17  ;;  %1018 = vrot.lane.b32.xlu2 %v6019_v61, %s5678_s0 }
 0x394   :  { %946 = vrot.lane.b32.xlu0 %v6019_v61, %s5671_s28  ;;  %1016 = vrot.lane.b32.xlu1 %v6017_v60, %s5678_s0 }
 0x395   :  { %v715_v22 = vpop.permute.xlu2 %714  ;;  %v721_v23 = vpop.permute.xlu0 %720  ;;  %v1284_v24 = vpack.c.b16 %v1281_v21, %v1280_v20  ;;  %v5608_v20 = vld [vmem:[%s8325_s2 + $0x14] ss:$0 sm:$0xff] }
 0x396   :  { %v727_v26 = vmul.f32 %v5605_v13, %v721_v23  ;;  %v823_v27 = vpop.permute.xlu1 %822  ;;  %v724_v47 = vmul.f32 %v5605_v13, %v715_v22 }
 0x397   :  { %v832_v29 = vmul.f32 %v5603_v40, %v823_v27  ;;  %1614 = vmatpush.bf16.msrb.mxu2 %v1284_v24 }
 0x398   :  { %v731_v30 = vpack.c.bf16 %v727_v26, %v727_v26  ;;  %v728_v57 = vpack.c.bf16 %v724_v47, %v724_v47 }
 0x399   :  { %v836_v31 = vpack.c.bf16 %v832_v29, %v832_v29 }
 0x39a   :  { %v1163_v33 = vunpack.c.l.b16 %v731_v30  ;;  %v1160_v6 = vunpack.c.l.b16 %v728_v57 }
 0x39b   :  { %v1232_v36 = vunpack.c.l.b16 %v836_v31  ;;  %944 = vrot.lane.b32.xlu2 %v6017_v60, %s5671_s28 }
 0x39c   :  { %1102 = vrot.lane.b32.xlu0 %v6027_v4, %s5698_s23  ;;  %1108 = vrot.lane.b32.xlu1 %v6019_v61, %s5698_s23  ;;  %v1165_v37 = vpack.c.b16 %v1163_v33, %v1162_v32 }
 0x39d   :  { %v807_v38 = vpop.permute.xlu2 %806  ;;  %v877_v0 = vpop.permute.xlu0 %876  ;;  %v1236_v1 = vpack.c.b16 %v1233_v34, %v1232_v36 }
 0x39e   :  { %v883_v40 = vpop.permute.xlu1 %882  ;;  %1579 = vmatpush.bf16.msrb.mxu3 %v1165_v37  ;;  %v886_v8 = vmul.f32 %v5607_v28, %v877_v0  ;;  %v815_v18 = vmul.f32 %v5606_v41, %v807_v38 }
 0x39f   :  { %v889_v45 = vmul.f32 %v5607_v28, %v883_v40  ;;  %1595 = vmatpush.bf16.msra.mxu1 %v1236_v1 }
 0x3a0   :  { %v890_v15 = vpack.c.bf16 %v886_v8, %v886_v8  ;;  %v819_v27 = vpack.c.bf16 %v815_v18, %v815_v18 }
 0x3a1   :  { %v893_v46 = vpack.c.bf16 %v889_v45, %v889_v45 }
 0x3a2   :  { %v1268_v19 = vunpack.c.l.b16 %v890_v15  ;;  %v1221_v32 = vunpack.c.l.b16 %v819_v27 }
 0x3a3   :  { %v1271_v50 = vunpack.c.l.b16 %v893_v46  ;;  %1014 = vrot.lane.b32.xlu2 %v6025_v3, %s5678_s0 }
 0x3a4   :  { %942 = vrot.lane.b32.xlu0 %v6025_v3, %s5671_s28  ;;  %1012 = vrot.lane.b32.xlu1 %v6027_v4, %s5678_s0 }
 0x3a5   :  { %v791_v51 = vpop.permute.xlu2 %790  ;;  %v717_v55 = vpop.permute.xlu0 %716  ;;  %v1273_v56 = vpack.c.b16 %v1271_v50, %v1270_v49 }
 0x3a6   :  { %v725_v58 = vmul.f32 %v5605_v13, %v717_v55  ;;  %v809_v59 = vpop.permute.xlu1 %808  ;;  %v798_v44 = vmul.f32 %v5608_v20, %v791_v51 }
 0x3a7   :  { %v816_v63 = vmul.f32 %v5606_v41, %v809_v59  ;;  %1615 = vmatpush.bf16.msrb.mxu2 %v1273_v56 }
 0x3a8   :  { %v729_v2 = vpack.c.bf16 %v725_v58, %v725_v58  ;;  %v802_v33 = vpack.c.bf16 %v798_v44, %v798_v44 }
 0x3a9   :  { %v820_v5 = vpack.c.bf16 %v816_v63, %v816_v63  ;;  %v5611_v63 = vld [vmem:[%s8325_s2 + $0x23] ss:$0 sm:$0xff] }
 0x3aa   :  { %v1161_v43 = vunpack.c.l.b16 %v729_v2  ;;  %v1210_v40 = vunpack.c.l.b16 %v802_v33 }
 0x3ab   :  { %v1222_v9 = vunpack.c.l.b16 %v820_v5  ;;  %940 = vrot.lane.b32.xlu2 %v6027_v4, %s5671_s28 }
 0x3ac   :  { %1088 = vrot.lane.b32.xlu0 %v6017_v60, %s5699_s10  ;;  %1104 = vrot.lane.b32.xlu1 %v6025_v3, %s5698_s23  ;;  %v1164_v10 = vpack.c.b16 %v1161_v43, %v1160_v6 }
 0x3ad   :  { %v861_v11 = vpop.permute.xlu2 %860  ;;  %v863_v12 = vpop.permute.xlu0 %862  ;;  %v1225_v13 = vpack.c.b16 %v1223_v7, %v1222_v9 }
 0x3ae   :  { %v879_v14 = vpop.permute.xlu1 %878  ;;  %1580 = vmatpush.bf16.msrb.mxu3 %v1164_v10 }
 0x3af   :  { %v887_v16 = vmul.f32 %v5607_v28, %v879_v14  ;;  %1596 = vmatpush.bf16.msra.mxu1 %v1225_v13  ;;  %v5609_v28 = vld [vmem:[%s8325_s2 + $0x18] ss:$0 sm:$0xff] }
 0x3b0   :  { %v870_v34 = vmul.f32 %v5609_v28, %v863_v12  ;;  %v869_v48 = vmul.f32 %v5609_v28, %v861_v11 }
 0x3b1   :  { %v891_v17 = vpack.c.bf16 %v887_v16, %v887_v16  ;;  %v5610_v16 = vld [vmem:[%s8325_s2 + $0x1f] ss:$0 sm:$0xff] }
 0x3b2   :  { %v873_v62 = vpack.c.bf16 %v869_v48, %v869_v48 }
 0x3b3   :  { %v1269_v21 = vunpack.c.l.b16 %v891_v17  ;;  %1000 = vrot.lane.b32.xlu2 %v6019_v61, %s5680_s15 }
 0x3b4   :  { %996 = vrot.lane.b32.xlu0 %v6025_v3, %s5680_s15  ;;  %998 = vrot.lane.b32.xlu1 %v6017_v60, %s5680_s15  ;;  %v1257_v8 = vunpack.c.l.b16 %v873_v62 }
 0x3b5   :  { %v787_v22 = vpop.permute.xlu2 %786  ;;  %v793_v23 = vpop.permute.xlu0 %792  ;;  %v1272_v24 = vpack.c.b16 %v1269_v21, %v1268_v19 }
 0x3b6   :  { %v799_v25 = vmul.f32 %v5608_v20, %v793_v23  ;;  %v805_v26 = vpop.permute.xlu1 %804  ;;  %v796_v47 = vmul.f32 %v5608_v20, %v787_v22 }
 0x3b7   :  { %v814_v29 = vmul.f32 %v5606_v41, %v805_v26  ;;  %1616 = vmatpush.bf16.msrb.mxu2 %v1272_v24  ;;  %v874_v41 = vpack.c.bf16 %v870_v34, %v870_v34 }
 0x3b8   :  { %v803_v30 = vpack.c.bf16 %v799_v25, %v799_v25  ;;  %v800_v57 = vpack.c.bf16 %v796_v47, %v796_v47 }
 0x3b9   :  { %v818_v31 = vpack.c.bf16 %v814_v29, %v814_v29  ;;  %v1258_v49 = vunpack.c.l.b16 %v874_v41 }
 0x3ba   :  { %v1211_v36 = vunpack.c.l.b16 %v803_v30  ;;  %v1208_v43 = vunpack.c.l.b16 %v800_v57 }
 0x3bb   :  { %v1220_v35 = vunpack.c.l.b16 %v818_v31  ;;  %994 = vrot.lane.b32.xlu2 %v6027_v4, %s5680_s15 }
 0x3bc   :  { %1142 = vrot.lane.b32.xlu0 %v6017_v60, %s5700_s18  ;;  %1090 = vrot.lane.b32.xlu1 %v6019_v61, %s5699_s10  ;;  %v1213_v46 = vpack.c.b16 %v1211_v36, %v1210_v40 }
 0x3bd   :  { %v983_v37 = vpop.permute.xlu2 %982  ;;  %v1053_v38 = vpop.permute.xlu0 %1052  ;;  %v1224_v0 = vpack.c.b16 %v1221_v32, %v1220_v35 }
 0x3be   :  { %v865_v1 = vpop.permute.xlu1 %864  ;;  %v1060_v9 = vmul.f32 %v5611_v63, %v1053_v38 }
 0x3bf   :  { %v871_v42 = vmul.f32 %v5609_v28, %v865_v1  ;;  %1597 = vmatpush.bf16.msra.mxu1 %v1224_v0  ;;  %v5612_v0 = vld [vmem:[%s8325_s2 + $0x22] ss:$0 sm:$0xff] }
 0x3c0   :  { %v1064_v17 = vpack.c.bf16 %v1060_v9, %v1060_v9 }
 0x3c1   :  { %v875_v45 = vpack.c.bf16 %v871_v42, %v871_v42 }
 0x3c2   :  { %v1390_v21 = vunpack.c.l.b16 %v1064_v17 }
 0x3c3   :  { %v1259_v50 = vunpack.c.l.b16 %v875_v45  ;;  %1598 = vmatpush.bf16.msra.mxu1 %v1213_v46  ;;  %1086 = vrot.lane.b32.xlu2 %v6025_v3, %s5699_s10  ;;  %v5613_v45 = vld [vmem:[%s8325_s2 + $0x1e] ss:$0 sm:$0xff] }
 0x3c4   :  { %1072 = vrot.lane.b32.xlu0 %v6019_v61, %s5701_s19  ;;  %1084 = vrot.lane.b32.xlu1 %v6027_v4, %s5699_s10 }
 0x3c5   :  { %v977_v51 = vpop.permute.xlu2 %976  ;;  %v789_v55 = vpop.permute.xlu0 %788  ;;  %v1261_v56 = vpack.c.b16 %v1259_v50, %v1258_v49 }
 0x3c6   :  { %v797_v58 = vmul.f32 %v5608_v20, %v789_v55  ;;  %v859_v59 = vpop.permute.xlu1 %858  ;;  %v989_v20 = vmul.f32 %v5610_v16, %v983_v37  ;;  %v986_v44 = vmul.f32 %v5610_v16, %v977_v51 }
 0x3c7   :  { %v868_v2 = vmul.f32 %v5609_v28, %v859_v59  ;;  %1617 = vmatpush.bf16.msrb.mxu2 %v1261_v56 }
 0x3c8   :  { %v801_v5 = vpack.c.bf16 %v797_v58, %v797_v58  ;;  %v993_v27 = vpack.c.bf16 %v989_v20, %v989_v20  ;;  %v990_v33 = vpack.c.bf16 %v986_v44, %v986_v44 }
 0x3c9   :  { %v872_v6 = vpack.c.bf16 %v868_v2, %v868_v2 }
 0x3ca   :  { %v1209_v7 = vunpack.c.l.b16 %v801_v5  ;;  %v1343_v32 = vunpack.c.l.b16 %v993_v27  ;;  %v1340_v41 = vunpack.c.l.b16 %v990_v33  ;;  %v5614_v5 = vld [vmem:[%s8325_s2 + $0x27] ss:$0 sm:$0xff] }
 0x3cb   :  { %v1256_v10 = vunpack.c.l.b16 %v872_v6  ;;  %1070 = vrot.lane.b32.xlu2 %v6017_v60, %s5701_s19 }
 0x3cc   :  { %1066 = vrot.lane.b32.xlu0 %v6027_v4, %s5701_s19  ;;  %1144 = vrot.lane.b32.xlu1 %v6019_v61, %s5700_s18  ;;  %v1212_v11 = vpack.c.b16 %v1209_v7, %v1208_v43 }
 0x3cd   :  { %v1037_v12 = vpop.permute.xlu2 %1036  ;;  %v1049_v13 = vpop.permute.xlu0 %1048  ;;  %v1260_v14 = vpack.c.b16 %v1257_v8, %v1256_v10 }
 0x3ce   :  { %v1055_v15 = vpop.permute.xlu1 %1054  ;;  %1599 = vmatpush.bf16.msra.mxu1 %v1212_v11  ;;  %v1058_v34 = vmul.f32 %v5611_v63, %v1049_v13  ;;  %v1043_v49 = vmul.f32 %v5612_v0, %v1037_v12 }
 0x3cf   :  { %v1061_v18 = vmul.f32 %v5611_v63, %v1055_v15  ;;  %1618 = vmatpush.bf16.msrb.mxu2 %v1260_v14 }
 0x3d0   :  { %v1062_v42 = vpack.c.bf16 %v1058_v34, %v1058_v34  ;;  %v1047_v58 = vpack.c.bf16 %v1043_v49, %v1043_v49 }
 0x3d1   :  { %v1065_v19 = vpack.c.bf16 %v1061_v18, %v1061_v18 }
 0x3d2   :  { %v1388_v50 = vunpack.c.l.b16 %v1062_v42  ;;  %v1379_v8 = vunpack.c.l.b16 %v1047_v58 }
 0x3d3   :  { %v1391_v22 = vunpack.c.l.b16 %v1065_v19  ;;  %1140 = vrot.lane.b32.xlu2 %v6025_v3, %s5700_s18 }
 0x3d4   :  { %1138 = vrot.lane.b32.xlu1 %v6027_v4, %s5700_s18 }
 0x3d5   :  { %v1393_v23 = vpack.c.b16 %v1391_v22, %v1390_v21  ;;  %v963_v24 = vpop.permute.xlu2 %962 }
 0x3d6   :  { %v979_v25 = vpop.permute.xlu0 %978  ;;  %v981_v26 = vpop.permute.xlu1 %980  ;;  %v970_v51 = vmul.f32 %v5613_v45, %v963_v24 }
 0x3d7   :  { %v987_v28 = vmul.f32 %v5610_v16, %v979_v25  ;;  %v988_v29 = vmul.f32 %v5610_v16, %v981_v26  ;;  %1649 = vmatpush.bf16.msra.mxu3 %v1393_v23  ;;  %v5073_v25 = vld [vmem:[%s8330_s5] sm:$0xf]  ;;  %v5373_v26 = vld [vmem:[%s8330_s5 + $0x18] sm:$0xf0] }
 0x3d8   :  { %v974_v2 = vpack.c.bf16 %v970_v51, %v970_v51  ;;  %v5074_v27 = vor.u32 %v5373_v26, %v5073_v25  ;;  %v5370_v25 = vld [vmem:[%s8330_s5 + $0x4] sm:$0xf]  ;;  %v5075_v26 = vld [vmem:[%s8330_s5 + $0x1c] sm:$0xf0] }
 0x3d9   :  { %v991_v30 = vpack.c.bf16 %v987_v28, %v987_v28  ;;  %v992_v31 = vpack.c.bf16 %v988_v29, %v988_v29 }
 0x3da   :  { %v1330_v9 = vunpack.c.l.b16 %v974_v2  ;;  %1581 = vmatmul.bf16.vlgmr.msrb.gmra.mxu3 %v5074_v27  ;;  %v5380_v2 = vld [vmem:[%s8330_s5 + $0x50] sm:$0xf0] }
 0x3db   :  { %v1342_v35 = vunpack.c.l.b16 %v992_v31  ;;  %v1341_v36 = vunpack.c.l.b16 %v991_v30 }
 0x3dc   :  { %1068 = vrot.lane.b32.xlu1 %v6025_v3, %s5701_s19 }
 0x3dd   :  { %v1345_v37 = vpack.c.b16 %v1343_v32, %v1342_v35  ;;  %v1033_v38 = vpop.permute.xlu2 %1032  ;;  %v1344_v48 = vpack.c.b16 %v1341_v36, %v1340_v41 }
 0x3de   :  { %v1125_v1 = vpop.permute.xlu0 %1124  ;;  %v1051_v40 = vpop.permute.xlu1 %1050  ;;  %v1041_v21 = vmul.f32 %v5612_v0, %v1033_v38 }
 0x3df   :  { %v1059_v46 = vmul.f32 %v5611_v63, %v1051_v40  ;;  %1630 = vmatpush.bf16.msra.mxu0 %v1345_v37  ;;  %v1132_v10 = vmul.f32 %v5614_v5, %v1125_v1 }
 0x3e0   :  { %v1045_v28 = vpack.c.bf16 %v1041_v21, %v1041_v21 }
 0x3e1   :  { %v1063_v47 = vpack.c.bf16 %v1059_v46, %v1059_v46  ;;  %v1136_v18 = vpack.c.bf16 %v1132_v10, %v1132_v10 }
 0x3e2   :  { %v1377_v37 = vunpack.c.l.b16 %v1045_v28  ;;  %v5078_v28 = vor.u32 %v5370_v25, %v5075_v26 }
 0x3e3   :  { %v1389_v55 = vunpack.c.l.b16 %v1063_v47  ;;  %1631 = vmatpush.bf16.msra.mxu0 %v1344_v48  ;;  %v1438_v22 = vunpack.c.l.b16 %v1136_v18  ;;  %v6245_v47 = vld [vmem:[%s8325_s2 + $0x21] ss:$0 sm:$0xff] }
 0x3e4   :  { %1600 = vmatmul.bf16.vlgmr.msra.gmra.mxu1 %v5078_v28 }
 0x3e5   :  { %v959_v56 = vpop.permute.xlu2 %958  ;;  %v1392_v57 = vpack.c.b16 %v1389_v55, %v1388_v50 }
 0x3e6   :  { %v965_v59 = vpop.permute.xlu0 %964  ;;  %v1035_v62 = vpop.permute.xlu1 %1034  ;;  %v968_v23 = vmul.f32 %v5613_v45, %v959_v56 }
 0x3e7   :  { %v971_v6 = vmul.f32 %v5613_v45, %v965_v59  ;;  %v1042_v63 = vmul.f32 %v5612_v0, %v1035_v62  ;;  %1650 = vmatpush.bf16.msra.mxu3 %v1392_v57  ;;  %v5101_v62 = vld [vmem:[%s8330_s5 + $0x38] sm:$0xf] }
 0x3e8   :  { %v972_v31 = vpack.c.bf16 %v968_v23, %v968_v23 }
 0x3e9   :  { %v975_v43 = vpack.c.bf16 %v971_v6, %v971_v6  ;;  %v1046_v7 = vpack.c.bf16 %v1042_v63, %v1042_v63  ;;  %v5102_v6 = vor.u32 %v5380_v2, %v5101_v62 }
 0x3ea   :  { %v1328_v38 = vunpack.c.l.b16 %v972_v31 }
 0x3eb   :  { %v1331_v11 = vunpack.c.l.b16 %v975_v43  ;;  %v1378_v12 = vunpack.c.l.b16 %v1046_v7  ;;  %1586 = vmatmul.bf16.gmra.mxu3 %v5102_v6 }
 0x3ed   :  { %v1019_v13 = vpop.permute.xlu2 %1018  ;;  %v1333_v14 = vpack.c.b16 %v1331_v11, %v1330_v9  ;;  %v1381_v15 = vpack.c.b16 %v1379_v8, %v1378_v12  ;;  %v6260_v9 = vld [vmem:[%s8325_s2 + $0x26] ss:$0 sm:$0xff] }
 0x3ee   :  { %v1121_v16 = vpop.permute.xlu0 %1120  ;;  %v1127_v17 = vpop.permute.xlu1 %1126  ;;  %v1025_v56 = vmul.f32 %v6245_v47, %v1019_v13 }
 0x3ef   :  { %v1133_v19 = vmul.f32 %v5614_v5, %v1127_v17  ;;  %1632 = vmatpush.bf16.msra.mxu0 %v1333_v14  ;;  %1651 = vmatpush.bf16.msra.mxu3 %v1381_v15  ;;  %v1130_v1 = vmul.f32 %v5614_v5, %v1121_v16  ;;  %v5081_v14 = vld [vmem:[%s8330_s5 + $0x8] sm:$0xf]  ;;  %v5374_v15 = vld [vmem:[%s8330_s5 + $0x20] sm:$0xf0] }
 0x3f0   :  { %v5082_v17 = vor.u32 %v5374_v15, %v5081_v14 }
 0x3f1   :  { %v1137_v20 = vpack.c.bf16 %v1133_v19, %v1133_v19  ;;  %v1134_v50 = vpack.c.bf16 %v1130_v1, %v1130_v1 }
 0x3f2   :  { %1619 = vmatmul.bf16.vlgmr.msrb.gmra.mxu2 %v5082_v17 }
 0x3f3   :  { %v1439_v24 = vunpack.c.l.b16 %v1137_v20  ;;  %v1436_v57 = vunpack.c.l.b16 %v1134_v50 }
 0x3f5   :  { %v1441_v44 = vpack.c.b16 %v1439_v24, %v1438_v22  ;;  %v945_v32 = vpop.permute.xlu2 %944 }
 0x3f6   :  { %v961_v29 = vpop.permute.xlu0 %960  ;;  %v1031_v30 = vpop.permute.xlu1 %1030 }
 0x3f7   :  { %v969_v33 = vmul.f32 %v5613_v45, %v961_v29  ;;  %v1040_v34 = vmul.f32 %v5612_v0, %v1031_v30  ;;  %1668 = vmatpush.bf16.msrb.mxu1 %v1441_v44  ;;  %v5616_v0 = vld [vmem:[%s8325_s2 + $0x1d] ss:$0 sm:$0xff] }
 0x3f8   :  { %v952_v58 = vmul.f32 %v5616_v0, %v945_v32  ;;  %v5620_v32 = vld [vmem:[%s8325_s2 + $0x1c] ss:$0 sm:$0xff] }
 0x3f9   :  { %v973_v35 = vpack.c.bf16 %v969_v33, %v969_v33  ;;  %v1044_v36 = vpack.c.bf16 %v1040_v34, %v1040_v34  ;;  %v934_v1 = vmul.f32 %v5620_v32, %v6017_v60  ;;  %v5109_v60 = vld [vmem:[%s8330_s5 + $0x40] sm:$0xf] }
 0x3fa   :  { %v956_v8 = vpack.c.bf16 %v952_v58, %v952_v58 }
 0x3fb   :  { %v1329_v40 = vunpack.c.l.b16 %v973_v35  ;;  %v1376_v41 = vunpack.c.l.b16 %v1044_v36 }
 0x3fc   :  { %v1318_v18 = vunpack.c.l.b16 %v956_v8  ;;  %v5377_v8 = vld [vmem:[%s8330_s5 + $0x3c] sm:$0xf] }
 0x3fd   :  { %v1332_v42 = vpack.c.b16 %v1329_v40, %v1328_v38  ;;  %v1380_v46 = vpack.c.b16 %v1377_v37, %v1376_v41  ;;  %v1015_v51 = vpop.permute.xlu2 %1014  ;;  %v935_v40 = vmul.f32 %v5620_v32, %v6019_v61  ;;  %v5381_v61 = vld [vmem:[%s8330_s5 + $0x58] sm:$0xf0] }
 0x3fe   :  { %v1107_v48 = vpop.permute.xlu0 %1106  ;;  %v1123_v49 = vpop.permute.xlu1 %1122  ;;  %v1023_v33 = vmul.f32 %v6245_v47, %v1015_v51  ;;  %v933_v51 = vmul.f32 %v5620_v32, %v6025_v3 }
 0x3ff   :  { %v1131_v45 = vmul.f32 %v5614_v5, %v1123_v49  ;;  %1633 = vmatpush.bf16.msra.mxu0 %v1332_v42  ;;  %1652 = vmatpush.bf16.msra.mxu3 %v1380_v46  ;;  %v1029_v5 = vpack.c.bf16 %v1025_v56, %v1025_v56  ;;  %v1114_v19 = vmul.f32 %v6260_v9, %v1107_v48 }
 0x400   :  { %v1027_v41 = vpack.c.bf16 %v1023_v33, %v1023_v33  ;;  %v939_v58 = vpack.c.bf16 %v935_v40, %v935_v40  ;;  %v937_v6 = vpack.c.bf16 %v933_v51, %v933_v51 }
 0x401   :  { %v1135_v55 = vpack.c.bf16 %v1131_v45, %v1131_v45  ;;  %v1367_v16 = vunpack.c.l.b16 %v1029_v5  ;;  %v1118_v29 = vpack.c.bf16 %v1114_v19, %v1114_v19  ;;  %v932_v45 = vmul.f32 %v5620_v32, %v6027_v4 }
 0x403   :  { %v1437_v59 = vunpack.c.l.b16 %v1135_v55  ;;  %v1426_v34 = vunpack.c.l.b16 %v1118_v29  ;;  %v936_v3 = vpack.c.bf16 %v932_v45, %v932_v45 }
 0x405   :  { %v1440_v63 = vpack.c.b16 %v1437_v59, %v1436_v57  ;;  %v941_v20 = vpop.permute.xlu2 %940  ;;  %v938_v57 = vpack.c.bf16 %v934_v1, %v934_v1  ;;  %v5110_v59 = vor.u32 %v5381_v61, %v5109_v60 }
 0x406   :  { %v947_v43 = vpop.permute.xlu0 %946  ;;  %v1017_v7 = vpop.permute.xlu1 %1016  ;;  %v950_v35 = vmul.f32 %v5616_v0, %v941_v20 }
 0x407   :  { %v953_v10 = vmul.f32 %v5616_v0, %v947_v43  ;;  %v1024_v11 = vmul.f32 %v6245_v47, %v1017_v7  ;;  %1669 = vmatpush.bf16.msrb.mxu1 %v1440_v63  ;;  %1624 = vmatmul.bf16.gmra.mxu2 %v5110_v59  ;;  %v1306_v43 = vunpack.c.l.b16 %v938_v57  ;;  %v1307_v7 = vunpack.c.l.b16 %v939_v58  ;;  %v5089_v57 = vld [vmem:[%s8330_s5 + $0x10] sm:$0xf]  ;;  %v5375_v58 = vld [vmem:[%s8330_s5 + $0x28] sm:$0xf0] }
 0x408   :  { %v954_v48 = vpack.c.bf16 %v950_v35, %v950_v35  ;;  %v6327_v59 = vld [vmem:[%s8326_s4 + $0x10] sm:$0xff] }
 0x409   :  { %v957_v12 = vpack.c.bf16 %v953_v10, %v953_v10  ;;  %v1028_v13 = vpack.c.bf16 %v1024_v11, %v1024_v11  ;;  %v5103_v10 = vld [vmem:[%s8330_s5 + $0x54] sm:$0xf0]  ;;  %v5618_v11 = vld [vmem:[%s8325_s2 + $0x20] ss:$0 sm:$0xff]  ;;  %v1309_v20 = vpack.c.b16 %v1307_v7, %v1306_v43 }
 0x40a   :  { %v5106_v14 = vor.u32 %v5377_v8, %v5103_v10 }
 0x40b   :  { %v1319_v21 = vunpack.c.l.b16 %v957_v12  ;;  %v1366_v22 = vunpack.c.l.b16 %v1028_v13 }
 0x40c   :  { %1605 = vmatmul.bf16.gmra.mxu1 %v5106_v14 }
 0x40d   :  { %v1321_v23 = vpack.c.b16 %v1319_v21, %v1318_v18  ;;  %v1369_v24 = vpack.c.b16 %v1367_v16, %v1366_v22  ;;  %v1001_v37 = vpop.permute.xlu2 %1000  ;;  %v1304_v18 = vunpack.c.l.b16 %v936_v3  ;;  %v1305_v21 = vunpack.c.l.b16 %v937_v6  ;;  %v5378_v6 = vld [vmem:[%s8330_s5 + $0x44] sm:$0xf] }
 0x40e   :  { %v1103_v27 = vpop.permute.xlu0 %1102  ;;  %v1109_v44 = vpop.permute.xlu1 %1108  ;;  %v1007_v22 = vmul.f32 %v5618_v11, %v1001_v37 }
 0x40f   :  { %v1115_v30 = vmul.f32 %v6260_v9, %v1109_v44  ;;  %1634 = vmatpush.bf16.msra.mxu0 %v1321_v23  ;;  %1653 = vmatpush.bf16.msra.mxu3 %v1369_v24  ;;  %v1112_v62 = vmul.f32 %v6260_v9, %v1103_v27  ;;  %v5702_v23 = vmov 3   ;;  %v6306_v24 = vld [vmem:[%s8326_s4] sm:$0xff]  ;;  %v5083_v27 = vld [vmem:[%s8330_s5 + $0x24] sm:$0xf0]  ;;  %v1308_v44 = vpack.c.b16 %v1305_v21, %v1304_v18 }
 0x410   :  { %5497 = vset.pattern.permute.xlu1 %v5702_v23  ;;  %5495 = vset.pattern.permute.xlu2 %v5702_v23  ;;  %v1011_v29 = vpack.c.bf16 %v1007_v22, %v1007_v22  ;;  %v6355_v18 = vld [vmem:[%s8326_s4 + $0x8] sm:$0xff] }
 0x411   :  { %v1119_v31 = vpack.c.bf16 %v1115_v30, %v1115_v30  ;;  %v1116_v15 = vpack.c.bf16 %v1112_v62, %v1112_v62  ;;  %1478 = vperm.xlu1 %5497, %v6306_v24   ;;  %5496 = vset.pattern.permute.xlu0 %v5702_v23  ;;  %v5703_v23 = vmov 8  }
 0x412   :  { %v1355_v40 = vunpack.c.l.b16 %v1011_v29  ;;  %1488 = vperm.xlu2 %5495, %v6327_v59   ;;  %v5117_v29 = vld [vmem:[%s8330_s5 + $0x48] sm:$0xf] }
 0x413   :  { %v1427_v36 = vunpack.c.l.b16 %v1119_v31  ;;  %v1424_v25 = vunpack.c.l.b16 %v1116_v15 }
 0x415   :  { %v1429_v38 = vpack.c.b16 %v1427_v36, %v1426_v34  ;;  %v995_v17 = vpop.permute.xlu2 %994  ;;  %v5619_v34 = vld [vmem:[%s8325_s2 + $0x25] ss:$0 sm:$0xff] }
 0x416   :  { %v943_v42 = vpop.permute.xlu0 %942  ;;  %v1013_v46 = vpop.permute.xlu1 %1012  ;;  %v1004_v33 = vmul.f32 %v5618_v11, %v995_v17 }
 0x417   :  { %v951_v49 = vmul.f32 %v5616_v0, %v943_v42  ;;  %v1022_v50 = vmul.f32 %v6245_v47, %v1013_v46  ;;  %1670 = vmatpush.bf16.msrb.mxu1 %v1429_v38  ;;  %v1365_v0 = vunpack.c.l.b16 %v1027_v41  ;;  %v1316_v47 = vunpack.c.l.b16 %v954_v48 }
 0x418   :  { %v1008_v41 = vpack.c.bf16 %v1004_v33, %v1004_v33 }
 0x419   :  { %v955_v55 = vpack.c.bf16 %v951_v49, %v951_v49  ;;  %v1026_v56 = vpack.c.bf16 %v1022_v50, %v1022_v50  ;;  %5498 = vset.pattern.permute.xlu1 %v5703_v23 }
 0x41a   :  { %v1352_v51 = vunpack.c.l.b16 %v1008_v41  ;;  %1483 = vperm.xlu2 %5495, %v6355_v18   ;;  %1726 = vperm.xlu1 %5498, %v6327_v59  }
 0x41b   :  { %v1317_v4 = vunpack.c.l.b16 %v955_v55  ;;  %v1364_v2 = vunpack.c.l.b16 %v1026_v56 }
 0x41d   :  { %v1320_v63 = vpack.c.b16 %v1317_v4, %v1316_v47  ;;  %v1368_v5 = vpack.c.b16 %v1365_v0, %v1364_v2  ;;  %v1087_v1 = vpop.permute.xlu2 %1086  ;;  %v5090_v0 = vor.u32 %v5375_v58, %v5089_v57  ;;  %v6332_v47 = vld [vmem:[%s8326_s4 + $0x18] sm:$0xff]  ;;  %v6337_v2 = vld [vmem:[%s8325_s2 + $0x24] ss:$0 sm:$0xff] }
 0x41e   :  { %v1089_v12 = vpop.permute.xlu0 %1088  ;;  %v1105_v13 = vpop.permute.xlu1 %1104  ;;  %v1095_v62 = vmul.f32 %v5619_v34, %v1087_v1  ;;  %1493 = vperm.xlu0 %5496, %v6332_v47  }
 0x41f   :  { %v1113_v16 = vmul.f32 %v6260_v9, %v1105_v13  ;;  %1635 = vmatpush.bf16.msra.mxu0 %v1320_v63  ;;  %1654 = vmatpush.bf16.msra.mxu3 %v1368_v5  ;;  %v5371_v9 = vld [vmem:[%s8330_s5 + $0xc] sm:$0xf]  ;;  %v1096_v42 = vmul.f32 %v5619_v34, %v1089_v12  ;;  %v5111_v63 = vld [vmem:[%s8330_s5 + $0x5c] sm:$0xf0]  ;;  %v5622_v13 = vld [vmem:[%s8325_s2 + $0x28] ss:$0 sm:$0xff] }
 0x420   :  { %v5086_v32 = vor.u32 %v5371_v9, %v5083_v27  ;;  %v5114_v10 = vor.u32 %v5378_v6, %v5111_v63  ;;  %v5091_v6 = vld [vmem:[%s8330_s5 + $0x2c] sm:$0xf0] }
 0x421   :  { %v1117_v19 = vpack.c.bf16 %v1113_v16, %v1113_v16  ;;  %v1100_v55 = vpack.c.bf16 %v1096_v42, %v1096_v42 }
 0x422   :  { %5499 = vset.pattern.permute.xlu2 %v5703_v23 }
 0x423   :  { %v1425_v26 = vunpack.c.l.b16 %v1117_v19  ;;  %1636 = vmatpush.bf16.msra.mxu0 %v1309_v20  ;;  %v1414_v4 = vunpack.c.l.b16 %v1100_v55  ;;  %1731 = vperm.xlu2 %5499, %v6332_v47   ;;  %v5376_v55 = vld [vmem:[%s8330_s5 + $0x30] sm:$0xf0] }
 0x425   :  { %v1428_v28 = vpack.c.b16 %v1425_v26, %v1424_v25  ;;  %v1071_v5 = vpop.permute.xlu2 %1070 }
 0x426   :  { %v997_v30 = vpop.permute.xlu0 %996  ;;  %v999_v31 = vpop.permute.xlu1 %998  ;;  %v1078_v12 = vmul.f32 %v6337_v2, %v1071_v5  ;;  %v5125_v5 = vld [vmem:[%s8330_s5 + $0x50] sm:$0xf] }
 0x427   :  { %v1005_v35 = vmul.f32 %v5618_v11, %v997_v30  ;;  %v1006_v36 = vmul.f32 %v5618_v11, %v999_v31  ;;  %1637 = vmatpush.bf16.msra.mxu0 %v1308_v44  ;;  %1671 = vmatpush.bf16.msrb.mxu1 %v1428_v28  ;;  %v1099_v11 = vpack.c.bf16 %v1095_v62, %v1095_v62  ;;  %v5382_v30 = vld [vmem:[%s8330_s5 + $0x60] sm:$0xf0] }
 0x428   :  { %v1082_v20 = vpack.c.bf16 %v1078_v12, %v1078_v12 }
 0x429   :  { %v1009_v37 = vpack.c.bf16 %v1005_v35, %v1005_v35  ;;  %v1010_v38 = vpack.c.bf16 %v1006_v36, %v1006_v36  ;;  %v1413_v19 = vunpack.c.l.b16 %v1099_v11 }
 0x42a   :  { %1638 = vmatmul.bf16.vlgmr.msra.gmra.mxu0 %v5086_v32  ;;  %v1402_v27 = vunpack.c.l.b16 %v1082_v20 }
 0x42b   :  { %v1354_v46 = vunpack.c.l.b16 %v1010_v38  ;;  %v1353_v48 = vunpack.c.l.b16 %v1009_v37  ;;  %v5704_v38 = vmov 9   ;;  %1716 = vperm.xlu2 %5499, %v6306_v24  }
 0x42c   :  { %5501 = vset.pattern.permute.xlu1 %v5704_v38  ;;  %5500 = vset.pattern.permute.xlu0 %v5704_v38 }
 0x42d   :  { %v1357_v49 = vpack.c.b16 %v1355_v40, %v1354_v46  ;;  %v1356_v61 = vpack.c.b16 %v1353_v48, %v1352_v51  ;;  %v1141_v31 = vpop.permute.xlu2 %1140  ;;  %1751 = vperm.xlu1 %5501, %v6332_v47   ;;  %1747 = vperm.xlu0 %5500, %v6327_v59   ;;  %v5097_v51 = vld [vmem:[%s8330_s5 + $0x18] sm:$0xf] }
 0x42e   :  { %v1143_v50 = vpop.permute.xlu0 %1142  ;;  %v1091_v45 = vpop.permute.xlu1 %1090  ;;  %v1149_v35 = vmul.f32 %v5622_v13, %v1141_v31  ;;  %v5098_v58 = vor.u32 %v5376_v55, %v5097_v51 }
 0x42f   :  { %v1097_v56 = vmul.f32 %v5619_v34, %v1091_v45  ;;  %1655 = vmatpush.bf16.msra.mxu3 %v1357_v49  ;;  %v1150_v21 = vmul.f32 %v5622_v13, %v1143_v50 }
 0x430   :  { %v1153_v41 = vpack.c.bf16 %v1149_v35, %v1149_v35 }
 0x431   :  { %v1101_v60 = vpack.c.bf16 %v1097_v56, %v1097_v56  ;;  %v1154_v44 = vpack.c.bf16 %v1150_v21, %v1150_v21 }
 0x432   :  { %v1449_v49 = vunpack.c.l.b16 %v1153_v41 }
 0x433   :  { %v1415_v3 = vunpack.c.l.b16 %v1101_v60  ;;  %1656 = vmatpush.bf16.msra.mxu3 %v1356_v61  ;;  %v1450_v36 = vunpack.c.l.b16 %v1154_v44  ;;  %5503 = vset.pattern.permute.xlu2 %v5704_v38 }
 0x434   :  { %1739 = vperm.xlu2 %5503, %v6306_v24  }
 0x435   :  { %v1417_v43 = vpack.c.b16 %v1415_v3, %v1414_v4  ;;  %5502 = vset.pattern.permute.xlu1 %v5703_v23  ;;  %1743 = vperm.xlu0 %5500, %v6355_v18   ;;  %v5372_v3 = vld [vmem:[%s8330_s5 + $0x14] sm:$0xf] }
 0x436   :  { %v1073_v7 = vpop.permute.xlu0 %1072  ;;  %v1085_v8 = vpop.permute.xlu1 %1084  ;;  %1657 = vmatmul.bf16.vlgmr.msra.gmra.mxu3 %v5090_v0  ;;  %1721 = vperm.xlu1 %5502, %v6355_v18  }
 0x437   :  { %v1079_v14 = vmul.f32 %v6337_v2, %v1073_v7  ;;  %v1094_v15 = vmul.f32 %v5619_v34, %v1085_v8  ;;  %1672 = vmatpush.bf16.msrb.mxu1 %v1417_v43  ;;  %v5118_v34 = vor.u32 %v5382_v30, %v5117_v29  ;;  %v5383_v43 = vld [vmem:[%s8330_s5 + $0x68] sm:$0xf0] }
 0x438   :  { %v5126_v7 = vor.u32 %v5383_v43, %v5125_v5  ;;  %v5379_v8 = vld [vmem:[%s8330_s5 + $0x4c] sm:$0xf] }
 0x439   :  { %v1083_v16 = vpack.c.bf16 %v1079_v14, %v1079_v14  ;;  %v1098_v17 = vpack.c.bf16 %v1094_v15, %v1094_v15 }
 0x43a   :  { %1643 = vmatmul.bf16.gmra.mxu0 %v5114_v10  ;;  %v5119_v10 = vld [vmem:[%s8330_s5 + $0x64] sm:$0xf0] }
 0x43b   :  { %v1412_v22 = vunpack.c.l.b16 %v1098_v17  ;;  %v1403_v25 = vunpack.c.l.b16 %v1083_v16  ;;  %v5122_v11 = vor.u32 %v5379_v8, %v5119_v10 }
 0x43d   :  { %v1416_v26 = vpack.c.b16 %v1413_v19, %v1412_v22  ;;  %v1405_v33 = vpack.c.b16 %v1403_v25, %v1402_v27 }
 0x43e   :  { %v1145_v9 = vpop.permute.xlu1 %1144  ;;  %v1067_v46 = vpop.permute.xlu0 %1066 }
 0x43f   :  { %v1151_v28 = vmul.f32 %v5622_v13, %v1145_v9  ;;  %1673 = vmatpush.bf16.msrb.mxu1 %v1416_v26  ;;  %v1076_v50 = vmul.f32 %v6337_v2, %v1067_v46 }
 0x441   :  { %v1155_v32 = vpack.c.bf16 %v1151_v28, %v1151_v28  ;;  %v1080_v60 = vpack.c.bf16 %v1076_v50, %v1076_v50 }
 0x443   :  { %v1451_v37 = vunpack.c.l.b16 %v1155_v32  ;;  %1674 = vmatpush.bf16.msrb.mxu1 %v1405_v33  ;;  %v1400_v62 = vunpack.c.l.b16 %v1080_v60 }
 0x445   :  { %v1453_v1 = vpack.c.b16 %v1451_v37, %v1450_v36 }
 0x446   :  { %v1139_v40 = vpop.permute.xlu1 %1138  ;;  %1662 = vmatmul.bf16.gmra.mxu3 %v5118_v34 }
 0x447   :  { %v1148_v42 = vmul.f32 %v5622_v13, %v1139_v40  ;;  %1693 = vmatpush.bf16.msra.mxu2 %v1453_v1 }
 0x449   :  { %v1152_v48 = vpack.c.bf16 %v1148_v42, %v1148_v42 }
 0x44b   :  { %v1448_v45 = vunpack.c.l.b16 %v1152_v48 }
 0x44d   :  { %v1452_v56 = vpack.c.b16 %v1449_v49, %v1448_v45 }
 0x44e   :  { %v1069_v57 = vpop.permute.xlu1 %1068 }
 0x44f   :  { %v1077_v61 = vmul.f32 %v6337_v2, %v1069_v57  ;;  %1694 = vmatpush.bf16.msra.mxu2 %v1452_v56  ;;  %v5094_v2 = vor.u32 %v5372_v3, %v5091_v6 }
 0x451   :  { %v1081_v0 = vpack.c.bf16 %v1077_v61, %v1077_v61 }
 0x452   :  { %5127 = vmatmul.msk.bf16.vlgmr.msra.gmra.mxu2 %vm1566_vm4, %v5098_v58 }
 0x453   :  { %v1401_v4 = vunpack.c.l.b16 %v1081_v0 }
 0x455   :  { %v1404_v63 = vpack.c.b16 %v1401_v4, %v1400_v62 }
 0x457   :  { %1675 = vmatpush.bf16.msrb.mxu1 %v1404_v63  ;;  %v6422_v63 = vld [vmem:[%s8325_s2 + $0x4] ss:$0 sm:$0xff] }
 0x45a   :  { %1676 = vmatmul.bf16.vlgmr.msrb.gmra.mxu1 %v5094_v2 }
 0x45d   :  { %v1582_v12 = vpop.f32.mrf.mxu3 }
 0x461   :  { %v1601_v14 = vpop.f32.mrf.mxu1 }
 0x462   :  { %5128 = vmatmul.msk.bf16.gmra.mxu2 %vm1566_vm4, %v5126_v7 }
 0x465   :  { %v1584_v13 = vpop.f32.mrf.mxu3 }
 0x469   :  { %v1603_v19 = vpop.f32.mrf.mxu1 }
 0x46a   :  { %1681 = vmatmul.bf16.gmra.mxu1 %v5122_v11 }
 0x46c   :  { %v1489_v16 = vpop.permute.xlu2 %1488 }
 0x46e   :  { %v1587_v17 = vpop.f32.mrf.mxu3 }
 0x46f   :  { %v1588_v8 = vadd.f32 %v1587_v17, %v1489_v16 }
 0x474   :  { %v1484_v21 = vpop.permute.xlu2 %1483 }
 0x475   :  { %v1620_v15 = vpop.f32.mrf.mxu2  ;;  %v1585_v33 = vadd.f32 %v1584_v13, %v1484_v21 }
 0x476   :  { %v6400_v23 = vpop.f32.mrf.mxu3 }
 0x477   :  { %v1604_v38 = vadd.f32 %v1603_v19, %v1585_v33 }
 0x47d   :  { %v1622_v20 = vpop.f32.mrf.mxu2  ;;  %v6402_v27 = vpop.permute.xlu2 %1731 }
 0x47e   :  { %v1623_v46 = vadd.f32 %v1622_v20, %v1604_v38 }
 0x483   :  { %v1479_v22 = vpop.permute.xlu1 %1478 }
 0x484   :  { %v1583_v25 = vadd.f32 %v1582_v12, %v1479_v22 }
 0x485   :  { %v1717_v37 = vpop.permute.xlu2 %1716 }
 0x486   :  { %v1602_v44 = vadd.f32 %v1601_v14, %v1583_v25 }
 0x488   :  { %v1621_v29 = vadd.f32 %v1620_v15, %v1602_v44 }
 0x489   :  { %v1606_v26 = vpop.f32.mrf.mxu1 }
 0x48a   :  { %v1625_v9 = vpop.f32.mrf.mxu2  ;;  %v1607_v13 = vadd.f32 %v1606_v26, %v1588_v8 }
 0x48c   :  { %v6404_v28 = vpop.permute.xlu1 %1726  ;;  %v1626_v20 = vadd.f32 %v1625_v9, %v1607_v13 }
 0x48e   :  { %v1740_v55 = vpop.permute.xlu2 %1739 }
 0x490   :  { %v1494_v35 = vpop.permute.xlu0 %1493 }
 0x491   :  { %v6406_v30 = vpop.f32.mrf.mxu1  ;;  %v1590_v44 = vadd.f32 %v6400_v23, %v1494_v35 }
 0x492   :  { %v6408_v31 = vpop.f32.mrf.mxu2 }
 0x493   :  { %v1609_v9 = vadd.f32 %v6406_v30, %v1590_v44 }
 0x49f   :  { %v6410_v40 = vpop.permute.xlu1 %1751  ;;  %v1748_v49 = vpop.permute.xlu0 %1747 }
 0x4a7   :  { %v1639_v32 = vpop.f32.mrf.mxu0  ;;  %v1744_v2 = vpop.permute.xlu0 %1743 }
 0x4a8   :  { %v1640_v36 = vadd.f32 %v1639_v32, %v1621_v29  ;;  %v1722_v3 = vpop.permute.xlu1 %1721 }
 0x4af   :  { %v1641_v50 = vpop.f32.mrf.mxu0 }
 0x4b0   :  { %v1642_v56 = vadd.f32 %v1641_v50, %v1623_v46 }
 0x4b7   :  { %v1644_v17 = vpop.f32.mrf.mxu0 }
 0x4b8   :  { %v1645_v22 = vadd.f32 %v1644_v17, %v1626_v20 }
 0x4b9   :  { %v1658_v34 = vpop.f32.mrf.mxu3 }
 0x4ba   :  { %v1659_v1 = vadd.f32 %v1658_v34, %v1640_v36  ;;  %v1628_v34 = vadd.f32 %v6408_v31, %v1609_v9 }
 0x4c1   :  { %v1660_v51 = vpop.f32.mrf.mxu3 }
 0x4c2   :  { %v1661_v58 = vadd.f32 %v1660_v51, %v1642_v56  ;;  %v6502_v51 = vld [vmem:[%s8326_s4 + $0x38] sm:$0xff]  ;;  %v5707_v56 = vmov 11  }
 0x4c9   :  { %v1663_v21 = vpop.f32.mrf.mxu3 }
 0x4ca   :  { %v1664_v26 = vadd.f32 %v1663_v21, %v1645_v22  ;;  %v5623_v21 = vld [vmem:[%s8325_s2 + $0x7] ss:$0 sm:$0xff] }
 0x4d1   :  { %v1665_v23 = vpop.f32.mrf.mxu3 }
 0x4d5   :  { %v1696_v41 = vpop.f32.mrf.mxu2 }
 0x4d7   :  { %v1677_v42 = vpop.f32.mrf.mxu1 }
 0x4d8   :  { %v1678_v48 = vadd.f32 %v1677_v42, %v1659_v1  ;;  %v5705_v1 = vmov 4  }
 0x4d9   :  { %5506 = vset.pattern.permute.xlu2 %v5705_v1  ;;  %5504 = vset.pattern.permute.xlu0 %v5705_v1 }
 0x4da   :  { %v6412_v45 = vadd.f32 %v1696_v41, %v1678_v48  ;;  %5505 = vset.pattern.permute.xlu1 %v5705_v1 }
 0x4dc   :  { %8393 = vst [vmem:[#allocation6_spill] sm:$0xff] %v6412_v45  ;;  %v1734_v57 = vmul.f32 %v1717_v37, %v6412_v45  ;;  %v1646_v37 = vpop.f32.mrf.mxu0 }
 0x4dd   :  { %v1698_v4 = vpop.f32.mrf.mxu2  ;;  %v1647_v35 = vadd.f32 %v1646_v37, %v1628_v34 }
 0x4de   :  { %v1754_v60 = vadd.f32 %v1740_v55, %v1734_v57  ;;  %v6512_v57 = vld [vmem:[%s8326_s4 + $0x20] sm:$0xff] }
 0x4df   :  { %v1679_v61 = vpop.f32.mrf.mxu1  ;;  %v1666_v41 = vadd.f32 %v1665_v23, %v1647_v35 }
 0x4e0   :  { %v1758_v0 = vmax.f32 %v1754_v60, 0.0  ;;  %v1680_v62 = vadd.f32 %v1679_v61, %v1661_v58  ;;  %v2158_v61 = vld [vmem:[%s8326_s4 + $0x28] sm:$0xff] }
 0x4e2   :  { %v6415_v6 = vadd.f32 %v1698_v4, %v1680_v62  ;;  %1798 = vrot.lane.b32.xlu0 %v1758_v0, %s5681_s16  ;;  %1816 = vrot.lane.b32.xlu1 %v1758_v0, %s5672_s8  ;;  %v1836_v7 = vmul.f32 %v6422_v63, %v1758_v0 }
 0x4e3   :  { %1880 = vrot.lane.b32.xlu2 %v1758_v0, %s5678_s0 }
 0x4e4   :  { %8394 = vst [vmem:[#allocation7_spill] sm:$0xff] %v6415_v6  ;;  %v1735_v5 = vmul.f32 %v1722_v3, %v6415_v6  ;;  %v1840_v12 = vpack.c.bf16 %v1836_v7, %v1836_v7 }
 0x4e5   :  { %v1701_v32 = vpop.f32.mrf.mxu2 }
 0x4e6   :  { %v1755_v43 = vadd.f32 %v1744_v2, %v1735_v5  ;;  %v6431_v15 = vunpack.c.l.b16 %v1840_v12 }
 0x4e7   :  { %v1682_v25 = vpop.f32.mrf.mxu1 }
 0x4e8   :  { %v1759_v10 = vmax.f32 %v1755_v43, 0.0  ;;  %v1683_v29 = vadd.f32 %v1682_v25, %v1664_v26 }
 0x4ea   :  { %1844 = vrot.lane.b32.xlu0 %v1758_v0, %s5671_s28  ;;  %1862 = vrot.lane.b32.xlu1 %v1758_v0, %s5680_s15  ;;  %v1837_v11 = vmul.f32 %v6422_v63, %v1759_v10  ;;  %v6445_v33 = vadd.f32 %v1701_v32, %v1683_v29 }
 0x4eb   :  { %1780 = vrot.lane.b32.xlu2 %v1758_v0, %s5682_s17 }
 0x4ec   :  { %v1841_v14 = vpack.c.bf16 %v1837_v11, %v1837_v11  ;;  %8395 = vst [vmem:[#allocation8_spill] sm:$0xff] %v6445_v33  ;;  %v1736_v36 = vmul.f32 %v6404_v28, %v6445_v33 }
 0x4ed   :  { %v1703_v28 = vpop.f32.mrf.mxu2 }
 0x4ee   :  { %v6433_v19 = vunpack.c.l.b16 %v1841_v14  ;;  %v1756_v38 = vadd.f32 %v1748_v49, %v1736_v36 }
 0x4ef   :  { %v1684_v30 = vpop.f32.mrf.mxu1 }
 0x4f0   :  { %v6453_v31 = vmax.f32 %v1756_v38, 0.0  ;;  %v1685_v42 = vadd.f32 %v1684_v30, %v1666_v41 }
 0x4f2   :  { %1762 = vrot.lane.b32.xlu0 %v1758_v0, %s5683_s26  ;;  %1898 = vrot.lane.b32.xlu1 %v1758_v0, %s5679_s14  ;;  %v6460_v46 = vadd.f32 %v1703_v28, %v1685_v42 }
 0x4f3   :  { %1818 = vrot.lane.b32.xlu2 %v1759_v10, %s5672_s8 }
 0x4f4   :  { %8396 = vst [vmem:[#allocation9_spill] sm:$0xff] %v6460_v46  ;;  %v1737_v48 = vmul.f32 %v6402_v27, %v6460_v46  ;;  %v6492_v27 = vld [vmem:[%s8326_s4 + $0x30] sm:$0xff] }
 0x4f6   :  { %v1757_v49 = vadd.f32 %v6410_v40, %v1737_v48  ;;  %v5706_v40 = vmov 10  }
 0x4f8   :  { %v6471_v50 = vmax.f32 %v1757_v49, 0.0 }
 0x4fa   :  { %1882 = vrot.lane.b32.xlu0 %v1759_v10, %s5678_s0  ;;  %1800 = vrot.lane.b32.xlu1 %v1759_v10, %s5681_s16 }
 0x4fb   :  { %1864 = vrot.lane.b32.xlu2 %v1759_v10, %s5680_s15 }
 0x502   :  { %1782 = vrot.lane.b32.xlu0 %v1759_v10, %s5682_s17  ;;  %1846 = vrot.lane.b32.xlu1 %v1759_v10, %s5671_s28 }
 0x503   :  { %1900 = vrot.lane.b32.xlu2 %v1759_v10, %s5679_s14 }
 0x50a   :  { %1820 = vrot.lane.b32.xlu0 %v6453_v31, %s5672_s8  ;;  %1764 = vrot.lane.b32.xlu1 %v1759_v10, %s5683_s26 }
 0x50b   :  { %1802 = vrot.lane.b32.xlu2 %v6453_v31, %s5681_s16 }
 0x512   :  { %1866 = vrot.lane.b32.xlu0 %v6453_v31, %s5680_s15  ;;  %1884 = vrot.lane.b32.xlu1 %v6453_v31, %s5678_s0 }
 0x513   :  { %1848 = vrot.lane.b32.xlu2 %v6453_v31, %s5671_s28 }
 0x51a   :  { %1804 = vrot.lane.b32.xlu0 %v6471_v50, %s5681_s16  ;;  %1784 = vrot.lane.b32.xlu1 %v6453_v31, %s5682_s17 }
 0x51b   :  { %1902 = vrot.lane.b32.xlu2 %v6453_v31, %s5679_s14 }
 0x522   :  { %1850 = vrot.lane.b32.xlu0 %v6471_v50, %s5671_s28  ;;  %1766 = vrot.lane.b32.xlu1 %v6453_v31, %s5683_s26 }
 0x523   :  { %1886 = vrot.lane.b32.xlu2 %v6471_v50, %s5678_s0 }
 0x52a   :  { %2041 = vperm.xlu0 %5504, %v6327_v59   ;;  %1822 = vrot.lane.b32.xlu1 %v6471_v50, %s5672_s8 }
 0x52b   :  { %2033 = vperm.xlu2 %5506, %v6306_v24  }
 0x532   :  { %1904 = vrot.lane.b32.xlu0 %v6471_v50, %s5679_s14  ;;  %1868 = vrot.lane.b32.xlu1 %v6471_v50, %s5680_s15 }
 0x533   :  { %5507 = vset.pattern.permute.xlu2 %v5706_v40  ;;  %5508 = vset.pattern.permute.xlu0 %v5706_v40 }
 0x534   :  { %2193 = vperm.xlu2 %5507, %v6492_v27  }
 0x53a   :  { %2045 = vperm.xlu1 %5505, %v6332_v47   ;;  %2198 = vperm.xlu0 %5508, %v6502_v51  }
 0x53c   :  { %1786 = vrot.lane.b32.xlu2 %v6471_v50, %s5682_s17 }
 0x53d   :  { %v1881_v55 = vpop.permute.xlu2 %1880  ;;  %5510 = vset.pattern.permute.xlu2 %v5707_v56 }
 0x53e   :  { %v1890_v44 = vmul.f32 %v5623_v21, %v1881_v55  ;;  %v5625_v55 = vld [vmem:[%s8325_s2 + $0x3] ss:$0 sm:$0xff] }
 0x542   :  { %2037 = vperm.xlu1 %5505, %v6355_v18   ;;  %5513 = vset.pattern.permute.xlu0 %v5707_v56 }
 0x543   :  { %2226 = vperm.xlu0 %5513, %v6512_v57  }
 0x544   :  { %1768 = vrot.lane.b32.xlu2 %v6471_v50, %s5683_s26 }
 0x545   :  { %v6517_v58 = vpop.permute.xlu2 %1780 }
 0x54a   :  { %5509 = vset.pattern.permute.xlu1 %v5707_v56 }
 0x54b   :  { %2234 = vperm.xlu1 %5509, %v6492_v27   ;;  %2222 = vperm.xlu0 %5513, %v6332_v47  }
 0x54c   :  { %2238 = vperm.xlu2 %5510, %v6502_v51  }
 0x54d   :  { %v6522_v60 = vpop.permute.xlu2 %1818 }
 0x553   :  { %5511 = vset.pattern.permute.xlu1 %v5706_v40  ;;  %2210 = vperm.xlu0 %5513, %v6306_v24  }
 0x554   :  { %5512 = vset.pattern.permute.xlu2 %v5706_v40  ;;  %v6528_v0 = vpop.permute.xlu0 %1798  ;;  %2183 = vperm.xlu1 %5511, %v6512_v57   ;;  %v1817_v62 = vpop.permute.xlu1 %1816 }
 0x555   :  { %2188 = vperm.xlu2 %5512, %v2158_v61   ;;  %v6531_v4 = vpop.permute.xlu2 %1864 }
 0x55c   :  { %v6533_v3 = vpop.permute.xlu0 %1844  ;;  %5514 = vset.pattern.permute.xlu1 %v5707_v56  ;;  %v1863_v2 = vpop.permute.xlu1 %1862 }
 0x55d   :  { %2173 = vperm.xlu2 %5512, %v6327_v59   ;;  %v6536_v5 = vpop.permute.xlu2 %1900  ;;  %2230 = vperm.xlu1 %5514, %v2158_v61  }
 0x564   :  { %v6538_v43 = vpop.permute.xlu0 %1762  ;;  %v6540_v7 = vpop.permute.xlu1 %1898 }
 0x565   :  { %5516 = vset.pattern.permute.xlu2 %v5707_v56  ;;  %v6542_v8 = vpop.permute.xlu2 %1802  ;;  %5515 = vset.pattern.permute.xlu1 %v5706_v40 }
 0x566   :  { %2218 = vperm.xlu2 %5516, %v6327_v59   ;;  %2178 = vperm.xlu1 %5515, %v6332_v47  }
 0x56c   :  { %v1883_v10 = vpop.permute.xlu0 %1882  ;;  %v6546_v11 = vpop.permute.xlu1 %1800 }
 0x56d   :  { %v6548_v12 = vpop.permute.xlu2 %1848 }
 0x56e   :  { %5517 = vset.pattern.permute.xlu2 %v5706_v40  ;;  %2163 = vperm.xlu1 %5515, %v6306_v24   ;;  %v1891_v24 = vmul.f32 %v5623_v21, %v1883_v10  ;;  %v1827_v10 = vmul.f32 %v5625_v55, %v6522_v60 }
 0x56f   :  { %2168 = vperm.xlu2 %5517, %v6355_v18  }
 0x570   :  { %v1895_v34 = vpack.c.bf16 %v1891_v24, %v1891_v24 }
 0x572   :  { %v2005_v35 = vunpack.c.l.b16 %v1895_v34  ;;  %v1831_v34 = vpack.c.bf16 %v1827_v10, %v1827_v10 }
 0x574   :  { %v6552_v13 = vpop.permute.xlu0 %1782  ;;  %v6554_v14 = vpop.permute.xlu1 %1846 }
 0x575   :  { %v1903_v20 = vpop.permute.xlu2 %1902 }
 0x576   :  { %5518 = vset.pattern.permute.xlu1 %v5707_v56  ;;  %v1826_v56 = vmul.f32 %v5625_v55, %v1817_v62  ;;  %v5629_v62 = vld [vmem:[%s8325_s2 + $0x8] ss:$0 sm:$0xff] }
 0x577   :  { %2214 = vperm.xlu1 %5518, %v6355_v18   ;;  %v1894_v18 = vpack.c.bf16 %v1890_v44, %v1890_v44 }
 0x579   :  { %v2004_v41 = vunpack.c.l.b16 %v1894_v18 }
 0x57b   :  { %v2008_v28 = vpack.c.b16 %v2005_v35, %v2004_v41  ;;  %v1910_v35 = vmul.f32 %v5629_v62, %v1903_v20 }
 0x57c   :  { %v1821_v59 = vpop.permute.xlu0 %1820  ;;  %v6557_v47 = vpop.permute.xlu1 %1764 }
 0x57d   :  { %v1887_v17 = vpop.permute.xlu2 %1886  ;;  %v1828_v61 = vmul.f32 %v5625_v55, %v1821_v59  ;;  %v1914_v16 = vpack.c.bf16 %v1910_v35, %v1910_v35 }
 0x57e   :  { %v1893_v22 = vmul.f32 %v5623_v21, %v1887_v17  ;;  %v5626_v17 = vld [vmem:[%s8325_s2 + $0x2] ss:$0 sm:$0xff] }
 0x57f   :  { %v1832_v44 = vpack.c.bf16 %v1828_v61, %v1828_v61  ;;  %v2018_v52 = vunpack.c.l.b16 %v1914_v16 }
 0x580   :  { %v1897_v29 = vpack.c.bf16 %v1893_v22, %v1893_v22 }
 0x581   :  { %v1958_v41 = vunpack.c.l.b16 %v1832_v44 }
 0x582   :  { %v2007_v37 = vunpack.c.l.b16 %v1897_v29 }
 0x584   :  { %v1867_v25 = vpop.permute.xlu0 %1866  ;;  %v1885_v26 = vpop.permute.xlu1 %1884 }
 0x585   :  { %v1892_v32 = vmul.f32 %v5623_v21, %v1885_v26  ;;  %v6562_v9 = vpop.permute.xlu2 %2033  ;;  %v5627_v21 = vld [vmem:[%s8325_s2 + $0x6] ss:$0 sm:$0xff]  ;;  %v1830_v26 = vpack.c.bf16 %v1826_v56, %v1826_v56  ;;  %v1909_v56 = vmul.f32 %v5629_v62, %v6536_v5  ;;  %v5628_v5 = vld [vmem:[%s8325_s2 + $0x5] ss:$0 sm:$0xff] }
 0x586   :  { %v1856_v39 = vmul.f32 %v5628_v5, %v6548_v12 }
 0x587   :  { %v1896_v36 = vpack.c.bf16 %v1892_v32, %v1892_v32  ;;  %v1872_v32 = vmul.f32 %v5627_v21, %v1863_v2 }
 0x589   :  { %v2006_v23 = vunpack.c.l.b16 %v1896_v36  ;;  %v1808_v36 = vmul.f32 %v5626_v17, %v6528_v0 }
 0x58b   :  { %v2009_v38 = vpack.c.b16 %v2007_v37, %v2006_v23  ;;  %v1873_v37 = vmul.f32 %v5627_v21, %v6531_v4  ;;  %v1810_v23 = vmul.f32 %v5626_v17, %v6542_v8  ;;  %v1812_v10 = vpack.c.bf16 %v1808_v36, %v1808_v36 }
 0x58c   :  { %v1805_v1 = vpop.permute.xlu0 %1804  ;;  %v6564_v30 = vpop.permute.xlu1 %1784 }
 0x58d   :  { %2103 = vmatpush.bf16.msrb.mxu3 %v2009_v38  ;;  %v1811_v60 = vmul.f32 %v5626_v17, %v1805_v1  ;;  %v1956_v38 = vunpack.c.l.b16 %v1830_v26  ;;  %v1809_v1 = vmul.f32 %v5626_v17, %v6546_v11  ;;  %v1877_v0 = vpack.c.bf16 %v1873_v37, %v1873_v37 }
 0x58e   :  { %v6566_v42 = vpop.permute.xlu2 %2193  ;;  %v1814_v4 = vpack.c.bf16 %v1810_v23, %v1810_v23 }
 0x58f   :  { %v1815_v61 = vpack.c.bf16 %v1811_v60, %v1811_v60  ;;  %v1913_v60 = vpack.c.bf16 %v1909_v56, %v1909_v56  ;;  %v1855_v56 = vmul.f32 %v5628_v5, %v6554_v14  ;;  %v1993_v12 = vunpack.c.l.b16 %v1877_v0 }
 0x590   :  { %v1860_v14 = vpack.c.bf16 %v1856_v39, %v1856_v39  ;;  %v5386_v39 = vld [vmem:[%s8328_s6 + $0x34] sm:$0xf0] }
 0x591   :  { %2104 = vmatpush.bf16.msrb.mxu3 %v2008_v28  ;;  %v1874_v28 = vmul.f32 %v5627_v21, %v1867_v25  ;;  %v5624_v25 = vld [vmem:[%s8325_s2 + $0x1] ss:$0 sm:$0xff]  ;;  %v1859_v0 = vpack.c.bf16 %v1855_v56, %v1855_v56 }
 0x593   :  { %v1878_v11 = vpack.c.bf16 %v1874_v28, %v1874_v28 }
 0x594   :  { %v1851_v48 = vpop.permute.xlu0 %1850  ;;  %v6568_v49 = vpop.permute.xlu1 %1766 }
 0x595   :  { %v1994_v28 = vunpack.c.l.b16 %v1878_v11 }
 0x596   :  { %v1787_v40 = vpop.permute.xlu2 %1786 }
 0x597   :  { %v1793_v37 = vmul.f32 %v5624_v25, %v1787_v40 }
 0x59c   :  { %v6580_v22 = vpop.permute.xlu0 %2041  ;;  %v1823_v24 = vpop.permute.xlu1 %1822 }
 0x59d   :  { %v1829_v29 = vmul.f32 %v5625_v55, %v1823_v24  ;;  %v1876_v55 = vpack.c.bf16 %v1872_v32, %v1872_v32  ;;  %v1957_v24 = vunpack.c.l.b16 %v1831_v34  ;;  %v1947_v34 = vunpack.c.l.b16 %v1815_v61 }
 0x59e   :  { %v6585_v59 = vpop.permute.xlu2 %1768 }
 0x59f   :  { %v1833_v18 = vpack.c.bf16 %v1829_v29, %v1829_v29  ;;  %v1908_v29 = vmul.f32 %v5629_v62, %v6540_v7  ;;  %v1960_v44 = vpack.c.b16 %v1957_v24, %v1956_v38  ;;  %v1992_v32 = vunpack.c.l.b16 %v1876_v55 }
 0x5a0   :  { %v1813_v7 = vpack.c.bf16 %v1809_v1, %v1809_v1  ;;  %v1791_v55 = vmul.f32 %v5624_v25, %v6552_v13  ;;  %v1797_v1 = vpack.c.bf16 %v1793_v37, %v1793_v37  ;;  %v5630_v13 = vld [vmem:[%s8325_s2] ss:$0 sm:$0xff] }
 0x5a1   :  { %v1959_v2 = vunpack.c.l.b16 %v1833_v18  ;;  %v1857_v18 = vmul.f32 %v5628_v5, %v1851_v48 }
 0x5a2   :  { %v1945_v38 = vunpack.c.l.b16 %v1813_v7 }
 0x5a3   :  { %v1961_v54 = vpack.c.b16 %v1959_v2, %v1958_v41  ;;  %v1912_v41 = vpack.c.bf16 %v1908_v29, %v1908_v29  ;;  %v1946_v2 = vunpack.c.l.b16 %v1814_v4  ;;  %v1861_v40 = vpack.c.bf16 %v1857_v18, %v1857_v18 }
 0x5a4   :  { %v1905_v8 = vpop.permute.xlu0 %1904  ;;  %v1869_v20 = vpop.permute.xlu1 %1868  ;;  %v1790_v29 = vmul.f32 %v5624_v25, %v6517_v58  ;;  %v1795_v58 = vpack.c.bf16 %v1791_v55, %v1791_v55  ;;  %v1772_v55 = vmul.f32 %v5630_v13, %v6538_v43  ;;  %v5131_v43 = vld [vmem:[%s8328_s6 + $0x24] sm:$0xf] }
 0x5a5   :  { %v1911_v17 = vmul.f32 %v5629_v62, %v1905_v8  ;;  %v1875_v26 = vmul.f32 %v5627_v21, %v1869_v20  ;;  %2084 = vmatpush.bf16.msrb.mxu0 %v1961_v54  ;;  %v1792_v21 = vmul.f32 %v5624_v25, %v6564_v30  ;;  %v1949_v48 = vpack.c.b16 %v1947_v34, %v1946_v2 }
 0x5a6   :  { %v6599_v36 = vpop.permute.xlu2 %2238  ;;  %v2016_v16 = vunpack.c.l.b16 %v1912_v41  ;;  %v1839_v30 = vmul.f32 %v6422_v63, %v6471_v50  ;;  %v1944_v8 = vunpack.c.l.b16 %v1812_v10  ;;  %v1854_v20 = vmul.f32 %v5628_v5, %v6533_v3  ;;  %v5139_v5 = vld [vmem:[%s8328_s6 + $0x2c] sm:$0xf] }
 0x5a7   :  { %v1915_v23 = vpack.c.bf16 %v1911_v17, %v1911_v17  ;;  %v1879_v35 = vpack.c.bf16 %v1875_v26, %v1875_v26  ;;  %v1796_v11 = vpack.c.bf16 %v1792_v21, %v1792_v21  ;;  %v1996_v25 = vpack.c.b16 %v1993_v12, %v1992_v32 }
 0x5a8   :  { %v1983_v17 = vunpack.c.l.b16 %v1861_v40  ;;  %v1935_v26 = vunpack.c.l.b16 %v1797_v1  ;;  %v1775_v50 = vmul.f32 %v5630_v13, %v6585_v59  ;;  %v1948_v3 = vpack.c.b16 %v1945_v38, %v1944_v8 }
 0x5a9   :  { %v2019_v54 = vunpack.c.l.b16 %v1915_v23  ;;  %v1995_v62 = vunpack.c.l.b16 %v1879_v35  ;;  %2085 = vmatpush.bf16.msrb.mxu0 %v1960_v44  ;;  %v1794_v44 = vpack.c.bf16 %v1790_v29, %v1790_v29  ;;  %v1838_v32 = vmul.f32 %v6422_v63, %v6453_v31 }
 0x5aa   :  { %v1858_v7 = vpack.c.bf16 %v1854_v20, %v1854_v20  ;;  %v1982_v34 = vunpack.c.l.b16 %v1860_v14  ;;  %v1934_v18 = vunpack.c.l.b16 %v1796_v11  ;;  %v1774_v59 = vmul.f32 %v5630_v13, %v6568_v49  ;;  %v5385_v14 = vld [vmem:[%s8328_s6 + $0x2c] sm:$0xf0]  ;;  %v5384_v11 = vld [vmem:[%s8328_s6 + $0x28] sm:$0xf] }
 0x5ab   :  { %v2021_v61 = vpack.c.b16 %v2019_v54, %v2018_v52  ;;  %v1997_v24 = vpack.c.b16 %v1995_v62, %v1994_v28  ;;  %v2017_v52 = vunpack.c.l.b16 %v1913_v60  ;;  %v1933_v37 = vunpack.c.l.b16 %v1795_v58 }
 0x5ac   :  { %v6606_v4 = vpop.permute.xlu1 %2045  ;;  %v1981_v23 = vunpack.c.l.b16 %v1859_v0  ;;  %v1843_v35 = vpack.c.bf16 %v1839_v30, %v1839_v30  ;;  %v5140_v41 = vor.u32 %v5386_v39, %v5139_v5  ;;  %v1773_v2 = vmul.f32 %v5630_v13, %v6557_v47 }
 0x5ad   :  { %2086 = vmatpush.bf16.msrb.mxu0 %v1949_v48  ;;  %2105 = vmatpush.bf16.msrb.mxu3 %v1997_v24  ;;  %v2020_v60 = vpack.c.b16 %v2017_v52, %v2016_v16  ;;  %v1779_v28 = vpack.c.bf16 %v1775_v50, %v1775_v50  ;;  %v1937_v21 = vpack.c.b16 %v1935_v26, %v1934_v18  ;;  %v1932_v31 = vunpack.c.l.b16 %v1794_v44  ;;  %v5133_v52 = vld [vmem:[%s8328_s6 + $0x30] sm:$0xf0]  ;;  %v6655_v44 = vpop.permute.xlu0 %2198  ;;  %v5387_v18 = vld [vmem:[%s8328_s6 + $0x40] sm:$0xf] }
 0x5ae   :  { %2128 = vmatpush.bf16.msra.mxu1 %v2021_v61  ;;  %v1985_v54 = vpack.c.b16 %v1983_v17, %v1982_v34  ;;  %v1842_v63 = vpack.c.bf16 %v1838_v32, %v1838_v32  ;;  %v1980_v38 = vunpack.c.l.b16 %v1858_v7  ;;  %v1778_v49 = vpack.c.bf16 %v1774_v59, %v1774_v59  ;;  %v5389_v17 = vld [vmem:[%s8328_s6 + $0x4c] sm:$0xf0]  ;;  %v5145_v59 = vld [vmem:[%s8328_s6 + $0x48] sm:$0xf0] }
 0x5af   :  { %v6615_v10 = vpop.permute.xlu2 %2188  ;;  %v1971_v56 = vunpack.c.l.b16 %v1843_v35  ;;  %v1777_v48 = vpack.c.bf16 %v1773_v2, %v1773_v2  ;;  %v1923_v40 = vunpack.c.l.b16 %v1779_v28  ;;  %v1936_v47 = vpack.c.b16 %v1933_v37, %v1932_v31 }
 0x5b0   :  { %v1984_v61 = vpack.c.b16 %v1981_v23, %v1980_v38  ;;  %v1776_v24 = vpack.c.bf16 %v1772_v55, %v1772_v55  ;;  %v1922_v29 = vunpack.c.l.b16 %v1778_v49  ;;  %v1970_v12 = vunpack.c.l.b16 %v1842_v63 }
 0x5b1   :  { %2087 = vmatpush.bf16.msrb.mxu0 %v1948_v3  ;;  %2106 = vmatpush.bf16.msrb.mxu3 %v1996_v25  ;;  %v1921_v16 = vunpack.c.l.b16 %v1777_v48  ;;  %v5151_v25 = vld [vmem:[%s8328_s6 + $0x44] sm:$0xf]  ;;  %v5132_v50 = vor.u32 %v5385_v14, %v5131_v43  ;;  %v5136_v3 = vor.u32 %v5384_v11, %v5133_v52  ;;  %v8397_v39 = vpack.c.b16 %v6433_v19, %v6431_v15  ;;  %v5143_v15 = vld [vmem:[%s8328_s6 + $0x3c] sm:$0xf]  ;;  %v5388_v19 = vld [vmem:[%s8328_s6 + $0x44] sm:$0xf0] }
 0x5b2   :  { %2129 = vmatpush.bf16.msra.mxu1 %v2020_v60  ;;  %v1925_v30 = vpack.c.b16 %v1923_v40, %v1922_v29  ;;  %v1973_v8 = vpack.c.b16 %v1971_v56, %v1970_v12  ;;  %v1920_v20 = vunpack.c.l.b16 %v1776_v24  ;;  %v5152_v60 = vor.u32 %v5389_v17, %v5151_v25  ;;  %v5665_v12 = vld [vmem:[%s8326_s4 + $0x10] sm:$0xff] }
 0x5b3   :  { %v5144_v23 = vor.u32 %v5388_v19, %v5143_v15  ;;  %v5148_v35 = vor.u32 %v5387_v18, %v5145_v59  ;;  %v5708_v40 = vmov 5  }
 0x5b4   :  { %v6627_v62 = vpop.permute.xlu1 %2037  ;;  %v1924_v0 = vpack.c.b16 %v1921_v16, %v1920_v20  ;;  %5520 = vset.pattern.permute.xlu1 %v5708_v40  ;;  %5519 = vset.pattern.permute.xlu0 %v5708_v40  ;;  %v6758_v16 = vld [vmem:[%s8326_s4] sm:$0xff] }
 0x5b5   :  { %2088 = vmatpush.bf16.msrb.mxu0 %v1937_v21  ;;  %2107 = vmatpush.bf16.msrb.mxu3 %v1985_v54  ;;  %v6664_v34 = vpop.permute.xlu0 %2226 }
 0x5b6   :  { %5153 = vmatmul.msk.bf16.vlgmr.msra.gmra.mxu1 %vm1566_vm4, %v5140_v41 }
 0x5b7   :  { %v2174_v1 = vpop.permute.xlu2 %2173 }
 0x5b8   :  { %v2203_v58 = vmul.f32 %v2174_v1, %v6445_v33  ;;  %v8335_v1 = vmov 12  }
 0x5b9   :  { %2089 = vmatpush.bf16.msrb.mxu0 %v1936_v47  ;;  %2108 = vmatpush.bf16.msrb.mxu3 %v1984_v61  ;;  %v5664_v47 = vld [vmem:[%s8326_s4 + $0x18] sm:$0xff] }
 0x5ba   :  { %5521 = vset.pattern.permute.xlu2 %v8335_v1 }
 0x5bd   :  { %2090 = vmatpush.bf16.msrb.mxu0 %v1925_v30  ;;  %2109 = vmatpush.bf16.msrb.mxu3 %v1973_v8  ;;  %v6634_v13 = vpop.permute.xlu1 %2234  ;;  %v2223_v41 = vpop.permute.xlu0 %2222 }
 0x5c0   :  { %v2219_v26 = vpop.permute.xlu2 %2218 }
 0x5c1   :  { %v2243_v5 = vadd.f32 %v2219_v26, %v2203_v58  ;;  %2091 = vmatpush.bf16.msrb.mxu0 %v1924_v0  ;;  %2110 = vmatpush.bf16.msrb.mxu3 %v8397_v39 }
 0x5c3   :  { %v6657_v32 = vmax.f32 %v2243_v5, 0.0 }
 0x5c4   :  { %2092 = vmatmul.bf16.vlgmr.msrb.gmra.mxu0 %v5132_v50  ;;  %2111 = vmatmul.bf16.vlgmr.msrb.gmra.mxu3 %v5136_v3 }
 0x5c5   :  { %8398 = vst [vmem:[#allocation10_spill] sm:$0xff] %v6657_v32  ;;  %2295 = vrot.lane.b32.xlu0 %v6657_v32, %s5682_s17  ;;  %v2211_v21 = vpop.permute.xlu0 %2210 }
 0x5c6   :  { %v6661_v7 = vpop.permute.xlu1 %2183  ;;  %5154 = vmatmul.msk.bf16.gmra.mxu1 %vm1566_vm4, %v5152_v60 }
 0x5c9   :  { %v2169_v31 = vpop.permute.xlu2 %2168 }
 0x5ca   :  { %v2202_v55 = vmul.f32 %v2169_v31, %v6415_v6 }
 0x5cf   :  { %v6678_v37 = vpop.permute.xlu1 %2230 }
 0x5d4   :  { %2097 = vmatmul.bf16.gmra.mxu0 %v5144_v23  ;;  %2116 = vmatmul.bf16.gmra.mxu3 %v5148_v35 }
 0x5d8   :  { %v2179_v2 = vpop.permute.xlu1 %2178 }
 0x5d9   :  { %v2204_v61 = vmul.f32 %v2179_v2, %v6460_v46 }
 0x5db   :  { %v2244_v24 = vadd.f32 %v2223_v41, %v2204_v61 }
 0x5dd   :  { %v6735_v29 = vmax.f32 %v2244_v24, 0.0 }
 0x5df   :  { %8401 = vst [vmem:[#allocation13_spill] sm:$0xff] %v6735_v29 }
 0x5e0   :  { %v2164_v28 = vpop.permute.xlu1 %2163 }
 0x5e1   :  { %v2201_v54 = vmul.f32 %v2164_v28, %v6412_v45 }
 0x5e3   :  { %v2241_v63 = vadd.f32 %v2211_v21, %v2201_v54 }
 0x5e5   :  { %v6681_v38 = vmax.f32 %v2241_v63, 0.0 }
 0x5e7   :  { %8399 = vst [vmem:[#allocation11_spill] sm:$0xff] %v6681_v38  ;;  %2257 = vrot.lane.b32.xlu1 %v6681_v38, %s5683_s26  ;;  %2291 = vrot.lane.b32.xlu2 %v6681_v38, %s5682_s17 }
 0x5e9   :  { %v2215_v49 = vpop.permute.xlu1 %2214 }
 0x5ea   :  { %v2242_v56 = vadd.f32 %v2215_v49, %v2202_v55 }
 0x5ec   :  { %v6688_v48 = vmax.f32 %v2242_v56, 0.0 }
 0x5ee   :  { %8400 = vst [vmem:[#allocation12_spill] sm:$0xff] %v6688_v48  ;;  %2293 = vrot.lane.b32.xlu0 %v6688_v48, %s5682_s17 }
 0x5ef   :  { %2261 = vrot.lane.b32.xlu2 %v6657_v32, %s5683_s26  ;;  %2361 = vrot.lane.b32.xlu1 %v6688_v48, %s5672_s8 }
 0x5f6   :  { %2363 = vrot.lane.b32.xlu0 %v6657_v32, %s5672_s8 }
 0x5f7   :  { %2481 = vrot.lane.b32.xlu1 %v6688_v48, %s5678_s0  ;;  %2259 = vrot.lane.b32.xlu2 %v6688_v48, %s5683_s26 }
 0x5fe   :  { %2413 = vrot.lane.b32.xlu0 %v6688_v48, %s5671_s28 }
 0x5ff   :  { %2329 = vrot.lane.b32.xlu1 %v6657_v32, %s5681_s16  ;;  %2415 = vrot.lane.b32.xlu2 %v6657_v32, %s5671_s28 }
 0x606   :  { %2359 = vrot.lane.b32.xlu0 %v6681_v38, %s5672_s8 }
 0x607   :  { %2325 = vrot.lane.b32.xlu1 %v6681_v38, %s5681_s16  ;;  %2411 = vrot.lane.b32.xlu2 %v6681_v38, %s5671_s28 }
 0x60e   :  { %2479 = vrot.lane.b32.xlu0 %v6681_v38, %s5678_s0 }
 0x60f   :  { %2445 = vrot.lane.b32.xlu1 %v6681_v38, %s5680_s15  ;;  %2483 = vrot.lane.b32.xlu2 %v6657_v32, %s5678_s0 }
 0x616   :  { %2449 = vrot.lane.b32.xlu0 %v6657_v32, %s5680_s15 }
 0x617   :  { %2796 = vperm.xlu1 %5520, %v5664_v47   ;;  %2517 = vrot.lane.b32.xlu2 %v6657_v32, %s5679_s14  ;;  %v5632_v32 = vld [vmem:[%s8325_s2 + $0x1] ss:$0 sm:$0xff] }
 0x61e   :  { %2515 = vrot.lane.b32.xlu0 %v6688_v48, %s5679_s14 }
 0x61f   :  { %5522 = vset.pattern.permute.xlu1 %v8335_v1  ;;  %2327 = vrot.lane.b32.xlu2 %v6688_v48, %s5681_s16 }
 0x620   :  { %3016 = vperm.xlu1 %5522, %v6502_v51  }
 0x626   :  { %2791 = vperm.xlu0 %5519, %v5665_v12  }
 0x627   :  { %2513 = vrot.lane.b32.xlu2 %v6681_v38, %s5679_s14 }
 0x628   :  { %2297 = vrot.lane.b32.xlu1 %v6735_v29, %s5682_s17 }
 0x62e   :  { %2263 = vrot.lane.b32.xlu0 %v6735_v29, %s5683_s26 }
 0x62f   :  { %2447 = vrot.lane.b32.xlu2 %v6688_v48, %s5680_s15 }
 0x630   :  { %2365 = vrot.lane.b32.xlu1 %v6735_v29, %s5672_s8 }
 0x633   :  { %v2131_v20 = vpop.f32.mrf.mxu1 }
 0x636   :  { %2417 = vrot.lane.b32.xlu0 %v6735_v29, %s5671_s28 }
 0x637   :  { %3011 = vperm.xlu2 %5521, %v6492_v27   ;;  %v6794_v19 = vpop.permute.xlu0 %2295 }
 0x638   :  { %2451 = vrot.lane.b32.xlu1 %v6735_v29, %s5680_s15 }
 0x63b   :  { %v2133_v5 = vpop.f32.mrf.mxu1 }
 0x63e   :  { %2485 = vrot.lane.b32.xlu0 %v6735_v29, %s5678_s0 }
 0x63f   :  { %5523 = vset.pattern.permute.xlu2 %v5708_v40 }
 0x640   :  { %2781 = vperm.xlu2 %5523, %v6758_v16  }
 0x641   :  { %v2093_v30 = vpop.f32.mrf.mxu0  ;;  %v6763_v8 = vpop.permute.xlu2 %2291 }
 0x642   :  { %v2094_v43 = vadd.f32 %v2093_v30, %v6562_v9 }
 0x643   :  { %v2136_v55 = vpop.f32.mrf.mxu1 }
 0x646   :  { %2519 = vrot.lane.b32.xlu0 %v6735_v29, %s5679_s14 }
 0x647   :  { %v2112_v14 = vpop.f32.mrf.mxu3 }
 0x648   :  { %v2113_v11 = vadd.f32 %v2112_v14, %v2094_v43  ;;  %2331 = vrot.lane.b32.xlu2 %v6735_v29, %s5681_s16 }
 0x649   :  { %v6770_v52 = vpop.permute.xlu2 %2261  ;;  %v2095_v0 = vpop.f32.mrf.mxu0 }
 0x64a   :  { %v6772_v58 = vadd.f32 %v2131_v20, %v2113_v11  ;;  %v2096_v9 = vadd.f32 %v2095_v0, %v6627_v62  ;;  %v6790_v62 = vld [vmem:[%s8325_s2 + $0x4] ss:$0 sm:$0xff] }
 0x64b   :  { %8404 = vst [vmem:[#allocation16_spill] sm:$0xff] %v6790_v62 }
 0x64c   :  { %8402 = vst [vmem:[#allocation14_spill] sm:$0xff] %v6772_v58  ;;  %v2205_v25 = vmul.f32 %v6661_v7, %v6772_v58 }
 0x64e   :  { %v2245_v17 = vadd.f32 %v6664_v34, %v2205_v25  ;;  %v2138_v25 = vpop.f32.mrf.mxu1 }
 0x64f   :  { %v2114_v26 = vpop.f32.mrf.mxu3 }
 0x650   :  { %v2253_v50 = vmax.f32 %v2245_v17, 0.0  ;;  %v2115_v3 = vadd.f32 %v2114_v26, %v2096_v9 }
 0x651   :  { %v6778_v39 = vpop.permute.xlu2 %2259 }
 0x652   :  { %v6780_v60 = vadd.f32 %v2133_v5, %v2115_v3  ;;  %2521 = vrot.lane.b32.xlu2 %v2253_v50, %s5679_s14  ;;  %2265 = vrot.lane.b32.xlu0 %v2253_v50, %s5683_s26  ;;  %v2399_v15 = vmul.f32 %v6790_v62, %v2253_v50 }
 0x653   :  { %2299 = vrot.lane.b32.xlu1 %v2253_v50, %s5682_s17 }
 0x654   :  { %8403 = vst [vmem:[#allocation15_spill] sm:$0xff] %v6780_v60  ;;  %v2206_v7 = vmul.f32 %v6615_v10, %v6780_v60  ;;  %v2098_v10 = vpop.f32.mrf.mxu0  ;;  %v2407_v41 = vpack.c.bf16 %v2399_v15, %v2399_v15 }
 0x655   :  { %v2099_v28 = vadd.f32 %v2098_v10, %v6580_v22 }
 0x656   :  { %v2246_v34 = vadd.f32 %v6678_v37, %v2206_v7  ;;  %v6805_v21 = vunpack.c.l.b16 %v2407_v41 }
 0x657   :  { %v2117_v37 = vpop.f32.mrf.mxu3 }
 0x658   :  { %v2254_v18 = vmax.f32 %v2246_v34, 0.0  ;;  %8406 = vst [vmem:[#allocation18_spill] sm:$0xff] %v6805_v21  ;;  %v2118_v63 = vadd.f32 %v2117_v37, %v2099_v28  ;;  %v2969_v37 = vld [vmem:[%s8326_s4 + $0x10] sm:$0xff] }
 0x659   :  { %v6796_v59 = vpop.permute.xlu1 %2257  ;;  %v6798_v23 = vpop.permute.xlu2 %2415 }
 0x65a   :  { %8405 = vst [vmem:[#allocation17_spill] sm:$0xff] %v6798_v23  ;;  %2301 = vrot.lane.b32.xlu2 %v2254_v18, %s5682_s17  ;;  %2367 = vrot.lane.b32.xlu0 %v2253_v50, %s5672_s8  ;;  %v2400_v35 = vmul.f32 %v6790_v62, %v2254_v18  ;;  %v6820_v22 = vadd.f32 %v2136_v55, %v2118_v63 }
 0x65b   :  { %2419 = vrot.lane.b32.xlu1 %v2253_v50, %s5671_s28 }
 0x65c   :  { %v2408_v2 = vpack.c.bf16 %v2400_v35, %v2400_v35  ;;  %8409 = vst [vmem:[#allocation21_spill] sm:$0xff] %v6820_v22  ;;  %v2207_v47 = vmul.f32 %v6566_v42, %v6820_v22  ;;  %v2100_v12 = vpop.f32.mrf.mxu0 }
 0x65d   :  { %v2101_v14 = vadd.f32 %v2100_v12, %v6606_v4 }
 0x65e   :  { %v6807_v54 = vunpack.c.l.b16 %v2408_v2  ;;  %v2247_v30 = vadd.f32 %v6634_v13, %v2207_v47  ;;  %v8338_v13 = vmov 13  }
 0x65f   :  { %v2119_v43 = vpop.f32.mrf.mxu3  ;;  %5525 = vset.pattern.permute.xlu2 %v8338_v13  ;;  %5524 = vset.pattern.permute.xlu1 %v8338_v13 }
 0x660   :  { %8407 = vst [vmem:[#allocation19_spill] sm:$0xff] %v6807_v54  ;;  %v6809_v31 = vpop.permute.xlu0 %2293  ;;  %v6835_v11 = vmax.f32 %v2247_v30, 0.0  ;;  %v2120_v42 = vadd.f32 %v2119_v43, %v2101_v14  ;;  %v2977_v14 = vld [vmem:[%s8326_s4 + $0x50] sm:$0xff] }
 0x661   :  { %v6813_v56 = vpop.permute.xlu2 %2411  ;;  %v6817_v40 = vpop.permute.xlu1 %2361 }
 0x662   :  { %8408 = vst [vmem:[#allocation20_spill] sm:$0xff] %v6813_v56  ;;  %2421 = vrot.lane.b32.xlu2 %v2254_v18, %s5671_s28  ;;  %2453 = vrot.lane.b32.xlu0 %v2253_v50, %s5680_s15  ;;  %v6846_v9 = vadd.f32 %v2138_v25, %v2120_v42  ;;  %v2972_v25 = vld [vmem:[%s8326_s4 + $0x28] sm:$0xff] }
 0x663   :  { %2487 = vrot.lane.b32.xlu1 %v2253_v50, %s5678_s0  ;;  %8410 = vst [vmem:[#allocation22_spill] sm:$0xff] %v6835_v11 }
 0x664   :  { %8412 = vst [vmem:[#allocation24_spill] sm:$0xff] %v6846_v9  ;;  %v2208_v26 = vmul.f32 %v6655_v44, %v6846_v9 }
 0x666   :  { %v2248_v5 = vadd.f32 %v6599_v36, %v2208_v26  ;;  %v6879_v36 = vld [vmem:[%s8326_s4 + $0x8] sm:$0xff] }
 0x668   :  { %v6824_v61 = vpop.permute.xlu0 %2363  ;;  %v6863_v7 = vmax.f32 %v2248_v5, 0.0 }
 0x669   :  { %v6826_v24 = vpop.permute.xlu2 %2483  ;;  %v6832_v20 = vpop.permute.xlu1 %2481 }
 0x66a   :  { %2489 = vrot.lane.b32.xlu2 %v2254_v18, %s5678_s0  ;;  %2523 = vrot.lane.b32.xlu0 %v2254_v18, %s5679_s14  ;;  %8414 = vst [vmem:[#allocation26_spill] sm:$0xff] %v6863_v7 }
 0x66b   :  { %2333 = vrot.lane.b32.xlu1 %v2253_v50, %s5681_s16 }
 0x670   :  { %v6837_v0 = vpop.permute.xlu0 %2413 }
 0x671   :  { %8411 = vst [vmem:[#allocation23_spill] sm:$0xff] %v6837_v0  ;;  %v6839_v17 = vpop.permute.xlu2 %2517  ;;  %v6849_v4 = vpop.permute.xlu1 %2329 }
 0x672   :  { %2335 = vrot.lane.b32.xlu2 %v2254_v18, %s5681_s16  ;;  %2423 = vrot.lane.b32.xlu0 %v6835_v11, %s5671_s28 }
 0x673   :  { %2267 = vrot.lane.b32.xlu1 %v2254_v18, %s5683_s26 }
 0x678   :  { %v6853_v50 = vpop.permute.xlu0 %2359 }
 0x679   :  { %v6855_v3 = vpop.permute.xlu2 %2327  ;;  %v6867_v15 = vpop.permute.xlu1 %2325 }
 0x67a   :  { %8413 = vst [vmem:[#allocation25_spill] sm:$0xff] %v6855_v3  ;;  %2303 = vrot.lane.b32.xlu2 %v6835_v11, %s5682_s17  ;;  %2457 = vrot.lane.b32.xlu0 %v6835_v11, %s5680_s15 }
 0x67b   :  { %2369 = vrot.lane.b32.xlu1 %v2254_v18, %s5672_s8 }
 0x680   :  { %v6865_v34 = vpop.permute.xlu0 %2479 }
 0x681   :  { %v6869_v44 = vpop.permute.xlu2 %2513  ;;  %v6888_v41 = vpop.permute.xlu1 %2445 }
 0x682   :  { %2371 = vrot.lane.b32.xlu2 %v6835_v11, %s5672_s8  ;;  %2305 = vrot.lane.b32.xlu0 %v6863_v7, %s5682_s17  ;;  %8417 = vst [vmem:[#allocation29_spill] sm:$0xff] %v6888_v41 }
 0x683   :  { %2455 = vrot.lane.b32.xlu1 %v2254_v18, %s5680_s15 }
 0x688   :  { %v6881_v10 = vpop.permute.xlu0 %2449 }
 0x689   :  { %8415 = vst [vmem:[#allocation27_spill] sm:$0xff] %v6881_v10  ;;  %v6883_v35 = vpop.permute.xlu2 %2447  ;;  %v6903_v28 = vpop.permute.xlu1 %2796 }
 0x68a   :  { %8416 = vst [vmem:[#allocation28_spill] sm:$0xff] %v6883_v35  ;;  %2525 = vrot.lane.b32.xlu2 %v6835_v11, %s5679_s14  ;;  %2786 = vperm.xlu0 %5519, %v6879_v36  }
 0x68b   :  { %2269 = vrot.lane.b32.xlu1 %v6835_v11, %s5683_s26  ;;  %8418 = vst [vmem:[#allocation30_spill] sm:$0xff] %v6903_v28  ;;  %v2978_v28 = vld [vmem:[%s8326_s4 + $0x58] sm:$0xff] }
 0x690   :  { %v6892_v18 = vpop.permute.xlu0 %2515 }
 0x691   :  { %v6897_v2 = vpop.permute.xlu2 %3011 }
 0x692   :  { %3080 = vperm.xlu2 %5525, %v6502_v51   ;;  %5526 = vset.pattern.permute.xlu0 %v8335_v1  ;;  %v6915_v51 = vpop.permute.xlu1 %3016 }
 0x693   :  { %2491 = vrot.lane.b32.xlu1 %v6835_v11, %s5678_s0  ;;  %2991 = vperm.xlu0 %5526, %v2969_v37   ;;  %8421 = vst [vmem:[#allocation33_spill] sm:$0xff] %v6915_v51 }
 0x698   :  { %v6905_v63 = vpop.permute.xlu0 %2791 }
 0x699   :  { %8419 = vst [vmem:[#allocation31_spill] sm:$0xff] %v6905_v63 }
 0x69a   :  { %v6907_v55 = vpop.permute.xlu2 %2781  ;;  %5528 = vset.pattern.permute.xlu2 %v8335_v1  ;;  %v6927_v43 = vpop.permute.xlu1 %2297 }
 0x69b   :  { %8420 = vst [vmem:[#allocation32_spill] sm:$0xff] %v6907_v55  ;;  %2337 = vrot.lane.b32.xlu1 %v6835_v11, %s5681_s16  ;;  %3001 = vperm.xlu2 %5528, %v6512_v57   ;;  %v2312_v56 = vmul.f32 %v5632_v32, %v6927_v43 }
 0x69c   :  { %2373 = vrot.lane.b32.xlu0 %v6863_v7, %s5672_s8 }
 0x6a0   :  { %v6917_v47 = vpop.permute.xlu0 %2263 }
 0x6a2   :  { %v6921_v12 = vpop.permute.xlu2 %2331  ;;  %v6945_v5 = vpop.permute.xlu1 %2365 }
 0x6a3   :  { %3076 = vperm.xlu1 %5524, %v6492_v27   ;;  %5529 = vset.pattern.permute.xlu2 %v8338_v13  ;;  %v2970_v27 = vld [vmem:[%s8326_s4 + $0x18] sm:$0xff] }
 0x6a4   :  { %2527 = vrot.lane.b32.xlu0 %v6863_v7, %s5679_s14  ;;  %3060 = vperm.xlu2 %5529, %v2969_v37  }
 0x6a8   :  { %v6925_v30 = vpop.permute.xlu0 %2417 }
 0x6a9   :  { %8422 = vst [vmem:[#allocation34_spill] sm:$0xff] %v6925_v30 }
 0x6aa   :  { %v6954_v53 = vpop.permute.xlu1 %2451 }
 0x6ab   :  { %5527 = vset.pattern.permute.xlu1 %v8335_v1  ;;  %8424 = vst [vmem:[#allocation36_spill] sm:$0xff] %v6954_v53  ;;  %v2976_v53 = vld [vmem:[%s8326_s4 + $0x48] sm:$0xff] }
 0x6ac   :  { %3031 = vperm.xlu0 %5526, %v2977_v14   ;;  %2996 = vperm.xlu1 %5527, %v2970_v27   ;;  %v6936_v42 = vpop.permute.xlu2 %2521 }
 0x6ad   :  { %2271 = vrot.lane.b32.xlu2 %v6863_v7, %s5683_s26 }
 0x6b0   :  { %v6943_v26 = vpop.permute.xlu0 %2485 }
 0x6b4   :  { %5533 = vset.pattern.permute.xlu0 %v8338_v13  ;;  %3006 = vperm.xlu1 %5527, %v2972_v25   ;;  %v2302_v37 = vpop.permute.xlu2 %2301 }
 0x6b5   :  { %3072 = vperm.xlu2 %5529, %v2972_v25   ;;  %3064 = vperm.xlu0 %5533, %v2970_v27   ;;  %v8425_v25 = vmov 12  }
 0x6b8   :  { %v6948_v49 = vpop.permute.xlu0 %2519 }
 0x6bc   :  { %2425 = vrot.lane.b32.xlu1 %v6863_v7, %s5671_s28  ;;  %v6952_v1 = vpop.permute.xlu2 %2421 }
 0x6bd   :  { %8423 = vst [vmem:[#allocation35_spill] sm:$0xff] %v6952_v1  ;;  %2493 = vrot.lane.b32.xlu2 %v6863_v7, %s5678_s0  ;;  %5530 = vset.pattern.permute.xlu1 %v8338_v13 }
 0x6be   :  { %5532 = vset.pattern.permute.xlu2 %v8425_v25  ;;  %3096 = vperm.xlu0 %5533, %v2978_v28  }
 0x6c4   :  { %3068 = vperm.xlu1 %5530, %v6512_v57   ;;  %v6964_v27 = vpop.permute.xlu2 %2489  ;;  %v6966_v63 = vpop.permute.xlu0 %2265  ;;  %v8426_v57 = vmov 13  }
 0x6c5   :  { %2986 = vperm.xlu2 %5532, %v6879_v36   ;;  %v2300_v55 = vpop.permute.xlu1 %2299 }
 0x6c6   :  { %v2313_v45 = vmul.f32 %v5632_v32, %v2300_v55 }
 0x6c8   :  { %v2321_v58 = vpack.c.bf16 %v2313_v45, %v2313_v45 }
 0x6ca   :  { %v2583_v55 = vunpack.c.l.b16 %v2321_v58 }
 0x6cc   :  { %5531 = vset.pattern.permute.xlu1 %v8425_v25  ;;  %v6970_v51 = vpop.permute.xlu2 %2335  ;;  %v6972_v13 = vpop.permute.xlu0 %2367 }
 0x6cd   :  { %2339 = vrot.lane.b32.xlu2 %v6863_v7, %s5681_s16  ;;  %2981 = vperm.xlu1 %5531, %v6758_v16   ;;  %v6977_v9 = vpop.permute.xlu1 %2419 }
 0x6ce   :  { %5534 = vset.pattern.permute.xlu2 %v8426_v57 }
 0x6d4   :  { %v2304_v6 = vpop.permute.xlu2 %2303  ;;  %v6980_v41 = vpop.permute.xlu0 %2453 }
 0x6d5   :  { %8427 = vst [vmem:[#allocation37_spill] sm:$0xff] %v6980_v41  ;;  %2459 = vrot.lane.b32.xlu1 %v6863_v7, %s5680_s15  ;;  %v6984_v35 = vpop.permute.xlu1 %2487  ;;  %3052 = vperm.xlu2 %5534, %v6758_v16   ;;  %v2315_v29 = vmul.f32 %v5632_v32, %v2304_v6  ;;  %v2320_v6 = vpack.c.bf16 %v2312_v56, %v2312_v56 }
 0x6d7   :  { %v2323_v62 = vpack.c.bf16 %v2315_v29, %v2315_v29  ;;  %v2582_v43 = vunpack.c.l.b16 %v2320_v6 }
 0x6d9   :  { %v2585_v30 = vunpack.c.l.b16 %v2323_v62 }
 0x6dc   :  { %v6987_v21 = vpop.permute.xlu2 %2371  ;;  %v6989_v54 = vpop.permute.xlu0 %2523 }
 0x6dd   :  { %3036 = vperm.xlu1 %5531, %v2978_v28   ;;  %v6991_v10 = vpop.permute.xlu1 %2333  ;;  %3092 = vperm.xlu2 %5534, %v2977_v14  }
 0x6e4   :  { %v6996_v41 = vpop.permute.xlu2 %2525  ;;  %v6998_v38 = vpop.permute.xlu0 %2423 }
 0x6e5   :  { %5535 = vset.pattern.permute.xlu1 %v8426_v57  ;;  %v2268_v48 = vpop.permute.xlu1 %2267  ;;  %5537 = vset.pattern.permute.xlu2 %v8425_v25 }
 0x6e6   :  { %3056 = vperm.xlu1 %5535, %v6879_v36   ;;  %3026 = vperm.xlu2 %5537, %v2976_v53   ;;  %v2314_v36 = vmul.f32 %v5632_v32, %v2302_v37 }
 0x6e8   :  { %v2322_v23 = vpack.c.bf16 %v2314_v36, %v2314_v36 }
 0x6ec   :  { %v7003_v16 = vpop.permute.xlu2 %3080  ;;  %v7005_v28 = vpop.permute.xlu0 %2457 }
 0x6ed   :  { %8428 = vst [vmem:[#allocation38_spill] sm:$0xff] %v7003_v16  ;;  %v7007_v14 = vpop.permute.xlu1 %2369 }
 0x6ee   :  { %8429 = vst [vmem:[#allocation39_spill] sm:$0xff] %v7005_v28  ;;  %5539 = vset.pattern.permute.xlu2 %v8426_v57  ;;  %5536 = vset.pattern.permute.xlu1 %v8425_v25  ;;  %v2311_v25 = vmul.f32 %v5632_v32, %v6794_v19 }
 0x6ef   :  { %3088 = vperm.xlu2 %5539, %v2976_v53   ;;  %v2310_v53 = vmul.f32 %v5632_v32, %v6809_v31  ;;  %v5633_v31 = vld [vmem:[%s8325_s2] ss:$0 sm:$0xff] }
 0x6f4   :  { %v2306_v11 = vpop.permute.xlu0 %2305 }
 0x6f5   :  { %v2316_v7 = vmul.f32 %v5632_v32, %v2306_v11  ;;  %v7014_v16 = vpop.permute.xlu1 %2455  ;;  %v7016_v28 = vpop.permute.xlu2 %3001  ;;  %v2319_v11 = vpack.c.bf16 %v2311_v25, %v2311_v25  ;;  %v2277_v25 = vmul.f32 %v5633_v31, %v6770_v52 }
 0x6f6   :  { %8430 = vst [vmem:[#allocation40_spill] sm:$0xff] %v7014_v16  ;;  %v2309_v16 = vmul.f32 %v5632_v32, %v6763_v8  ;;  %v2276_v8 = vmul.f32 %v5633_v31, %v6778_v39  ;;  %v5635_v39 = vld [vmem:[%s8325_s2 + $0x3] ss:$0 sm:$0xff] }
 0x6f7   :  { %8431 = vst [vmem:[#allocation41_spill] sm:$0xff] %v7016_v28  ;;  %v2324_v0 = vpack.c.bf16 %v2316_v7, %v2316_v7  ;;  %v2584_v28 = vunpack.c.l.b16 %v2322_v23  ;;  %v2318_v7 = vpack.c.bf16 %v2310_v53, %v2310_v53  ;;  %v2581_v36 = vunpack.c.l.b16 %v2319_v11 }
 0x6f8   :  { %v2317_v62 = vpack.c.bf16 %v2309_v16, %v2309_v16 }
 0x6f9   :  { %v2586_v1 = vunpack.c.l.b16 %v2324_v0  ;;  %v2589_v19 = vpack.c.b16 %v2584_v28, %v2583_v55  ;;  %v2580_v58 = vunpack.c.l.b16 %v2318_v7  ;;  %v2588_v56 = vpack.c.b16 %v2582_v43, %v2581_v36  ;;  %v2975_v36 = vld [vmem:[%s8326_s4 + $0x40] sm:$0xff] }
 0x6fa   :  { %v2579_v32 = vunpack.c.l.b16 %v2317_v62  ;;  %v2280_v28 = vmul.f32 %v5633_v31, %v2268_v48  ;;  %v2284_v7 = vpack.c.bf16 %v2276_v8, %v2276_v8  ;;  %v2278_v48 = vmul.f32 %v5633_v31, %v6917_v47  ;;  %3021 = vperm.xlu1 %5536, %v2975_v36  }
 0x6fb   :  { %v2590_v37 = vpack.c.b16 %v2586_v1, %v2585_v30  ;;  %v2275_v1 = vmul.f32 %v5633_v31, %v6796_v59  ;;  %v2279_v59 = vmul.f32 %v5633_v31, %v6966_v63  ;;  %v2285_v63 = vpack.c.bf16 %v2277_v25, %v2277_v25 }
 0x6fc   :  { %v7021_v29 = vpop.permute.xlu0 %2786  ;;  %v2587_v55 = vpack.c.b16 %v2580_v58, %v2579_v32  ;;  %v2288_v43 = vpack.c.bf16 %v2280_v28, %v2280_v28  ;;  %v7049_v47 = vunpack.c.l.b16 %v2284_v7  ;;  %v2382_v32 = vmul.f32 %v5635_v39, %v7007_v14 }
 0x6fd   :  { %v2270_v3 = vpop.permute.xlu1 %2269  ;;  %2856 = vmatpush.bf16.msrb.mxu2 %v2590_v37  ;;  %v2283_v53 = vpack.c.bf16 %v2275_v1, %v2275_v1  ;;  %v2379_v1 = vmul.f32 %v5635_v39, %v6824_v61  ;;  %v2287_v58 = vpack.c.bf16 %v2279_v59, %v2279_v59  ;;  %v2286_v61 = vpack.c.bf16 %v2278_v48, %v2278_v48 }
 0x6fe   :  { %v3061_v45 = vpop.permute.xlu2 %3060  ;;  %v2281_v0 = vmul.f32 %v5633_v31, %v2270_v3  ;;  %v2560_v28 = vunpack.c.l.b16 %v2288_v43  ;;  %v2557_v14 = vunpack.c.l.b16 %v2285_v63  ;;  %v2380_v7 = vmul.f32 %v5635_v39, %v6945_v5 }
 0x6ff   :  { %v7043_v62 = vunpack.c.l.b16 %v2283_v53  ;;  %v2381_v53 = vmul.f32 %v5635_v39, %v6972_v13  ;;  %v2387_v59 = vpack.c.bf16 %v2379_v1, %v2379_v1  ;;  %v2390_v13 = vpack.c.bf16 %v2382_v32, %v2382_v32 }
 0x700   :  { %v2289_v37 = vpack.c.bf16 %v2281_v0, %v2281_v0  ;;  %v2558_v63 = vunpack.c.l.b16 %v2286_v61 }
 0x701   :  { %2857 = vmatpush.bf16.msrb.mxu2 %v2589_v19  ;;  %v2389_v1 = vpack.c.bf16 %v2381_v53, %v2381_v53  ;;  %v7083_v5 = vunpack.c.l.b16 %v2387_v59 }
 0x702   :  { %5538 = vset.pattern.permute.xlu1 %v8426_v57 }
 0x703   :  { %3084 = vperm.xlu1 %5538, %v2975_v36  }
 0x705   :  { %v7029_v23 = vpop.permute.xlu1 %2491  ;;  %v2992_v30 = vpop.permute.xlu0 %2991  ;;  %2858 = vmatpush.bf16.msrb.mxu2 %v2588_v56  ;;  %v2561_v56 = vunpack.c.l.b16 %v2289_v37  ;;  %v2559_v37 = vunpack.c.l.b16 %v2287_v58 }
 0x706   :  { %v3041_v16 = vmul.f32 %v2992_v30, %v6445_v33  ;;  %v7056_v30 = vmul.f32 %v5635_v39, %v6817_v40  ;;  %v7069_v40 = vld [vmem:[%s8325_s2 + $0x8] ss:$0 sm:$0xff] }
 0x707   :  { %v2272_v6 = vpop.permute.xlu2 %2271 }
 0x708   :  { %v3101_v11 = vadd.f32 %v3061_v45, %v3041_v16  ;;  %v2282_v3 = vmul.f32 %v5633_v31, %v2272_v6  ;;  %v2383_v45 = vmul.f32 %v5635_v39, %v6987_v21  ;;  %v2377_v31 = vmul.f32 %v5635_v39, %v6853_v50  ;;  %v7061_v21 = vld [vmem:[%s8325_s2 + $0x7] ss:$0 sm:$0xff] }
 0x709   :  { %2859 = vmatpush.bf16.msrb.mxu2 %v2587_v55  ;;  %v2386_v43 = vpack.c.bf16 %v7056_v30, %v7056_v30  ;;  %v2501_v61 = vmul.f32 %v7061_v21, %v6984_v35 }
 0x70a   :  { %v7038_v19 = vmax.f32 %v3101_v11, 0.0  ;;  %v2290_v52 = vpack.c.bf16 %v2282_v3, %v2282_v3  ;;  %v2391_v6 = vpack.c.bf16 %v2383_v45, %v2383_v45  ;;  %v2563_v11 = vpack.c.b16 %v7049_v47, %v7043_v62 }
 0x70b   :  { %v2385_v3 = vpack.c.bf16 %v2377_v31, %v2377_v31  ;;  %v2565_v45 = vpack.c.b16 %v2560_v28, %v2559_v37  ;;  %v2632_v31 = vunpack.c.l.b16 %v2390_v13  ;;  %v2534_v13 = vmul.f32 %v7069_v40, %v6948_v49 }
 0x70c   :  { %v2562_v0 = vunpack.c.l.b16 %v2290_v52  ;;  %3177 = vrot.lane.b32.xlu2 %v7038_v19, %s5682_s17  ;;  %v7078_v52 = vmul.f32 %v7061_v21, %v6826_v24  ;;  %v2633_v58 = vunpack.c.l.b16 %v2391_v6  ;;  %v3045_v24 = vmul.f32 %v6897_v2, %v6820_v22 }
 0x70d   :  { %v7053_v8 = vpop.permute.xlu1 %2337  ;;  %v7093_v47 = vunpack.c.l.b16 %v2385_v3  ;;  %v2564_v2 = vpack.c.b16 %v2558_v63, %v2557_v14  ;;  %v5157_v14 = vld [vmem:[%s8330_s5 + $0x70] sm:$0xf]  ;;  %v2500_v3 = vmul.f32 %v7061_v21, %v6943_v26  ;;  %v2532_v49 = vmul.f32 %v7069_v40, %v6892_v18 }
 0x70e   :  { %v2374_v16 = vpop.permute.xlu0 %2373  ;;  %v2566_v25 = vpack.c.b16 %v2562_v0, %v2561_v56  ;;  %v2537_v56 = vmul.f32 %v7069_v40, %v6996_v41  ;;  %v2503_v0 = vmul.f32 %v7061_v21, %v7029_v23  ;;  %v2388_v41 = vpack.c.bf16 %v2380_v7, %v2380_v7 }
 0x70f   :  { %v2384_v50 = vmul.f32 %v5635_v39, %v2374_v16  ;;  %v7064_v55 = vpop.permute.xlu2 %3072  ;;  %v7087_v39 = vmul.f32 %v7069_v40, %v6839_v17  ;;  %v2536_v17 = vmul.f32 %v7069_v40, %v6989_v54  ;;  %v2535_v23 = vmul.f32 %v7069_v40, %v6936_v42  ;;  %v5392_v42 = vld [vmem:[%s8330_s5 + $0x88] sm:$0xf0] }
 0x710   :  { %2860 = vmatpush.bf16.msrb.mxu2 %v2566_v25  ;;  %v2631_v25 = vunpack.c.l.b16 %v2389_v1  ;;  %v2545_v36 = vpack.c.bf16 %v2537_v56, %v2537_v56  ;;  %v2511_v59 = vpack.c.bf16 %v2503_v0, %v2503_v0  ;;  %v2630_v37 = vunpack.c.l.b16 %v2388_v41 }
 0x711   :  { %v2392_v48 = vpack.c.bf16 %v2384_v50, %v2384_v50  ;;  %v2502_v50 = vmul.f32 %v7061_v21, %v6964_v27  ;;  %v2544_v63 = vpack.c.bf16 %v2536_v17, %v2536_v17  ;;  %v2497_v1 = vmul.f32 %v7061_v21, %v6865_v34 }
 0x712   :  { %v2637_v27 = vpack.c.b16 %v2632_v31, %v2631_v25  ;;  %v2729_v0 = vunpack.c.l.b16 %v2511_v59  ;;  %v2508_v31 = vpack.c.bf16 %v2500_v3, %v2500_v3  ;;  %v2531_v18 = vmul.f32 %v7069_v40, %v6869_v44  ;;  %v5637_v44 = vld [vmem:[%s8325_s2 + $0x2] ss:$0 sm:$0xff] }
 0x713   :  { %v2634_v62 = vunpack.c.l.b16 %v2392_v48  ;;  %v2509_v48 = vpack.c.bf16 %v2501_v61, %v2501_v61  ;;  %v2510_v26 = vpack.c.bf16 %v2502_v50, %v2502_v50  ;;  %v2542_v61 = vpack.c.bf16 %v2534_v13, %v2534_v13 }
 0x714   :  { %2861 = vmatpush.bf16.msrb.mxu2 %v2565_v45  ;;  %v2505_v30 = vpack.c.bf16 %v2497_v1, %v2497_v1  ;;  %v2348_v1 = vmul.f32 %v5637_v44, %v6970_v51  ;;  %v5634_v51 = vld [vmem:[%s8325_s2 + $0x5] ss:$0 sm:$0xff] }
 0x715   :  { %v2638_v32 = vpack.c.b16 %v2634_v62, %v2633_v58  ;;  %v3077_v57 = vpop.permute.xlu1 %3076  ;;  %v2753_v58 = vunpack.c.l.b16 %v2545_v36  ;;  %v5158_v62 = vor.u32 %v5392_v42, %v5157_v14  ;;  %v2727_v17 = vunpack.c.l.b16 %v2509_v48 }
 0x716   :  { %v3105_v28 = vadd.f32 %v3077_v57, %v3045_v24  ;;  %v2528_v16 = vpop.permute.xlu0 %2527  ;;  %v2543_v24 = vpack.c.bf16 %v2535_v23, %v2535_v23  ;;  %v2636_v57 = vpack.c.b16 %v2630_v37, %v7083_v5  ;;  %v2628_v23 = vunpack.c.l.b16 %v2386_v43 }
 0x717   :  { %v2538_v53 = vmul.f32 %v7069_v40, %v2528_v16  ;;  %v2494_v6 = vpop.permute.xlu2 %2493  ;;  %2875 = vmatpush.bf16.msra.mxu0 %v2638_v32  ;;  %v2507_v5 = vpack.c.bf16 %v7078_v52, %v7078_v52  ;;  %v2541_v36 = vpack.c.bf16 %v7087_v39, %v7087_v39  ;;  %v2540_v43 = vpack.c.bf16 %v2532_v49, %v2532_v49 }
 0x718   :  { %v7104_v35 = vmax.f32 %v3105_v28, 0.0  ;;  %v2504_v54 = vmul.f32 %v7061_v21, %v2494_v6  ;;  %2862 = vmatpush.bf16.msrb.mxu2 %v2564_v2  ;;  %v2752_v28 = vunpack.c.l.b16 %v2544_v63  ;;  %v2728_v6 = vunpack.c.l.b16 %v2510_v26 }
 0x719   :  { %v2546_v7 = vpack.c.bf16 %v2538_v53, %v2538_v53  ;;  %v2751_v53 = vunpack.c.l.b16 %v2543_v24  ;;  %v2750_v40 = vunpack.c.l.b16 %v2542_v61  ;;  %v2725_v39 = vunpack.c.l.b16 %v2507_v5 }
 0x71a   :  { %v2512_v45 = vpack.c.bf16 %v2504_v54, %v2504_v54  ;;  %3235 = vrot.lane.b32.xlu0 %v7104_v35, %s5681_s16  ;;  %v2733_v59 = vpack.c.b16 %v2728_v6, %v2727_v17  ;;  %v2539_v54 = vpack.c.bf16 %v2531_v18, %v2531_v18  ;;  %v2749_v14 = vunpack.c.l.b16 %v2541_v36 }
 0x71b   :  { %v2754_v56 = vunpack.c.l.b16 %v2546_v7  ;;  %2876 = vmatpush.bf16.msra.mxu0 %v2637_v27  ;;  %v2757_v50 = vpack.c.b16 %v2752_v28, %v2751_v53  ;;  %v2349_v42 = vmul.f32 %v5637_v44, %v7053_v8  ;;  %v2723_v37 = vunpack.c.l.b16 %v2505_v30 }
 0x71c   :  { %v2730_v41 = vunpack.c.l.b16 %v2512_v45  ;;  %2863 = vmatpush.bf16.msrb.mxu2 %v2563_v11  ;;  %v2498_v11 = vmul.f32 %v7061_v21, %v6832_v20  ;;  %v2635_v20 = vpack.c.b16 %v2628_v23, %v7093_v47  ;;  %v2726_v21 = vunpack.c.l.b16 %v2508_v31 }
 0x71d   :  { %v2758_v32 = vpack.c.b16 %v2754_v56, %v2753_v58  ;;  %v2748_v3 = vunpack.c.l.b16 %v2540_v43  ;;  %v2347_v47 = vmul.f32 %v5637_v44, %v6991_v10  ;;  %v2756_v13 = vpack.c.b16 %v2750_v40, %v2749_v14  ;;  %v5177_v10 = vld [vmem:[%s8330_s5 + $0xa8] sm:$0xf]  ;;  %v8433_v43 = vld [vmem:[#allocation35_spill] sm:$0xff] }
 0x71e   :  { %v2734_v34 = vpack.c.b16 %v2730_v41, %v2729_v0  ;;  %v2997_v16 = vpop.permute.xlu1 %2996  ;;  %v7124_v2 = vpop.permute.xlu0 %3031  ;;  %v2506_v52 = vpack.c.bf16 %v2498_v11, %v2498_v11  ;;  %v2732_v48 = vpack.c.b16 %v2726_v21, %v2725_v39  ;;  %v2747_v45 = vunpack.c.l.b16 %v2539_v54  ;;  %v5397_v0 = vld [vmem:[%s8330_s5 + $0xc0] sm:$0xf0] }
 0x71f   :  { %v7133_v25 = vpop.permute.xlu2 %2986  ;;  %2864 = vmatmul.bf16.vlgmr.msrb.gmra.mxu2 %v5158_v62  ;;  %2877 = vmatpush.bf16.msra.mxu0 %v2636_v57  ;;  %v3042_v7 = vmul.f32 %v2997_v16, %v6460_v46  ;;  %v2357_v8 = vpack.c.bf16 %v2349_v42, %v2349_v42  ;;  %v2355_v57 = vpack.c.bf16 %v2347_v47, %v2347_v47 }
 0x720   :  { %2936 = vmatpush.bf16.msra.mxu2 %v2758_v32  ;;  %2913 = vmatpush.bf16.msrb.mxu1 %v2734_v34  ;;  %v2724_v63 = vunpack.c.l.b16 %v2506_v52  ;;  %v2755_v49 = vpack.c.b16 %v2748_v3, %v2747_v45  ;;  %v2346_v32 = vmul.f32 %v5637_v44, %v6921_v12  ;;  %v2435_v28 = vmul.f32 %v5634_v51, %v6998_v38  ;;  %v8432_v38 = vld [vmem:[#allocation25_spill] sm:$0xff] }
 0x721   :  { %v5178_v16 = vor.u32 %v5397_v0, %v5177_v10  ;;  %v2345_v23 = vmul.f32 %v5637_v44, %v6849_v4  ;;  %v2356_v11 = vpack.c.bf16 %v2348_v1, %v2348_v1  ;;  %v2609_v18 = vunpack.c.l.b16 %v2357_v8 }
 0x722   :  { %v2731_v31 = vpack.c.b16 %v2724_v63, %v2723_v37  ;;  %v2433_v12 = vmul.f32 %v5634_v51, %v6977_v9  ;;  %v2344_v36 = vmul.f32 %v5637_v44, %v8432_v38  ;;  %v2354_v53 = vpack.c.bf16 %v2346_v32, %v2346_v32  ;;  %v8434_v9 = vld [vmem:[#allocation34_spill] sm:$0xff]  ;;  %v8435_v37 = vld [vmem:[#allocation17_spill] sm:$0xff] }
 0x723   :  { %2878 = vmatpush.bf16.msra.mxu0 %v2635_v20  ;;  %v2607_v6 = vunpack.c.l.b16 %v2355_v57  ;;  %v2434_v20 = vmul.f32 %v5634_v51, %v8433_v43  ;;  %v2443_v21 = vpack.c.bf16 %v2435_v28, %v2435_v28  ;;  %v2431_v3 = vmul.f32 %v5634_v51, %v8435_v37  ;;  %v5159_v28 = vld [vmem:[%s8330_s5 + $0x8c] sm:$0xf0]  ;;  %v5394_v38 = vld [vmem:[%s8330_s5 + $0x98] sm:$0xf0] }
 0x724   :  { %2937 = vmatpush.bf16.msra.mxu2 %v2757_v50  ;;  %2914 = vmatpush.bf16.msrb.mxu1 %v2733_v59  ;;  %v2608_v50 = vunpack.c.l.b16 %v2356_v11  ;;  %v2432_v59 = vmul.f32 %v5634_v51, %v8434_v9  ;;  %v2441_v52 = vpack.c.bf16 %v2433_v12, %v2433_v12  ;;  %v2352_v14 = vpack.c.bf16 %v2344_v36, %v2344_v36  ;;  %v5173_v12 = vld [vmem:[%s8330_s5 + $0x80] sm:$0xf] }
 0x725   :  { %v2606_v42 = vunpack.c.l.b16 %v2354_v53  ;;  %v2442_v47 = vpack.c.bf16 %v2434_v20, %v2434_v20  ;;  %v5174_v20 = vor.u32 %v5394_v38, %v5173_v12 }
 0x726   :  { %v3007_v27 = vpop.permute.xlu1 %3006  ;;  %v2440_v45 = vpack.c.bf16 %v2432_v59, %v2432_v59  ;;  %v2679_v1 = vunpack.c.l.b16 %v2441_v52 }
 0x727   :  { %v3044_v58 = vmul.f32 %v3007_v27, %v6780_v60  ;;  %v2340_v56 = vpop.permute.xlu2 %2339  ;;  %v3065_v62 = vpop.permute.xlu0 %3064  ;;  %v2680_v32 = vunpack.c.l.b16 %v2442_v47 }
 0x728   :  { %v2350_v24 = vmul.f32 %v5637_v44, %v2340_v56  ;;  %v3102_v26 = vadd.f32 %v3065_v62, %v3042_v7  ;;  %2938 = vmatpush.bf16.msra.mxu2 %v2756_v13  ;;  %2915 = vmatpush.bf16.msrb.mxu1 %v2732_v48  ;;  %v2681_v7 = vunpack.c.l.b16 %v2443_v21  ;;  %v8436_v13 = vld [vmem:[#allocation23_spill] sm:$0xff]  ;;  %v8438_v56 = vld [vmem:[#allocation41_spill] sm:$0xff] }
 0x729   :  { %v3104_v41 = vadd.f32 %v7064_v55, %v3044_v58  ;;  %v2343_v55 = vmul.f32 %v5637_v44, %v6867_v15  ;;  %v2353_v15 = vpack.c.bf16 %v2345_v23, %v2345_v23  ;;  %v2613_v44 = vpack.c.b16 %v2608_v50, %v2607_v6  ;;  %v8437_v58 = vld [vmem:[#allocation14_spill] sm:$0xff]  ;;  %v8441_v23 = vld [vmem:[#allocation16_spill] sm:$0xff] }
 0x72a   :  { %v2358_v61 = vpack.c.bf16 %v2350_v24, %v2350_v24  ;;  %v7159_v17 = vmax.f32 %v3102_v26, 0.0  ;;  %v2430_v48 = vmul.f32 %v5634_v51, %v8436_v13  ;;  %v3043_v62 = vmul.f32 %v8438_v56, %v8437_v58 }
 0x72b   :  { %v7162_v34 = vmax.f32 %v3104_v41, 0.0  ;;  %v2351_v39 = vpack.c.bf16 %v2343_v55, %v2343_v55  ;;  %v2605_v63 = vunpack.c.l.b16 %v2353_v15  ;;  %v2604_v26 = vunpack.c.l.b16 %v2352_v14 }
 0x72c   :  { %v2610_v5 = vunpack.c.l.b16 %v2358_v61  ;;  %2939 = vmatpush.bf16.msra.mxu2 %v2755_v49  ;;  %2916 = vmatpush.bf16.msrb.mxu1 %v2731_v31  ;;  %v2439_v41 = vpack.c.bf16 %v2431_v3, %v2431_v3  ;;  %v8439_v49 = vld [vmem:[#allocation20_spill] sm:$0xff]  ;;  %v5390_v61 = vld [vmem:[%s8330_s5 + $0x74] sm:$0xf]  ;;  %v5639_v3 = vld [vmem:[%s8325_s2 + $0x6] ss:$0 sm:$0xff] }
 0x72d   :  { %3179 = vrot.lane.b32.xlu0 %v7159_v17, %s5682_s17  ;;  %3233 = vrot.lane.b32.xlu2 %v7162_v34, %s5681_s16  ;;  %v2603_v24 = vunpack.c.l.b16 %v2351_v39  ;;  %v2612_v0 = vpack.c.b16 %v2606_v42, %v2605_v63  ;;  %v2429_v31 = vmul.f32 %v5634_v51, %v8439_v49 }
 0x72e   :  { %v2426_v4 = vpop.permute.xlu1 %2425  ;;  %v2614_v30 = vpack.c.b16 %v2610_v5, %v2609_v18  ;;  %v2438_v18 = vpack.c.bf16 %v2430_v48, %v2430_v48  ;;  %v2678_v5 = vunpack.c.l.b16 %v2440_v45  ;;  %v2677_v53 = vunpack.c.l.b16 %v2439_v41  ;;  %v8446_v48 = vld [vmem:[#allocation39_spill] sm:$0xff] }
 0x72f   :  { %v2436_v40 = vmul.f32 %v5634_v51, %v2426_v4  ;;  %2869 = vmatmul.bf16.gmra.mxu2 %v5178_v16  ;;  %v8440_v16 = vld [vmem:[#allocation26_spill] sm:$0xff]  ;;  %v2685_v51 = vpack.c.b16 %v2680_v32, %v2679_v1  ;;  %v2611_v36 = vpack.c.b16 %v2604_v26, %v2603_v24  ;;  %v2437_v6 = vpack.c.bf16 %v2429_v31, %v2429_v31  ;;  %v3053_v59 = vpop.permute.xlu2 %3052  ;;  %v8448_v24 = vld [vmem:[#allocation40_spill] sm:$0xff]  ;;  %v8449_v41 = vld [vmem:[#allocation11_spill] sm:$0xff] }
 0x730   :  { %2879 = vmatpush.bf16.msra.mxu0 %v2614_v30  ;;  %v2402_v11 = vmul.f32 %v8441_v23, %v8440_v16  ;;  %v5162_v4 = vor.u32 %v5390_v61, %v5159_v28  ;;  %v8442_v30 = vld [vmem:[#allocation22_spill] sm:$0xff]  ;;  %v2676_v21 = vunpack.c.l.b16 %v2438_v18  ;;  %v2469_v63 = vmul.f32 %v5639_v3, %v8446_v48  ;;  %v8450_v31 = vld [vmem:[#allocation37_spill] sm:$0xff]  ;;  %v5395_v28 = vld [vmem:[%s8330_s5 + $0xac] sm:$0xf] }
 0x731   :  { %v2444_v54 = vpack.c.bf16 %v2436_v40, %v2436_v40  ;;  %v2401_v43 = vmul.f32 %v8441_v23, %v8442_v30  ;;  %v2684_v40 = vpack.c.b16 %v2678_v5, %v2677_v53  ;;  %v2675_v50 = vunpack.c.l.b16 %v2437_v6  ;;  %v5179_v16 = vld [vmem:[%s8330_s5 + $0xc4] sm:$0xf0]  ;;  %v5193_v5 = vld [vmem:[%s8330_s5 + $0xb8] sm:$0xf]  ;;  %v8452_v53 = vld [vmem:[#allocation27_spill] sm:$0xff] }
 0x732   :  { %v2410_v15 = vpack.c.bf16 %v2402_v11, %v2402_v11  ;;  %v2468_v26 = vmul.f32 %v5639_v3, %v8448_v24  ;;  %v2395_v49 = vmul.f32 %v8441_v23, %v8449_v41  ;;  %v2467_v32 = vmul.f32 %v5639_v3, %v8450_v31  ;;  %v8454_v30 = vld [vmem:[#allocation18_spill] sm:$0xff]  ;;  %v5393_v48 = vld [vmem:[%s8330_s5 + $0x90] sm:$0xf0] }
 0x733   :  { %v2682_v27 = vunpack.c.l.b16 %v2444_v54  ;;  %v2409_v52 = vpack.c.bf16 %v2401_v43, %v2401_v43  ;;  %v8443_v54 = vld [vmem:[#allocation6_spill] sm:$0xff]  ;;  %v2683_v14 = vpack.c.b16 %v2676_v21, %v2675_v50  ;;  %v2465_v6 = vmul.f32 %v5639_v3, %v8452_v53  ;;  %v5187_v53 = vld [vmem:[%s8330_s5 + $0xcc] sm:$0xf0] }
 0x734   :  { %2880 = vmatpush.bf16.msra.mxu0 %v2613_v44  ;;  %v2658_v42 = vunpack.c.l.b16 %v2410_v15  ;;  %v8444_v44 = vld [vmem:[#allocation13_spill] sm:$0xff]  ;;  %v2476_v38 = vpack.c.bf16 %v2468_v26, %v2468_v26  ;;  %v2475_v15 = vpack.c.bf16 %v2467_v32, %v2467_v32  ;;  %v8458_v32 = vld [vmem:[#allocation7_spill] sm:$0xff] }
 0x735   :  { %v2686_v8 = vpack.c.b16 %v2682_v27, %v2681_v7  ;;  %3227 = vrot.lane.b32.xlu2 %v7038_v19, %s5681_s16  ;;  %v2398_v37 = vmul.f32 %v8441_v23, %v8444_v44  ;;  %v2657_v7 = vunpack.c.l.b16 %v2409_v52  ;;  %v8445_v27 = vld [vmem:[#allocation10_spill] sm:$0xff] }
 0x736   :  { %v3069_v10 = vpop.permute.xlu1 %3068  ;;  %v2397_v13 = vmul.f32 %v8441_v23, %v8445_v27 }
 0x737   :  { %v3103_v57 = vadd.f32 %v3069_v10, %v3043_v62  ;;  %2894 = vmatpush.bf16.msra.mxu3 %v2686_v8  ;;  %v2662_v1 = vpack.c.b16 %v2658_v42, %v2657_v7  ;;  %v2406_v56 = vpack.c.bf16 %v2398_v37, %v2398_v37  ;;  %v8447_v62 = vld [vmem:[#allocation12_spill] sm:$0xff]  ;;  %v2704_v37 = vunpack.c.l.b16 %v2476_v38 }
 0x738   :  { %2881 = vmatpush.bf16.msra.mxu0 %v2612_v0  ;;  %v2396_v8 = vmul.f32 %v8441_v23, %v8447_v62  ;;  %v2405_v0 = vpack.c.bf16 %v2397_v13, %v2397_v13  ;;  %v5399_v23 = vld [vmem:[%s8330_s5 + $0xd0] sm:$0xf0]  ;;  %v5165_v13 = vld [vmem:[%s8330_s5 + $0x78] sm:$0xf]  ;;  %v2703_v62 = vunpack.c.l.b16 %v2475_v15 }
 0x739   :  { %v7189_v55 = vmax.f32 %v3103_v57, 0.0  ;;  %v2477_v57 = vpack.c.bf16 %v2469_v63, %v2469_v63  ;;  %v2654_v11 = vunpack.c.l.b16 %v2406_v56  ;;  %v8457_v63 = vld [vmem:[#allocation29_spill] sm:$0xff]  ;;  %v2473_v56 = vpack.c.bf16 %v2465_v6, %v2465_v6 }
 0x73a   :  { %v2404_v18 = vpack.c.bf16 %v2396_v8, %v2396_v8  ;;  %v2653_v21 = vunpack.c.l.b16 %v2405_v0  ;;  %v5166_v0 = vor.u32 %v5393_v48, %v5165_v13 }
 0x73b   :  { %2895 = vmatpush.bf16.msra.mxu3 %v2685_v51  ;;  %3231 = vrot.lane.b32.xlu1 %v7189_v55, %s5681_s16  ;;  %v8451_v51 = vld [vmem:[#allocation36_spill] sm:$0xff]  ;;  %v2705_v50 = vunpack.c.l.b16 %v2477_v57  ;;  %v3040_v57 = vmul.f32 %v7133_v25, %v8458_v32  ;;  %v5185_v25 = vld [vmem:[%s8330_s5 + $0xb0] sm:$0xf] }
 0x73c   :  { %2882 = vmatpush.bf16.msra.mxu0 %v2611_v36  ;;  %v2466_v12 = vmul.f32 %v5639_v3, %v8451_v51  ;;  %v2660_v52 = vpack.c.b16 %v2654_v11, %v2653_v21  ;;  %v5167_v11 = vld [vmem:[%s8330_s5 + $0x94] sm:$0xf0] }
 0x73e   :  { %v2474_v44 = vpack.c.bf16 %v2466_v12, %v2466_v12  ;;  %v5398_v12 = vld [vmem:[%s8330_s5 + $0xc8] sm:$0xf0] }
 0x73f   :  { %2883 = vmatmul.bf16.vlgmr.msra.gmra.mxu0 %v5162_v4  ;;  %2896 = vmatpush.bf16.msra.mxu3 %v2684_v40  ;;  %v2982_v9 = vpop.permute.xlu1 %2981  ;;  %v8453_v4 = vld [vmem:[#allocation19_spill] sm:$0xff]  ;;  %v2403_v40 = vpack.c.bf16 %v2395_v49, %v2395_v49  ;;  %v2701_v49 = vunpack.c.l.b16 %v2473_v56  ;;  %v5186_v38 = vor.u32 %v5398_v12, %v5185_v25 }
 0x740   :  { %v3039_v39 = vmul.f32 %v2982_v9, %v8443_v54  ;;  %5195 = vmatmul.msk.bf16.vlgmr.msra.gmra.mxu2 %vm2849_vm5, %v5174_v20  ;;  %v8455_v43 = vpack.c.b16 %v8453_v4, %v8454_v30  ;;  %v5182_v20 = vor.u32 %v5395_v28, %v5179_v16  ;;  %v2702_v26 = vunpack.c.l.b16 %v2474_v44  ;;  %v5391_v16 = vld [vmem:[%s8330_s5 + $0x7c] sm:$0xf]  ;;  %v7303_v4 = vpop.permute.xlu2 %3092 }
 0x741   :  { %v2651_v27 = vunpack.c.l.b16 %v2403_v40  ;;  %v5170_v51 = vor.u32 %v5391_v16, %v5167_v11  ;;  %v7340_v40 = vld [vmem:[%s8325_s2 + $0x1] ss:$0 sm:$0xff] }
 0x742   :  { %v3099_v47 = vadd.f32 %v3053_v59, %v3039_v39  ;;  %v5194_v59 = vor.u32 %v5399_v23, %v5193_v5  ;;  %v2652_v39 = vunpack.c.l.b16 %v2404_v18 }
 0x743   :  { %2897 = vmatpush.bf16.msra.mxu3 %v2683_v14  ;;  %v8456_v14 = vld [vmem:[#allocation28_spill] sm:$0xff] }
 0x744   :  { %v7211_v45 = vmax.f32 %v3099_v47, 0.0  ;;  %v2464_v42 = vmul.f32 %v5639_v3, %v8456_v14  ;;  %v2659_v8 = vpack.c.b16 %v2652_v39, %v2651_v27  ;;  %v8461_v14 = vld [vmem:[#allocation38_spill] sm:$0xff] }
 0x746   :  { %3223 = vrot.lane.b32.xlu2 %v7211_v45, %s5681_s16  ;;  %3173 = vrot.lane.b32.xlu0 %v7211_v45, %s5682_s17  ;;  %v2472_v24 = vpack.c.bf16 %v2464_v42, %v2464_v42 }
 0x747   :  { %2898 = vmatpush.bf16.msra.mxu3 %v2662_v1  ;;  %v2460_v10 = vpop.permute.xlu1 %2459  ;;  %v2463_v1 = vmul.f32 %v5639_v3, %v8457_v63 }
 0x748   :  { %v2470_v61 = vmul.f32 %v5639_v3, %v2460_v10  ;;  %v2709_v10 = vpack.c.b16 %v2704_v37, %v2703_v62  ;;  %v2700_v31 = vunpack.c.l.b16 %v2472_v24  ;;  %v2708_v3 = vpack.c.b16 %v2702_v26, %v2701_v49  ;;  %v7311_v30 = vpop.permute.xlu2 %3026 }
 0x749   :  { %v2471_v41 = vpack.c.bf16 %v2463_v1, %v2463_v1 }
 0x74a   :  { %v2478_v36 = vpack.c.bf16 %v2470_v61, %v2470_v61 }
 0x74b   :  { %2899 = vmatpush.bf16.msra.mxu3 %v8455_v43  ;;  %v2699_v61 = vunpack.c.l.b16 %v2471_v41  ;;  %v7325_v43 = vpop.permute.xlu0 %3096 }
 0x74c   :  { %v2706_v9 = vunpack.c.l.b16 %v2478_v36  ;;  %v5396_v36 = vld [vmem:[%s8330_s5 + $0xb4] sm:$0xf] }
 0x74d   :  { %v2707_v5 = vpack.c.b16 %v2700_v31, %v2699_v61  ;;  %v5190_v6 = vor.u32 %v5396_v36, %v5187_v53 }
 0x74e   :  { %3283 = vrot.lane.b32.xlu2 %v7162_v34, %s5672_s8  ;;  %3229 = vrot.lane.b32.xlu0 %v7159_v17, %s5681_s16  ;;  %v2710_v47 = vpack.c.b16 %v2706_v9, %v2705_v50  ;;  %v8459_v9 = vld [vmem:[#allocation24_spill] sm:$0xff] }
 0x74f   :  { %2888 = vmatmul.bf16.gmra.mxu0 %v5182_v20  ;;  %v7245_v7 = vpop.permute.xlu1 %3036  ;;  %2900 = vmatpush.bf16.msra.mxu3 %v2660_v52 }
 0x750   :  { %2917 = vmatpush.bf16.msrb.mxu1 %v2710_v47  ;;  %5196 = vmatmul.msk.bf16.gmra.mxu2 %vm2849_vm5, %v5194_v59  ;;  %v7327_v20 = vpop.permute.xlu2 %3088  ;;  %v8460_v59 = vld [vmem:[#allocation33_spill] sm:$0xff] }
 0x751   :  { %v3046_v52 = vmul.f32 %v8460_v59, %v8459_v9 }
 0x753   :  { %2901 = vmatpush.bf16.msra.mxu3 %v2659_v8  ;;  %v3106_v42 = vadd.f32 %v8461_v14, %v3046_v52 }
 0x754   :  { %2918 = vmatpush.bf16.msrb.mxu1 %v2709_v10 }
 0x755   :  { %v7353_v27 = vmax.f32 %v3106_v42, 0.0 }
 0x756   :  { %3185 = vrot.lane.b32.xlu2 %v7104_v35, %s5682_s17  ;;  %2902 = vmatmul.bf16.vlgmr.msra.gmra.mxu3 %v5166_v0 }
 0x758   :  { %2919 = vmatpush.bf16.msrb.mxu1 %v2708_v3  ;;  %v3057_v28 = vpop.permute.xlu1 %3056 }
 0x759   :  { %v3100_v18 = vadd.f32 %v3057_v28, %v3040_v57 }
 0x75b   :  { %v7265_v23 = vmax.f32 %v3100_v18, 0.0 }
 0x75c   :  { %2920 = vmatpush.bf16.msrb.mxu1 %v2707_v5 }
 0x75d   :  { %3225 = vrot.lane.b32.xlu0 %v7265_v23, %s5681_s16  ;;  %3175 = vrot.lane.b32.xlu1 %v7265_v23, %s5682_s17 }
 0x75e   :  { %3279 = vrot.lane.b32.xlu2 %v7159_v17, %s5672_s8 }
 0x75f   :  { %2921 = vmatmul.bf16.vlgmr.msrb.gmra.mxu1 %v5170_v51 }
 0x765   :  { %3135 = vrot.lane.b32.xlu0 %v7104_v35, %s5683_s26  ;;  %3285 = vrot.lane.b32.xlu1 %v7104_v35, %s5672_s8 }
 0x766   :  { %3181 = vrot.lane.b32.xlu2 %v7189_v55, %s5682_s17  ;;  %2907 = vmatmul.bf16.gmra.mxu3 %v5186_v38  ;;  %v3178_v15 = vpop.permute.xlu2 %3177  ;;  %v8462_v38 = vld [vmem:[#allocation32_spill] sm:$0xff] }
 0x767   :  { %v3201_v50 = vmul.f32 %v7340_v40, %v3178_v15 }
 0x769   :  { %v3213_v44 = vpack.c.bf16 %v3201_v50, %v3201_v50 }
 0x76b   :  { %v3599_v13 = vunpack.c.l.b16 %v3213_v44 }
 0x76c   :  { %v3022_v56 = vpop.permute.xlu1 %3021 }
 0x76d   :  { %3131 = vrot.lane.b32.xlu0 %v7189_v55, %s5683_s26  ;;  %3281 = vrot.lane.b32.xlu1 %v7189_v55, %s5672_s8 }
 0x76e   :  { %3275 = vrot.lane.b32.xlu2 %v7265_v23, %s5672_s8 }
 0x76f   :  { %2926 = vmatmul.bf16.gmra.mxu1 %v5190_v6 }
 0x775   :  { %3127 = vrot.lane.b32.xlu0 %v7038_v19, %s5683_s26  ;;  %3133 = vrot.lane.b32.xlu1 %v7162_v34, %s5683_s26  ;;  %v3085_v26 = vpop.permute.xlu1 %3084 }
 0x776   :  { %3123 = vrot.lane.b32.xlu2 %v7211_v45, %s5683_s26 }
 0x77d   :  { %3183 = vrot.lane.b32.xlu0 %v7162_v34, %s5682_s17  ;;  %3277 = vrot.lane.b32.xlu1 %v7038_v19, %s5672_s8 }
 0x77e   :  { %3409 = vrot.lane.b32.xlu2 %v7162_v34, %s5680_s15 }
 0x785   :  { %3353 = vrot.lane.b32.xlu0 %v7038_v19, %s5671_s28  ;;  %3129 = vrot.lane.b32.xlu1 %v7159_v17, %s5683_s26 }
 0x786   :  { %3403 = vrot.lane.b32.xlu2 %v7038_v19, %s5680_s15 }
 0x787   :  { %v7361_v1 = vpop.permute.xlu2 %3233 }
 0x78c   :  { %v7335_v21 = vpop.permute.xlu0 %3235 }
 0x78d   :  { %3125 = vrot.lane.b32.xlu0 %v7265_v23, %s5683_s26  ;;  %3273 = vrot.lane.b32.xlu1 %v7211_v45, %s5672_s8 }
 0x78e   :  { %3459 = vrot.lane.b32.xlu2 %v7162_v34, %s5678_s0 }
 0x78f   :  { %v7367_v62 = vpop.permute.xlu2 %3227 }
 0x795   :  { %3349 = vrot.lane.b32.xlu0 %v7211_v45, %s5671_s28  ;;  %3355 = vrot.lane.b32.xlu1 %v7159_v17, %s5671_s28 }
 0x796   :  { %3453 = vrot.lane.b32.xlu2 %v7038_v19, %s5678_s0 }
 0x79d   :  { %3411 = vrot.lane.b32.xlu0 %v7104_v35, %s5680_s15  ;;  %3351 = vrot.lane.b32.xlu1 %v7265_v23, %s5671_s28 }
 0x79e   :  { %3449 = vrot.lane.b32.xlu2 %v7211_v45, %s5678_s0 }
 0x79f   :  { %v3180_v39 = vpop.permute.xlu0 %3179 }
 0x7a0   :  { %v3202_v37 = vmul.f32 %v7340_v40, %v3180_v39  ;;  %v7373_v24 = vpop.permute.xlu2 %3223 }
 0x7a2   :  { %v3214_v47 = vpack.c.bf16 %v3202_v37, %v3202_v37  ;;  %v2865_v8 = vpop.f32.mrf.mxu2 }
 0x7a3   :  { %v2866_v36 = vadd.f32 %v2865_v8, %v8462_v38 }
 0x7a4   :  { %v3600_v48 = vunpack.c.l.b16 %v3214_v47 }
 0x7a5   :  { %3461 = vrot.lane.b32.xlu0 %v7104_v35, %s5678_s0  ;;  %3407 = vrot.lane.b32.xlu1 %v7189_v55, %s5680_s15 }
 0x7a6   :  { %v3610_v63 = vpack.c.b16 %v3600_v48, %v3599_v13  ;;  %3287 = vrot.lane.b32.xlu2 %v7353_v27, %s5672_s8 }
 0x7a8   :  { %3990 = vmatpush.bf16.msrb.mxu0 %v3610_v63  ;;  %v7383_v41 = vpop.permute.xlu2 %3283 }
 0x7aa   :  { %v2867_v0 = vpop.f32.mrf.mxu2 }
 0x7ab   :  { %v2868_v47 = vadd.f32 %v2867_v0, %v7021_v29 }
 0x7ad   :  { %3405 = vrot.lane.b32.xlu0 %v7159_v17, %s5680_s15  ;;  %3457 = vrot.lane.b32.xlu1 %v7189_v55, %s5678_s0  ;;  %v7385_v49 = vpop.permute.xlu1 %3231 }
 0x7b0   :  { %v7396_v16 = vpop.permute.xlu2 %3185 }
 0x7b2   :  { %v2870_v3 = vpop.f32.mrf.mxu2 }
 0x7b5   :  { %3399 = vrot.lane.b32.xlu0 %v7211_v45, %s5680_s15  ;;  %3401 = vrot.lane.b32.xlu1 %v7265_v23, %s5680_s15 }
 0x7b8   :  { %v3174_v10 = vpop.permute.xlu0 %3173  ;;  %v3280_v39 = vpop.permute.xlu2 %3279 }
 0x7b9   :  { %v3199_v57 = vmul.f32 %v7340_v40, %v3174_v10 }
 0x7ba   :  { %v2872_v53 = vpop.f32.mrf.mxu2 }
 0x7bb   :  { %v3211_v11 = vpack.c.bf16 %v3199_v57, %v3199_v57 }
 0x7bc   :  { %v2884_v5 = vpop.f32.mrf.mxu0 }
 0x7bd   :  { %3455 = vrot.lane.b32.xlu0 %v7159_v17, %s5678_s0  ;;  %3237 = vrot.lane.b32.xlu1 %v7353_v27, %s5681_s16  ;;  %v3597_v25 = vunpack.c.l.b16 %v3211_v11  ;;  %v2885_v59 = vadd.f32 %v2884_v5, %v2866_v36 }
 0x7c0   :  { %v7387_v31 = vpop.permute.xlu0 %3229  ;;  %v3182_v5 = vpop.permute.xlu2 %3181 }
 0x7c3   :  { %v2941_v13 = vpop.f32.mrf.mxu2 }
 0x7c4   :  { %v2886_v42 = vpop.f32.mrf.mxu0 }
 0x7c5   :  { %3451 = vrot.lane.b32.xlu0 %v7265_v23, %s5678_s0  ;;  %3137 = vrot.lane.b32.xlu1 %v7353_v27, %s5683_s26  ;;  %v2887_v10 = vadd.f32 %v2886_v42, %v2868_v47  ;;  %v8465_v42 = vld [vmem:[#allocation31_spill] sm:$0xff] }
 0x7c8   :  { %v3276_v47 = vpop.permute.xlu2 %3275 }
 0x7cb   :  { %v2943_v36 = vpop.f32.mrf.mxu2 }
 0x7cc   :  { %v2889_v38 = vpop.f32.mrf.mxu0 }
 0x7cd   :  { %3187 = vrot.lane.b32.xlu0 %v7353_v27, %s5682_s17  ;;  %3413 = vrot.lane.b32.xlu1 %v7353_v27, %s5680_s15 }
 0x7cf   :  { %v7394_v61 = vpop.permute.xlu0 %3225  ;;  %v3176_v28 = vpop.permute.xlu1 %3175 }
 0x7d0   :  { %v3200_v18 = vmul.f32 %v7340_v40, %v3176_v28 }
 0x7d2   :  { %v3212_v51 = vpack.c.bf16 %v3200_v18, %v3200_v18 }
 0x7d4   :  { %v3598_v12 = vunpack.c.l.b16 %v3212_v51 }
 0x7d5   :  { %3463 = vrot.lane.b32.xlu1 %v7353_v27, %s5678_s0 }
 0x7d6   :  { %v3609_v6 = vpack.c.b16 %v3598_v12, %v3597_v25 }
 0x7d7   :  { %v7402_v15 = vpop.permute.xlu0 %3135  ;;  %v7404_v50 = vpop.permute.xlu1 %3285 }
 0x7d8   :  { %3991 = vmatpush.bf16.msrb.mxu0 %v3609_v6 }
 0x7d9   :  { %v2903_v52 = vpop.f32.mrf.mxu3 }
 0x7da   :  { %v2904_v14 = vadd.f32 %v2903_v52, %v2885_v59  ;;  %v3203_v52 = vmul.f32 %v7340_v40, %v3182_v5 }
 0x7dc   :  { %v2922_v44 = vpop.f32.mrf.mxu1 }
 0x7dd   :  { %v2923_v37 = vadd.f32 %v2922_v44, %v2904_v14  ;;  %v2871_v44 = vadd.f32 %v2870_v3, %v8465_v42 }
 0x7df   :  { %v7407_v48 = vadd.f32 %v2941_v13, %v2923_v37  ;;  %v7409_v63 = vpop.permute.xlu0 %3131  ;;  %v7411_v8 = vpop.permute.xlu1 %3281 }
 0x7e1   :  { %8463 = vst [vmem:[#allocation25_spill] sm:$0xff] %v7407_v48  ;;  %v3047_v57 = vmul.f32 %v3022_v56, %v7407_v48  ;;  %v2905_v28 = vpop.f32.mrf.mxu3  ;;  %v7427_v56 = vld [vmem:[%s8325_s2 + $0x3] ss:$0 sm:$0xff] }
 0x7e2   :  { %v2906_v11 = vadd.f32 %v2905_v28, %v2887_v10  ;;  %v3302_v59 = vmul.f32 %v7427_v56, %v3280_v39  ;;  %v3215_v10 = vpack.c.bf16 %v3203_v52, %v3203_v52 }
 0x7e3   :  { %v3107_v18 = vadd.f32 %v3085_v26, %v3047_v57  ;;  %v2890_v57 = vadd.f32 %v2889_v38, %v2871_v44 }
 0x7e4   :  { %v2924_v51 = vpop.f32.mrf.mxu1  ;;  %v3314_v13 = vpack.c.bf16 %v3302_v59, %v3302_v59  ;;  %v7453_v44 = vunpack.c.l.b16 %v3215_v10 }
 0x7e5   :  { %v7414_v25 = vmax.f32 %v3107_v18, 0.0  ;;  %v2925_v12 = vadd.f32 %v2924_v51, %v2906_v11  ;;  %v2946_v51 = vpop.f32.mrf.mxu2 }
 0x7e6   :  { %v7451_v42 = vunpack.c.l.b16 %v3314_v13 }
 0x7e7   :  { %v3128_v29 = vpop.permute.xlu0 %3127  ;;  %v7416_v0 = vpop.permute.xlu1 %3133  ;;  %3189 = vrot.lane.b32.xlu2 %v7414_v25, %s5682_s17  ;;  %3139 = vrot.lane.b32.xlu0 %v7414_v25, %s5683_s26  ;;  %v7429_v26 = vadd.f32 %v2943_v36, %v2925_v12  ;;  %v8466_v12 = vld [vmem:[#allocation30_spill] sm:$0xff]  ;;  %v7449_v36 = vld [vmem:[%s8325_s2] ss:$0 sm:$0xff] }
 0x7e8   :  { %3289 = vrot.lane.b32.xlu1 %v7414_v25, %s5672_s8  ;;  %v2873_v38 = vadd.f32 %v2872_v53, %v8466_v12  ;;  %v3151_v54 = vmul.f32 %v7449_v36, %v3128_v29 }
 0x7e9   :  { %8464 = vst [vmem:[#allocation35_spill] sm:$0xff] %v7429_v26  ;;  %v2908_v6 = vpop.f32.mrf.mxu3  ;;  %v3048_v37 = vmul.f32 %v7311_v30, %v7429_v26  ;;  %v2891_v30 = vpop.f32.mrf.mxu0 }
 0x7ea   :  { %v2909_v5 = vadd.f32 %v2908_v6, %v2890_v57  ;;  %v3163_v29 = vpack.c.bf16 %v3151_v54, %v3151_v54 }
 0x7eb   :  { %v3108_v3 = vadd.f32 %v7327_v20, %v3048_v37 }
 0x7ec   :  { %v2927_v14 = vpop.f32.mrf.mxu1 }
 0x7ed   :  { %v7460_v53 = vmax.f32 %v3108_v3, 0.0  ;;  %v2928_v37 = vadd.f32 %v2927_v14, %v2909_v5  ;;  %v3124_v14 = vpop.permute.xlu2 %3123 }
 0x7ef   :  { %v3184_v28 = vpop.permute.xlu0 %3183  ;;  %v3278_v11 = vpop.permute.xlu1 %3277  ;;  %3465 = vrot.lane.b32.xlu2 %v7414_v25, %s5678_s0  ;;  %3365 = vrot.lane.b32.xlu0 %v7414_v25, %s5671_s28  ;;  %v7473_v3 = vadd.f32 %v2946_v51, %v2928_v37 }
 0x7f0   :  { %v3204_v39 = vmul.f32 %v7340_v40, %v3184_v28  ;;  %v3301_v18 = vmul.f32 %v7427_v56, %v3278_v11  ;;  %3239 = vrot.lane.b32.xlu1 %v7414_v25, %s5681_s16  ;;  %v2892_v11 = vadd.f32 %v2891_v30, %v2873_v38 }
 0x7f1   :  { %v2910_v28 = vpop.f32.mrf.mxu3  ;;  %8467 = vst [vmem:[#allocation34_spill] sm:$0xff] %v7473_v3  ;;  %v3049_v54 = vmul.f32 %v7124_v2, %v7473_v3 }
 0x7f2   :  { %v3216_v59 = vpack.c.bf16 %v3204_v39, %v3204_v39  ;;  %v3313_v52 = vpack.c.bf16 %v3301_v18, %v3301_v18  ;;  %v2911_v39 = vadd.f32 %v2910_v28, %v2892_v11  ;;  %v3149_v28 = vmul.f32 %v7449_v36, %v3124_v14 }
 0x7f3   :  { %v7477_v11 = vunpack.c.l.b16 %v3163_v29  ;;  %v5647_v29 = vld [vmem:[%s8325_s2 + $0x5] ss:$0 sm:$0xff]  ;;  %v3109_v14 = vadd.f32 %v7303_v4, %v3049_v54 }
 0x7f4   :  { %v7456_v20 = vunpack.c.l.b16 %v3216_v59  ;;  %v7458_v6 = vunpack.c.l.b16 %v3313_v52  ;;  %v2929_v10 = vpop.f32.mrf.mxu1  ;;  %v3300_v59 = vmul.f32 %v7427_v56, %v3276_v47  ;;  %v2948_v52 = vpop.f32.mrf.mxu2  ;;  %v3161_v47 = vpack.c.bf16 %v3149_v28, %v3149_v28 }
 0x7f5   :  { %v2930_v5 = vadd.f32 %v2929_v10, %v2911_v39  ;;  %8468 = vst [vmem:[#allocation17_spill] sm:$0xff] %v7477_v11  ;;  %v3410_v51 = vpop.permute.xlu2 %3409 }
 0x7f6   :  { %v3312_v37 = vpack.c.bf16 %v3300_v59, %v3300_v59  ;;  %v7503_v28 = vunpack.c.l.b16 %v3161_v47 }
 0x7f7   :  { %v3354_v18 = vpop.permute.xlu0 %3353  ;;  %v3130_v12 = vpop.permute.xlu1 %3129  ;;  %3291 = vrot.lane.b32.xlu2 %v7460_v53, %s5672_s8  ;;  %3191 = vrot.lane.b32.xlu0 %v7460_v53, %s5682_s17 }
 0x7f8   :  { %v3152_v30 = vmul.f32 %v7449_v36, %v3130_v12  ;;  %3515 = vrot.lane.b32.xlu1 %v7414_v25, %s5679_s14  ;;  %v7483_v12 = vadd.f32 %v2948_v52, %v2930_v5  ;;  %v7501_v52 = vunpack.c.l.b16 %v3312_v37  ;;  %8471 = vst [vmem:[#allocation20_spill] sm:$0xff] %v7503_v28  ;;  %v3377_v13 = vmul.f32 %v5647_v29, %v3354_v18 }
 0x7fa   :  { %v3164_v38 = vpack.c.bf16 %v3152_v30, %v3152_v30  ;;  %8470 = vst [vmem:[#allocation41_spill] sm:$0xff] %v7483_v12  ;;  %v3050_v5 = vmul.f32 %v7245_v7, %v7483_v12  ;;  %v3389_v18 = vpack.c.bf16 %v3377_v13, %v3377_v13 }
 0x7fc   :  { %v7479_v57 = vunpack.c.l.b16 %v3164_v38  ;;  %v3110_v33 = vadd.f32 %v7325_v43, %v3050_v5 }
 0x7fe   :  { %8469 = vst [vmem:[#allocation23_spill] sm:$0xff] %v7479_v57  ;;  %v7522_v43 = vmax.f32 %v3110_v33, 0.0 }
 0x7ff   :  { %v3126_v39 = vpop.permute.xlu0 %3125  ;;  %v3274_v10 = vpop.permute.xlu1 %3273  ;;  %3241 = vrot.lane.b32.xlu2 %v7460_v53, %s5681_s16  ;;  %3467 = vrot.lane.b32.xlu0 %v7460_v53, %s5678_s0 }
 0x800   :  { %v3150_v2 = vmul.f32 %v7449_v36, %v3126_v39  ;;  %v3299_v30 = vmul.f32 %v7427_v56, %v3274_v10  ;;  %3141 = vrot.lane.b32.xlu1 %v7460_v53, %s5683_s26  ;;  %v7509_v10 = vmax.f32 %v3109_v14, 0.0 }
 0x802   :  { %v3162_v38 = vpack.c.bf16 %v3150_v2, %v3150_v2  ;;  %v3311_v59 = vpack.c.bf16 %v3299_v30, %v3299_v30  ;;  %v3743_v30 = vunpack.c.l.b16 %v3389_v18 }
 0x804   :  { %v7505_v32 = vunpack.c.l.b16 %v3162_v38  ;;  %v7507_v39 = vunpack.c.l.b16 %v3311_v59  ;;  %v7527_v38 = vld [vmem:[%s8325_s2 + $0x4] ss:$0 sm:$0xff]  ;;  %v3404_v59 = vpop.permute.xlu2 %3403 }
 0x805   :  { %v3336_v13 = vmul.f32 %v7527_v38, %v7522_v43  ;;  %v3334_v7 = vmul.f32 %v7527_v38, %v7460_v53 }
 0x806   :  { %8472 = vst [vmem:[#allocation26_spill] sm:$0xff] %v7505_v32 }
 0x807   :  { %v3350_v54 = vpop.permute.xlu0 %3349  ;;  %v3356_v37 = vpop.permute.xlu1 %3355  ;;  %3517 = vrot.lane.b32.xlu2 %v7460_v53, %s5679_s14  ;;  %3143 = vrot.lane.b32.xlu0 %v7509_v10, %s5683_s26  ;;  %v3346_v22 = vpack.c.bf16 %v3334_v7, %v3334_v7 }
 0x808   :  { %v3378_v47 = vmul.f32 %v5647_v29, %v3356_v37  ;;  %3293 = vrot.lane.b32.xlu1 %v7509_v10, %s5672_s8  ;;  %v3375_v14 = vmul.f32 %v5647_v29, %v3350_v54  ;;  %v7534_v37 = vld [vmem:[%s8325_s2 + $0x6] ss:$0 sm:$0xff] }
 0x809   :  { %v3430_v46 = vmul.f32 %v7534_v37, %v3410_v51  ;;  %v3332_v51 = vmul.f32 %v7527_v38, %v7353_v27  ;;  %v3714_v3 = vunpack.c.l.b16 %v3346_v22  ;;  %v3427_v12 = vmul.f32 %v7534_v37, %v3404_v59 }
 0x80a   :  { %v3390_v2 = vpack.c.bf16 %v3378_v47, %v3378_v47  ;;  %v3387_v54 = vpack.c.bf16 %v3375_v14, %v3375_v14  ;;  %v3331_v14 = vmul.f32 %v7527_v38, %v7104_v35  ;;  %v3328_v22 = vmul.f32 %v7527_v38, %v7159_v17 }
 0x80b   :  { %v3344_v28 = vpack.c.bf16 %v3332_v51, %v3332_v51 }
 0x80c   :  { %v3744_v5 = vunpack.c.l.b16 %v3390_v2  ;;  %v3335_v2 = vmul.f32 %v7527_v38, %v7509_v10  ;;  %v3741_v58 = vunpack.c.l.b16 %v3387_v54  ;;  %v3442_v54 = vpack.c.bf16 %v3430_v46, %v3430_v46 }
 0x80d   :  { %v3329_v46 = vmul.f32 %v7527_v38, %v7189_v55 }
 0x80e   :  { %v3754_v4 = vpack.c.b16 %v3744_v5, %v3743_v30  ;;  %v3348_v5 = vpack.c.bf16 %v3336_v13, %v3336_v13  ;;  %v3347_v9 = vpack.c.bf16 %v3335_v2, %v3335_v2  ;;  %v3460_v2 = vpop.permute.xlu2 %3459  ;;  %v7574_v32 = vunpack.c.l.b16 %v3442_v54 }
 0x80f   :  { %v7536_v33 = vpop.permute.xlu0 %3411  ;;  %v3352_v18 = vpop.permute.xlu1 %3351  ;;  %3193 = vrot.lane.b32.xlu2 %v7509_v10, %s5682_s17  ;;  %3369 = vrot.lane.b32.xlu0 %v7509_v10, %s5671_s28  ;;  %v3341_v51 = vpack.c.bf16 %v3329_v46, %v3329_v46 }
 0x810   :  { %v3376_v47 = vmul.f32 %v5647_v29, %v3352_v18  ;;  %3243 = vrot.lane.b32.xlu1 %v7509_v10, %s5681_s16  ;;  %4047 = vmatpush.bf16.msrb.mxu2 %v3754_v4  ;;  %v3333_v29 = vmul.f32 %v7527_v38, %v7414_v25  ;;  %v3716_v18 = vunpack.c.l.b16 %v3348_v5  ;;  %8473 = vst [vmem:[#allocation16_spill] sm:$0xff] %v7574_v32 }
 0x812   :  { %v3388_v30 = vpack.c.bf16 %v3376_v47, %v3376_v47  ;;  %v7564_v47 = vld [vmem:[%s8325_s2 + $0x7] ss:$0 sm:$0xff]  ;;  %v3345_v7 = vpack.c.bf16 %v3333_v29, %v3333_v29 }
 0x814   :  { %v3742_v60 = vunpack.c.l.b16 %v3388_v30  ;;  %v3343_v30 = vpack.c.bf16 %v3331_v14, %v3331_v14  ;;  %v3713_v29 = vunpack.c.l.b16 %v3345_v7  ;;  %v3327_v7 = vmul.f32 %v7527_v38, %v7038_v19 }
 0x816   :  { %v3753_v4 = vpack.c.b16 %v3742_v60, %v3741_v58  ;;  %v3715_v58 = vunpack.c.l.b16 %v3347_v9  ;;  %v3711_v14 = vunpack.c.l.b16 %v3343_v30  ;;  %v3721_v59 = vpack.c.b16 %v3714_v3, %v3713_v29  ;;  %v3454_v32 = vpop.permute.xlu2 %3453 }
 0x817   :  { %v7553_v48 = vpop.permute.xlu0 %3461  ;;  %v3408_v13 = vpop.permute.xlu1 %3407  ;;  %3469 = vrot.lane.b32.xlu2 %v7509_v10, %s5678_s0  ;;  %3195 = vrot.lane.b32.xlu0 %v7522_v43, %s5682_s17 }
 0x818   :  { %v3429_v60 = vmul.f32 %v7534_v37, %v3408_v13  ;;  %3519 = vrot.lane.b32.xlu1 %v7509_v10, %s5679_s14  ;;  %4048 = vmatpush.bf16.msrb.mxu2 %v3753_v4  ;;  %v3722_v26 = vpack.c.b16 %v3716_v18, %v3715_v58  ;;  %v3330_v13 = vmul.f32 %v7527_v38, %v7162_v34  ;;  %v3709_v18 = vunpack.c.l.b16 %v3341_v51 }
 0x819   :  { %v3480_v4 = vmul.f32 %v7564_v47, %v3460_v2 }
 0x81a   :  { %v3441_v5 = vpack.c.bf16 %v3429_v60, %v3429_v60  ;;  %v3439_v60 = vpack.c.bf16 %v3427_v12, %v3427_v12  ;;  %v3342_v54 = vpack.c.bf16 %v3330_v13, %v3330_v13 }
 0x81b   :  { %v3492_v2 = vpack.c.bf16 %v3480_v4, %v3480_v4  ;;  %v3325_v4 = vmul.f32 %v7527_v38, %v7211_v45 }
 0x81c   :  { %v7577_v9 = vunpack.c.l.b16 %v3441_v5  ;;  %4049 = vmatpush.bf16.msrb.mxu2 %v3722_v26  ;;  %v3712_v26 = vunpack.c.l.b16 %v3344_v28  ;;  %v3340_v5 = vpack.c.bf16 %v3328_v22, %v3328_v22  ;;  %v3326_v28 = vmul.f32 %v7527_v38, %v7265_v23 }
 0x81d   :  { %v3710_v13 = vunpack.c.l.b16 %v3342_v54 }
 0x81e   :  { %8474 = vst [vmem:[#allocation22_spill] sm:$0xff] %v7577_v9  ;;  %v3720_v12 = vpack.c.b16 %v3712_v26, %v3711_v14  ;;  %v3339_v9 = vpack.c.bf16 %v3327_v7, %v3327_v7  ;;  %v3708_v22 = vunpack.c.l.b16 %v3340_v5  ;;  %v3338_v54 = vpack.c.bf16 %v3326_v28, %v3326_v28 }
 0x81f   :  { %v3406_v58 = vpop.permute.xlu0 %3405  ;;  %v3458_v11 = vpop.permute.xlu1 %3457  ;;  %3295 = vrot.lane.b32.xlu2 %v7522_v43, %s5672_s8  ;;  %3361 = vrot.lane.b32.xlu0 %v7104_v35, %s5671_s28  ;;  %v3719_v26 = vpack.c.b16 %v3710_v13, %v3709_v18  ;;  %v7620_v18 = vld [vmem:[%s8325_s2 + $0x2] ss:$0 sm:$0xff]  ;;  %v3477_v28 = vmul.f32 %v7564_v47, %v3454_v32 }
 0x820   :  { %v3428_v30 = vmul.f32 %v7534_v37, %v3406_v58  ;;  %v3479_v3 = vmul.f32 %v7564_v47, %v3458_v11  ;;  %3145 = vrot.lane.b32.xlu1 %v7522_v43, %s5683_s26  ;;  %4050 = vmatpush.bf16.msrb.mxu2 %v3721_v59  ;;  %v7597_v58 = vunpack.c.l.b16 %v3439_v60  ;;  %v7599_v11 = vunpack.c.l.b16 %v3492_v2 }
 0x822   :  { %v3440_v46 = vpack.c.bf16 %v3428_v30, %v3428_v30  ;;  %v3491_v29 = vpack.c.bf16 %v3479_v3, %v3479_v3  ;;  %8475 = vst [vmem:[#allocation13_spill] sm:$0xff] %v7597_v58  ;;  %v3707_v30 = vunpack.c.l.b16 %v3339_v9  ;;  %v3337_v3 = vpack.c.bf16 %v3325_v4, %v3325_v4 }
 0x823   :  { %v3253_v4 = vmul.f32 %v7620_v18, %v7385_v49 }
 0x824   :  { %v7601_v57 = vunpack.c.l.b16 %v3440_v46  ;;  %v7603_v14 = vunpack.c.l.b16 %v3491_v29  ;;  %4051 = vmatpush.bf16.msrb.mxu2 %v3720_v12  ;;  %v3718_v5 = vpack.c.b16 %v3708_v22, %v3707_v30  ;;  %v3706_v46 = vunpack.c.l.b16 %v3338_v54 }
 0x825   :  { %v3255_v29 = vmul.f32 %v7620_v18, %v7335_v21  ;;  %v3705_v9 = vunpack.c.l.b16 %v3337_v3  ;;  %v3254_v54 = vmul.f32 %v7620_v18, %v7361_v1  ;;  %v3265_v3 = vpack.c.bf16 %v3253_v4, %v3253_v4 }
 0x826   :  { %8476 = vst [vmem:[#allocation10_spill] sm:$0xff] %v7601_v57  ;;  %v5711_v1 = vmov 6   ;;  %v3305_v57 = vmul.f32 %v7427_v56, %v7404_v50 }
 0x827   :  { %v3400_v38 = vpop.permute.xlu0 %3399  ;;  %v3402_v60 = vpop.permute.xlu1 %3401  ;;  %3419 = vrot.lane.b32.xlu2 %v7509_v10, %s5680_s15  ;;  %3471 = vrot.lane.b32.xlu0 %v7522_v43, %s5678_s0  ;;  %v3717_v22 = vpack.c.b16 %v3706_v46, %v3705_v9  ;;  %v3267_v21 = vpack.c.bf16 %v3255_v29, %v3255_v29  ;;  %v3251_v29 = vmul.f32 %v7620_v18, %v7367_v62 }
 0x828   :  { %v3425_v7 = vmul.f32 %v7534_v37, %v3400_v38  ;;  %v3426_v2 = vmul.f32 %v7534_v37, %v3402_v60  ;;  %3367 = vrot.lane.b32.xlu1 %v7460_v53, %s5671_s28  ;;  %4052 = vmatpush.bf16.msrb.mxu2 %v3719_v26  ;;  %v3450_v26 = vpop.permute.xlu2 %3449 }
 0x829   :  { %5540 = vset.pattern.permute.xlu0 %v5711_v1  ;;  %5541 = vset.pattern.permute.xlu1 %v5711_v1  ;;  %v3639_v46 = vunpack.c.l.b16 %v3267_v21  ;;  %v3475_v9 = vmul.f32 %v7564_v47, %v3450_v26 }
 0x82a   :  { %v3437_v12 = vpack.c.bf16 %v3425_v7, %v3425_v7  ;;  %v3438_v10 = vpack.c.bf16 %v3426_v2, %v3426_v2  ;;  %v3489_v2 = vpack.c.bf16 %v3477_v28, %v3477_v28  ;;  %5542 = vset.pattern.permute.xlu2 %v5711_v1  ;;  %v3155_v28 = vmul.f32 %v7449_v36, %v7402_v15 }
 0x82b   :  { %v3249_v15 = vmul.f32 %v7620_v18, %v7373_v24 }
 0x82c   :  { %v7625_v13 = vunpack.c.l.b16 %v3437_v12  ;;  %v7627_v38 = vunpack.c.l.b16 %v3438_v10  ;;  %4053 = vmatpush.bf16.msrb.mxu2 %v3718_v5  ;;  %v3252_v12 = vmul.f32 %v7620_v18, %v7387_v31 }
 0x82e   :  { %8477 = vst [vmem:[#allocation39_spill] sm:$0xff] %v7625_v13  ;;  %v3264_v31 = vpack.c.bf16 %v3252_v12, %v3252_v12 }
 0x82f   :  { %8478 = vst [vmem:[#allocation12_spill] sm:$0xff] %v7627_v38  ;;  %v3456_v7 = vpop.permute.xlu0 %3455  ;;  %v3238_v32 = vpop.permute.xlu1 %3237  ;;  %3513 = vrot.lane.b32.xlu2 %v7353_v27, %s5679_s14  ;;  %3417 = vrot.lane.b32.xlu0 %v7460_v53, %s5680_s15  ;;  %v3266_v53 = vpack.c.bf16 %v3254_v54, %v3254_v54  ;;  %v7793_v54 = vld [vmem:[%s8326_s4 + $0x58] sm:$0xff] }
 0x830   :  { %v3478_v49 = vmul.f32 %v7564_v47, %v3456_v7  ;;  %v3256_v30 = vmul.f32 %v7620_v18, %v3238_v32  ;;  %3511 = vrot.lane.b32.xlu1 %v7104_v35, %s5679_s14  ;;  %4054 = vmatpush.bf16.msrb.mxu2 %v3717_v22  ;;  %v7649_v35 = vunpack.c.l.b16 %v3489_v2  ;;  %v3637_v7 = vunpack.c.l.b16 %v3265_v3  ;;  %v7668_v12 = vpop.permute.xlu2 %3287 }
 0x831   :  { %v3250_v32 = vmul.f32 %v7620_v18, %v7394_v61  ;;  %v3638_v62 = vunpack.c.l.b16 %v3266_v53  ;;  %v3167_v2 = vpack.c.bf16 %v3155_v28, %v3155_v28  ;;  %v3487_v3 = vpack.c.bf16 %v3475_v9, %v3475_v9 }
 0x832   :  { %v3490_v10 = vpack.c.bf16 %v3478_v49, %v3478_v49  ;;  %v3268_v5 = vpack.c.bf16 %v3256_v30, %v3256_v30  ;;  %8479 = vst [vmem:[#allocation40_spill] sm:$0xff] %v7649_v35  ;;  %v3263_v49 = vpack.c.bf16 %v3251_v29, %v3251_v29  ;;  %v3261_v28 = vpack.c.bf16 %v3249_v15, %v3249_v15 }
 0x833   :  { %v3647_v24 = vpack.c.b16 %v3638_v62, %v3637_v7  ;;  %v3205_v9 = vmul.f32 %v7340_v40, %v7396_v16  ;;  %v8488_v35 = vmov 14  }
 0x834   :  { %v7652_v4 = vunpack.c.l.b16 %v3490_v10  ;;  %v3640_v22 = vunpack.c.l.b16 %v3268_v5  ;;  %v3636_v10 = vunpack.c.l.b16 %v3264_v31  ;;  %v3262_v5 = vpack.c.bf16 %v3250_v32, %v3250_v32  ;;  %v4157_v32 = vld [vmem:[%s8326_s4 + $0x70] sm:$0xff] }
 0x835   :  { %v3635_v29 = vunpack.c.l.b16 %v3263_v49  ;;  %v3217_v62 = vpack.c.bf16 %v3205_v9, %v3205_v9 }
 0x836   :  { %8480 = vst [vmem:[#allocation11_spill] sm:$0xff] %v7652_v4  ;;  %v3648_v21 = vpack.c.b16 %v3640_v22, %v3639_v46  ;;  %v7672_v22 = vunpack.c.l.b16 %v3167_v2  ;;  %v3634_v31 = vunpack.c.l.b16 %v3262_v5 }
 0x837   :  { %v3452_v30 = vpop.permute.xlu0 %3451  ;;  %v3138_v26 = vpop.permute.xlu1 %3137  ;;  %3245 = vrot.lane.b32.xlu2 %v7522_v43, %s5681_s16  ;;  %3357 = vrot.lane.b32.xlu0 %v7189_v55, %s5671_s28  ;;  %v3646_v7 = vpack.c.b16 %v3636_v10, %v3635_v29 }
 0x838   :  { %v3476_v61 = vmul.f32 %v7564_v47, %v3452_v30  ;;  %v3156_v1 = vmul.f32 %v7449_v36, %v3138_v26  ;;  %3363 = vrot.lane.b32.xlu1 %v7353_v27, %s5671_s28  ;;  %4009 = vmatpush.bf16.msrb.mxu3 %v3648_v21  ;;  %v7674_v30 = vunpack.c.l.b16 %v3487_v3  ;;  %v3431_v27 = vmul.f32 %v7534_v37, %v7536_v33 }
 0x839   :  { %v3633_v33 = vunpack.c.l.b16 %v3261_v28 }
 0x83a   :  { %v3488_v53 = vpack.c.bf16 %v3476_v61, %v3476_v61  ;;  %v3168_v46 = vpack.c.bf16 %v3156_v1, %v3156_v1  ;;  %8481 = vst [vmem:[#allocation37_spill] sm:$0xff] %v7674_v30  ;;  %v3443_v2 = vpack.c.bf16 %v3431_v27, %v3431_v27 }
 0x83c   :  { %v7678_v21 = vunpack.c.l.b16 %v3488_v53  ;;  %v7680_v26 = vunpack.c.l.b16 %v3168_v46  ;;  %4010 = vmatpush.bf16.msrb.mxu3 %v3647_v24  ;;  %v3645_v24 = vpack.c.b16 %v3634_v31, %v3633_v33  ;;  %v7696_v53 = vunpack.c.l.b16 %v3217_v62  ;;  %v7726_v33 = vld [vmem:[%s8326_s4 + $0x10] sm:$0xff] }
 0x83d   :  { %v3481_v46 = vmul.f32 %v7564_v47, %v7553_v48  ;;  %8485 = vst [vmem:[#allocation18_spill] sm:$0xff] %v7726_v33 }
 0x83e   :  { %8482 = vst [vmem:[#allocation36_spill] sm:$0xff] %v7678_v21 }
 0x83f   :  { %v3188_v49 = vpop.permute.xlu0 %3187  ;;  %v3414_v15 = vpop.permute.xlu1 %3413  ;;  %3415 = vrot.lane.b32.xlu2 %v7414_v25, %s5680_s15  ;;  %3421 = vrot.lane.b32.xlu0 %v7522_v43, %s5680_s15  ;;  %v7698_v25 = vunpack.c.l.b16 %v3443_v2  ;;  %v4158_v2 = vld [vmem:[%s8326_s4 + $0x78] sm:$0xff] }
 0x840   :  { %v3206_v3 = vmul.f32 %v7340_v40, %v3188_v49  ;;  %v3432_v61 = vmul.f32 %v7534_v37, %v3414_v15  ;;  %3507 = vrot.lane.b32.xlu1 %v7189_v55, %s5679_s14  ;;  %4011 = vmatpush.bf16.msrb.mxu3 %v3646_v7  ;;  %v3493_v7 = vpack.c.bf16 %v3481_v46, %v3481_v46 }
 0x841   :  { %v7694_v1 = vpop.permute.xlu2 %3189  ;;  %8483 = vst [vmem:[#allocation27_spill] sm:$0xff] %v7698_v25 }
 0x842   :  { %v3218_v10 = vpack.c.bf16 %v3206_v3, %v3206_v3  ;;  %v3444_v5 = vpack.c.bf16 %v3432_v61, %v3432_v61  ;;  %v7719_v49 = vunpack.c.l.b16 %v3493_v7  ;;  %v8379_v3 = vmov 14   ;;  %v7775_v7 = vld [vmem:[%s8326_s4 + $0x8] sm:$0xff] }
 0x843   :  { %8487 = vst [vmem:[#allocation29_spill] sm:$0xff] %v7775_v7 }
 0x844   :  { %v7702_v29 = vunpack.c.l.b16 %v3218_v10  ;;  %v7704_v28 = vunpack.c.l.b16 %v3444_v5  ;;  %4012 = vmatpush.bf16.msrb.mxu3 %v3645_v24  ;;  %v7750_v10 = vld [vmem:[%s8326_s4 + $0x18] sm:$0xff] }
 0x846   :  { %8484 = vst [vmem:[#allocation19_spill] sm:$0xff] %v7704_v28 }
 0x847   :  { %v3464_v27 = vpop.permute.xlu1 %3463  ;;  %3521 = vrot.lane.b32.xlu2 %v7522_v43, %s5679_s14  ;;  %3505 = vrot.lane.b32.xlu0 %v7159_v17, %s5679_s14 }
 0x848   :  { %v3482_v48 = vmul.f32 %v7564_v47, %v3464_v27  ;;  %3371 = vrot.lane.b32.xlu1 %v7522_v43, %s5671_s28  ;;  %v7770_v27 = vld [vmem:[%s8326_s4] sm:$0xff] }
 0x849   :  { %v7717_v31 = vpop.permute.xlu2 %3465 }
 0x84a   :  { %v3494_v62 = vpack.c.bf16 %v3482_v48, %v3482_v48  ;;  %v8377_v48 = vmov 15  }
 0x84c   :  { %v7721_v15 = vunpack.c.l.b16 %v3494_v62 }
 0x84f   :  { %3509 = vrot.lane.b32.xlu2 %v7162_v34, %s5679_s14  ;;  %3905 = vperm.xlu0 %5540, %v7726_v33  }
 0x850   :  { %3359 = vrot.lane.b32.xlu1 %v7162_v34, %s5671_s28 }
 0x851   :  { %v3292_v43 = vpop.permute.xlu2 %3291 }
 0x857   :  { %3503 = vrot.lane.b32.xlu2 %v7038_v19, %s5679_s14  ;;  %5544 = vset.pattern.permute.xlu0 %v8379_v3  ;;  %v7755_v19 = vld [vmem:[%s8326_s4 + $0x38] sm:$0xff] }
 0x858   :  { %3499 = vrot.lane.b32.xlu1 %v7211_v45, %s5679_s14  ;;  %4236 = vperm.xlu0 %5544, %v4158_v2  }
 0x859   :  { %v7743_v61 = vpop.permute.xlu2 %3241  ;;  %v7745_v24 = vpop.permute.xlu0 %3139 }
 0x85a   :  { %v3290_v34 = vpop.permute.xlu1 %3289 }
 0x85b   :  { %v3307_v16 = vmul.f32 %v7427_v56, %v3290_v34 }
 0x85d   :  { %v3319_v38 = vpack.c.bf16 %v3307_v16, %v3307_v16 }
 0x85f   :  { %3501 = vrot.lane.b32.xlu2 %v7265_v23, %s5679_s14  ;;  %v4155_v23 = vld [vmem:[%s8326_s4 + $0x60] sm:$0xff] }
 0x860   :  { %3910 = vperm.xlu1 %5541, %v7750_v10   ;;  %4196 = vperm.xlu0 %5544, %v7755_v19  }
 0x861   :  { %v7761_v45 = vpop.permute.xlu2 %3517  ;;  %v7763_v5 = vpop.permute.xlu0 %3365 }
 0x862   :  { %8486 = vst [vmem:[#allocation28_spill] sm:$0xff] %v7763_v5  ;;  %v7765_v46 = vpop.permute.xlu1 %3239 }
 0x867   :  { %3895 = vperm.xlu2 %5542, %v7770_v27  }
 0x868   :  { %3900 = vperm.xlu1 %5541, %v7775_v7   ;;  %5554 = vset.pattern.permute.xlu0 %v8377_v48 }
 0x869   :  { %v3194_v62 = vpop.permute.xlu2 %3193  ;;  %v3192_v60 = vpop.permute.xlu0 %3191  ;;  %4304 = vperm.xlu0 %5554, %v4155_v23  }
 0x86a   :  { %v7783_v59 = vpop.permute.xlu1 %3515  ;;  %v3208_v25 = vmul.f32 %v7340_v40, %v3192_v60 }
 0x86f   :  { %5543 = vset.pattern.permute.xlu2 %v8379_v3 }
 0x870   :  { %5545 = vset.pattern.permute.xlu1 %v8377_v48  ;;  %4231 = vperm.xlu2 %5543, %v4157_v32  }
 0x871   :  { %4312 = vperm.xlu1 %5545, %v4157_v32   ;;  %v7795_v9 = vpop.permute.xlu2 %3469  ;;  %v7797_v51 = vpop.permute.xlu0 %3467  ;;  %4300 = vperm.xlu0 %5554, %v7793_v54   ;;  %v7810_v32 = vld [vmem:[%s8326_s4 + $0x40] sm:$0xff] }
 0x872   :  { %v7800_v17 = vpop.permute.xlu1 %3141 }
 0x878   :  { %5546 = vset.pattern.permute.xlu2 %v8377_v48  ;;  %v3308_v48 = vmul.f32 %v7427_v56, %v3292_v43  ;;  %v3303_v43 = vmul.f32 %v7427_v56, %v7411_v8 }
 0x879   :  { %5547 = vset.pattern.permute.xlu1 %v8379_v3  ;;  %4316 = vperm.xlu2 %5546, %v4158_v2   ;;  %v3296_v55 = vpop.permute.xlu2 %3295  ;;  %v7805_v7 = vpop.permute.xlu0 %3143  ;;  %v3306_v2 = vmul.f32 %v7427_v56, %v7668_v12 }
 0x87a   :  { %v3310_v33 = vmul.f32 %v7427_v56, %v3296_v55  ;;  %4221 = vperm.xlu1 %5547, %v4155_v23   ;;  %v3294_v13 = vpop.permute.xlu1 %3293  ;;  %4288 = vperm.xlu0 %5554, %v7810_v32   ;;  %v3320_v30 = vpack.c.bf16 %v3308_v48, %v3308_v48  ;;  %v4156_v23 = vld [vmem:[%s8326_s4 + $0x68] sm:$0xff]  ;;  %v3317_v48 = vpack.c.bf16 %v3305_v57, %v3305_v57 }
 0x87b   :  { %v3309_v34 = vmul.f32 %v7427_v56, %v3294_v13  ;;  %v3318_v13 = vpack.c.bf16 %v3306_v2, %v3306_v2  ;;  %v3315_v8 = vpack.c.bf16 %v3303_v43, %v3303_v43  ;;  %v3209_v2 = vmul.f32 %v7340_v40, %v3194_v62 }
 0x87c   :  { %v3322_v3 = vpack.c.bf16 %v3310_v33, %v3310_v33  ;;  %v3677_v33 = vunpack.c.l.b16 %v3319_v38  ;;  %v3675_v4 = vunpack.c.l.b16 %v3317_v48 }
 0x87d   :  { %v3321_v5 = vpack.c.bf16 %v3309_v34, %v3309_v34  ;;  %v3678_v34 = vunpack.c.l.b16 %v3320_v30  ;;  %v3676_v38 = vunpack.c.l.b16 %v3318_v13  ;;  %v3673_v28 = vunpack.c.l.b16 %v3315_v8 }
 0x87e   :  { %v3680_v58 = vunpack.c.l.b16 %v3322_v3  ;;  %v8490_v3 = vmov 15   ;;  %v3207_v30 = vmul.f32 %v7340_v40, %v7694_v1  ;;  %v3220_v13 = vpack.c.bf16 %v3208_v25, %v3208_v25 }
 0x87f   :  { %v3679_v55 = vunpack.c.l.b16 %v3321_v5  ;;  %v3304_v5 = vmul.f32 %v7427_v56, %v7383_v41  ;;  %v3684_v41 = vpack.c.b16 %v3676_v38, %v3675_v4  ;;  %v3257_v38 = vmul.f32 %v7620_v18, %v7765_v46 }
 0x880   :  { %v3219_v1 = vpack.c.bf16 %v3207_v30, %v3207_v30  ;;  %v3606_v25 = vunpack.c.l.b16 %v3220_v13  ;;  %v3157_v46 = vmul.f32 %v7449_v36, %v7745_v24  ;;  %v3485_v24 = vmul.f32 %v7564_v47, %v7795_v9 }
 0x881   :  { %v3686_v21 = vpack.c.b16 %v3680_v58, %v3679_v55  ;;  %5548 = vset.pattern.permute.xlu2 %v8488_v35  ;;  %v7826_v12 = vpop.permute.xlu2 %3419  ;;  %v7828_v16 = vpop.permute.xlu0 %3369  ;;  %v3685_v58 = vpack.c.b16 %v3678_v34, %v3677_v33  ;;  %v3316_v55 = vpack.c.bf16 %v3304_v5, %v3304_v5  ;;  %v7850_v33 = vld [vmem:[%s8326_s4 + $0x20] sm:$0xff]  ;;  %v3159_v34 = vmul.f32 %v7449_v36, %v7805_v7  ;;  %v5209_v7 = vld [vmem:[%s8330_s5 + $0x104] sm:$0xf0] }
 0x882   :  { %8489 = vst [vmem:[#allocation33_spill] sm:$0xff] %v7828_v16  ;;  %5549 = vset.pattern.permute.xlu1 %v8490_v3  ;;  %v3244_v50 = vpop.permute.xlu1 %3243  ;;  %4226 = vperm.xlu2 %5548, %v4156_v23   ;;  %v4153_v16 = vld [vmem:[%s8326_s4 + $0x50] sm:$0xff] }
 0x883   :  { %4308 = vperm.xlu1 %5549, %v4156_v23   ;;  %4028 = vmatpush.bf16.msra.mxu1 %v3686_v21  ;;  %v3221_v21 = vpack.c.bf16 %v3209_v2, %v3209_v2  ;;  %v3674_v43 = vunpack.c.l.b16 %v3316_v55  ;;  %v3605_v55 = vunpack.c.l.b16 %v3219_v1  ;;  %v3154_v1 = vmul.f32 %v7449_v36, %v7416_v0 }
 0x884   :  { %4272 = vperm.xlu0 %5554, %v7850_v33   ;;  %v3484_v0 = vmul.f32 %v7564_v47, %v7797_v51  ;;  %v5400_v51 = vld [vmem:[%s8330_s5 + $0xe4] sm:$0xf] }
 0x885   :  { %v3683_v4 = vpack.c.b16 %v3674_v43, %v3673_v28  ;;  %v3607_v5 = vunpack.c.l.b16 %v3221_v21  ;;  %v3258_v28 = vmul.f32 %v7620_v18, %v7743_v61  ;;  %v3613_v43 = vpack.c.b16 %v3606_v25, %v3605_v55 }
 0x886   :  { %v3166_v55 = vpack.c.bf16 %v3154_v1, %v3154_v1 }
 0x887   :  { %4029 = vmatpush.bf16.msra.mxu1 %v3685_v58 }
 0x889   :  { %v7838_v56 = vpop.permute.xlu2 %3513  ;;  %v3196_v57 = vpop.permute.xlu0 %3195 }
 0x88a   :  { %v3210_v62 = vmul.f32 %v7340_v40, %v3196_v57  ;;  %v7843_v23 = vpop.permute.xlu1 %3519  ;;  %4211 = vperm.xlu2 %5548, %v4153_v16   ;;  %v3259_v40 = vmul.f32 %v7620_v18, %v3244_v50  ;;  %v3158_v50 = vmul.f32 %v7449_v36, %v7800_v17  ;;  %v3171_v17 = vpack.c.bf16 %v3159_v34, %v3159_v34 }
 0x88b   :  { %5550 = vset.pattern.permute.xlu1 %v8488_v35  ;;  %4030 = vmatpush.bf16.msra.mxu1 %v3684_v41  ;;  %v3483_v34 = vmul.f32 %v7564_v47, %v7717_v31  ;;  %v5201_v31 = vld [vmem:[%s8330_s5 + $0xfc] sm:$0xf0] }
 0x88c   :  { %v3222_v60 = vpack.c.bf16 %v3210_v62, %v3210_v62  ;;  %4216 = vperm.xlu1 %5550, %v7793_v54   ;;  %v5401_v54 = vld [vmem:[%s8330_s5 + $0xec] sm:$0xf]  ;;  %v3271_v41 = vpack.c.bf16 %v3259_v40, %v3259_v40  ;;  %v8491_v62 = vpack.c.b16 %v7451_v42, %v7458_v6  ;;  %4268 = vperm.xlu0 %5554, %v7750_v10  }
 0x88d   :  { %v5212_v61 = vor.u32 %v5401_v54, %v5209_v7  ;;  %v3270_v42 = vpack.c.bf16 %v3258_v28, %v3258_v28  ;;  %v3169_v6 = vpack.c.bf16 %v3157_v46, %v3157_v46 }
 0x88e   :  { %v3608_v48 = vunpack.c.l.b16 %v3222_v60  ;;  %v3170_v60 = vpack.c.bf16 %v3158_v50, %v3158_v50  ;;  %v3497_v50 = vpack.c.bf16 %v3485_v24, %v3485_v24 }
 0x88f   :  { %4031 = vmatpush.bf16.msra.mxu1 %v3683_v4  ;;  %4055 = vmatmul.bf16.vlgmr.msrb.gmra.mxu2 %v5212_v61  ;;  %v7919_v61 = vld [vmem:[%s8325_s2 + $0x8] ss:$0 sm:$0xff] }
 0x890   :  { %v3614_v8 = vpack.c.b16 %v3608_v48, %v3607_v5  ;;  %v3643_v5 = vunpack.c.l.b16 %v3271_v41  ;;  %v3642_v41 = vunpack.c.l.b16 %v3270_v42 }
 0x891   :  { %v3246_v58 = vpop.permute.xlu2 %3245  ;;  %v7865_v2 = vpop.permute.xlu0 %3361 }
 0x892   :  { %v3260_v57 = vmul.f32 %v7620_v18, %v3246_v58  ;;  %v3146_v30 = vpop.permute.xlu1 %3145  ;;  %5551 = vset.pattern.permute.xlu2 %v8490_v3  ;;  %4013 = vmatpush.bf16.msrb.mxu3 %v3614_v8  ;;  %v3269_v18 = vpack.c.bf16 %v3257_v38, %v3257_v38  ;;  %v3570_v8 = vunpack.c.l.b16 %v3170_v60 }
 0x893   :  { %v3160_v21 = vmul.f32 %v7449_v36, %v3146_v30  ;;  %4032 = vmatpush.bf16.msra.mxu1 %v8491_v62  ;;  %4296 = vperm.xlu2 %5551, %v4153_v16   ;;  %v3571_v16 = vunpack.c.l.b16 %v3171_v17  ;;  %v3495_v30 = vpack.c.bf16 %v3483_v34, %v3483_v34  ;;  %v3823_v62 = vunpack.c.l.b16 %v3497_v50  ;;  %v4149_v34 = vld [vmem:[%s8326_s4 + $0x30] sm:$0xff] }
 0x894   :  { %v3272_v13 = vpack.c.bf16 %v3260_v57, %v3260_v57  ;;  %4201 = vperm.xlu1 %5550, %v7810_v32   ;;  %v8492_v32 = vpack.c.b16 %v7501_v52, %v7507_v39  ;;  %v3641_v25 = vunpack.c.l.b16 %v3269_v18  ;;  %v8493_v52 = vpack.c.b16 %v7702_v29, %v7696_v53  ;;  %v4152_v39 = vld [vmem:[%s8326_s4 + $0x48] sm:$0xff]  ;;  %v5404_v29 = vld [vmem:[%s8330_s5 + $0x100] sm:$0xf0]  ;;  %4256 = vperm.xlu0 %5554, %v7770_v27  }
 0x895   :  { %v3172_v4 = vpack.c.bf16 %v3160_v21, %v3160_v21  ;;  %v3569_v57 = vunpack.c.l.b16 %v3169_v6  ;;  %v5207_v53 = vld [vmem:[%s8330_s5 + $0xe8] sm:$0xf]  ;;  %v5204_v21 = vor.u32 %v5400_v51, %v5201_v31  ;;  %v8494_v18 = vpack.c.b16 %v7456_v20, %v7453_v44  ;;  %v5237_v44 = vld [vmem:[%s8330_s5 + $0x13c] sm:$0xf0] }
 0x896   :  { %v3644_v40 = vunpack.c.l.b16 %v3272_v13  ;;  %4014 = vmatpush.bf16.msrb.mxu3 %v3613_v43  ;;  %v3649_v46 = vpack.c.b16 %v3642_v41, %v3641_v25  ;;  %v3535_v43 = vmul.f32 %v7919_v61, %v7843_v23  ;;  %v5208_v60 = vor.u32 %v5404_v29, %v5207_v53  ;;  %v5199_v53 = vld [vmem:[%s8330_s5 + $0xe0] sm:$0xf]  ;;  %v5229_v29 = vld [vmem:[%s8330_s5 + $0x134] sm:$0xf0] }
 0x897   :  { %v3572_v48 = vunpack.c.l.b16 %v3172_v4  ;;  %4033 = vmatpush.bf16.msra.mxu1 %v8492_v32  ;;  %v3577_v17 = vpack.c.b16 %v3570_v8, %v3569_v57  ;;  %v3533_v23 = vmul.f32 %v7919_v61, %v7783_v59  ;;  %v3821_v20 = vunpack.c.l.b16 %v3495_v30 }
 0x898   :  { %v3650_v9 = vpack.c.b16 %v3644_v40, %v3643_v5  ;;  %v5408_v5 = vld [vmem:[%s8330_s5 + $0x124] sm:$0xf]  ;;  %v3566_v40 = vunpack.c.l.b16 %v3166_v55  ;;  %v8495_v25 = vpack.c.b16 %v7680_v26, %v7672_v22  ;;  %v8496_v57 = vpack.c.b16 %v7721_v15, %v7719_v49  ;;  %v5403_v49 = vld [vmem:[%s8330_s5 + $0xf8] sm:$0xf0]  ;;  %v5235_v15 = vld [vmem:[%s8330_s5 + $0x120] sm:$0xf] }
 0x899   :  { %v3578_v54 = vpack.c.b16 %v3572_v48, %v3571_v16  ;;  %v7891_v38 = vpop.permute.xlu2 %3415  ;;  %v3472_v28 = vpop.permute.xlu0 %3471  ;;  %v3547_v16 = vpack.c.bf16 %v3535_v43, %v3535_v43 }
 0x89a   :  { %v3486_v58 = vmul.f32 %v7564_v47, %v3472_v28  ;;  %v7894_v7 = vpop.permute.xlu1 %3367  ;;  %4015 = vmatpush.bf16.msrb.mxu3 %v8493_v52  ;;  %v3153_v47 = vmul.f32 %v7449_v36, %v7409_v63  ;;  %v3496_v63 = vpack.c.bf16 %v3484_v0, %v3484_v0  ;;  %v5240_v0 = vor.u32 %v5408_v5, %v5237_v44  ;;  %v8501_v5 = vld [vmem:[#allocation20_spill] sm:$0xff]  ;;  %v8505_v44 = vld [vmem:[#allocation27_spill] sm:$0xff] }
 0x89b   :  { %3992 = vmatpush.bf16.msrb.mxu0 %v3578_v54  ;;  %4034 = vmatpush.bf16.msra.mxu1 %v3650_v9  ;;  %v3534_v9 = vmul.f32 %v7919_v61, %v7761_v45  ;;  %v3545_v28 = vpack.c.bf16 %v3533_v23, %v3533_v23  ;;  %v3532_v45 = vmul.f32 %v7919_v61, %v7838_v56  ;;  %v5407_v56 = vld [vmem:[%s8330_s5 + $0x11c] sm:$0xf] }
 0x89c   :  { %v3498_v36 = vpack.c.bf16 %v3486_v58, %v3486_v58  ;;  %5552 = vset.pattern.permute.xlu2 %v8488_v35  ;;  %5553 = vset.pattern.permute.xlu1 %v8490_v3  ;;  %v3165_v4 = vpack.c.bf16 %v3153_v47, %v3153_v47  ;;  %v3822_v1 = vunpack.c.l.b16 %v3496_v63  ;;  %v3859_v58 = vunpack.c.l.b16 %v3547_v16  ;;  %v8497_v63 = vld [vmem:[#allocation23_spill] sm:$0xff] }
 0x89d   :  { %4206 = vperm.xlu2 %5552, %v4152_v39   ;;  %4292 = vperm.xlu1 %5553, %v4152_v39   ;;  %v3546_v51 = vpack.c.bf16 %v3534_v9, %v3534_v9  ;;  %v3857_v22 = vunpack.c.l.b16 %v3545_v28  ;;  %v5232_v43 = vor.u32 %v5407_v56, %v5229_v29  ;;  %v8503_v23 = vpack.c.b16 %v7599_v11, %v7603_v14  ;;  %v8507_v9 = vld [vmem:[#allocation11_spill] sm:$0xff]  ;;  %v8511_v28 = vld [vmem:[#allocation22_spill] sm:$0xff]  ;;  %v8515_v56 = vld [vmem:[#allocation37_spill] sm:$0xff] }
 0x89e   :  { %v3824_v13 = vunpack.c.l.b16 %v3498_v36  ;;  %4016 = vmatpush.bf16.msrb.mxu3 %v8494_v18  ;;  %v3565_v59 = vunpack.c.l.b16 %v3165_v4  ;;  %v3829_v8 = vpack.c.b16 %v3822_v1, %v3821_v20  ;;  %v8498_v36 = vld [vmem:[#allocation17_spill] sm:$0xff]  ;;  %v3433_v11 = vmul.f32 %v7534_v37, %v7891_v38 }
 0x89f   :  { %3993 = vmatpush.bf16.msrb.mxu0 %v3577_v17  ;;  %4035 = vmatpush.bf16.msra.mxu1 %v3649_v46  ;;  %v3858_v30 = vunpack.c.l.b16 %v3546_v51  ;;  %v8499_v46 = vpack.c.b16 %v8497_v63, %v8498_v36  ;;  %v5411_v17 = vld [vmem:[%s8330_s5 + $0x138] sm:$0xf0]  ;;  %v8518_v36 = vld [vmem:[#allocation13_spill] sm:$0xff] }
 0x8a0   :  { %v3830_v24 = vpack.c.b16 %v3824_v13, %v3823_v62  ;;  %4060 = vmatmul.bf16.gmra.mxu2 %v5240_v0  ;;  %v3575_v50 = vpack.c.b16 %v3566_v40, %v3565_v59  ;;  %v3435_v13 = vmul.f32 %v7534_v37, %v7826_v12  ;;  %v5236_v4 = vor.u32 %v5411_v17, %v5235_v15  ;;  %v8504_v12 = vld [vmem:[#allocation19_spill] sm:$0xff]  ;;  %v8517_v63 = vld [vmem:[#allocation10_spill] sm:$0xff] }
 0x8a1   :  { %v3522_v42 = vpop.permute.xlu2 %3521  ;;  %v3418_v6 = vpop.permute.xlu0 %3417  ;;  %4017 = vmatmul.bf16.vlgmr.msrb.gmra.mxu3 %v5204_v21  ;;  %v3544_v21 = vpack.c.bf16 %v3532_v45, %v3532_v45  ;;  %v3865_v62 = vpack.c.b16 %v3858_v30, %v3857_v22  ;;  %v8506_v20 = vpack.c.b16 %v8504_v12, %v8505_v44  ;;  %v5666_v45 = vld [vmem:[%s8325_s2 + $0x5] ss:$0 sm:$0xff]  ;;  %v5402_v44 = vld [vmem:[%s8330_s5 + $0xf4] sm:$0xf] }
 0x8a2   :  { %v3536_v48 = vmul.f32 %v7919_v61, %v3522_v42  ;;  %v3512_v32 = vpop.permute.xlu1 %3511  ;;  %4085 = vmatpush.bf16.msra.mxu3 %v3830_v24  ;;  %4036 = vmatmul.bf16.vlgmr.msra.gmra.mxu1 %v5208_v60  ;;  %v5200_v60 = vor.u32 %v5403_v49, %v5199_v53  ;;  %v8500_v24 = vld [vmem:[#allocation26_spill] sm:$0xff]  ;;  %v3447_v16 = vpack.c.bf16 %v3435_v13, %v3435_v13  ;;  %v8514_v53 = vld [vmem:[#allocation36_spill] sm:$0xff] }
 0x8a3   :  { %3994 = vmatpush.bf16.msrb.mxu0 %v8495_v25  ;;  %v3531_v39 = vmul.f32 %v7919_v61, %v3512_v32  ;;  %v8502_v40 = vpack.c.b16 %v8500_v24, %v8501_v5  ;;  %v3856_v42 = vunpack.c.l.b16 %v3544_v21  ;;  %v8508_v25 = vld [vmem:[#allocation40_spill] sm:$0xff]  ;;  %v8516_v29 = vpack.c.b16 %v8514_v53, %v8515_v56  ;;  %v5227_v5 = vld [vmem:[%s8330_s5 + $0x118] sm:$0xf] }
 0x8a4   :  { %v3548_v54 = vpack.c.bf16 %v3536_v48, %v3536_v48  ;;  %v3787_v38 = vunpack.c.l.b16 %v3447_v16  ;;  %v3384_v49 = vmul.f32 %v5666_v45, %v7894_v7  ;;  %v5410_v7 = vld [vmem:[%s8330_s5 + $0x130] sm:$0xf0] }
 0x8a5   :  { %4191 = vperm.xlu2 %5552, %v4149_v34   ;;  %4280 = vperm.xlu1 %5553, %v4149_v34   ;;  %v3543_v55 = vpack.c.bf16 %v3531_v39, %v3531_v39 }
 0x8a6   :  { %v3860_v52 = vunpack.c.l.b16 %v3548_v54  ;;  %4086 = vmatpush.bf16.msra.mxu3 %v3829_v8  ;;  %v8509_v8 = vpack.c.b16 %v8507_v9, %v8508_v25  ;;  %v8510_v54 = vld [vmem:[#allocation16_spill] sm:$0xff]  ;;  %v8524_v25 = vld [vmem:[#allocation18_spill] sm:$0xff] }
 0x8a7   :  { %3995 = vmatpush.bf16.msrb.mxu0 %v3575_v50  ;;  %v3855_v18 = vunpack.c.l.b16 %v3543_v55  ;;  %v8512_v50 = vpack.c.b16 %v8510_v54, %v8511_v28 }
 0x8a8   :  { %v3866_v31 = vpack.c.b16 %v3860_v52, %v3859_v58  ;;  %v4148_v58 = vld [vmem:[%s8326_s4 + $0x28] sm:$0xff] }
 0x8a9   :  { %v3510_v26 = vpop.permute.xlu2 %3509  ;;  %v7949_v47 = vpop.permute.xlu0 %3357  ;;  %v3864_v48 = vpack.c.b16 %v3856_v42, %v3855_v18  ;;  %v8522_v42 = vld [vmem:[#allocation39_spill] sm:$0xff] }
 0x8aa   :  { %v7951_v41 = vpop.permute.xlu1 %3363  ;;  %4087 = vmatpush.bf16.msra.mxu3 %v8496_v57  ;;  %4106 = vmatpush.bf16.msrb.mxu1 %v3866_v31  ;;  %v3530_v1 = vmul.f32 %v7919_v61, %v3510_v26  ;;  %v8513_v31 = vld [vmem:[#allocation33_spill] sm:$0xff]  ;;  %v3445_v26 = vpack.c.bf16 %v3433_v11, %v3433_v11 }
 0x8ab   :  { %3996 = vmatpush.bf16.msrb.mxu0 %v8499_v46  ;;  %v3385_v22 = vmul.f32 %v5666_v45, %v8513_v31  ;;  %v8519_v46 = vpack.c.b16 %v8517_v63, %v8518_v36  ;;  %v3382_v16 = vmul.f32 %v5666_v45, %v7951_v41  ;;  %v5409_v63 = vld [vmem:[%s8330_s5 + $0x12c] sm:$0xf]  ;;  %v5245_v36 = vld [vmem:[%s8330_s5 + $0x144] sm:$0xf0] }
 0x8ac   :  { %v3542_v14 = vpack.c.bf16 %v3530_v1, %v3530_v1  ;;  %v3785_v1 = vunpack.c.l.b16 %v3445_v26 }
 0x8ad   :  { %5555 = vset.pattern.permute.xlu2 %v8490_v3  ;;  %5556 = vset.pattern.permute.xlu1 %v8488_v35  ;;  %v3394_v28 = vpack.c.bf16 %v3382_v16, %v3382_v16 }
 0x8ae   :  { %4284 = vperm.xlu2 %5555, %v7755_v19   ;;  %4181 = vperm.xlu1 %5556, %v7850_v33   ;;  %v3434_v19 = vmul.f32 %v7534_v37, %v3418_v6  ;;  %v3854_v55 = vunpack.c.l.b16 %v3542_v14  ;;  %v5228_v14 = vor.u32 %v5410_v7, %v5227_v5 }
 0x8af   :  { %3997 = vmatpush.bf16.msrb.mxu0 %v8502_v40  ;;  %4088 = vmatpush.bf16.msra.mxu3 %v8503_v23  ;;  %v8521_v23 = vld [vmem:[#allocation12_spill] sm:$0xff] }
 0x8b0   :  { %4107 = vmatpush.bf16.msrb.mxu1 %v3865_v62  ;;  %v3446_v52 = vpack.c.bf16 %v3434_v19, %v3434_v19  ;;  %v8520_v62 = vld [vmem:[#allocation28_spill] sm:$0xff]  ;;  %v8523_v12 = vpack.c.b16 %v8521_v23, %v8522_v42  ;;  %v3396_v19 = vpack.c.bf16 %v3384_v49, %v3384_v49 }
 0x8b1   :  { %v3422_v33 = vpop.permute.xlu0 %3421  ;;  %4022 = vmatmul.bf16.gmra.mxu3 %v5232_v43  ;;  %v3504_v0 = vpop.permute.xlu2 %3503  ;;  %v3383_v43 = vmul.f32 %v5666_v45, %v8520_v62  ;;  %v5223_v62 = vld [vmem:[%s8330_s5 + $0xf8] sm:$0xf] }
 0x8b2   :  { %v3436_v32 = vmul.f32 %v7534_v37, %v3422_v33  ;;  %3998 = vmatmul.bf16.vlgmr.msrb.gmra.mxu0 %v5200_v60  ;;  %v3508_v34 = vpop.permute.xlu1 %3507  ;;  %4041 = vmatmul.bf16.gmra.mxu1 %v5236_v4  ;;  %v3527_v39 = vmul.f32 %v7919_v61, %v3504_v0  ;;  %v3786_v15 = vunpack.c.l.b16 %v3446_v52  ;;  %v3397_v4 = vpack.c.bf16 %v3385_v22, %v3385_v22 }
 0x8b3   :  { %4066 = vmatpush.bf16.msra.mxu0 %v8506_v20  ;;  %v3529_v59 = vmul.f32 %v7919_v61, %v3508_v34  ;;  %4089 = vmatpush.bf16.msra.mxu3 %v8509_v8  ;;  %v5217_v20 = vld [vmem:[%s8330_s5 + $0x10c] sm:$0xf0]  ;;  %v3750_v54 = vunpack.c.l.b16 %v3396_v19 }
 0x8b4   :  { %v3448_v6 = vpack.c.bf16 %v3436_v32, %v3436_v32  ;;  %4108 = vmatpush.bf16.msrb.mxu1 %v3864_v48  ;;  %v3539_v13 = vpack.c.bf16 %v3527_v39, %v3527_v39  ;;  %v3793_v33 = vpack.c.b16 %v3786_v15, %v3785_v1  ;;  %v3395_v32 = vpack.c.bf16 %v3383_v43, %v3383_v43  ;;  %v5406_v43 = vld [vmem:[%s8330_s5 + $0x110] sm:$0xf0] }
 0x8b5   :  { %v3541_v37 = vpack.c.bf16 %v3529_v59, %v3529_v59  ;;  %v3751_v0 = vunpack.c.l.b16 %v3397_v4  ;;  %v3381_v59 = vmul.f32 %v5666_v45, %v7865_v2  ;;  %v5220_v8 = vor.u32 %v5402_v44, %v5217_v20  ;;  %v5243_v4 = vld [vmem:[%s8330_s5 + $0x128] sm:$0xf] }
 0x8b6   :  { %v3788_v51 = vunpack.c.l.b16 %v3448_v6  ;;  %5557 = vset.pattern.permute.xlu2 %v8488_v35  ;;  %5558 = vset.pattern.permute.xlu1 %v8490_v3  ;;  %v3851_v34 = vunpack.c.l.b16 %v3539_v13  ;;  %v3379_v2 = vmul.f32 %v5666_v45, %v7949_v47 }
 0x8b7   :  { %4067 = vmatpush.bf16.msra.mxu0 %v8512_v50  ;;  %v3853_v57 = vunpack.c.l.b16 %v3541_v37  ;;  %4186 = vperm.xlu2 %5557, %v4148_v58   ;;  %v3393_v52 = vpack.c.bf16 %v3381_v59, %v3381_v59 }
 0x8b8   :  { %4090 = vmatpush.bf16.msra.mxu3 %v8516_v29  ;;  %v3794_v30 = vpack.c.b16 %v3788_v51, %v3787_v38  ;;  %4276 = vperm.xlu1 %5558, %v4148_v58   ;;  %v3749_v58 = vunpack.c.l.b16 %v3395_v32  ;;  %v3748_v51 = vunpack.c.l.b16 %v3394_v28  ;;  %v3391_v26 = vpack.c.bf16 %v3379_v2, %v3379_v2  ;;  %v5215_v29 = vld [vmem:[%s8330_s5 + $0xf0] sm:$0xf] }
 0x8b9   :  { %v3863_v17 = vpack.c.b16 %v3854_v55, %v3853_v57  ;;  %v3506_v21 = vpop.permute.xlu0 %3505  ;;  %v3502_v38 = vpop.permute.xlu2 %3501  ;;  %v3747_v22 = vunpack.c.l.b16 %v3393_v52 }
 0x8ba   :  { %v3528_v18 = vmul.f32 %v7919_v61, %v3506_v21  ;;  %v3372_v60 = vpop.permute.xlu1 %3371  ;;  %v3757_v39 = vpack.c.b16 %v3750_v54, %v3749_v58  ;;  %v3526_v55 = vmul.f32 %v7919_v61, %v3502_v38  ;;  %v5248_v21 = vor.u32 %v5409_v63, %v5245_v36 }
 0x8bb   :  { %4068 = vmatpush.bf16.msra.mxu0 %v8519_v46  ;;  %v3386_v24 = vmul.f32 %v5666_v45, %v3372_v60  ;;  %4109 = vmatpush.bf16.msrb.mxu1 %v3863_v17  ;;  %v5224_v60 = vor.u32 %v5406_v43, %v5223_v62 }
 0x8bc   :  { %4091 = vmatpush.bf16.msra.mxu3 %v3794_v30  ;;  %v3540_v40 = vpack.c.bf16 %v3528_v18, %v3528_v18  ;;  %v3538_v53 = vpack.c.bf16 %v3526_v55, %v3526_v55  ;;  %v5405_v30 = vld [vmem:[%s8330_s5 + $0x108] sm:$0xf0]  ;;  %v8525_v18 = vld [vmem:[#allocation29_spill] sm:$0xff] }
 0x8bd   :  { %v3398_v48 = vpack.c.bf16 %v3386_v24, %v3386_v24  ;;  %v5413_v24 = vld [vmem:[%s8330_s5 + $0x148] sm:$0xf0] }
 0x8be   :  { %v3852_v11 = vunpack.c.l.b16 %v3540_v40  ;;  %v3850_v15 = vunpack.c.l.b16 %v3538_v53 }
 0x8bf   :  { %4069 = vmatpush.bf16.msra.mxu0 %v8523_v12  ;;  %v3752_v9 = vunpack.c.l.b16 %v3398_v48  ;;  %4171 = vperm.xlu2 %5557, %v8524_v25  }
 0x8c0   :  { %4092 = vmatpush.bf16.msra.mxu3 %v3793_v33  ;;  %v3862_v6 = vpack.c.b16 %v3852_v11, %v3851_v34  ;;  %5559 = vset.pattern.permute.xlu1 %v8488_v35 }
 0x8c1   :  { %v3758_v50 = vpack.c.b16 %v3752_v9, %v3751_v0  ;;  %4176 = vperm.xlu1 %5559, %v7750_v10   ;;  %v3756_v10 = vpack.c.b16 %v3748_v51, %v3747_v22  ;;  %v3896_v40 = vpop.permute.xlu2 %3895 }
 0x8c2   :  { %4003 = vmatmul.bf16.gmra.mxu0 %v5228_v14  ;;  %v3360_v41 = vpop.permute.xlu1 %3359  ;;  %4110 = vmatpush.bf16.msrb.mxu1 %v3862_v6 }
 0x8c3   :  { %v3380_v37 = vmul.f32 %v5666_v45, %v3360_v41  ;;  %4070 = vmatpush.bf16.msra.mxu0 %v3758_v50  ;;  %4093 = vmatmul.bf16.vlgmr.msra.gmra.mxu3 %v5220_v8  ;;  %v3745_v45 = vunpack.c.l.b16 %v3391_v26 }
 0x8c5   :  { %v3392_v31 = vpack.c.bf16 %v3380_v37, %v3380_v37 }
 0x8c7   :  { %5560 = vset.pattern.permute.xlu2 %v8490_v3  ;;  %4071 = vmatpush.bf16.msra.mxu0 %v3757_v39  ;;  %v3746_v57 = vunpack.c.l.b16 %v3392_v31 }
 0x8c8   :  { %4264 = vperm.xlu2 %5560, %v8524_v25   ;;  %v3906_v25 = vpop.permute.xlu0 %3905 }
 0x8c9   :  { %4161 = vperm.xlu1 %5559, %v7770_v27   ;;  %v3755_v46 = vpack.c.b16 %v3746_v57, %v3745_v45 }
 0x8ca   :  { %v3500_v47 = vpop.permute.xlu1 %3499  ;;  %v8083_v42 = vpop.permute.xlu2 %4231 }
 0x8cb   :  { %v3525_v56 = vmul.f32 %v7919_v61, %v3500_v47  ;;  %4072 = vmatpush.bf16.msra.mxu0 %v3756_v10  ;;  %v5216_v61 = vor.u32 %v5405_v30, %v5215_v29 }
 0x8cd   :  { %v3537_v49 = vpack.c.bf16 %v3525_v56, %v3525_v56 }
 0x8cf   :  { %v3849_v17 = vunpack.c.l.b16 %v3537_v49  ;;  %4073 = vmatpush.bf16.msra.mxu0 %v3755_v46 }
 0x8d0   :  { %5561 = vset.pattern.permute.xlu2 %v8488_v35  ;;  %v5412_v35 = vld [vmem:[%s8330_s5 + $0x140] sm:$0xf0]  ;;  %v4237_v58 = vpop.permute.xlu0 %4236 }
 0x8d1   :  { %v3861_v13 = vpack.c.b16 %v3850_v15, %v3849_v17  ;;  %5562 = vset.pattern.permute.xlu1 %v8490_v3  ;;  %4166 = vperm.xlu2 %5561, %v8525_v18   ;;  %v5244_v1 = vor.u32 %v5412_v35, %v5243_v4  ;;  %v5251_v3 = vld [vmem:[%s8330_s5 + $0x130] sm:$0xf] }
 0x8d2   :  { %4260 = vperm.xlu1 %5562, %v8525_v18   ;;  %4074 = vmatmul.bf16.vlgmr.msra.gmra.mxu0 %v5216_v61  ;;  %v5252_v5 = vor.u32 %v5413_v24, %v5251_v3  ;;  %v3911_v7 = vpop.permute.xlu1 %3910 }
 0x8d3   :  { %4111 = vmatpush.bf16.msrb.mxu1 %v3861_v13  ;;  %4098 = vmatmul.bf16.gmra.mxu3 %v5248_v21  ;;  %v8087_v44 = vpop.permute.xlu2 %4316 }
 0x8d6   :  { %5253 = vmatmul.msk.bf16.vlgmr.msrb.gmra.mxu1 %vm3983_vm6, %v5224_v60 }
 0x8d8   :  { %v8107_v22 = vpop.permute.xlu0 %4196 }
 0x8da   :  { %v3901_v23 = vpop.permute.xlu1 %3900 }
 0x8dc   :  { %v8091_v33 = vpop.permute.xlu2 %4226 }
 0x8e0   :  { %v4305_v63 = vpop.permute.xlu0 %4304 }
 0x8e2   :  { %4079 = vmatmul.bf16.gmra.mxu0 %v5244_v1 }
 0x8e3   :  { %v8085_v12 = vpop.permute.xlu1 %4312 }
 0x8e4   :  { %v8095_v11 = vpop.permute.xlu2 %4211 }
 0x8e6   :  { %5254 = vmatmul.msk.bf16.gmra.mxu1 %vm3983_vm6, %v5252_v5 }
 0x8e8   :  { %v4301_v5 = vpop.permute.xlu0 %4300 }
 0x8ec   :  { %v8089_v20 = vpop.permute.xlu1 %4221 }
 0x8ed   :  { %v8099_v8 = vpop.permute.xlu2 %4296 }
 0x8f5   :  { %v8093_v16 = vpop.permute.xlu1 %4308 }
 0x8f7   :  { %v8103_v52 = vpop.permute.xlu2 %4206 }
 0x8fe   :  { %v8097_v14 = vpop.permute.xlu1 %4216 }
 0x8ff   :  { %v8109_v26 = vpop.permute.xlu2 %4191 }
 0x906   :  { %v8101_v6 = vpop.permute.xlu1 %4201 }
 0x908   :  { %v8113_v17 = vpop.permute.xlu2 %4284 }
 0x90f   :  { %v8105_v37 = vpop.permute.xlu1 %4292 }
 0x912   :  { %v4056_v41 = vpop.f32.mrf.mxu2 }
 0x917   :  { %v8111_v57 = vpop.permute.xlu1 %4280 }
 0x91a   :  { %v4058_v51 = vpop.f32.mrf.mxu2 }
 0x91f   :  { %v4037_v48 = vpop.f32.mrf.mxu1 }
 0x920   :  { %v8115_v43 = vpop.permute.xlu1 %4181 }
 0x923   :  { %v4061_v46 = vpop.f32.mrf.mxu2 }
 0x924   :  { %v4018_v19 = vpop.f32.mrf.mxu3 }
 0x927   :  { %v4039_v0 = vpop.f32.mrf.mxu1 }
 0x92c   :  { %v4020_v32 = vpop.f32.mrf.mxu3 }
 0x92f   :  { %v3999_v34 = vpop.f32.mrf.mxu0  ;;  %v4042_v28 = vpop.f32.mrf.mxu1 }
 0x930   :  { %v4000_v45 = vadd.f32 %v3999_v34, %v3896_v40 }
 0x932   :  { %v4019_v36 = vadd.f32 %v4018_v19, %v4000_v45  ;;  %v4289_v45 = vpop.permute.xlu0 %4288 }
 0x934   :  { %v4023_v9 = vpop.f32.mrf.mxu3  ;;  %v4038_v62 = vadd.f32 %v4037_v48, %v4019_v36 }
 0x936   :  { %v4057_v1 = vadd.f32 %v4056_v41, %v4038_v62 }
 0x937   :  { %v4001_v59 = vpop.f32.mrf.mxu0  ;;  %v4044_v38 = vpop.f32.mrf.mxu1 }
 0x938   :  { %v4002_v55 = vadd.f32 %v4001_v59, %v3901_v23 }
 0x93a   :  { %v4021_v56 = vadd.f32 %v4020_v32, %v4002_v55  ;;  %v4063_v32 = vpop.f32.mrf.mxu2 }
 0x93c   :  { %v4025_v50 = vpop.f32.mrf.mxu3  ;;  %v4040_v49 = vadd.f32 %v4039_v0, %v4021_v56  ;;  %v4187_v0 = vpop.permute.xlu2 %4186 }
 0x93e   :  { %v4059_v13 = vadd.f32 %v4058_v51, %v4040_v49 }
 0x93f   :  { %v4004_v54 = vpop.f32.mrf.mxu0 }
 0x940   :  { %v4005_v10 = vadd.f32 %v4004_v54, %v3906_v25  ;;  %v4277_v25 = vpop.permute.xlu1 %4276 }
 0x942   :  { %v4024_v29 = vadd.f32 %v4023_v9, %v4005_v10 }
 0x944   :  { %v4043_v61 = vadd.f32 %v4042_v28, %v4024_v29  ;;  %v4172_v29 = vpop.permute.xlu2 %4171 }
 0x946   :  { %v4094_v39 = vpop.f32.mrf.mxu3  ;;  %v4062_v18 = vadd.f32 %v4061_v46, %v4043_v61 }
 0x947   :  { %v4006_v2 = vpop.f32.mrf.mxu0 }
 0x948   :  { %v4007_v15 = vadd.f32 %v4006_v2, %v3911_v7 }
 0x94a   :  { %v4026_v60 = vadd.f32 %v4025_v50, %v4007_v15 }
 0x94c   :  { %v4045_v40 = vadd.f32 %v4044_v38, %v4026_v60  ;;  %v8529_v60 = vld [vmem:[#allocation25_spill] sm:$0xff] }
 0x94e   :  { %v4096_v53 = vpop.f32.mrf.mxu3  ;;  %v4064_v59 = vadd.f32 %v4063_v32, %v4045_v40 }
 0x94f   :  { %v4075_v31 = vpop.f32.mrf.mxu0 }
 0x950   :  { %v4076_v23 = vadd.f32 %v4075_v31, %v4057_v1  ;;  %v4265_v1 = vpop.permute.xlu2 %4264 }
 0x952   :  { %v4095_v48 = vadd.f32 %v4094_v39, %v4076_v23 }
 0x953   :  { %v4113_v47 = vpop.f32.mrf.mxu1 }
 0x954   :  { %v4114_v51 = vadd.f32 %v4113_v47, %v4095_v48  ;;  %v8533_v48 = vld [vmem:[#allocation14_spill] sm:$0xff] }
 0x956   :  { %v4099_v4 = vpop.f32.mrf.mxu3 }
 0x957   :  { %v4077_v30 = vpop.f32.mrf.mxu0 }
 0x958   :  { %v4078_v3 = vadd.f32 %v4077_v30, %v4059_v13  ;;  %v8526_v30 = vld [vmem:[#allocation41_spill] sm:$0xff] }
 0x959   :  { %v4250_v36 = vmul.f32 %v8097_v14, %v8526_v30 }
 0x95a   :  { %v4097_v34 = vadd.f32 %v4096_v53, %v4078_v3  ;;  %v4251_v53 = vmul.f32 %v8089_v20, %v4114_v51  ;;  %v8530_v3 = vld [vmem:[#allocation21_spill] sm:$0xff] }
 0x95b   :  { %v4115_v21 = vpop.f32.mrf.mxu1  ;;  %v4330_v62 = vadd.f32 %v4301_v5, %v4250_v36  ;;  %v8531_v5 = vld [vmem:[#allocation24_spill] sm:$0xff] }
 0x95c   :  { %v4116_v28 = vadd.f32 %v4115_v21, %v4097_v34  ;;  %v4331_v49 = vadd.f32 %v4305_v63, %v4251_v53  ;;  %v5714_v63 = vmov 7   ;;  %v4246_v40 = vmul.f32 %v8107_v22, %v8531_v5  ;;  %v8532_v34 = vld [vmem:[#allocation15_spill] sm:$0xff] }
 0x95d   :  { %5565 = vset.pattern.permute.xlu1 %v5714_v63  ;;  %5563 = vset.pattern.permute.xlu2 %v5714_v63 }
 0x95e   :  { %v4101_v2 = vpop.f32.mrf.mxu3  ;;  %v4252_v38 = vmul.f32 %v8091_v33, %v4116_v28  ;;  %v8527_v33 = vld [vmem:[#allocation34_spill] sm:$0xff]  ;;  %4369 = vperm.xlu1 %5565, %v7770_v27   ;;  %5564 = vset.pattern.permute.xlu0 %v5714_v63 }
 0x95f   :  { %v4080_v35 = vpop.f32.mrf.mxu0  ;;  %v4249_v21 = vmul.f32 %v8095_v11, %v8527_v33  ;;  %v4346_v11 = vmax.f32 %v4330_v62, 0.0  ;;  %v5421_v33 = vld [vmem:[%s8329_s3 + $0x128] sm:$0xff] }
 0x960   :  { %v4081_v24 = vadd.f32 %v4080_v35, %v4062_v18  ;;  %v4332_v46 = vadd.f32 %v8093_v16, %v4252_v38  ;;  %v8528_v18 = vld [vmem:[#allocation35_spill] sm:$0xff]  ;;  %v4247_v16 = vmul.f32 %v8101_v6, %v8529_v60 }
 0x961   :  { %v4248_v14 = vmul.f32 %v8103_v52, %v8528_v18  ;;  %v4245_v52 = vmul.f32 %v8109_v26, %v8530_v3  ;;  %v5420_v18 = vld [vmem:[%s8329_s3 + $0x120] sm:$0xff]  ;;  %v5417_v3 = vld [vmem:[%s8329_s3 + $0x108] sm:$0xff] }
 0x962   :  { %v4100_v19 = vadd.f32 %v4099_v4, %v4081_v24  ;;  %v4348_v20 = vmax.f32 %v4332_v46, 0.0  ;;  %v4327_v24 = vadd.f32 %v4289_v45, %v4247_v16  ;;  %v5422_v46 = vld [vmem:[%s8329_s3 + $0x130] sm:$0xff] }
 0x963   :  { %v4118_v7 = vpop.f32.mrf.mxu1  ;;  %v4328_v4 = vadd.f32 %v8105_v37, %v4248_v14  ;;  %v4325_v27 = vadd.f32 %v8111_v57, %v4245_v52  ;;  %v4326_v37 = vadd.f32 %v8113_v17, %v4246_v40  ;;  %v8538_v16 = vld [vmem:[#allocation5_spill] sm:$0xff]  ;;  %v5416_v52 = vld [vmem:[%s8329_s3 + $0x100] sm:$0xff] }
 0x964   :  { %v4119_v9 = vadd.f32 %v4118_v7, %v4100_v19  ;;  %v4343_v7 = vmax.f32 %v4327_v24, 0.0 }
 0x965   :  { %v4344_v19 = vmax.f32 %v4328_v4, 0.0  ;;  %v4342_v22 = vmax.f32 %v4326_v37, 0.0  ;;  %v5415_v4 = vld [vmem:[%s8328_s6 + $0x74] sm:$0xf0]  ;;  %v8541_v37 = vld [vmem:[#allocation3_spill] sm:$0xff] }
 0x966   :  { %v4253_v41 = vmul.f32 %v8083_v42, %v4119_v9  ;;  %v4177_v42 = vpop.permute.xlu1 %4176  ;;  %v4243_v9 = vmul.f32 %v8115_v43, %v8533_v48  ;;  %v8148_v43 = vld [vmem:[%s8326_s4 + $0x10] sm:$0xff] }
 0x967   :  { %v4082_v54 = vpop.f32.mrf.mxu0  ;;  %v4359_v26 = vpack.c.bf16 %v4344_v19, %v4343_v7  ;;  %4379 = vperm.xlu2 %5563, %v8148_v43   ;;  %v437_v7 = vperm.slane %v8541_v37, 0 }
 0x968   :  { %v4083_v50 = vadd.f32 %v4082_v54, %v4064_v59  ;;  %v4333_v56 = vadd.f32 %v8085_v12, %v4253_v41  ;;  %v4273_v12 = vpop.permute.xlu0 %4272  ;;  %v4244_v59 = vmul.f32 %v4187_v0, %v8532_v34  ;;  %v4341_v54 = vmax.f32 %v4325_v27, 0.0  ;;  %v4167_v41 = vpop.permute.xlu2 %4166  ;;  %v8153_v0 = vld [vmem:[%s8326_s4 + $0x18] sm:$0xff] }
 0x969   :  { %v4323_v51 = vadd.f32 %v4273_v12, %v4243_v9  ;;  %4384 = vperm.xlu0 %5564, %v8153_v0   ;;  %v5414_v12 = vld [vmem:[%s8328_s6 + $0x5c] sm:$0xf0]  ;;  %v438_v34 = vperm.slane %v8541_v37, 1 }
 0x96a   :  { %v4102_v55 = vadd.f32 %v4101_v2, %v4083_v50  ;;  %v4349_v61 = vmax.f32 %v4333_v56, 0.0  ;;  %v4324_v28 = vadd.f32 %v4277_v25, %v4244_v59  ;;  %v8534_v50 = vld [vmem:[#allocation9_spill] sm:$0xff]  ;;  %v4358_v57 = vpack.c.bf16 %v4342_v22, %v4341_v54  ;;  %v5423_v25 = vld [vmem:[%s8329_s3 + $0x138] sm:$0xff]  ;;  %v8536_v56 = vld [vmem:[#allocation7_spill] sm:$0xff] }
 0x96b   :  { %v4120_v10 = vpop.f32.mrf.mxu1  ;;  %v4242_v2 = vmul.f32 %v4177_v42, %v8534_v50  ;;  %v4339_v53 = vmax.f32 %v4323_v51, 0.0  ;;  %4492 = vmatpush.bf16.msrb.mxu0 %v5423_v25  ;;  %5432 = vmatpush.bf16.msra.mxu1 %v5423_v25 }
 0x96c   :  { %v4121_v31 = vadd.f32 %v4120_v10, %v4102_v55  ;;  %v8535_v55 = vld [vmem:[#allocation8_spill] sm:$0xff]  ;;  %v4340_v17 = vmax.f32 %v4324_v28, 0.0 }
 0x96d   :  { %v4241_v10 = vmul.f32 %v4172_v29, %v8535_v55  ;;  %v8537_v29 = vld [vmem:[#allocation6_spill] sm:$0xff] }
 0x96e   :  { %v4254_v39 = vmul.f32 %v4237_v58, %v4121_v31  ;;  %v4329_v58 = vadd.f32 %v8099_v8, %v4249_v21  ;;  %v4162_v6 = vpop.permute.xlu1 %4161 }
 0x96f   :  { %v4321_v45 = vadd.f32 %v4265_v1, %v4241_v10  ;;  %v4239_v30 = vmul.f32 %v4162_v6, %v8537_v29  ;;  %4493 = vmatpush.bf16.msrb.mxu0 %v5422_v46  ;;  %5433 = vmatpush.bf16.msra.mxu1 %v5422_v46  ;;  %v5419_v1 = vld [vmem:[%s8329_s3 + $0x118] sm:$0xff] }
 0x970   :  { %v4334_v47 = vadd.f32 %v8087_v44, %v4254_v39  ;;  %v4347_v44 = vmax.f32 %v4331_v49, 0.0  ;;  %v4345_v8 = vmax.f32 %v4329_v58, 0.0  ;;  %v4269_v32 = vpop.permute.xlu0 %4268  ;;  %v4240_v39 = vmul.f32 %v4167_v41, %v8536_v56  ;;  %v8177_v58 = vld [vmem:[%s8326_s4 + $0x8] sm:$0xff] }
 0x971   :  { %v4322_v38 = vadd.f32 %v4269_v32, %v4242_v2  ;;  %4374 = vperm.xlu2 %5563, %v8177_v58   ;;  %v439_v41 = vperm.slane %v8541_v37, 2 }
 0x972   :  { %v4350_v15 = vmax.f32 %v4334_v47, 0.0  ;;  %v4361_v35 = vpack.c.bf16 %v4348_v20, %v4347_v44  ;;  %v4360_v23 = vpack.c.bf16 %v4346_v11, %v4345_v8  ;;  %v4357_v47 = vpack.c.bf16 %v4340_v17, %v4339_v53  ;;  %v8539_v44 = vld [vmem:[#allocation4_spill] sm:$0xff]  ;;  %v5418_v8 = vld [vmem:[%s8329_s3 + $0x110] sm:$0xff] }
 0x973   :  { %v4338_v42 = vmax.f32 %v4322_v38, 0.0  ;;  %4494 = vmatpush.bf16.msrb.mxu0 %v5421_v33  ;;  %5434 = vmatpush.bf16.msra.mxu1 %v5421_v33  ;;  %v8540_v63 = vpack.c.bf16 %v8538_v16, %v8539_v44  ;;  %v5261_v11 = vld [vmem:[%s8328_s6 + $0x6c] sm:$0xf] }
 0x974   :  { %v4362_v13 = vpack.c.bf16 %v4350_v15, %v4349_v61  ;;  %v4337_v61 = vmax.f32 %v4321_v45, 0.0 }
 0x976   :  { %4399 = vmatpush.bf16.msra.mxu2 %v4362_v13  ;;  %v4261_v31 = vpop.permute.xlu1 %4260  ;;  %v4356_v21 = vpack.c.bf16 %v4338_v42, %v4337_v61  ;;  %v5257_v13 = vld [vmem:[%s8328_s6 + $0x54] sm:$0xf] }
 0x977   :  { %v4320_v49 = vadd.f32 %v4261_v31, %v4240_v39  ;;  %v5258_v60 = vor.u32 %v5414_v12, %v5257_v13  ;;  %4495 = vmatpush.bf16.msrb.mxu0 %v5420_v18  ;;  %5435 = vmatpush.bf16.msra.mxu1 %v5420_v18 }
 0x978   :  { %v4257_v36 = vpop.permute.xlu0 %4256 }
 0x979   :  { %v4319_v15 = vadd.f32 %v4257_v36, %v4239_v30  ;;  %v4336_v62 = vmax.f32 %v4320_v49, 0.0 }
 0x97a   :  { %4400 = vmatpush.bf16.msra.mxu2 %v4361_v35  ;;  %v5262_v35 = vor.u32 %v5415_v4, %v5261_v11 }
 0x97b   :  { %v4335_v20 = vmax.f32 %v4319_v15, 0.0  ;;  %4496 = vmatpush.bf16.msrb.mxu0 %v5419_v1  ;;  %5436 = vmatpush.bf16.msra.mxu1 %v5419_v1 }
 0x97d   :  { %v4355_v14 = vpack.c.bf16 %v4336_v62, %v4335_v20 }
 0x97e   :  { %4401 = vmatpush.bf16.msra.mxu2 %v4360_v23 }
 0x97f   :  { %4497 = vmatpush.bf16.msrb.mxu0 %v5418_v8  ;;  %5437 = vmatpush.bf16.msra.mxu1 %v5418_v8 }
 0x982   :  { %4402 = vmatpush.bf16.msra.mxu2 %v4359_v26 }
 0x983   :  { %4498 = vmatpush.bf16.msrb.mxu0 %v5417_v3  ;;  %5438 = vmatpush.bf16.msra.mxu1 %v5417_v3 }
 0x986   :  { %4403 = vmatpush.bf16.msra.mxu2 %v4358_v57  ;;  %v440_v57 = vperm.slane %v8541_v37, 3 }
 0x987   :  { %4499 = vmatpush.bf16.msrb.mxu0 %v5416_v52  ;;  %5439 = vmatpush.bf16.msra.mxu1 %v5416_v52 }
 0x98a   :  { %4404 = vmatpush.bf16.msra.mxu2 %v4357_v47 }
 0x98e   :  { %4405 = vmatpush.bf16.msra.mxu2 %v4356_v21 }
 0x992   :  { %4406 = vmatpush.bf16.msra.mxu2 %v4355_v14 }
 0x995   :  { %4407 = vmatmul.bf16.vlgmr.msra.gmra.mxu2 %v5258_v60 }
 0x996   :  { %4790 = vmatpush.bf16.msrb.mxu2 %v8540_v63 }
 0x9a5   :  { %4412 = vmatmul.bf16.gmra.mxu2 %v5262_v35 }
 0x9c1   :  { %v4380_v24 = vpop.permute.xlu2 %4379 }
 0x9cb   :  { %v4375_v23 = vpop.permute.xlu2 %4374 }
 0x9d0   :  { %v4370_v5 = vpop.permute.xlu1 %4369 }
 0x9db   :  { %v4385_v50 = vpop.permute.xlu0 %4384 }
 0xa18   :  { %v4408_v6 = vpop.f32.mrf.mxu2 }
 0xa19   :  { %v4409_v40 = vadd.f32 %v4408_v6, %v4370_v5 }
 0xa1b   :  { %v4418_v27 = vmax.f32 %v4409_v40, 0.0 }
 0xa1d   :  { %v4438_v48 = vmul.f32 %v4418_v27, %v437_v7 }
 0xa20   :  { %v4410_v19 = vpop.f32.mrf.mxu2 }
 0xa21   :  { %v4411_v32 = vadd.f32 %v4410_v19, %v4375_v23 }
 0xa23   :  { %v4419_v59 = vmax.f32 %v4411_v32, 0.0 }
 0xa25   :  { %v4439_v9 = vmul.f32 %v4419_v59, %v438_v34  ;;  %v5715_v34 = vmov 16  }
 0xa26   :  { %5568 = vset.pattern.permute.xlu0 %v5715_v34  ;;  %5566 = vset.pattern.permute.xlu1 %v5715_v34 }
 0xa27   :  { %v4442_v26 = vpack.c.bf16 %v4439_v9, %v4438_v48  ;;  %v8235_v9 = vld [vmem:[%s8326_s4] sm:$0xff]  ;;  %4607 = vperm.xlu1 %5566, %v8148_v43   ;;  %5567 = vset.pattern.permute.xlu2 %v5715_v34 }
 0xa28   :  { %v4413_v54 = vpop.f32.mrf.mxu2  ;;  %4599 = vperm.xlu0 %5568, %v8235_v9   ;;  %4611 = vperm.xlu2 %5567, %v8153_v0  }
 0xa29   :  { %4500 = vmatmul.bf16.vlgmr.msrb.gmra.mxu0 %v4442_v26  ;;  %v4414_v28 = vadd.f32 %v4413_v54, %v4380_v24 }
 0xa2b   :  { %v4420_v22 = vmax.f32 %v4414_v28, 0.0 }
 0xa2d   :  { %v4440_v10 = vmul.f32 %v4420_v22, %v439_v41 }
 0xa2f   :  { %4603 = vperm.xlu1 %5566, %v8177_v58  }
 0xa30   :  { %v4415_v2 = vpop.f32.mrf.mxu2 }
 0xa31   :  { %v4416_v51 = vadd.f32 %v4415_v2, %v4385_v50 }
 0xa33   :  { %v4421_v55 = vmax.f32 %v4416_v51, 0.0 }
 0xa35   :  { %v4441_v17 = vmul.f32 %v4421_v55, %v440_v57 }
 0xa37   :  { %v4443_v38 = vpack.c.bf16 %v4441_v17, %v4440_v10 }
 0xa39   :  { %4505 = vmatmul.bf16.vlgmr.msra.gmra.mxu1 %v4443_v38 }
 0xaa6   :  { %v8208_v31 = vpop.f32.mrf.mxu0 }
 0xaa7   :  { %v4511_v25 = vmul.f32 %v8208_v31, %v8208_v31 }
 0xaa9   :  { %v4513_v45 = vsel %vm4512_vm7, %v4511_v25, 0.0 }
 0xaaa   :  { %v4514_v53 = vrot.slane %v4513_v45, 4 }
 0xaac   :  { %v4515_v56 = vadd.f32 %v4514_v53, %v4513_v45 }
 0xaae   :  { %v8213_v39 = vpop.f32.mrf.mxu0  ;;  %v4516_v36 = vrot.slane %v4515_v56, 2 }
 0xaaf   :  { %v4532_v29 = vmul.f32 %v8213_v39, %v8213_v39 }
 0xab0   :  { %v4517_v42 = vadd.f32 %v4516_v36, %v4515_v56  ;;  %v5317_v56 = vld [vmem:[%s8328_s6 + $0xf0] sm:$0xf] }
 0xab1   :  { %v4533_v30 = vsel %vm4512_vm7, %v4532_v29, 0.0  ;;  %v5428_v29 = vld [vmem:[%s8328_s6 + $0xf8] sm:$0xf0] }
 0xab2   :  { %v4534_v46 = vrot.slane %v4533_v30, 4  ;;  %v4518_v62 = vrot.slane %v4517_v42, 1 }
 0xab4   :  { %v4535_v47 = vadd.f32 %v4534_v46, %v4533_v30  ;;  %v4519_v14 = vadd.f32 %v4518_v62, %v4517_v42  ;;  %v5318_v30 = vor.u32 %v5428_v29, %v5317_v56  ;;  %v5426_v56 = vld [vmem:[%s8328_s6 + $0xc8] sm:$0xf0] }
 0xab6   :  { %v4536_v49 = vrot.slane %v4535_v47, 2  ;;  %v8218_v61 = vpop.f32.mrf.mxu1  ;;  %v8228_v35 = vmax.f32 %v4519_v14, 1e-24  ;;  %5323 = vmatmul.msk.bf16.vlgmr.msrb.gmra.mxu2 %vm192_vm0, %v5318_v30 }
 0xab7   :  { %v4552_v15 = vmul.f32 %v8218_v61, %v8218_v61 }
 0xab8   :  { %v4537_v33 = vadd.f32 %v4536_v49, %v4535_v47  ;;  %vm4527_vm3 = vweird.f32 %v8228_v35 }
 0xab9   :  { %v4553_v21 = vsel %vm4512_vm7, %v4552_v15, 0.0 }
 0xaba   :  { %v4538_v20 = vrot.slane %v4537_v33, 1  ;;  %v4554_v13 = vrot.slane %v4553_v21, 4 }
 0xabc   :  { %v4539_v12 = vadd.f32 %v4538_v20, %v4537_v33  ;;  %v4555_v18 = vadd.f32 %v4554_v13, %v4553_v21 }
 0xabe   :  { %v4556_v60 = vrot.slane %v4555_v18, 2  ;;  %v8223_v16 = vpop.f32.mrf.mxu1  ;;  %v4540_v63 = vmax.f32 %v4539_v12, 1e-24  ;;  %v5297_v12 = vld [vmem:[%s8328_s6 + $0x90] sm:$0xf] }
 0xabf   :  { %v4572_v44 = vmul.f32 %v8223_v16, %v8223_v16 }
 0xac0   :  { %v4557_v11 = vadd.f32 %v4556_v60, %v4555_v18  ;;  %5656 = vrsqrt.f32 %v4540_v63  ;;  %vm4547_vm13 = vweird.f32 %v4540_v63  ;;  %v5424_v18 = vld [vmem:[%s8328_s6 + $0x98] sm:$0xf0] }
 0xac1   :  { %v4573_v4 = vsel %vm4512_vm7, %v4572_v44, 0.0  ;;  %5658 = vrsqrt.f32 %v8228_v35  ;;  %v5298_v60 = vor.u32 %v5424_v18, %v5297_v12  ;;  %v5429_v44 = vld [vmem:[%s8328_s6 + $0x110] sm:$0xf0] }
 0xac2   :  { %v4558_v1 = vrot.slane %v4557_v11, 1  ;;  %v4574_v8 = vrot.slane %v4573_v4, 4 }
 0xac4   :  { %v4559_v3 = vadd.f32 %v4558_v1, %v4557_v11  ;;  %v4575_v52 = vadd.f32 %v4574_v8, %v4573_v4  ;;  %v4608_v4 = vpop.permute.xlu1 %4607 }
 0xac6   :  { %v4560_v24 = vmax.f32 %v4559_v3, 1e-24  ;;  %v4576_v6 = vrot.slane %v4575_v52, 2  ;;  %v5657_v40 = vpop.eup %5656  ;;  %v5717_v3 = vmov 17  }
 0xac7   :  { %v5659_v19 = vpop.eup %5658  ;;  %v4542_v32 = vmul.f32 %v5657_v40, %v4540_v63  ;;  %vm4548_vm9 = vweird.f32 %v5657_v40 }
 0xac8   :  { %5660 = vrsqrt.f32 %v4560_v24  ;;  %v4577_v5 = vadd.f32 %v4576_v6, %v4575_v52  ;;  %v4522_v59 = vmul.f32 %v5659_v19, %v8228_v35  ;;  %vm4567_vm10 = vweird.f32 %v4560_v24  ;;  %vm4549_vm15 = vmor %vm4547_vm13, %vm4548_vm9  ;;  %v4600_v52 = vpop.permute.xlu0 %4599 }
 0xac9   :  { %v4543_v26 = vmul.f32 %v5657_v40, %v4542_v32  ;;  %vm4528_vm12 = vweird.f32 %v5659_v19  ;;  %v5716_v35 = vmov 18  }
 0xaca   :  { %v4578_v23 = vrot.slane %v4577_v5, 1  ;;  %v4523_v28 = vmul.f32 %v5659_v19, %v4522_v59  ;;  %vm4529_vm6 = vmor %vm4527_vm3, %vm4528_vm12  ;;  %5570 = vset.pattern.permute.xlu1 %v5716_v35  ;;  %5571 = vset.pattern.permute.xlu0 %v5716_v35 }
 0xacb   :  { %v4544_v2 = vmul.f32 0.5, %v4543_v26  ;;  %4764 = vperm.xlu1 %5570, %v8153_v0   ;;  %4756 = vperm.xlu0 %5571, %v8177_v58  }
 0xacc   :  { %v4579_v27 = vadd.f32 %v4578_v23, %v4577_v5  ;;  %v4524_v51 = vmul.f32 0.5, %v4523_v28  ;;  %5569 = vset.pattern.permute.xlu2 %v5716_v35  ;;  %v4604_v8 = vpop.permute.xlu1 %4603 }
 0xacd   :  { %v4545_v55 = vsub.f32 1.5, %v4544_v2  ;;  %4760 = vperm.xlu2 %5569, %v8148_v43  }
 0xace   :  { %v5661_v37 = vpop.eup %5660  ;;  %v4580_v7 = vmax.f32 %v4579_v27, 1e-24  ;;  %v4525_v17 = vsub.f32 1.5, %v4524_v51  ;;  %v4612_v27 = vpop.permute.xlu2 %4611 }
 0xacf   :  { %v4562_v48 = vmul.f32 %v5661_v37, %v4560_v24  ;;  %vm4568_vm8 = vweird.f32 %v5661_v37  ;;  %v4546_v45 = vmul.f32 %v5657_v40, %v4545_v55 }
 0xad0   :  { %5662 = vrsqrt.f32 %v4580_v7  ;;  %vm4569_vm14 = vmor %vm4567_vm10, %vm4568_vm8  ;;  %v4526_v36 = vmul.f32 %v5659_v19, %v4525_v17  ;;  %vm4587_vm1 = vweird.f32 %v4580_v7 }
 0xad1   :  { %v4563_v54 = vmul.f32 %v5661_v37, %v4562_v48  ;;  %v4550_v42 = vsel %vm4549_vm15, %v5657_v40, %v4546_v45 }
 0xad2   :  { %v4530_v21 = vsel %vm4529_vm6, %v5659_v19, %v4526_v36  ;;  %v4551_v62 = vmul.f32 %v4550_v42, %v8213_v39  ;;  %v5301_v39 = vld [vmem:[%s8328_s6 + $0xa8] sm:$0xf]  ;;  %v5311_v36 = vld [vmem:[%s8328_s6 + $0xd8] sm:$0xf] }
 0xad3   :  { %v4564_v50 = vmul.f32 0.5, %v4563_v54  ;;  %v4531_v13 = vmul.f32 %v4530_v21, %v8208_v31  ;;  %v5425_v31 = vld [vmem:[%s8328_s6 + $0xb0] sm:$0xf0]  ;;  %5572 = vset.pattern.permute.xlu1 %v5717_v3 }
 0xad4   :  { %4684 = vperm.xlu1 %5572, %v8148_v43  }
 0xad5   :  { %v4565_v41 = vsub.f32 1.5, %v4564_v50  ;;  %v4596_v14 = vpack.c.bf16 %v4551_v62, %v4531_v13  ;;  %4752 = vperm.xlu2 %5569, %v8235_v9  }
 0xad6   :  { %v5663_v22 = vpop.eup %5662 }
 0xad7   :  { %v4582_v57 = vmul.f32 %v5663_v22, %v4580_v7  ;;  %v4566_v38 = vmul.f32 %v5661_v37, %v4565_v41  ;;  %vm4588_vm11 = vweird.f32 %v5663_v22 }
 0xad8   :  { %vm4589_vm2 = vmor %vm4587_vm1, %vm4588_vm11 }
 0xad9   :  { %v4583_v10 = vmul.f32 %v5663_v22, %v4582_v57  ;;  %v4570_v46 = vsel %vm4569_vm14, %v5661_v37, %v4566_v38 }
 0xada   :  { %v4571_v15 = vmul.f32 %v4570_v46, %v8218_v61  ;;  %v5302_v61 = vor.u32 %v5425_v31, %v5301_v39  ;;  %v5427_v46 = vld [vmem:[%s8328_s6 + $0xe0] sm:$0xf0] }
 0xadb   :  { %v4584_v25 = vmul.f32 0.5, %v4583_v10 }
 0xadc   :  { %4676 = vperm.xlu1 %5572, %v8235_v9  }
 0xadd   :  { %v4585_v53 = vsub.f32 1.5, %v4584_v25  ;;  %5573 = vset.pattern.permute.xlu2 %v5717_v3 }
 0xade   :  { %4688 = vperm.xlu2 %5573, %v8153_v0  }
 0xadf   :  { %v4586_v47 = vmul.f32 %v5663_v22, %v4585_v53  ;;  %v5307_v53 = vld [vmem:[%s8328_s6 + $0xc0] sm:$0xf] }
 0xae0   :  { %v5308_v30 = vor.u32 %v5426_v56, %v5307_v53 }
 0xae1   :  { %v4590_v49 = vsel %vm4589_vm2, %v5663_v22, %v4586_v47  ;;  %v5312_v47 = vor.u32 %v5427_v46, %v5311_v36 }
 0xae2   :  { %v4591_v33 = vmul.f32 %v4590_v49, %v8223_v16  ;;  %v5321_v16 = vld [vmem:[%s8328_s6 + $0x108] sm:$0xf] }
 0xae3   :  { %v5322_v63 = vor.u32 %v5429_v44, %v5321_v16 }
 0xae4   :  { %v4597_v20 = vpack.c.bf16 %v4591_v33, %v4571_v15 }
 0xae5   :  { %5324 = vmatmul.msk.bf16.gmra.mxu2 %vm192_vm0, %v5322_v63  ;;  %vm4926_vm0 = vcmask 9216  }
 0xae6   :  { %4636 = vmatpush.bf16.msrb.mxu3 %v4597_v20  ;;  %4680 = vperm.xlu2 %5573, %v8177_v58  }
 0xaea   :  { %4637 = vmatpush.bf16.msrb.mxu3 %v4596_v14 }
 0xaed   :  { %5303 = vmatmul.msk.bf16.vlgmr.msrb.gmra.mxu3 %vm1566_vm4, %v5298_v60 }
 0xafd   :  { %5304 = vmatmul.msk.bf16.gmra.mxu3 %vm1566_vm4, %v5302_v61 }
 0xb27   :  { %v4761_v49 = vpop.permute.xlu2 %4760 }
 0xb2f   :  { %v4753_v33 = vpop.permute.xlu2 %4752 }
 0xb39   :  { %v4792_v42 = vpop.f32.mrf.mxu2 }
 0xb3a   :  { %v4793_v20 = vadd.f32 %v4792_v42, %v4753_v33 }
 0xb3c   :  { %v4802_v18 = vadd.f32 3.0, %v4793_v20 }
 0xb3d   :  { %v4765_v14 = vpop.permute.xlu1 %4764  ;;  %v4757_v60 = vpop.permute.xlu0 %4756 }
 0xb3e   :  { %v4806_v44 = vmax.f32 %v4802_v18, 0.0  ;;  %v5431_v18 = vld [vmem:[%s8328_s6 + $0x140] sm:$0xf0] }
 0xb41   :  { %v4794_v15 = vpop.f32.mrf.mxu2 }
 0xb42   :  { %v4795_v31 = vadd.f32 %v4794_v15, %v4757_v60 }
 0xb44   :  { %v4803_v63 = vadd.f32 3.0, %v4795_v31 }
 0xb68   :  { %v4797_v21 = vpop.f32.mrf.mxu2 }
 0xb69   :  { %v4798_v62 = vadd.f32 %v4797_v21, %v4761_v49 }
 0xb6b   :  { %v4804_v13 = vadd.f32 3.0, %v4798_v62 }
 0xb6d   :  { %v4808_v12 = vmax.f32 %v4804_v13, 0.0 }
 0xb6f   :  { %v4812_v61 = vmin.f32 %v4808_v12, 6.0  ;;  %v5331_v12 = vld [vmem:[%s8328_s6 + $0x138] sm:$0xf] }
 0xb70   :  { %v4639_v11 = vpop.f32.mrf.mxu3  ;;  %v4799_v39 = vpop.f32.mrf.mxu2 }
 0xb71   :  { %v4640_v40 = vadd.f32 %v4639_v11, %v4600_v52  ;;  %v4800_v16 = vadd.f32 %v4799_v39, %v4765_v14  ;;  %v4816_v35 = vmul.f32 %v4812_v61, %v4798_v62  ;;  %v5430_v62 = vld [vmem:[%s8328_s6 + $0x128] sm:$0xf0]  ;;  %v5332_v14 = vor.u32 %v5431_v18, %v5331_v12 }
 0xb73   :  { %v4649_v32 = vadd.f32 3.0, %v4640_v40  ;;  %v4805_v11 = vadd.f32 3.0, %v4800_v16 }
 0xb75   :  { %v4653_v48 = vmax.f32 %v4649_v32, 0.0 }
 0xb77   :  { %v4657_v2 = vmin.f32 %v4653_v48, 6.0 }
 0xb78   :  { %v4641_v1 = vpop.f32.mrf.mxu3 }
 0xb79   :  { %v4642_v6 = vadd.f32 %v4641_v1, %v4604_v8  ;;  %v4661_v55 = vmul.f32 %v4657_v2, %v4640_v40  ;;  %v4809_v1 = vmax.f32 %v4805_v11, 0.0  ;;  %v4810_v8 = vmin.f32 %v4806_v44, 6.0  ;;  %v4904_v44 = vld [vmem:[%s8326_s4] sm:$0x3] }
 0xb7b   :  { %v4650_v19 = vadd.f32 3.0, %v4642_v6  ;;  %v4665_v45 = vmul.f32 0.16666667, %v4661_v55  ;;  %v4813_v52 = vmin.f32 %v4809_v1, 6.0 }
 0xb7d   :  { %v4654_v34 = vmax.f32 %v4650_v19, 0.0 }
 0xb7f   :  { %v4658_v28 = vmin.f32 %v4654_v34, 6.0  ;;  %v4689_v34 = vpop.permute.xlu2 %4688 }
 0xb80   :  { %v4644_v24 = vpop.f32.mrf.mxu3 }
 0xb81   :  { %v4645_v5 = vadd.f32 %v4644_v24, %v4608_v4  ;;  %v4662_v41 = vmul.f32 %v4658_v28, %v4642_v6  ;;  %v4807_v4 = vmax.f32 %v4803_v63, 0.0  ;;  %v4820_v24 = vmul.f32 0.16666667, %v4816_v35 }
 0xb82   :  { %v4817_v6 = vmul.f32 %v4813_v52, %v4800_v16  ;;  %v5719_v63 = vmov 20  }
 0xb83   :  { %v4651_v23 = vadd.f32 3.0, %v4645_v5  ;;  %v4666_v38 = vmul.f32 0.16666667, %v4662_v41  ;;  %v4811_v3 = vmin.f32 %v4807_v4, 6.0 }
 0xb85   :  { %v4655_v37 = vmax.f32 %v4651_v23, 0.0  ;;  %v4673_v29 = vpack.c.bf16 %v4666_v38, %v4665_v45  ;;  %v4815_v40 = vmul.f32 %v4811_v3, %v4795_v31  ;;  %v4821_v23 = vmul.f32 0.16666667, %v4817_v6 }
 0xb87   :  { %v4659_v26 = vmin.f32 %v4655_v37, 6.0  ;;  %v4829_v19 = vpack.c.bf16 %v4821_v23, %v4820_v24  ;;  %v4819_v32 = vmul.f32 0.16666667, %v4815_v40 }
 0xb88   :  { %v4646_v7 = vpop.f32.mrf.mxu3 }
 0xb89   :  { %v4647_v59 = vadd.f32 %v4646_v7, %v4612_v27  ;;  %v4663_v22 = vmul.f32 %v4659_v26, %v4645_v5  ;;  %v4814_v5 = vmul.f32 %v4810_v8, %v4793_v20  ;;  %4866 = vmatpush.bf16.msra.mxu0 %v4829_v19  ;;  %v4681_v26 = vpop.permute.xlu2 %4680 }
 0xb8b   :  { %v4652_v54 = vadd.f32 3.0, %v4647_v59  ;;  %v4667_v10 = vmul.f32 0.16666667, %v4663_v22  ;;  %v4818_v27 = vmul.f32 0.16666667, %v4814_v5 }
 0xb8d   :  { %v4656_v50 = vmax.f32 %v4652_v54, 0.0  ;;  %v4828_v37 = vpack.c.bf16 %v4819_v32, %v4818_v27  ;;  %v5718_v54 = vmov 19  }
 0xb8e   :  { %5575 = vset.pattern.permute.xlu1 %v5718_v54  ;;  %5574 = vset.pattern.permute.xlu0 %v5718_v54 }
 0xb8f   :  { %v4660_v51 = vmin.f32 %v4656_v50, 6.0  ;;  %4867 = vmatpush.bf16.msra.mxu0 %v4828_v37  ;;  %4843 = vperm.xlu1 %5575, %v8153_v0  }
 0xb90   :  { %4839 = vperm.xlu0 %5574, %v8148_v43   ;;  %5576 = vset.pattern.permute.xlu2 %v5718_v54 }
 0xb91   :  { %v4664_v57 = vmul.f32 %v4660_v51, %v4647_v59  ;;  %v4685_v59 = vpop.permute.xlu1 %4684  ;;  %4831 = vperm.xlu2 %5576, %v8235_v9  }
 0xb93   :  { %v4668_v17 = vmul.f32 0.16666667, %v4664_v57 }
 0xb95   :  { %v4674_v25 = vpack.c.bf16 %v4668_v17, %v4667_v10 }
 0xb97   :  { %4713 = vmatpush.bf16.msrb.mxu1 %v4674_v25  ;;  %4835 = vperm.xlu1 %5575, %v8177_v58   ;;  %v5327_v58 = vld [vmem:[%s8328_s6 + $0x120] sm:$0xf] }
 0xb98   :  { %v5328_v13 = vor.u32 %v5430_v62, %v5327_v58  ;;  %5578 = vset.pattern.permute.xlu0 %v5719_v63 }
 0xb99   :  { %v4677_v28 = vpop.permute.xlu1 %4676  ;;  %5577 = vset.pattern.permute.xlu2 %v5719_v63 }
 0xb9a   :  { %4907 = vperm.xlu2 %5577, %v4904_v44  }
 0xb9b   :  { %4714 = vmatpush.bf16.msrb.mxu1 %v4673_v29 }
 0xb9e   :  { %5313 = vmatmul.msk.bf16.vlgmr.msrb.gmra.mxu1 %vm1566_vm4, %v5308_v30 }
 0xbae   :  { %5314 = vmatmul.msk.bf16.gmra.mxu1 %vm1566_vm4, %v5312_v47 }
 0xbeb   :  { %v4832_v11 = vpop.permute.xlu2 %4831 }
 0xc01   :  { %v4844_v39 = vpop.permute.xlu1 %4843 }
 0xc02   :  { %v4840_v16 = vpop.permute.xlu0 %4839 }
 0xc09   :  { %v4836_v61 = vpop.permute.xlu1 %4835 }
 0xc1b   :  { %v4716_v7 = vpop.f32.mrf.mxu1 }
 0xc1c   :  { %v4717_v51 = vadd.f32 %v4716_v7, %v4677_v28 }
 0xc1e   :  { %v4726_v55 = vadd.f32 3.0, %v4717_v51 }
 0xc20   :  { %v4730_v45 = vmax.f32 %v4726_v55, 0.0  ;;  %v4901_v55 = vld [vmem:[%s8328_s6 + $0x150] sm:$0x1] }
 0xc22   :  { %v4734_v29 = vmin.f32 %v4730_v45, 6.0 }
 0xc23   :  { %v4718_v48 = vpop.f32.mrf.mxu1 }
 0xc24   :  { %v4719_v2 = vadd.f32 %v4718_v48, %v4681_v26  ;;  %v4738_v47 = vmul.f32 %v4734_v29, %v4717_v51 }
 0xc26   :  { %v4727_v57 = vadd.f32 3.0, %v4719_v2  ;;  %v4742_v21 = vmul.f32 0.16666667, %v4738_v47 }
 0xc28   :  { %v4731_v38 = vmax.f32 %v4727_v57, 0.0 }
 0xc2a   :  { %v4735_v56 = vmin.f32 %v4731_v38, 6.0 }
 0xc2b   :  { %v4721_v50 = vpop.f32.mrf.mxu1 }
 0xc2c   :  { %v4722_v22 = vadd.f32 %v4721_v50, %v4685_v59  ;;  %v4739_v46 = vmul.f32 %v4735_v56, %v4719_v2 }
 0xc2e   :  { %v4728_v41 = vadd.f32 3.0, %v4722_v22  ;;  %v4743_v15 = vmul.f32 0.16666667, %v4739_v46 }
 0xc30   :  { %v4732_v10 = vmax.f32 %v4728_v41, 0.0  ;;  %v4826_v20 = vpack.c.bf16 %v4743_v15, %v4742_v21 }
 0xc32   :  { %v4736_v53 = vmin.f32 %v4732_v10, 6.0  ;;  %v4908_v10 = vpop.permute.xlu2 %4907 }
 0xc33   :  { %v4723_v17 = vpop.f32.mrf.mxu1 }
 0xc34   :  { %v4724_v25 = vadd.f32 %v4723_v17, %v4689_v34  ;;  %v4740_v30 = vmul.f32 %v4736_v53, %v4722_v22 }
 0xc36   :  { %v4729_v0 = vadd.f32 3.0, %v4724_v25  ;;  %v4744_v42 = vmul.f32 0.16666667, %v4740_v30 }
 0xc38   :  { %v4733_v43 = vmax.f32 %v4729_v0, 0.0 }
 0xc3a   :  { %v4737_v36 = vmin.f32 %v4733_v43, 6.0 }
 0xc3c   :  { %v4741_v9 = vmul.f32 %v4737_v36, %v4724_v25 }
 0xc3e   :  { %v4745_v49 = vmul.f32 0.16666667, %v4741_v9 }
 0xc40   :  { %v4827_v33 = vpack.c.bf16 %v4745_v49, %v4744_v42 }
 0xc42   :  { %4868 = vmatpush.bf16.msra.mxu0 %v4827_v33 }
 0xc46   :  { %4869 = vmatpush.bf16.msra.mxu0 %v4826_v20 }
 0xc49   :  { %5333 = vmatmul.msk.bf16.vlgmr.msra.gmra.mxu0 %vm2849_vm5, %v5328_v13 }
 0xc59   :  { %5334 = vmatmul.msk.bf16.gmra.mxu0 %vm2849_vm5, %v5332_v14 }
 0xcc6   :  { %v4871_v60 = vpop.f32.mrf.mxu0 }
 0xcc7   :  { %v4872_v8 = vadd.f32 %v4871_v60, %v4832_v11 }
 0xcc9   :  { %v4881_v24 = vadd.f32 3.0, %v4872_v8 }
 0xccb   :  { %v4885_v19 = vmax.f32 %v4881_v24, 0.0 }
 0xccd   :  { %v4889_v34 = vmin.f32 %v4885_v19, 6.0 }
 0xcce   :  { %v4873_v31 = vpop.f32.mrf.mxu0 }
 0xccf   :  { %v4874_v35 = vadd.f32 %v4873_v31, %v4836_v61  ;;  %v4893_v28 = vmul.f32 %v4889_v34, %v4872_v8 }
 0xcd1   :  { %v4882_v52 = vadd.f32 3.0, %v4874_v35  ;;  %v4897_v41 = vmul.f32 0.16666667, %v4893_v28 }
 0xcd3   :  { %v4886_v40 = vmax.f32 %v4882_v52, 0.0 }
 0xcd5   :  { %v4890_v37 = vmin.f32 %v4886_v40, 6.0 }
 0xcd6   :  { %v4876_v4 = vpop.f32.mrf.mxu0 }
 0xcd7   :  { %v4877_v1 = vadd.f32 %v4876_v4, %v4840_v16  ;;  %v4894_v26 = vmul.f32 %v4890_v37, %v4874_v35 }
 0xcd9   :  { %v4883_v3 = vadd.f32 3.0, %v4877_v1  ;;  %v4898_v22 = vmul.f32 0.16666667, %v4894_v26 }
 0xcdb   :  { %v4887_v6 = vmax.f32 %v4883_v3, 0.0  ;;  %v4902_v57 = vpack.c.bf16 %v4898_v22, %v4897_v41 }
 0xcdd   :  { %v4891_v27 = vmin.f32 %v4887_v6, 6.0 }
 0xcde   :  { %v4878_v5 = vpop.f32.mrf.mxu0 }
 0xcdf   :  { %v4879_v23 = vadd.f32 %v4878_v5, %v4844_v39  ;;  %v4895_v59 = vmul.f32 %v4891_v27, %v4877_v1 }
 0xce1   :  { %v4884_v32 = vadd.f32 3.0, %v4879_v23  ;;  %v4899_v50 = vmul.f32 0.16666667, %v4895_v59 }
 0xce3   :  { %v4888_v7 = vmax.f32 %v4884_v32, 0.0 }
 0xce5   :  { %v4892_v48 = vmin.f32 %v4888_v7, 6.0 }
 0xce7   :  { %v4896_v54 = vmul.f32 %v4892_v48, %v4879_v23 }
 0xce9   :  { %v4900_v2 = vmul.f32 0.16666667, %v4896_v54 }
 0xceb   :  { %v4903_v51 = vpack.c.bf16 %v4900_v2, %v4899_v50 }
 0xced   :  { %4919 = vmatpush.bf16.msra.mxu3 %v4903_v51 }
 0xcf1   :  { %4920 = vmatpush.bf16.msra.mxu3 %v4902_v57 }
 0xcf4   :  { %5335 = vmatmul.msk.bf16.vlgmr.msra.gmra.mxu3 %vm1566_vm4, %v4901_v55 }
 0xd77   :  { %v4922_v17 = vpop.f32.mrf.mxu3 }
 0xd78   :  { %v4923_v38 = vadd.f32 %v4922_v17, %v4908_v10 }
 0xd7a   :  { %4927 = vst.msk [vmem:[%s8331_s7] sm:$0x3] %vm4926_vm0, %v4923_v38 }
 0xd7f   :  { %v4924_v25 = vpop.f32.mrf.mxu3 }

</bundles_post_ra>
